<compile_context>
chip_gen: v6e
topology: v6e:2x2x1
jax: 0.10.0
libtpu: 0.0.40
codegen_flags: <defaults>
</compile_context>

<pallas_src>
import jax
import jax.numpy as jnp
import numpy as np
from jax.experimental import pallas as pl
from jax.experimental.pallas import tpu as pltpu

LANE = 128      # every channel dim is padded to one full lane tile
WPAD = 8        # sublane-aligned zero columns added to each side of W (>= 1 needed)
NLAYERS = 4


def _pad_hw(a):
    """(H, W, C) -> (H+2, W+2*WPAD, C) zero 'same' padding via tile-aligned concats."""
    h, w, c = a.shape
    zw = jnp.zeros((h, WPAD, c), a.dtype)
    a = jnp.concatenate([zw, a, zw], axis=1)        # pad W (sublane axis, 8-aligned pieces)
    zh = jnp.zeros((1, a.shape[1], c), a.dtype)
    return jnp.concatenate([zh, a, zh], axis=0)     # pad H (untiled leading dim)


def _conv3x3_im2col(a, w_l, b_l):
    """3x3 'same' conv as a single (H*W, 9*LANE) @ (9*LANE, LANE) MXU matmul.

    a:   (H, W, LANE) f32 activation (channels beyond the real Cin are zero).
    w_l: (9*LANE, LANE) bf16 weights, rows ordered (dh, dw, ci).
    b_l: (1, LANE) f32 bias.
    Returns (H*W, LANE) f32 pre-activation.
    """
    h, w, c = a.shape
    ap = _pad_hw(a)                                 # (H+2, W+2*WPAD, C) f32
    # dw shift: one (possibly sublane-misaligned) slice per dw, done in f32,
    # cast to bf16 once and shared by the three dh taps.  dh shift is a free
    # leading-dim slice on the already-bf16 column.
    cols = [ap[:, WPAD - 1 + dw:WPAD - 1 + dw + w, :].astype(jnp.bfloat16)
            for dw in range(3)]
    taps = []
    for dh in range(3):
        for dw in range(3):
            taps.append(cols[dw][dh:dh + h].reshape(h * w, c))
    slab = jnp.concatenate(taps, axis=-1)           # (H*W, 9*LANE) bf16, lane-aligned
    acc = jnp.dot(slab, w_l, preferred_element_type=jnp.float32)
    return acc + b_l                                # f32 (H*W, LANE)


def _net_kernel(x_ref, w_ref, b_ref, o_ref):
    _, h, w, c = x_ref.shape
    a = x_ref[0]                                    # (H, W, LANE) f32
    for l in range(NLAYERS):
        pre = _conv3x3_im2col(a, w_ref[l], b_ref[l])
        if l + 1 < NLAYERS:
            a = pre.reshape(h, w, c)
        else:
            # lane-dense (1, H*W, 128) store; sigmoid in f32
            o_ref[...] = jax.nn.sigmoid(pre).reshape(o_ref.shape)


def _prep_params(params):
    """Stack HWIO weights/biases, zero-padded to 128 lanes.

    Returns ((4, 9*LANE, LANE) bf16, (4, 1, LANE) f32).
    """
    ws, bs = [], []
    for (w_hwio, b) in params:
        kh, kw, cin, cout = w_hwio.shape
        assert kh == 3 and kw == 3 and cin <= LANE and cout <= LANE
        wp = jnp.pad(w_hwio, ((0, 0), (0, 0), (0, LANE - cin), (0, LANE - cout)))
        ws.append(wp.reshape(kh * kw * LANE, LANE).astype(jnp.bfloat16))
        bs.append(jnp.pad(b, ((0, LANE - cout),)).reshape(1, LANE).astype(jnp.float32))
    return jnp.stack(ws), jnp.stack(bs)


def net_forward(x_nchw, params):
    """Forward pass of Net (conv1..conv4, 3x3 pad=1, then Sigmoid) -> NCHW output."""
    n, cin, h, w = x_nchw.shape
    x = jnp.transpose(x_nchw, (0, 2, 3, 1))                      # NHWC
    x = jnp.pad(x, ((0, 0), (0, 0), (0, 0), (0, LANE - cin)))    # lane-pad channels
    w_all, b_all = _prep_params(params)

    out = pl.pallas_call(
        _net_kernel,
        out_shape=jax.ShapeDtypeStruct((n, h * w, LANE), jnp.float32),
        grid_spec=pltpu.PrefetchScalarGridSpec(
            num_scalar_prefetch=0,
            grid=(n,),
            in_specs=[
                pl.BlockSpec((1, h, w, LANE), lambda i: (i, 0, 0, 0)),
                # weights/biases: constant block index -> stay VMEM-resident
                pl.BlockSpec(w_all.shape, lambda i: (0, 0, 0)),
                pl.BlockSpec(b_all.shape, lambda i: (0, 0, 0)),
            ],
            out_specs=pl.BlockSpec((1, h * w, LANE), lambda i: (i, 0, 0)),
        ),
        compiler_params=pltpu.CompilerParams(
            dimension_semantics=("parallel",)),
    )(x, w_all, b_all)

    return out[:, :, 0].reshape(n, 1, h, w)                      # NCHW, real channel 0


def init_params(key):
    """Deterministic params matching nn.Conv2d shapes (stored as HWIO)."""
    layer_dims = [(1, 32), (32, 64), (64, 64), (64, 1)]
    params = []
    for i, (cin, cout) in enumerate(layer_dims):
        kw, kb = jax.random.split(jax.random.fold_in(key, i))
        fan_in = cin * 3 * 3
        bound = 1.0 / float(np.sqrt(fan_in))   # PyTorch default conv init range
        w = jax.random.uniform(kw, (3, 3, cin, cout), jnp.float32, -bound, bound)
        b = jax.random.uniform(kb, (cout,), jnp.float32, -bound, bound)
        params.append((w, b))
    return params


def net_reference(x_nchw, params):
    """Pure-JAX reference (lax conv) for a correctness sanity check."""
    x = x_nchw
    for (w, b) in params:
        w_oihw = jnp.transpose(w, (3, 2, 0, 1))
        x = jax.lax.conv_general_dilated(
            x, w_oihw, window_strides=(1, 1), padding="SAME",
            dimension_numbers=("NCHW", "OIHW", "NCHW"))
        x = x + b.reshape(1, -1, 1, 1)
    return jax.nn.sigmoid(x)


if __name__ == "__main__":
    key = jax.random.PRNGKey(0)
    params = init_params(jax.random.fold_in(key, 1))

    # Module expects single-channel input: (N, 1, H, W).
    x = jax.random.normal(jax.random.fold_in(key, 2), (2, 1, 16, 16), jnp.float32)

    fwd = jax.jit(net_forward)
    out = jax.block_until_ready(fwd(x, params))

    assert out.shape == (2, 1, 16, 16), out.shape
    ref = net_reference(x, params)
    np.testing.assert_allclose(np.asarray(out), np.asarray(ref),
                               atol=1e-2, rtol=1e-2)
    print("KERNEL_OK")
</pallas_src>

<mosaic_0001>
module attributes {stable_mosaic.version = 11 : i64} {
  func.func @_net_kernel(%arg0: i32, %arg1: memref<1x16x16x128xf32, #tpu.memory_space<vmem>>, %arg2: memref<4x1152x128xbf16, #tpu.memory_space<vmem>>, %arg3: memref<4x1x128xf32, #tpu.memory_space<vmem>>, %arg4: memref<1x256x128xf32, #tpu.memory_space<vmem>>) attributes {dimension_semantics = [#tpu.dimension_semantics<parallel>], iteration_bounds = array<i64: 2>, scalar_prefetch = 0 : i64, scratch_operands = 0 : i64, tpu.core_type = #tpu.core_type<tc>, window_params = [{transform_indices = @transform_0, window_bounds = array<i64: 1, 16, 16, 128>}, {pipeline_mode = #tpu.pipeline_mode<synchronous>, transform_indices = @transform_1, window_bounds = array<i64: 4, 1152, 128>}, {pipeline_mode = #tpu.pipeline_mode<synchronous>, transform_indices = @transform_2, window_bounds = array<i64: 4, 1, 128>}, {transform_indices = @transform_3, window_bounds = array<i64: 1, 256, 128>}]} {
    %c0 = arith.constant 0 : index
    %c0_0 = arith.constant 0 : index
    %c0_1 = arith.constant 0 : index
    %c0_2 = arith.constant 0 : index
    %0 = vector.load %arg1[%c0, %c0_0, %c0_1, %c0_2] : memref<1x16x16x128xf32, #tpu.memory_space<vmem>>, vector<1x16x16x128xf32>
    %1 = vector.shape_cast %0 : vector<1x16x16x128xf32> to vector<16x16x128xf32>
    %c0_3 = arith.constant 0 : index
    %c0_4 = arith.constant 0 : index
    %c0_5 = arith.constant 0 : index
    %2 = vector.load %arg2[%c0_3, %c0_4, %c0_5] : memref<4x1152x128xbf16, #tpu.memory_space<vmem>>, vector<1x1152x128xbf16>
    %3 = vector.shape_cast %2 : vector<1x1152x128xbf16> to vector<1152x128xbf16>
    %c0_6 = arith.constant 0 : index
    %c0_7 = arith.constant 0 : index
    %c0_8 = arith.constant 0 : index
    %4 = vector.load %arg3[%c0_6, %c0_7, %c0_8] : memref<4x1x128xf32, #tpu.memory_space<vmem>>, vector<1x1x128xf32>
    %5 = vector.shape_cast %4 : vector<1x1x128xf32> to vector<1x128xf32>
    %cst = arith.constant 0.000000e+00 : f32
    %6 = vector.broadcast %cst : f32 to vector<16x8x128xf32>
    %7 = tpu.concatenate %6, %1, %6 in 1 : vector<16x8x128xf32>, vector<16x16x128xf32>, vector<16x8x128xf32> -> vector<16x32x128xf32>
    %cst_9 = arith.constant 0.000000e+00 : f32
    %8 = vector.broadcast %cst_9 : f32 to vector<1x32x128xf32>
    %9 = tpu.concatenate %8, %7, %8 in 0 : vector<1x32x128xf32>, vector<16x32x128xf32>, vector<1x32x128xf32> -> vector<18x32x128xf32>
    %10 = vector.extract_strided_slice %9 {offsets = [0, 7, 0], sizes = [18, 16, 128], strides = [1, 1, 1]} : vector<18x32x128xf32> to vector<18x16x128xf32>
    %11 = arith.truncf %10 : vector<18x16x128xf32> to vector<18x16x128xbf16>
    %12 = vector.extract_strided_slice %9 {offsets = [0, 8, 0], sizes = [18, 16, 128], strides = [1, 1, 1]} : vector<18x32x128xf32> to vector<18x16x128xf32>
    %13 = arith.truncf %12 : vector<18x16x128xf32> to vector<18x16x128xbf16>
    %14 = vector.extract_strided_slice %9 {offsets = [0, 9, 0], sizes = [18, 16, 128], strides = [1, 1, 1]} : vector<18x32x128xf32> to vector<18x16x128xf32>
    %15 = arith.truncf %14 : vector<18x16x128xf32> to vector<18x16x128xbf16>
    %16 = vector.extract_strided_slice %11 {offsets = [0, 0, 0], sizes = [16, 16, 128], strides = [1, 1, 1]} : vector<18x16x128xbf16> to vector<16x16x128xbf16>
    %17 = vector.shape_cast %16 : vector<16x16x128xbf16> to vector<256x128xbf16>
    %18 = vector.extract_strided_slice %13 {offsets = [0, 0, 0], sizes = [16, 16, 128], strides = [1, 1, 1]} : vector<18x16x128xbf16> to vector<16x16x128xbf16>
    %19 = vector.shape_cast %18 : vector<16x16x128xbf16> to vector<256x128xbf16>
    %20 = vector.extract_strided_slice %15 {offsets = [0, 0, 0], sizes = [16, 16, 128], strides = [1, 1, 1]} : vector<18x16x128xbf16> to vector<16x16x128xbf16>
    %21 = vector.shape_cast %20 : vector<16x16x128xbf16> to vector<256x128xbf16>
    %22 = vector.extract_strided_slice %11 {offsets = [1, 0, 0], sizes = [16, 16, 128], strides = [1, 1, 1]} : vector<18x16x128xbf16> to vector<16x16x128xbf16>
    %23 = vector.shape_cast %22 : vector<16x16x128xbf16> to vector<256x128xbf16>
    %24 = vector.extract_strided_slice %13 {offsets = [1, 0, 0], sizes = [16, 16, 128], strides = [1, 1, 1]} : vector<18x16x128xbf16> to vector<16x16x128xbf16>
    %25 = vector.shape_cast %24 : vector<16x16x128xbf16> to vector<256x128xbf16>
    %26 = vector.extract_strided_slice %15 {offsets = [1, 0, 0], sizes = [16, 16, 128], strides = [1, 1, 1]} : vector<18x16x128xbf16> to vector<16x16x128xbf16>
    %27 = vector.shape_cast %26 : vector<16x16x128xbf16> to vector<256x128xbf16>
    %28 = vector.extract_strided_slice %11 {offsets = [2, 0, 0], sizes = [16, 16, 128], strides = [1, 1, 1]} : vector<18x16x128xbf16> to vector<16x16x128xbf16>
    %29 = vector.shape_cast %28 : vector<16x16x128xbf16> to vector<256x128xbf16>
    %30 = vector.extract_strided_slice %13 {offsets = [2, 0, 0], sizes = [16, 16, 128], strides = [1, 1, 1]} : vector<18x16x128xbf16> to vector<16x16x128xbf16>
    %31 = vector.shape_cast %30 : vector<16x16x128xbf16> to vector<256x128xbf16>
    %32 = vector.extract_strided_slice %15 {offsets = [2, 0, 0], sizes = [16, 16, 128], strides = [1, 1, 1]} : vector<18x16x128xbf16> to vector<16x16x128xbf16>
    %33 = vector.shape_cast %32 : vector<16x16x128xbf16> to vector<256x128xbf16>
    %34 = tpu.concatenate %17, %19, %21, %23, %25, %27, %29, %31, %33 in 1 : vector<256x128xbf16>, vector<256x128xbf16>, vector<256x128xbf16>, vector<256x128xbf16>, vector<256x128xbf16>, vector<256x128xbf16>, vector<256x128xbf16>, vector<256x128xbf16>, vector<256x128xbf16> -> vector<256x1152xbf16>
    %cst_10 = arith.constant dense<0.000000e+00> : vector<256x128xf32>
    %35 = tpu.matmul %34, %3, %cst_10 {dimension_numbers = #tpu.dot_dimension_numbers<[1], [0], [0], [1], [0, 0, 1, 1], [], []>} : vector<256x1152xbf16>, vector<1152x128xbf16>, vector<256x128xf32> -> vector<256x128xf32>
    %36 = vector.broadcast %5 : vector<1x128xf32> to vector<256x128xf32>
    %37 = arith.addf %35, %36 : vector<256x128xf32>
    %38 = vector.shape_cast %37 : vector<256x128xf32> to vector<16x16x128xf32>
    %c1 = arith.constant 1 : index
    %c0_11 = arith.constant 0 : index
    %c0_12 = arith.constant 0 : index
    %39 = vector.load %arg2[%c1, %c0_11, %c0_12] : memref<4x1152x128xbf16, #tpu.memory_space<vmem>>, vector<1x1152x128xbf16>
    %40 = vector.shape_cast %39 : vector<1x1152x128xbf16> to vector<1152x128xbf16>
    %c1_13 = arith.constant 1 : index
    %c0_14 = arith.constant 0 : index
    %c0_15 = arith.constant 0 : index
    %41 = vector.load %arg3[%c1_13, %c0_14, %c0_15] : memref<4x1x128xf32, #tpu.memory_space<vmem>>, vector<1x1x128xf32>
    %42 = vector.shape_cast %41 : vector<1x1x128xf32> to vector<1x128xf32>
    %cst_16 = arith.constant 0.000000e+00 : f32
    %43 = vector.broadcast %cst_16 : f32 to vector<16x8x128xf32>
    %44 = tpu.concatenate %43, %38, %43 in 1 : vector<16x8x128xf32>, vector<16x16x128xf32>, vector<16x8x128xf32> -> vector<16x32x128xf32>
    %cst_17 = arith.constant 0.000000e+00 : f32
    %45 = vector.broadcast %cst_17 : f32 to vector<1x32x128xf32>
    %46 = tpu.concatenate %45, %44, %45 in 0 : vector<1x32x128xf32>, vector<16x32x128xf32>, vector<1x32x128xf32> -> vector<18x32x128xf32>
    %47 = vector.extract_strided_slice %46 {offsets = [0, 7, 0], sizes = [18, 16, 128], strides = [1, 1, 1]} : vector<18x32x128xf32> to vector<18x16x128xf32>
    %48 = arith.truncf %47 : vector<18x16x128xf32> to vector<18x16x128xbf16>
    %49 = vector.extract_strided_slice %46 {offsets = [0, 8, 0], sizes = [18, 16, 128], strides = [1, 1, 1]} : vector<18x32x128xf32> to vector<18x16x128xf32>
    %50 = arith.truncf %49 : vector<18x16x128xf32> to vector<18x16x128xbf16>
    %51 = vector.extract_strided_slice %46 {offsets = [0, 9, 0], sizes = [18, 16, 128], strides = [1, 1, 1]} : vector<18x32x128xf32> to vector<18x16x128xf32>
    %52 = arith.truncf %51 : vector<18x16x128xf32> to vector<18x16x128xbf16>
    %53 = vector.extract_strided_slice %48 {offsets = [0, 0, 0], sizes = [16, 16, 128], strides = [1, 1, 1]} : vector<18x16x128xbf16> to vector<16x16x128xbf16>
    %54 = vector.shape_cast %53 : vector<16x16x128xbf16> to vector<256x128xbf16>
    %55 = vector.extract_strided_slice %50 {offsets = [0, 0, 0], sizes = [16, 16, 128], strides = [1, 1, 1]} : vector<18x16x128xbf16> to vector<16x16x128xbf16>
    %56 = vector.shape_cast %55 : vector<16x16x128xbf16> to vector<256x128xbf16>
    %57 = vector.extract_strided_slice %52 {offsets = [0, 0, 0], sizes = [16, 16, 128], strides = [1, 1, 1]} : vector<18x16x128xbf16> to vector<16x16x128xbf16>
    %58 = vector.shape_cast %57 : vector<16x16x128xbf16> to vector<256x128xbf16>
    %59 = vector.extract_strided_slice %48 {offsets = [1, 0, 0], sizes = [16, 16, 128], strides = [1, 1, 1]} : vector<18x16x128xbf16> to vector<16x16x128xbf16>
    %60 = vector.shape_cast %59 : vector<16x16x128xbf16> to vector<256x128xbf16>
    %61 = vector.extract_strided_slice %50 {offsets = [1, 0, 0], sizes = [16, 16, 128], strides = [1, 1, 1]} : vector<18x16x128xbf16> to vector<16x16x128xbf16>
    %62 = vector.shape_cast %61 : vector<16x16x128xbf16> to vector<256x128xbf16>
    %63 = vector.extract_strided_slice %52 {offsets = [1, 0, 0], sizes = [16, 16, 128], strides = [1, 1, 1]} : vector<18x16x128xbf16> to vector<16x16x128xbf16>
    %64 = vector.shape_cast %63 : vector<16x16x128xbf16> to vector<256x128xbf16>
    %65 = vector.extract_strided_slice %48 {offsets = [2, 0, 0], sizes = [16, 16, 128], strides = [1, 1, 1]} : vector<18x16x128xbf16> to vector<16x16x128xbf16>
    %66 = vector.shape_cast %65 : vector<16x16x128xbf16> to vector<256x128xbf16>
    %67 = vector.extract_strided_slice %50 {offsets = [2, 0, 0], sizes = [16, 16, 128], strides = [1, 1, 1]} : vector<18x16x128xbf16> to vector<16x16x128xbf16>
    %68 = vector.shape_cast %67 : vector<16x16x128xbf16> to vector<256x128xbf16>
    %69 = vector.extract_strided_slice %52 {offsets = [2, 0, 0], sizes = [16, 16, 128], strides = [1, 1, 1]} : vector<18x16x128xbf16> to vector<16x16x128xbf16>
    %70 = vector.shape_cast %69 : vector<16x16x128xbf16> to vector<256x128xbf16>
    %71 = tpu.concatenate %54, %56, %58, %60, %62, %64, %66, %68, %70 in 1 : vector<256x128xbf16>, vector<256x128xbf16>, vector<256x128xbf16>, vector<256x128xbf16>, vector<256x128xbf16>, vector<256x128xbf16>, vector<256x128xbf16>, vector<256x128xbf16>, vector<256x128xbf16> -> vector<256x1152xbf16>
    %cst_18 = arith.constant dense<0.000000e+00> : vector<256x128xf32>
    %72 = tpu.matmul %71, %40, %cst_18 {dimension_numbers = #tpu.dot_dimension_numbers<[1], [0], [0], [1], [0, 0, 1, 1], [], []>} : vector<256x1152xbf16>, vector<1152x128xbf16>, vector<256x128xf32> -> vector<256x128xf32>
    %73 = vector.broadcast %42 : vector<1x128xf32> to vector<256x128xf32>
    %74 = arith.addf %72, %73 : vector<256x128xf32>
    %75 = vector.shape_cast %74 : vector<256x128xf32> to vector<16x16x128xf32>
    %c2 = arith.constant 2 : index
    %c0_19 = arith.constant 0 : index
    %c0_20 = arith.constant 0 : index
    %76 = vector.load %arg2[%c2, %c0_19, %c0_20] : memref<4x1152x128xbf16, #tpu.memory_space<vmem>>, vector<1x1152x128xbf16>
    %77 = vector.shape_cast %76 : vector<1x1152x128xbf16> to vector<1152x128xbf16>
    %c2_21 = arith.constant 2 : index
    %c0_22 = arith.constant 0 : index
    %c0_23 = arith.constant 0 : index
    %78 = vector.load %arg3[%c2_21, %c0_22, %c0_23] : memref<4x1x128xf32, #tpu.memory_space<vmem>>, vector<1x1x128xf32>
    %79 = vector.shape_cast %78 : vector<1x1x128xf32> to vector<1x128xf32>
    %cst_24 = arith.constant 0.000000e+00 : f32
    %80 = vector.broadcast %cst_24 : f32 to vector<16x8x128xf32>
    %81 = tpu.concatenate %80, %75, %80 in 1 : vector<16x8x128xf32>, vector<16x16x128xf32>, vector<16x8x128xf32> -> vector<16x32x128xf32>
    %cst_25 = arith.constant 0.000000e+00 : f32
    %82 = vector.broadcast %cst_25 : f32 to vector<1x32x128xf32>
    %83 = tpu.concatenate %82, %81, %82 in 0 : vector<1x32x128xf32>, vector<16x32x128xf32>, vector<1x32x128xf32> -> vector<18x32x128xf32>
    %84 = vector.extract_strided_slice %83 {offsets = [0, 7, 0], sizes = [18, 16, 128], strides = [1, 1, 1]} : vector<18x32x128xf32> to vector<18x16x128xf32>
    %85 = arith.truncf %84 : vector<18x16x128xf32> to vector<18x16x128xbf16>
    %86 = vector.extract_strided_slice %83 {offsets = [0, 8, 0], sizes = [18, 16, 128], strides = [1, 1, 1]} : vector<18x32x128xf32> to vector<18x16x128xf32>
    %87 = arith.truncf %86 : vector<18x16x128xf32> to vector<18x16x128xbf16>
    %88 = vector.extract_strided_slice %83 {offsets = [0, 9, 0], sizes = [18, 16, 128], strides = [1, 1, 1]} : vector<18x32x128xf32> to vector<18x16x128xf32>
    %89 = arith.truncf %88 : vector<18x16x128xf32> to vector<18x16x128xbf16>
    %90 = vector.extract_strided_slice %85 {offsets = [0, 0, 0], sizes = [16, 16, 128], strides = [1, 1, 1]} : vector<18x16x128xbf16> to vector<16x16x128xbf16>
    %91 = vector.shape_cast %90 : vector<16x16x128xbf16> to vector<256x128xbf16>
    %92 = vector.extract_strided_slice %87 {offsets = [0, 0, 0], sizes = [16, 16, 128], strides = [1, 1, 1]} : vector<18x16x128xbf16> to vector<16x16x128xbf16>
    %93 = vector.shape_cast %92 : vector<16x16x128xbf16> to vector<256x128xbf16>
    %94 = vector.extract_strided_slice %89 {offsets = [0, 0, 0], sizes = [16, 16, 128], strides = [1, 1, 1]} : vector<18x16x128xbf16> to vector<16x16x128xbf16>
    %95 = vector.shape_cast %94 : vector<16x16x128xbf16> to vector<256x128xbf16>
    %96 = vector.extract_strided_slice %85 {offsets = [1, 0, 0], sizes = [16, 16, 128], strides = [1, 1, 1]} : vector<18x16x128xbf16> to vector<16x16x128xbf16>
    %97 = vector.shape_cast %96 : vector<16x16x128xbf16> to vector<256x128xbf16>
    %98 = vector.extract_strided_slice %87 {offsets = [1, 0, 0], sizes = [16, 16, 128], strides = [1, 1, 1]} : vector<18x16x128xbf16> to vector<16x16x128xbf16>
    %99 = vector.shape_cast %98 : vector<16x16x128xbf16> to vector<256x128xbf16>
    %100 = vector.extract_strided_slice %89 {offsets = [1, 0, 0], sizes = [16, 16, 128], strides = [1, 1, 1]} : vector<18x16x128xbf16> to vector<16x16x128xbf16>
    %101 = vector.shape_cast %100 : vector<16x16x128xbf16> to vector<256x128xbf16>
    %102 = vector.extract_strided_slice %85 {offsets = [2, 0, 0], sizes = [16, 16, 128], strides = [1, 1, 1]} : vector<18x16x128xbf16> to vector<16x16x128xbf16>
    %103 = vector.shape_cast %102 : vector<16x16x128xbf16> to vector<256x128xbf16>
    %104 = vector.extract_strided_slice %87 {offsets = [2, 0, 0], sizes = [16, 16, 128], strides = [1, 1, 1]} : vector<18x16x128xbf16> to vector<16x16x128xbf16>
    %105 = vector.shape_cast %104 : vector<16x16x128xbf16> to vector<256x128xbf16>
    %106 = vector.extract_strided_slice %89 {offsets = [2, 0, 0], sizes = [16, 16, 128], strides = [1, 1, 1]} : vector<18x16x128xbf16> to vector<16x16x128xbf16>
    %107 = vector.shape_cast %106 : vector<16x16x128xbf16> to vector<256x128xbf16>
    %108 = tpu.concatenate %91, %93, %95, %97, %99, %101, %103, %105, %107 in 1 : vector<256x128xbf16>, vector<256x128xbf16>, vector<256x128xbf16>, vector<256x128xbf16>, vector<256x128xbf16>, vector<256x128xbf16>, vector<256x128xbf16>, vector<256x128xbf16>, vector<256x128xbf16> -> vector<256x1152xbf16>
    %cst_26 = arith.constant dense<0.000000e+00> : vector<256x128xf32>
    %109 = tpu.matmul %108, %77, %cst_26 {dimension_numbers = #tpu.dot_dimension_numbers<[1], [0], [0], [1], [0, 0, 1, 1], [], []>} : vector<256x1152xbf16>, vector<1152x128xbf16>, vector<256x128xf32> -> vector<256x128xf32>
    %110 = vector.broadcast %79 : vector<1x128xf32> to vector<256x128xf32>
    %111 = arith.addf %109, %110 : vector<256x128xf32>
    %112 = vector.shape_cast %111 : vector<256x128xf32> to vector<16x16x128xf32>
    %c3 = arith.constant 3 : index
    %c0_27 = arith.constant 0 : index
    %c0_28 = arith.constant 0 : index
    %113 = vector.load %arg2[%c3, %c0_27, %c0_28] : memref<4x1152x128xbf16, #tpu.memory_space<vmem>>, vector<1x1152x128xbf16>
    %114 = vector.shape_cast %113 : vector<1x1152x128xbf16> to vector<1152x128xbf16>
    %c3_29 = arith.constant 3 : index
    %c0_30 = arith.constant 0 : index
    %c0_31 = arith.constant 0 : index
    %115 = vector.load %arg3[%c3_29, %c0_30, %c0_31] : memref<4x1x128xf32, #tpu.memory_space<vmem>>, vector<1x1x128xf32>
    %116 = vector.shape_cast %115 : vector<1x1x128xf32> to vector<1x128xf32>
    %cst_32 = arith.constant 0.000000e+00 : f32
    %117 = vector.broadcast %cst_32 : f32 to vector<16x8x128xf32>
    %118 = tpu.concatenate %117, %112, %117 in 1 : vector<16x8x128xf32>, vector<16x16x128xf32>, vector<16x8x128xf32> -> vector<16x32x128xf32>
    %cst_33 = arith.constant 0.000000e+00 : f32
    %119 = vector.broadcast %cst_33 : f32 to vector<1x32x128xf32>
    %120 = tpu.concatenate %119, %118, %119 in 0 : vector<1x32x128xf32>, vector<16x32x128xf32>, vector<1x32x128xf32> -> vector<18x32x128xf32>
    %121 = vector.extract_strided_slice %120 {offsets = [0, 7, 0], sizes = [18, 16, 128], strides = [1, 1, 1]} : vector<18x32x128xf32> to vector<18x16x128xf32>
    %122 = arith.truncf %121 : vector<18x16x128xf32> to vector<18x16x128xbf16>
    %123 = vector.extract_strided_slice %120 {offsets = [0, 8, 0], sizes = [18, 16, 128], strides = [1, 1, 1]} : vector<18x32x128xf32> to vector<18x16x128xf32>
    %124 = arith.truncf %123 : vector<18x16x128xf32> to vector<18x16x128xbf16>
    %125 = vector.extract_strided_slice %120 {offsets = [0, 9, 0], sizes = [18, 16, 128], strides = [1, 1, 1]} : vector<18x32x128xf32> to vector<18x16x128xf32>
    %126 = arith.truncf %125 : vector<18x16x128xf32> to vector<18x16x128xbf16>
    %127 = vector.extract_strided_slice %122 {offsets = [0, 0, 0], sizes = [16, 16, 128], strides = [1, 1, 1]} : vector<18x16x128xbf16> to vector<16x16x128xbf16>
    %128 = vector.shape_cast %127 : vector<16x16x128xbf16> to vector<256x128xbf16>
    %129 = vector.extract_strided_slice %124 {offsets = [0, 0, 0], sizes = [16, 16, 128], strides = [1, 1, 1]} : vector<18x16x128xbf16> to vector<16x16x128xbf16>
    %130 = vector.shape_cast %129 : vector<16x16x128xbf16> to vector<256x128xbf16>
    %131 = vector.extract_strided_slice %126 {offsets = [0, 0, 0], sizes = [16, 16, 128], strides = [1, 1, 1]} : vector<18x16x128xbf16> to vector<16x16x128xbf16>
    %132 = vector.shape_cast %131 : vector<16x16x128xbf16> to vector<256x128xbf16>
    %133 = vector.extract_strided_slice %122 {offsets = [1, 0, 0], sizes = [16, 16, 128], strides = [1, 1, 1]} : vector<18x16x128xbf16> to vector<16x16x128xbf16>
    %134 = vector.shape_cast %133 : vector<16x16x128xbf16> to vector<256x128xbf16>
    %135 = vector.extract_strided_slice %124 {offsets = [1, 0, 0], sizes = [16, 16, 128], strides = [1, 1, 1]} : vector<18x16x128xbf16> to vector<16x16x128xbf16>
    %136 = vector.shape_cast %135 : vector<16x16x128xbf16> to vector<256x128xbf16>
    %137 = vector.extract_strided_slice %126 {offsets = [1, 0, 0], sizes = [16, 16, 128], strides = [1, 1, 1]} : vector<18x16x128xbf16> to vector<16x16x128xbf16>
    %138 = vector.shape_cast %137 : vector<16x16x128xbf16> to vector<256x128xbf16>
    %139 = vector.extract_strided_slice %122 {offsets = [2, 0, 0], sizes = [16, 16, 128], strides = [1, 1, 1]} : vector<18x16x128xbf16> to vector<16x16x128xbf16>
    %140 = vector.shape_cast %139 : vector<16x16x128xbf16> to vector<256x128xbf16>
    %141 = vector.extract_strided_slice %124 {offsets = [2, 0, 0], sizes = [16, 16, 128], strides = [1, 1, 1]} : vector<18x16x128xbf16> to vector<16x16x128xbf16>
    %142 = vector.shape_cast %141 : vector<16x16x128xbf16> to vector<256x128xbf16>
    %143 = vector.extract_strided_slice %126 {offsets = [2, 0, 0], sizes = [16, 16, 128], strides = [1, 1, 1]} : vector<18x16x128xbf16> to vector<16x16x128xbf16>
    %144 = vector.shape_cast %143 : vector<16x16x128xbf16> to vector<256x128xbf16>
    %145 = tpu.concatenate %128, %130, %132, %134, %136, %138, %140, %142, %144 in 1 : vector<256x128xbf16>, vector<256x128xbf16>, vector<256x128xbf16>, vector<256x128xbf16>, vector<256x128xbf16>, vector<256x128xbf16>, vector<256x128xbf16>, vector<256x128xbf16>, vector<256x128xbf16> -> vector<256x1152xbf16>
    %cst_34 = arith.constant dense<0.000000e+00> : vector<256x128xf32>
    %146 = tpu.matmul %145, %114, %cst_34 {dimension_numbers = #tpu.dot_dimension_numbers<[1], [0], [0], [1], [0, 0, 1, 1], [], []>} : vector<256x1152xbf16>, vector<1152x128xbf16>, vector<256x128xf32> -> vector<256x128xf32>
    %147 = vector.broadcast %116 : vector<1x128xf32> to vector<256x128xf32>
    %148 = arith.addf %146, %147 : vector<256x128xf32>
    %149 = arith.negf %148 : vector<256x128xf32>
    %150 = math.exp %149 : vector<256x128xf32>
    %cst_35 = arith.constant 1.000000e+00 : f32
    %151 = vector.broadcast %cst_35 : f32 to vector<256x128xf32>
    %152 = arith.addf %151, %150 : vector<256x128xf32>
    %153 = arith.divf %151, %152 : vector<256x128xf32>
    %154 = vector.shape_cast %153 : vector<256x128xf32> to vector<1x256x128xf32>
    %c0_36 = arith.constant 0 : index
    %c0_37 = arith.constant 0 : index
    %c0_38 = arith.constant 0 : index
    %155 = vector.load %arg4[%c0_36, %c0_37, %c0_38] : memref<1x256x128xf32, #tpu.memory_space<vmem>>, vector<1x256x128xf32>
    tpu.vector_store %arg4[%c0_36, %c0_37, %c0_38], %154 {strides = array<i32>} : memref<1x256x128xf32, #tpu.memory_space<vmem>>, vector<1x256x128xf32>,
    return
  }
  func.func @transform_0(%arg0: i32) -> (i32, i32, i32, i32) {
    %c0_i32 = arith.constant 0 : i32
    %c0_i32_0 = arith.constant 0 : i32
    %c0_i32_1 = arith.constant 0 : i32
    %c0_i32_2 = arith.constant 0 : i32
    return %arg0, %c0_i32, %c0_i32_0, %c0_i32_1 : i32, i32, i32, i32
  }
  func.func @transform_1(%arg0: i32) -> (i32, i32, i32) {
    %c0_i32 = arith.constant 0 : i32
    %c0_i32_0 = arith.constant 0 : i32
    %c0_i32_1 = arith.constant 0 : i32
    %c0_i32_2 = arith.constant 0 : i32
    return %c0_i32, %c0_i32_0, %c0_i32_1 : i32, i32, i32
  }
  func.func @transform_2(%arg0: i32) -> (i32, i32, i32) {
    %c0_i32 = arith.constant 0 : i32
    %c0_i32_0 = arith.constant 0 : i32
    %c0_i32_1 = arith.constant 0 : i32
    %c0_i32_2 = arith.constant 0 : i32
    return %c0_i32, %c0_i32_0, %c0_i32_1 : i32, i32, i32
  }
  func.func @transform_3(%arg0: i32) -> (i32, i32, i32) {
    %c0_i32 = arith.constant 0 : i32
    %c0_i32_0 = arith.constant 0 : i32
    %c0_i32_1 = arith.constant 0 : i32
    return %arg0, %c0_i32, %c0_i32_0 : i32, i32, i32
  }
}

</mosaic_0001>

<bundles_post_ra>
// kernel: squeeze.1
= control target key start
LH: loop header
LB: loop body
LE: loop exit
PB: predicated region body
PF: predicated region fallthrough
CT: control target
= control target key end

     0   :  { %s139_s0 = inlined_call_operand.vmem [shape: f32[2,256], index: 0, kind: input, shape index: {}]   ;;  %s140_s1 = inlined_call_operand.hbm [shape: f32[2,1,16,16], index: 1, kind: output, shape index: {}]  }
   0x1   :  { %v72_v0 = vld [vmem:[%s139_s0 + $0x2] sm:$0x3]  ;;  %v10_v1 = vld [vmem:[%s139_s0] sm:$0x3] }
   0x2   :  { %9 = vst [vmem:[#allocation2 + $0x8] sm:$0x3] %v72_v0  ;;  %11 = vst [vmem:[#allocation2] sm:$0x3] %v10_v1 }
   0x3   :  { %2 = vsyncpa [#allocation1], 0  ;;  %vm13_vm0 = vcmask 130048   ;;  %s103_s0 = smov 112   ;;  %s104_s10 = smov 80  }
   0x4   :  { %s105_s11 = smov 96   ;;  %s106_s12 = smov 64  }
   0x5   :  { %s107_s13 = smov 48   ;;  %s108_s14 = smov 32  }
   0x6   :  { %s109_s15 = smov 16   ;;  %s110_s16 = smov [#allocation0]  }
   0x7   :  { %s66_s17 = sshll.u32 %s110_s16, 4  ;;  %s67_s17 = int_to_ptr.vmem [resolvable:$true] %s66_s17 }
   0x8   :  { %s81_s18 = scalar_lea.vmem %s67_s17, 512  ;;  %p86_p1 = scmp.lt.s32.totalorder %s67_s17, %s67_s17 }
   0x9   :  { %v20_v2 = vld.sshfl [vmem:[#allocation2] sm:$0xff pattern:$0x99999180]   ;;  %p82_p0 = scmp.ne.s32.totalorder %s67_s17, %s81_s18  ;;  %p87_p2 = scmp.lt.s32.totalorder %s81_s18, %s81_s18 }
   0xa   :  { %v12_v3 = vld [vmem:[#allocation2] sm:$0x3]   ;;  %21 = vrot.lane.b32.xlu0 %v20_v2, %s103_s0  ;;  %33 = vrot.lane.b32.xlu1 %v20_v2, %s104_s10  ;;  %v16_v4 = vld [vmem:[#allocation2 + $0x8] sm:$0x3]  }
   0xb   :  { %14 = vst.msk [vmem:[#allocation0] ss:$16 sm:$0x3] %vm13_vm0, %v12_v3   ;;  %19 = vst.msk [vmem:[#allocation0 + $0x8] ss:$16 sm:$0x3] %vm13_vm0, %v16_v4   ;;  %p88_p3 = por %p87_p2, %p86_p1 }
   0xd   :  { %p89_p4 = pnand %p88_p3, %p82_p0 }
   0xe   :  { %27 = vrot.lane.b32.xlu0 %v20_v2, %s105_s11  ;;  %39 = vrot.lane.b32.xlu1 %v20_v2, %s106_s12 }
  0x12   :  { %45 = vrot.lane.b32.xlu0 %v20_v2, %s107_s13  ;;  %51 = vrot.lane.b32.xlu1 %v20_v2, %s108_s14 }
  0x16   :  { %57 = vrot.lane.b32.xlu0 %v20_v2, %s109_s15 }
  0x7c   :  { %v22_v5 = vpop.permute.xlu0 %21   ;;  %v34_v6 = vpop.permute.xlu1 %33  }
  0x7d   :  { %25 = vst.msk [vmem:[#allocation0 + $0x1] ss:$8 sm:$0xf] %vm13_vm0, %v22_v5   ;;  %37 = vst.msk [vmem:[#allocation0 + $0x3] ss:$8 sm:$0xf] %vm13_vm0, %v34_v6  }
  0x80   :  { %v28_v7 = vpop.permute.xlu0 %27   ;;  %v40_v8 = vpop.permute.xlu1 %39  }
  0x81   :  { %31 = vst.msk [vmem:[#allocation0 + $0x2] ss:$8 sm:$0xf] %vm13_vm0, %v28_v7   ;;  %43 = vst.msk [vmem:[#allocation0 + $0x4] ss:$8 sm:$0xf] %vm13_vm0, %v40_v8  }
  0x84   :  { %v46_v9 = vpop.permute.xlu0 %45   ;;  %v52_v10 = vpop.permute.xlu1 %51  }
  0x85   :  { %49 = vst.msk [vmem:[#allocation0 + $0x5] ss:$8 sm:$0xf] %vm13_vm0, %v46_v9   ;;  %55 = vst.msk [vmem:[#allocation0 + $0x6] ss:$8 sm:$0xf] %vm13_vm0, %v52_v10  }
  0x88   :  { %v58_v11 = vpop.permute.xlu0 %57  }
  0x89   :  { %61 = vst.msk [vmem:[#allocation0 + $0x7] ss:$8 sm:$0xf] %vm13_vm0, %v58_v11  }
  0x8a   :  { %92 = shalt.err (!%p89_p4)
}
  0x8b   :  { %69 = dma.vmem_to_hbm [thread:$0]  %s67_s17, 512, %s140_s1, [#allocation1]  }
  0x8c   :  { %101 = dma.done.wait [#allocation1], 512  }
  0x8d   :  { %102 = vsyncadd [#allocation1], 4294966784 }
  0x8e   :  { %71 = vsyncpa [#allocation1], 1 }

// kernel: net_forward.1
= control target key start
LH: loop header
LB: loop body
LE: loop exit
PB: predicated region body
PF: predicated region fallthrough
CT: control target
= control target key end

     0   :  { %s11288_s12 = smov 0   ;;  %s15978_s0 = inlined_call_operand.vmem [shape: f32[2,16,16,128], index: 0, kind: input, shape index: {}]   ;;  %s15979_s1 = inlined_call_operand.vmem [shape: bf16[4,1152,128], index: 1, kind: input, shape index: {}]   ;;  %s15980_s2 = inlined_call_operand.vmem [shape: f32[4,1,128], index: 2, kind: input, shape index: {}]   ;;  %s15981_s3 = inlined_call_operand.vmem [shape: f32[2,256,128], index: 3, kind: output, shape index: {}]  }
   0x1 LB: > { %s7978_s13 = sadd.s32 4294967295, %s11263_s12   ;;  %p7982_p0 = scmp.ge.s32.totalorder %s11263_s12, 1  ;;  %s11263_s12 = sphi %s11288_s12, %s13_s12  }
   0x2   : > { %p137_p1 = scmp.lt.s32.totalorder %s11263_s12, 3 }
   0x4   : > { %p138_p2 = pnand %p7982_p0, %p137_p1 }
   0x6   : > { %141 = sbr.rel (%p138_p2) target bundleno = 1968 (0x7b0), region = 32 }
   0xb   : > { %v10841_v0 = vld [vmem:[%s15979_s1 + $0x78] sm:$0xff]   ;;  %v15982_v2 = vmov 0.0|0.0   ;;  %v10845_v5 = vld [vmem:[%s15979_s1 + $0x70] sm:$0xff]   ;;  %v10849_v9 = vld [vmem:[%s15979_s1 + $0x68] sm:$0xff]   ;;  %p161_p3 = scmp.lt.s32.totalorder %s7978_s13, 1  ;;  %v11266_v27 = vmov 0  }
   0xc   : > { %v10842_v1 = vld [vmem:[%s15979_s1 + $0x38] sm:$0xff]   ;;  %1316 = vmatprep.mubr.bf16.mxu0 %v15982_v2  ;;  %8750 = vmatprep.subr.bf16.mxu0 %v10841_v0  ;;  %v10846_v6 = vld [vmem:[%s15979_s1 + $0x30] sm:$0xff]   ;;  %v10850_v10 = vld [vmem:[%s15979_s1 + $0x28] sm:$0xff]   ;;  %v402_v28 = vrot.slane %v11266_v27, 3  ;;  %v405_v30 = vrot.slane %v11266_v27, 4  ;;  %v15988_v40 = vmov 0.0  }
   0xd   : > { %v10843_v3 = vld [vmem:[%s15979_s1 + $0xf8] sm:$0xff]   ;;  %8751 = vmatpush3.bf16.msra.mxu0 %v10842_v1  ;;  %v10847_v7 = vld [vmem:[%s15979_s1 + $0xf0] sm:$0xff]   ;;  %v10851_v11 = vld [vmem:[%s15979_s1 + $0xe8] sm:$0xff]   ;;  %s16480_s13 = smov (!%p161_p3, %s7978_s13), 1  ;;  %vm398_vm0 = vsmask.f32 4352 }
   0xe   : > { %v10844_v4 = vld [vmem:[%s15979_s1 + $0xb8] sm:$0xff]   ;;  %8862 = vmatprep.subr.bf16.mxu1 %v10843_v3  ;;  %8752 = vmatprep.subr.bf16.mxu0 %v10845_v5  ;;  %v10848_v8 = vld [vmem:[%s15979_s1 + $0xb0] sm:$0xff]   ;;  %v10852_v12 = vld [vmem:[%s15979_s1 + $0xa8] sm:$0xff]   ;;  %s8748_s20 = sshll.u32 %s16480_s13, 8  ;;  %v11397_v35 = vor.u32 %v405_v30, %v402_v28  ;;  %v11422_v46 = vrot.slane %v11266_v27, 1 }
   0xf   : > { %8863 = vmatpush3.bf16.msra.mxu1 %v10844_v4  ;;  %v10853_v13 = vld [vmem:[%s15979_s1 + $0x60] sm:$0xff]   ;;  %v10857_v17 = vld [vmem:[%s15979_s1 + $0x58] sm:$0xff]   ;;  %v10861_v21 = vld [vmem:[%s15979_s1 + $0x50] sm:$0xff]   ;;  %s11404_s29 = scalar_lea.vmem %s15978_s0, %s8748_s20  ;;  %vm679_vm1 = vsmask.f32 7424 }
  0x10   : > { %8864 = vmatprep.subr.bf16.mxu1 %v10847_v7  ;;  %v10854_v14 = vld [vmem:[%s15979_s1 + $0x20] sm:$0xff]   ;;  %v10858_v18 = vld [vmem:[%s15979_s1 + $0x18] sm:$0xff]   ;;  %v10862_v22 = vld [vmem:[%s15979_s1 + $0x10] sm:$0xff]   ;;  %16087 = vst [vmem:[#allocation2_spill] sm:$0xff] %v11397_v35 }
  0x11   : > { %8753 = vmatpush3.bf16.msra.mxu0 %v10846_v6  ;;  %v10855_v15 = vld [vmem:[%s15979_s1 + $0xe0] sm:$0xff]   ;;  %v10859_v19 = vld [vmem:[%s15979_s1 + $0xd8] sm:$0xff]   ;;  %v10863_v23 = vld [vmem:[%s15979_s1 + $0xd0] sm:$0xff]   ;;  %16088 = vst [vmem:[#allocation3_spill] sm:$0xff] %v11422_v46 }
  0x12   : > { %8754 = vmatprep.subr.bf16.mxu0 %v10849_v9  ;;  %v10856_v16 = vld [vmem:[%s15979_s1 + $0xa0] sm:$0xff]   ;;  %v10860_v20 = vld [vmem:[%s15979_s1 + $0x98] sm:$0xff]   ;;  %v10864_v24 = vld [vmem:[%s15979_s1 + $0x90] sm:$0xff]  }
  0x13   : > { %8865 = vmatpush3.bf16.msra.mxu1 %v10848_v8  ;;  %v10865_v25 = vld [vmem:[%s15979_s1 + $0x48] sm:$0xff]   ;;  %v10869_v32 = vld [vmem:[%s15979_s1 + $0x40] sm:$0xff]   ;;  %v10873_v37 = vld [vmem:[%s15979_s1 + $0x178] sm:$0xff]  }
  0x14   : > { %8866 = vmatprep.subr.bf16.mxu1 %v10851_v11  ;;  %v10866_v26 = vld [vmem:[%s15979_s1 + $0x8] sm:$0xff]   ;;  %v10870_v33 = vld [vmem:[%s15979_s1] sm:$0xff]   ;;  %v10874_v43 = vld [vmem:[%s15979_s1 + $0x138] sm:$0xff]  }
  0x15   : > { %8755 = vmatpush3.bf16.msra.mxu0 %v10850_v10  ;;  %v10867_v29 = vld [vmem:[%s15979_s1 + $0xc8] sm:$0xff]   ;;  %v10871_v34 = vld [vmem:[%s15979_s1 + $0xc0] sm:$0xff]   ;;  %v174_v45 = vld [vmem:[%s11404_s29 + $0x10] sm:$0xff] }
  0x16   : > { %8756 = vmatprep.subr.bf16.mxu0 %v10853_v13  ;;  %v10868_v31 = vld [vmem:[%s15979_s1 + $0x88] sm:$0xff]   ;;  %v10872_v36 = vld [vmem:[%s15979_s1 + $0x80] sm:$0xff]   ;;  %v175_v47 = vld [vmem:[%s11404_s29 + $0x18] sm:$0xff]  ;;  %v352_v48 = vpack.c.bf16 %v174_v45, %v15988_v40 }
  0x17   : > { %8867 = vmatpush3.bf16.msra.mxu1 %v10852_v12  ;;  %v172_v38 = vld [vmem:[%s11404_s29] sm:$0xff]  ;;  %v173_v39 = vld [vmem:[%s11404_s29 + $0x8] sm:$0xff]  ;;  %v10875_v53 = vld [vmem:[%s15979_s1 + $0x170] sm:$0xff]   ;;  %v353_v54 = vpack.c.bf16 %v175_v47, %v175_v47  ;;  %v11437_v9 = vpack.c.bf16 %v175_v47, %v174_v45 }
  0x18   : > { %8868 = vmatprep.subr.bf16.mxu1 %v10855_v15  ;;  %v350_v41 = vpack.c.bf16 %v172_v38, %v15988_v40  ;;  %v351_v42 = vpack.c.bf16 %v173_v39, %v173_v39  ;;  %v11419_v44 = vpack.c.bf16 %v173_v39, %v172_v38  ;;  %v426_v55 = vshrl.u32 %v352_v48, 16  ;;  %v176_v58 = vld [vmem:[%s11404_s29 + $0x20] sm:$0xff]  ;;  %v177_v4 = vld [vmem:[%s11404_s29 + $0x28] sm:$0xff]  ;;  %v10876_v5 = vld [vmem:[%s15979_s1 + $0x130] sm:$0xff]  }
  0x19   : > { %8757 = vmatpush3.bf16.msra.mxu0 %v10854_v14  ;;  %v429_v56 = vshll.u32 %v352_v48, 16  ;;  %v434_v1 = vshrl.u32 %v353_v54, 16  ;;  %v437_v3 = vshll.u32 %v353_v54, 16  ;;  %v354_v13 = vpack.c.bf16 %v176_v58, %v15988_v40  ;;  %v10877_v14 = vld [vmem:[%s15979_s1 + $0x168] sm:$0xff]   ;;  %v180_v39 = vld [vmem:[%s11404_s29 + $0x40] sm:$0xff] }
  0x1a   : > { %8758 = vmatprep.subr.bf16.mxu0 %v10857_v17  ;;  %v409_v49 = vshrl.u32 %v350_v41, 16  ;;  %v412_v50 = vshll.u32 %v350_v41, 16  ;;  %v417_v51 = vshrl.u32 %v351_v42, 16  ;;  %v420_v52 = vshll.u32 %v351_v42, 16  ;;  %v10880_v41 = vld [vmem:[%s15979_s1 + $0x120] sm:$0xff]   ;;  %v181_v48 = vld [vmem:[%s11404_s29 + $0x48] sm:$0xff] }
  0x1b   : > { %8869 = vmatpush3.bf16.msra.mxu1 %v10856_v16  ;;  %v684_v57 = vshrl.u32 %v11419_v44, 16  ;;  %v428_v63 = vrot.slane %v426_v55, 3  ;;  %v431_v0 = vrot.slane %v429_v56, 4  ;;  %v686_v8 = vshll.u32 %v11419_v44, 16 }
  0x1c   : > { %8870 = vmatprep.subr.bf16.mxu1 %v10859_v19  ;;  %v411_v59 = vrot.slane %v409_v49, 3  ;;  %v414_v60 = vrot.slane %v412_v50, 4  ;;  %v419_v61 = vrot.slane %v417_v51, 3  ;;  %v422_v62 = vrot.slane %v420_v52, 4  ;;  %v10881_v49 = vld [vmem:[%s15979_s1 + $0x158] sm:$0xff]  }
  0x1d   : > { %8759 = vmatpush3.bf16.msra.mxu0 %v10858_v18  ;;  %v432_v10 = vor.u32 %v431_v0, %v428_v63  ;;  %v436_v11 = vrot.slane %v434_v1, 3  ;;  %v439_v12 = vrot.slane %v437_v3, 4  ;;  %v688_v16 = vrot.slane %v686_v8, 1  ;;  %v182_v3 = vld [vmem:[%s11404_s29 + $0x50] sm:$0xff] }
  0x1e   : > { %8760 = vmatprep.subr.bf16.mxu0 %v10861_v21  ;;  %v415_v6 = vor.u32 %v414_v60, %v411_v59  ;;  %v423_v7 = vor.u32 %v422_v62, %v419_v61  ;;  %v355_v17 = vpack.c.bf16 %v177_v4, %v177_v4  ;;  %v443_v19 = vshrl.u32 %v354_v13, 16 }
  0x1f   : > { %8871 = vmatpush3.bf16.msra.mxu1 %v10860_v20  ;;  %v440_v18 = vor.u32 %v439_v12, %v436_v11  ;;  %v446_v20 = vshll.u32 %v354_v13, 16  ;;  %v694_v21 = vshll.u32 %v11437_v9, 16  ;;  %v689_v28 = vor.u32 %v688_v16, %v684_v57  ;;  %v10882_v57 = vld [vmem:[%s15979_s1 + $0x118] sm:$0xff]   ;;  %v10884_v12 = vld [vmem:[%s15979_s1 + $0x110] sm:$0xff]   ;;  %v10885_v16 = vld [vmem:[%s15979_s1 + $0x148] sm:$0xff]  }
  0x20   : > { %8872 = vmatprep.subr.bf16.mxu1 %v10863_v23  ;;  %v424_v15 = vsel %vm398_vm0, %v415_v6, %v423_v7  ;;  %v11449_v23 = vld [vmem:[%s11404_s29 + $0x38] sm:$0xff]  ;;  %v358_v60 = vpack.c.bf16 %v180_v39, %v15988_v40  ;;  %v359_v61 = vpack.c.bf16 %v181_v48, %v181_v48 }
  0x21   : > { %8761 = vmatpush3.bf16.msra.mxu0 %v10862_v22  ;;  %1477 = vmatprep.mubr.bf16.mxu1 %v424_v15  ;;  %v11446_v22 = vld [vmem:[%s11404_s29 + $0x30] sm:$0xff]  ;;  %v11457_v27 = vsel %vm398_vm0, %v432_v10, %v440_v18  ;;  %v448_v30 = vrot.slane %v446_v20, 4  ;;  %v357_v38 = vpack.c.bf16 %v11449_v23, %v11449_v23  ;;  %v11480_v50 = vsel %vm679_vm1, %v689_v28, %v11422_v46 }
  0x22   : > { %8762 = vmatprep.subr.bf16.mxu0 %v10865_v25  ;;  %v451_v25 = vshrl.u32 %v355_v17, 16  ;;  %v696_v51 = vrot.slane %v694_v21, 1  ;;  %v477_v0 = vshrl.u32 %v358_v60, 16  ;;  %v480_v1 = vshll.u32 %v358_v60, 16  ;;  %v11516_v21 = vld [vmem:[%s11404_s29 + $0x60] sm:$0xff] }
  0x23   : > { %8873 = vmatpush3.bf16.msra.mxu1 %v10864_v24  ;;  %v10878_v24 = vld [vmem:[%s15979_s1 + $0x128] sm:$0xff]   ;;  %v468_v52 = vshrl.u32 %v357_v38, 16  ;;  %v485_v8 = vshrl.u32 %v359_v61, 16  ;;  %v488_v10 = vshll.u32 %v359_v61, 16  ;;  %v11528_v28 = vpack.c.bf16 %v181_v48, %v180_v39  ;;  %v10889_v39 = vld [vmem:[%s15979_s1 + $0x1f0] sm:$0xff]   ;;  %v187_v61 = vld [vmem:[%s11404_s29 + $0x78] sm:$0xff] }
  0x24   : > { %8874 = vmatprep.subr.bf16.mxu1 %v10867_v29  ;;  %v445_v29 = vrot.slane %v443_v19, 3  ;;  %v479_v18 = vrot.slane %v477_v0, 3  ;;  %v482_v19 = vrot.slane %v480_v1, 4  ;;  %v10891_v0 = vld [vmem:[%s15979_s1 + $0x1e8] sm:$0xff]  }
  0x25   : > { %8763 = vmatpush3.bf16.msra.mxu0 %v10866_v26  ;;  %v454_v26 = vshll.u32 %v355_v17, 16  ;;  %16091 = vst [vmem:[#allocation6_spill] sm:$0xff] %v11528_v28  ;;  %v718_v48 = vshll.u32 %v11528_v28, 16  ;;  %v716_v1 = vshrl.u32 %v11528_v28, 16 }
  0x26   : > { %8764 = vmatprep.subr.bf16.mxu0 %v10869_v32  ;;  %v453_v32 = vrot.slane %v451_v25, 3  ;;  %v10886_v25 = vld [vmem:[%s15979_s1 + $0x108] sm:$0xff]  }
  0x27   : > { %8875 = vmatpush3.bf16.msra.mxu1 %v10868_v31  ;;  %v10879_v31 = vld [vmem:[%s15979_s1 + $0x160] sm:$0xff]  }
  0x28   : > { %8876 = vmatprep.subr.bf16.mxu1 %v10871_v34  ;;  %v356_v34 = vpack.c.bf16 %v11446_v22, %v15988_v40 }
  0x29   : > { %8765 = vmatpush3.bf16.msra.mxu0 %v10870_v33  ;;  %v456_v33 = vrot.slane %v454_v26, 4  ;;  %v10887_v26 = vld [vmem:[%s15979_s1 + $0x1f8] sm:$0xff]  }
  0x2a   : > { %8974 = vmatprep.subr.bf16.mxu0 %v10873_v37  ;;  %v692_v37 = vshrl.u32 %v11437_v9, 16  ;;  %v460_v45 = vshrl.u32 %v356_v34, 16  ;;  %v463_v47 = vshll.u32 %v356_v34, 16 }
  0x2b   : > { %8877 = vmatpush3.bf16.msra.mxu1 %v10872_v36  ;;  %v449_v36 = vor.u32 %v448_v30, %v445_v29  ;;  %v457_v42 = vor.u32 %v456_v33, %v453_v32  ;;  %v11531_v29 = vld [vmem:[%s11404_s29 + $0x68] sm:$0xff]  ;;  %v10888_v30 = vld [vmem:[%s15979_s1 + $0x1b8] sm:$0xff]  }
  0x2c   : > { %1317 = vmatmul.mubr.bf16.vlgmr.msra.gmra.mxu0 %v11397_v35  ;;  %v462_v55 = vrot.slane %v460_v45, 3  ;;  %v465_v56 = vrot.slane %v463_v47, 4  ;;  %v697_v63 = vor.u32 %v696_v51, %v692_v37  ;;  %9086 = vmatprep.subr.bf16.mxu1 %v10887_v26  ;;  %v10890_v45 = vld [vmem:[%s15979_s1 + $0x1b0] sm:$0xff]   ;;  %v11585_v26 = vpack.c.bf16 %v11531_v29, %v11516_v21  ;;  %v201_v35 = vld [vmem:[%s11404_s29 + $0xe8] sm:$0xff] }
  0x2d   : > { %8975 = vmatpush3.bf16.msra.mxu0 %v10874_v43  ;;  %1324 = vmatprep.mubr.bf16.mxu0 %v11419_v44  ;;  %v11472_v43 = vpack.c.bf16 %v177_v4, %v176_v58  ;;  %v11483_v54 = vsel %vm398_vm0, %v449_v36, %v457_v42  ;;  %v470_v58 = vrot.slane %v468_v52, 3  ;;  %v183_v4 = vld [vmem:[%s11404_s29 + $0x58] sm:$0xff] }
  0x2e   : > { %8976 = vmatprep.subr.bf16.mxu0 %v10875_v53  ;;  %1478 = vmatmul.mubr.bf16.vlgmr.msra.gmra.mxu1 %v11422_v46  ;;  %v471_v53 = vshll.u32 %v357_v38, 16  ;;  %v466_v6 = vor.u32 %v465_v56, %v462_v55  ;;  %v11513_v17 = vsel %vm679_vm1, %v697_v63, %v11422_v46  ;;  %v361_v20 = vpack.c.bf16 %v183_v4, %v183_v4  ;;  %v186_v56 = vld [vmem:[%s11404_s29 + $0x70] sm:$0xff] }
  0x2f   : > { %1485 = vmatprep.mubr.bf16.mxu1 %v11457_v27  ;;  %v702_v62 = vshll.u32 %v11472_v43, 16  ;;  %v700_v11 = vshrl.u32 %v11472_v43, 16  ;;  %v362_v38 = vpack.c.bf16 %v11516_v21, %v15988_v40  ;;  %9087 = vmatpush3.bf16.msra.mxu1 %v10888_v30  ;;  %v11556_v55 = vpack.c.bf16 %v183_v4, %v182_v3  ;;  %16094 = vst [vmem:[#allocation9_spill] sm:$0xff] %v11585_v26 }
  0x30   : > { %v473_v59 = vrot.slane %v471_v53, 4  ;;  %v502_v36 = vshrl.u32 %v361_v20, 16  ;;  %v505_v37 = vshll.u32 %v361_v20, 16  ;;  %9088 = vmatprep.subr.bf16.mxu1 %v10889_v39  ;;  %v10894_v20 = vld [vmem:[%s15979_s1 + $0x1a0] sm:$0xff]   ;;  %v11603_v39 = vld [vmem:[%s11404_s29 + $0x98] sm:$0xff] }
  0x31   : > { %8977 = vmatpush3.bf16.msra.mxu0 %v10876_v5  ;;  %v10883_v5 = vld [vmem:[%s15979_s1 + $0x150] sm:$0xff]   ;;  %v704_v13 = vrot.slane %v702_v62, 1  ;;  %16092 = vst [vmem:[#allocation7_spill] sm:$0xff] %v11556_v55  ;;  %v511_v60 = vshrl.u32 %v362_v38, 16  ;;  %v514_v63 = vshll.u32 %v362_v38, 16  ;;  %v724_v30 = vshrl.u32 %v11556_v55, 16 }
  0x32   : > { %8978 = vmatprep.subr.bf16.mxu0 %v10877_v14  ;;  %v474_v7 = vor.u32 %v473_v59, %v470_v58  ;;  %v11505_v14 = vpack.c.bf16 %v11449_v23, %v11446_v22  ;;  %v487_v22 = vrot.slane %v485_v8, 3  ;;  %v490_v23 = vrot.slane %v488_v10, 4  ;;  %v10893_v8 = vld [vmem:[%s15979_s1 + $0x1e0] sm:$0xff]  }
  0x33   : > { %v504_v58 = vrot.slane %v502_v36, 3  ;;  %v507_v59 = vrot.slane %v505_v37, 4  ;;  %9089 = vmatpush3.bf16.msra.mxu1 %v10890_v45  ;;  %v11593_v36 = vld [vmem:[%s11404_s29 + $0x90] sm:$0xff]  ;;  %v10895_v37 = vld [vmem:[%s15979_s1 + $0x140] sm:$0xff]  }
  0x34   : > { %1325 = vmatmul.mubr.bf16.gmra.mxu0 %v424_v15  ;;  %16089 = vst [vmem:[#allocation4_spill] sm:$0xff] %v11505_v14  ;;  %v360_v15 = vpack.c.bf16 %v182_v3, %v15988_v40  ;;  %v710_v32 = vshll.u32 %v11505_v14, 16  ;;  %v491_v42 = vor.u32 %v490_v23, %v487_v22  ;;  %v708_v47 = vshrl.u32 %v11505_v14, 16  ;;  %9090 = vmatprep.subr.bf16.mxu1 %v10891_v0  ;;  %v10899_v0 = vld [vmem:[%s15979_s1 + $0x1d0] sm:$0xff]  }
  0x35   : > { %1332 = vmatprep.mubr.bf16.mxu0 %v11437_v9  ;;  %8979 = vmatpush3.bf16.msra.mxu0 %v10878_v24  ;;  %v11519_v24 = vsel %vm398_vm0, %v466_v6, %v474_v7  ;;  %v720_v3 = vrot.slane %v718_v48, 1  ;;  %v726_v6 = vshll.u32 %v11556_v55, 16  ;;  %v10892_v7 = vld [vmem:[%s15979_s1 + $0x1a8] sm:$0xff]   ;;  %v10896_v48 = vld [vmem:[%s15979_s1 + $0x100] sm:$0xff]  }
  0x36   : > { %8980 = vmatprep.subr.bf16.mxu0 %v10879_v31  ;;  %1486 = vmatmul.mubr.bf16.gmra.mxu1 %v11480_v50  ;;  %16090 = vst [vmem:[#allocation5_spill] sm:$0xff] %v11519_v24  ;;  %v705_v31 = vor.u32 %v704_v13, %v700_v11  ;;  %v494_v33 = vshrl.u32 %v360_v15, 16  ;;  %v497_v34 = vshll.u32 %v360_v15, 16  ;;  %v712_v52 = vrot.slane %v710_v32, 1  ;;  %v188_v13 = vld [vmem:[%s11404_s29 + $0x80] sm:$0xff] }
  0x37   : > { %1493 = vmatprep.mubr.bf16.mxu1 %v11483_v54  ;;  %v513_v11 = vrot.slane %v511_v60, 3  ;;  %9091 = vmatpush3.bf16.msra.mxu1 %v10892_v7  ;;  %v721_v22 = vor.u32 %v720_v3, %v716_v1  ;;  %v11588_v32 = vpack.c.bf16 %v187_v61, %v186_v56 }
  0x38   : > { %v11554_v51 = vsel %vm679_vm1, %v705_v31, %v11422_v46  ;;  %v496_v53 = vrot.slane %v494_v33, 3  ;;  %v713_v10 = vor.u32 %v712_v52, %v708_v47  ;;  %9092 = vmatprep.subr.bf16.mxu1 %v10893_v8  ;;  %v728_v31 = vrot.slane %v726_v6, 1  ;;  %v189_v33 = vld [vmem:[%s11404_s29 + $0x88] sm:$0xff] }
  0x39   : > { %8981 = vmatpush3.bf16.msra.mxu0 %v10880_v41  ;;  %v483_v41 = vor.u32 %v482_v19, %v479_v18  ;;  %v516_v18 = vrot.slane %v514_v63, 4  ;;  %v365_v19 = vpack.c.bf16 %v187_v61, %v187_v61  ;;  %16095 = vst [vmem:[#allocation10_spill] sm:$0xff] %v11588_v32  ;;  %v732_v47 = vshrl.u32 %v11585_v26, 16  ;;  %v10898_v63 = vld [vmem:[%s15979_s1 + $0x198] sm:$0xff]  }
  0x3a   : > { %8982 = vmatprep.subr.bf16.mxu0 %v10881_v49  ;;  %v363_v49 = vpack.c.bf16 %v11531_v29, %v11531_v29  ;;  %v11600_v38 = vsel %vm679_vm1, %v713_v10, %v11422_v46  ;;  %v742_v61 = vshll.u32 %v11588_v32, 16  ;;  %v369_v10 = vpack.c.bf16 %v11603_v39, %v11603_v39 }
  0x3b   : > { %v11561_v62 = vsel %vm398_vm0, %v483_v41, %v491_v42  ;;  %16096 = vst [vmem:[#allocation11_spill] sm:$0xff] %v11600_v38  ;;  %v536_v42 = vshrl.u32 %v365_v19, 16  ;;  %v539_v45 = vshll.u32 %v365_v19, 16  ;;  %9093 = vmatpush3.bf16.msra.mxu1 %v10894_v20  ;;  %v740_v20 = vshrl.u32 %v11588_v32, 16 }
  0x3c   : > { %1333 = vmatmul.mubr.bf16.gmra.mxu0 %v11457_v27  ;;  %16093 = vst [vmem:[#allocation8_spill] sm:$0xff] %v11561_v62  ;;  %v519_v4 = vshrl.u32 %v363_v49, 16 }
  0x3d   : > { %1340 = vmatprep.mubr.bf16.mxu0 %v11472_v43  ;;  %8983 = vmatpush3.bf16.msra.mxu0 %v10882_v57  ;;  %v499_v57 = vrot.slane %v497_v34, 4  ;;  %v366_v34 = vpack.c.bf16 %v188_v13, %v15988_v40  ;;  %v538_v7 = vrot.slane %v536_v42, 3  ;;  %v541_v8 = vrot.slane %v539_v45, 4 }
  0x3e   : > { %8984 = vmatprep.subr.bf16.mxu0 %v10883_v5  ;;  %1494 = vmatmul.mubr.bf16.gmra.mxu1 %v11513_v17  ;;  %v522_v5 = vshll.u32 %v363_v49, 16  ;;  %v521_v23 = vrot.slane %v519_v4, 3  ;;  %v517_v49 = vor.u32 %v516_v18, %v513_v11  ;;  %v11634_v4 = vpack.c.bf16 %v189_v33, %v188_v13  ;;  %v193_v11 = vld [vmem:[%s11404_s29 + $0xa8] sm:$0xff]  ;;  %v10900_v18 = vld [vmem:[%s15979_s1 + $0x190] sm:$0xff]  }
  0x3f   : > { %1501 = vmatprep.mubr.bf16.mxu1 %v11519_v24  ;;  %v500_v15 = vor.u32 %v499_v57, %v496_v53  ;;  %v734_v53 = vshll.u32 %v11585_v26, 16  ;;  %v11615_v57 = vld [vmem:[%s11404_s29 + $0xa0] sm:$0xff]  ;;  %v545_v60 = vshrl.u32 %v366_v34, 16  ;;  %v548_v3 = vshll.u32 %v366_v34, 16 }
  0x40   : > { %v542_v45 = vor.u32 %v541_v8, %v538_v7 }
  0x41   : > { %8985 = vmatpush3.bf16.msra.mxu0 %v10884_v12  ;;  %v364_v12 = vpack.c.bf16 %v186_v56, %v15988_v40  ;;  %v367_v56 = vpack.c.bf16 %v189_v33, %v189_v33  ;;  %v11647_v19 = vrot.slane %v545_v60, 3  ;;  %v729_v33 = vor.u32 %v728_v31, %v724_v30 }
  0x42   : > { %8986 = vmatprep.subr.bf16.mxu0 %v10885_v16  ;;  %v508_v16 = vor.u32 %v507_v59, %v504_v58  ;;  %v10897_v58 = vld [vmem:[%s15979_s1 + $0x1d8] sm:$0xff]   ;;  %v11623_v59 = vsel %vm679_vm1, %v721_v22, %v11422_v46  ;;  %v11650_v22 = vrot.slane %v742_v61, 1  ;;  %v11655_v34 = vrot.slane %v548_v3, 4 }
  0x43   : > { %v528_v21 = vshrl.u32 %v364_v12, 16  ;;  %v531_v29 = vshll.u32 %v364_v12, 16  ;;  %16098 = vst [vmem:[#allocation13_spill] sm:$0xff] %v11623_v59  ;;  %9094 = vmatprep.subr.bf16.mxu1 %v10897_v58  ;;  %v556_v13 = vshll.u32 %v367_v56, 16  ;;  %v573_v30 = vshll.u32 %v369_v10, 16  ;;  %v10902_v58 = vld [vmem:[%s15979_s1 + $0x188] sm:$0xff]  }
  0x44   : > { %1341 = vmatmul.mubr.bf16.gmra.mxu0 %v11483_v54  ;;  %v11606_v41 = vsel %vm398_vm0, %v500_v15, %v508_v16  ;;  %v736_v15 = vrot.slane %v734_v53, 1  ;;  %v553_v16 = vshrl.u32 %v367_v56, 16  ;;  %9095 = vmatpush3.bf16.msra.mxu1 %v10898_v63  ;;  %v371_v31 = vpack.c.bf16 %v193_v11, %v193_v11  ;;  %v195_v56 = vld [vmem:[%s11404_s29 + $0xb8] sm:$0xff]  ;;  %v10903_v63 = vld [vmem:[%s15979_s1 + $0x1c0] sm:$0xff]  }
  0x45   : > { %1348 = vmatprep.mubr.bf16.mxu0 %v11505_v14  ;;  %8987 = vmatpush3.bf16.msra.mxu0 %v10886_v25  ;;  %v524_v25 = vrot.slane %v522_v5, 4  ;;  %16097 = vst [vmem:[#allocation12_spill] sm:$0xff] %v11606_v41  ;;  %v530_v1 = vrot.slane %v528_v21, 3  ;;  %v368_v5 = vpack.c.bf16 %v11593_v36, %v15988_v40  ;;  %v533_v6 = vrot.slane %v531_v29, 4  ;;  %v10901_v29 = vld [vmem:[%s15979_s1 + $0x1c8] sm:$0xff]  }
  0x46   : > { %1502 = vmatmul.mubr.bf16.gmra.mxu1 %v11554_v51  ;;  %8988 = vmatprep.subr.bf16.mxu0 %v10895_v37  ;;  %v750_v21 = vshll.u32 %v11634_v4, 16  ;;  %v11664_v53 = vrot.slane %v556_v13, 4  ;;  %v737_v60 = vor.u32 %v736_v15, %v732_v47  ;;  %v11681_v3 = vpack.c.bf16 %v11603_v39, %v11593_v36  ;;  %v10904_v13 = vld [vmem:[%s15979_s1 + $0x180] sm:$0xff]  }
  0x47   : > { %1509 = vmatprep.mubr.bf16.mxu1 %v11561_v62  ;;  %v525_v52 = vor.u32 %v524_v25, %v521_v23  ;;  %v370_v23 = vpack.c.bf16 %v11615_v57, %v15988_v40  ;;  %v194_v25 = vld [vmem:[%s11404_s29 + $0xb0] sm:$0xff]  ;;  %9096 = vmatprep.subr.bf16.mxu1 %v10899_v0  ;;  %v562_v37 = vshrl.u32 %v368_v5, 16  ;;  %v534_v42 = vor.u32 %v533_v6, %v530_v1  ;;  %v196_v6 = vld [vmem:[%s11404_s29 + $0xc0] sm:$0xff] }
  0x48   : > { %9097 = vmatpush3.bf16.msra.mxu1 %v10900_v18  ;;  %v11677_v1 = vrot.slane %v750_v21, 1  ;;  %v11693_v15 = vsel %vm679_vm1, %v729_v33, %v11422_v46  ;;  %v587_v36 = vshrl.u32 %v371_v31, 16  ;;  %v590_v39 = vshll.u32 %v371_v31, 16  ;;  %v11704_v18 = vld [vmem:[%s15979_s1 + $0x238] sm:$0xff]  }
  0x49   : > { %8989 = vmatpush3.bf16.msra.mxu0 %v10896_v48  ;;  %v11642_v12 = vsel %vm398_vm0, %v517_v49, %v525_v52  ;;  %v565_v48 = vshll.u32 %v368_v5, 16  ;;  %v570_v49 = vshrl.u32 %v369_v10, 16  ;;  %v11662_v52 = vrot.slane %v553_v16, 3  ;;  %9098 = vmatprep.subr.bf16.mxu1 %v10901_v29  ;;  %16100 = vst [vmem:[#allocation15_spill] sm:$0xff] %v11693_v15  ;;  %v197_v29 = vld [vmem:[%s11404_s29 + $0xc8] sm:$0xff] }
  0x4a   : > { %16099 = vst [vmem:[#allocation14_spill] sm:$0xff] %v11642_v12  ;;  %v579_v61 = vshrl.u32 %v370_v23, 16  ;;  %v372_v5 = vpack.c.bf16 %v194_v25, %v15988_v40  ;;  %v11685_v47 = vrot.slane %v562_v37, 3  ;;  %v582_v10 = vshll.u32 %v370_v23, 16  ;;  %10638 = vmatprep.subr.bf16.mxu0 %v11704_v18 }
  0x4b   : > { %v11687_v7 = vrot.slane %v565_v48, 4  ;;  %v11689_v8 = vrot.slane %v570_v49, 3  ;;  %v11696_v16 = vsel %vm398_vm0, %v534_v42, %v542_v45  ;;  %v11706_v23 = vrot.slane %v573_v30, 4 }
  0x4c   : > { %1349 = vmatmul.mubr.bf16.gmra.mxu0 %v11519_v24  ;;  %16101 = vst [vmem:[#allocation16_spill] sm:$0xff] %v11696_v16  ;;  %9099 = vmatpush3.bf16.msra.mxu1 %v10902_v58  ;;  %v11708_v33 = vrot.slane %v579_v61, 3  ;;  %v11711_v37 = vpack.c.bf16 %v193_v11, %v11615_v57  ;;  %v373_v21 = vpack.c.bf16 %v195_v56, %v195_v56  ;;  %v758_v48 = vshll.u32 %v11681_v3, 16  ;;  %v198_v58 = vld [vmem:[%s11404_s29 + $0xd0] sm:$0xff] }
  0x4d   : > { %1356 = vmatprep.mubr.bf16.mxu0 %v11528_v28  ;;  %9100 = vmatprep.subr.bf16.mxu1 %v10903_v63  ;;  %v11716_v42 = vsel %vm679_vm1, %v737_v60, %v11422_v46  ;;  %v551_v45 = vor.u32 %v11655_v34, %v11647_v19  ;;  %v596_v49 = vshrl.u32 %v372_v5, 16  ;;  %v559_v57 = vor.u32 %v11664_v53, %v11662_v52  ;;  %v199_v63 = vld [vmem:[%s11404_s29 + $0xd8] sm:$0xff] }
  0x4e   : > { %1510 = vmatmul.mubr.bf16.gmra.mxu1 %v11600_v38  ;;  %16102 = vst [vmem:[#allocation17_spill] sm:$0xff] %v11716_v42  ;;  %v11724_v11 = vrot.slane %v582_v10, 4  ;;  %v374_v31 = vpack.c.bf16 %v196_v6, %v15988_v40  ;;  %v11730_v60 = vrot.slane %v587_v36, 3  ;;  %v11732_v19 = vrot.slane %v590_v39, 4 }
  0x4f   : > { %1517 = vmatprep.mubr.bf16.mxu1 %v11606_v41  ;;  %v599_v34 = vshll.u32 %v372_v5, 16  ;;  %v11734_v61 = vpack.c.bf16 %v195_v56, %v194_v25  ;;  %v745_v52 = vor.u32 %v11650_v22, %v740_v20  ;;  %v604_v53 = vshrl.u32 %v373_v21, 16  ;;  %v200_v22 = vld [vmem:[%s11404_s29 + $0xe0] sm:$0xff] }
  0x50   : > { %9101 = vmatpush3.bf16.msra.mxu1 %v10904_v13  ;;  %v766_v10 = vshll.u32 %v11711_v37, 16  ;;  %v375_v36 = vpack.c.bf16 %v197_v29, %v197_v29  ;;  %v11744_v5 = vrot.slane %v758_v48, 1  ;;  %v11746_v25 = vrot.slane %v596_v49, 3 }
  0x51   : > { %v607_v56 = vshll.u32 %v373_v21, 16  ;;  %v11750_v13 = vsel %vm398_vm0, %v551_v45, %v559_v57  ;;  %v613_v2 = vshrl.u32 %v374_v31, 16  ;;  %v616_v30 = vshll.u32 %v374_v31, 16 }
  0x52   : > { %v11752_v20 = vpack.c.bf16 %v197_v29, %v196_v6  ;;  %v568_v0 = vor.u32 %v11687_v7, %v11685_v47  ;;  %v11757_v48 = vrot.slane %v599_v34, 4  ;;  %v774_v49 = vshll.u32 %v11734_v61, 16  ;;  %v11773_v34 = vld [vmem:[%s11404_s29 + $0xf0] sm:$0xff] }
  0x53   : > { %v376_v21 = vpack.c.bf16 %v198_v58, %v15988_v40  ;;  %v11761_v39 = vrot.slane %v604_v53, 3  ;;  %v11763_v45 = vrot.slane %v766_v10, 1  ;;  %v621_v57 = vshrl.u32 %v375_v36, 16 }
  0x54   : > { %1357 = vmatmul.mubr.bf16.gmra.mxu0 %v11561_v62  ;;  %v377_v31 = vpack.c.bf16 %v199_v63, %v199_v63  ;;  %v576_v6 = vor.u32 %v11706_v23, %v11689_v8  ;;  %v11768_v29 = vrot.slane %v607_v56, 4  ;;  %v624_v47 = vshll.u32 %v375_v36, 16 }
  0x55   : > { %1364 = vmatprep.mubr.bf16.mxu0 %v11556_v55  ;;  %v11770_v7 = vpack.c.bf16 %v199_v63, %v198_v58  ;;  %v11777_v40 = vrot.slane %v616_v30, 4  ;;  %v782_v10 = vshll.u32 %v11752_v20, 16  ;;  %v11785_v8 = vrot.slane %v774_v49, 1 }
  0x56   : > { %1518 = vmatmul.mubr.bf16.gmra.mxu1 %v11623_v59  ;;  %v630_v23 = vshrl.u32 %v376_v21, 16  ;;  %v16103_v36 = vmov 0.0   ;;  %v379_v63 = vpack.c.bf16 %v201_v35, %v201_v35  ;;  %v633_v30 = vshll.u32 %v376_v21, 16 }
  0x57   : > { %1525 = vmatprep.mubr.bf16.mxu1 %v11642_v12  ;;  %v378_v58 = vpack.c.bf16 %v200_v22, %v16103_v36  ;;  %v638_v56 = vshrl.u32 %v377_v31, 16  ;;  %v641_v53 = vshll.u32 %v377_v31, 16  ;;  %v11795_v55 = vrot.slane %v782_v10, 1 }
  0x58   : > { %v655_v62 = vshrl.u32 %v379_v63, 16  ;;  %v11801_v21 = vsel %vm679_vm1, %v745_v52, %v11422_v46  ;;  %v658_v31 = vshll.u32 %v379_v63, 16  ;;  %v11811_v38 = vsel %vm398_vm0, %v568_v0, %v576_v6 }
  0x59   : > { %v647_v49 = vshrl.u32 %v378_v58, 16  ;;  %v640_v28 = vrot.slane %v638_v56, 3  ;;  %v643_v59 = vrot.slane %v641_v53, 4  ;;  %v11813_v63 = vpack.c.bf16 %v201_v35, %v200_v22 }
  0x5b   : > { %v11805_v10 = vrot.slane %v647_v49, 3  ;;  %v796_v35 = vshrl.u32 %v11813_v63, 16 }
  0x5c   : > { %1365 = vmatmul.mubr.bf16.gmra.mxu0 %v11606_v41  ;;  %v790_v41 = vshll.u32 %v11770_v7, 16 }
  0x5d   : > { %1372 = vmatprep.mubr.bf16.mxu0 %v11585_v26  ;;  %v626_v26 = vrot.slane %v624_v47, 4 }
  0x5e   : > { %1526 = vmatmul.mubr.bf16.gmra.mxu1 %v11693_v15  ;;  %v650_v15 = vshll.u32 %v378_v58, 16  ;;  %v788_v58 = vshrl.u32 %v11770_v7, 16  ;;  %v11808_v14 = vrot.slane %v790_v41, 1  ;;  %v16104_v41 = vshrl.u32 %v11634_v4, 16 }
  0x5f   : > { %1533 = vmatprep.mubr.bf16.mxu1 %v11696_v16 }
  0x60   : > { %v652_v52 = vrot.slane %v650_v15, 4  ;;  %v753_v0 = vor.u32 %v11677_v1, %v16104_v41  ;;  %v585_v15 = vor.u32 %v11724_v11, %v11708_v33  ;;  %v16105_v1 = vshrl.u32 %v11681_v3, 16 }
  0x61   : > { %v602_v11 = vor.u32 %v11757_v48, %v11746_v25  ;;  %v798_v48 = vshll.u32 %v11813_v63, 16  ;;  %v16108_v41 = vshrl.u32 %v11752_v20, 16 }
  0x62   : > { %v761_v33 = vor.u32 %v11744_v5, %v16105_v1  ;;  %v16106_v5 = vshrl.u32 %v11711_v37, 16  ;;  %v16115_v1 = vld [vmem:[#allocation15_spill] sm:$0xff] }
  0x64   : > { %1373 = vmatmul.mubr.bf16.gmra.mxu0 %v11642_v12  ;;  %v11782_v12 = vld [vmem:[%s11404_s29 + $0xf8] sm:$0xff]  ;;  %v769_v25 = vor.u32 %v11763_v45, %v16106_v5  ;;  %v16107_v45 = vshrl.u32 %v11734_v61, 16  ;;  %s15895_s29 = scalar_lea.vmem %s15981_s3, %s8748_s20 }
  0x65   : > { %1380 = vmatprep.mubr.bf16.mxu0 %v11588_v32  ;;  %v11775_v32 = vrot.slane %v613_v2, 3  ;;  %v11790_v2 = vrot.slane %v621_v57, 3  ;;  %v632_v57 = vrot.slane %v630_v23, 3  ;;  %v381_v47 = vpack.c.bf16 %v11782_v12, %v11782_v12  ;;  %v16119_v5 = vld [vmem:[#allocation9_spill] sm:$0xff] }
  0x66   : > { %1534 = vmatmul.mubr.bf16.gmra.mxu1 %v11716_v42  ;;  %v380_v42 = vpack.c.bf16 %v11773_v34, %v16103_v36  ;;  %v657_v23 = vrot.slane %v655_v62, 3 }
  0x67   : > { %1541 = vmatprep.mubr.bf16.mxu1 %v11750_v13  ;;  %v828_v53 = vshrl.u32 %v381_v47, 16  ;;  %v831_v49 = vshll.u32 %v381_v47, 16 }
  0x68   : > { %v820_v24 = vshrl.u32 %v380_v42, 16  ;;  %v823_v36 = vshll.u32 %v380_v42, 16  ;;  %v11831_v42 = vsel %vm679_vm1, %v753_v0, %v11422_v46 }
  0x6a   : > { %v11816_v56 = vrot.slane %v820_v24, 3  ;;  %v825_v62 = vrot.slane %v823_v36, 4  ;;  %v593_v24 = vor.u32 %v11732_v19, %v11730_v60  ;;  %v610_v60 = vor.u32 %v11768_v29, %v11761_v39 }
  0x6b   : > { %v11849_v19 = vsel %vm679_vm1, %v761_v33, %v11422_v46  ;;  %v830_v39 = vrot.slane %v828_v53, 3  ;;  %v619_v29 = vor.u32 %v11777_v40, %v11775_v32  ;;  %v627_v36 = vor.u32 %v626_v26, %v11790_v2  ;;  %v16116_v33 = vld [vmem:[#allocation7_spill] sm:$0xff] }
  0x6c   : > { %1381 = vmatmul.mubr.bf16.gmra.mxu0 %v11696_v16  ;;  %v635_v16 = vrot.slane %v633_v30, 4  ;;  %v660_v30 = vrot.slane %v658_v31, 4  ;;  %v11834_v22 = vsel %vm398_vm0, %v585_v15, %v593_v24  ;;  %v11852_v6 = vsel %vm398_vm0, %v602_v11, %v610_v60  ;;  %v16114_v24 = vld [vmem:[#allocation8_spill] sm:$0xff]  ;;  %v16118_v60 = vld [vmem:[#allocation17_spill] sm:$0xff] }
  0x6d   : > { %1388 = vmatprep.mubr.bf16.mxu0 %v11634_v4  ;;  %v11867_v31 = vsel %vm679_vm1, %v769_v25, %v11422_v46  ;;  %v11870_v47 = vsel %vm398_vm0, %v619_v29, %v627_v36  ;;  %v777_v40 = vor.u32 %v11785_v8, %v16107_v45  ;;  %v644_v32 = vor.u32 %v643_v59, %v640_v28  ;;  %v16117_v11 = vld [vmem:[#allocation12_spill] sm:$0xff]  ;;  %v16120_v25 = vld [vmem:[#allocation14_spill] sm:$0xff] }
  0x6e   : > { %1542 = vmatmul.mubr.bf16.gmra.mxu1 %v11801_v21  ;;  %v636_v26 = vor.u32 %v635_v16, %v632_v57  ;;  %v785_v16 = vor.u32 %v11795_v55, %v16108_v41  ;;  %v833_v28 = vrot.slane %v831_v49, 4  ;;  %v800_v59 = vrot.slane %v798_v48, 1  ;;  %v16122_v48 = vld [vmem:[#allocation16_spill] sm:$0xff] }
  0x6f   : > { %1549 = vmatprep.mubr.bf16.mxu1 %v11811_v38  ;;  %v11881_v2 = vsel %vm679_vm1, %v777_v40, %v11422_v46  ;;  %v653_v8 = vor.u32 %v652_v52, %v11805_v10  ;;  %v661_v57 = vor.u32 %v660_v30, %v657_v23  ;;  %v793_v55 = vor.u32 %v11808_v14, %v788_v58  ;;  %v10907_v58 = vld [vmem:[%s15979_s1 + $0x228] sm:$0xff]  }
  0x70   : > { %v11884_v53 = vsel %vm398_vm0, %v636_v26, %v644_v32  ;;  %v11896_v0 = vsel %vm679_vm1, %v785_v16, %v11422_v46  ;;  %v826_v10 = vor.u32 %v825_v62, %v11816_v56  ;;  %v834_v52 = vor.u32 %v833_v28, %v830_v39  ;;  %v16110_v56 = vld [vmem:[#allocation4_spill] sm:$0xff]  ;;  %v10912_v62 = vld [vmem:[%s15979_s1 + $0x200] sm:$0xff]  }
  0x71   : > { %v11899_v15 = vsel %vm398_vm0, %v653_v8, %v661_v57  ;;  %v11911_v23 = vpack.c.bf16 %v11782_v12, %v11773_v34  ;;  %v11915_v30 = vsel %vm679_vm1, %v793_v55, %v11422_v46  ;;  %v801_v14 = vor.u32 %v800_v59, %v796_v35  ;;  %v10906_v12 = vld [vmem:[%s15979_s1 + $0x230] sm:$0xff]   ;;  %v16113_v35 = vld [vmem:[#allocation6_spill] sm:$0xff] }
  0x72   : > { %v11918_v49 = vsel %vm398_vm0, %v826_v10, %v834_v52  ;;  %v16121_v39 = vld [vmem:[#allocation10_spill] sm:$0xff] }
  0x73   : > { %v11929_v34 = vsel %vm679_vm1, %v801_v14, %v11422_v46  ;;  %v11989_v26 = vld [vmem:[%s15980_s2] ss:$0 sm:$0xff] }
  0x74   : > { %1389 = vmatmul.mubr.bf16.gmra.mxu0 %v11750_v13 }
  0x75   : > { %1396 = vmatprep.mubr.bf16.mxu0 %v11681_v3 }
  0x76   : > { %1550 = vmatmul.mubr.bf16.gmra.mxu1 %v11831_v42 }
  0x77   : > { %1557 = vmatprep.mubr.bf16.mxu1 %v11834_v22 }
  0x7c   : > { %1397 = vmatmul.mubr.bf16.gmra.mxu0 %v11811_v38 }
  0x7d   : > { %1404 = vmatprep.mubr.bf16.mxu0 %v11711_v37 }
  0x7e   : > { %1558 = vmatmul.mubr.bf16.gmra.mxu1 %v11849_v19 }
  0x7f   : > { %1565 = vmatprep.mubr.bf16.mxu1 %v11852_v6 }
  0x84   : > { %1405 = vmatmul.mubr.bf16.gmra.mxu0 %v11834_v22 }
  0x85   : > { %1412 = vmatprep.mubr.bf16.mxu0 %v11734_v61 }
  0x86   : > { %1566 = vmatmul.mubr.bf16.gmra.mxu1 %v11867_v31 }
  0x87   : > { %1573 = vmatprep.mubr.bf16.mxu1 %v11870_v47 }
  0x8c   : > { %1413 = vmatmul.mubr.bf16.gmra.mxu0 %v11852_v6 }
  0x8d   : > { %1420 = vmatprep.mubr.bf16.mxu0 %v11752_v20 }
  0x8e   : > { %1574 = vmatmul.mubr.bf16.gmra.mxu1 %v11881_v2 }
  0x8f   : > { %1581 = vmatprep.mubr.bf16.mxu1 %v11884_v53 }
  0x94   : > { %1421 = vmatmul.mubr.bf16.gmra.mxu0 %v11870_v47 }
  0x95   : > { %1428 = vmatprep.mubr.bf16.mxu0 %v11770_v7 }
  0x96   : > { %1582 = vmatmul.mubr.bf16.gmra.mxu1 %v11896_v0 }
  0x97   : > { %1589 = vmatprep.mubr.bf16.mxu1 %v11899_v15 }
  0x9c   : > { %1429 = vmatmul.mubr.bf16.gmra.mxu0 %v11884_v53 }
  0x9d   : > { %1436 = vmatprep.mubr.bf16.mxu0 %v11813_v63 }
  0x9e   : > { %1590 = vmatmul.mubr.bf16.gmra.mxu1 %v11915_v30 }
  0x9f   : > { %1597 = vmatprep.mubr.bf16.mxu1 %v11918_v49 }
  0xa4   : > { %1437 = vmatmul.mubr.bf16.gmra.mxu0 %v11899_v15 }
  0xa5   : > { %1638 = vmatprep.mubr.bf16.mxu0 %v11480_v50  ;;  %v10908_v50 = vld [vmem:[%s15979_s1 + $0x220] sm:$0xff]  }
  0xa6   : > { %1598 = vmatmul.mubr.bf16.gmra.mxu1 %v11929_v34 }
  0xa7   : > { %1799 = vmatprep.mubr.bf16.mxu1 %v11437_v9 }
  0xac   : > { %1639 = vmatmul.mubr.bf16.vlgmr.msra.gmra.mxu0 %v11419_v44  ;;  %v10909_v44 = vld [vmem:[%s15979_s1 + $0x218] sm:$0xff]  }
  0xad   : > { %10639 = vmatpush3.bf16.msra.mxu0 %v11704_v18  ;;  %1646 = vmatprep.mubr.bf16.mxu0 %v11513_v17  ;;  %v10910_v18 = vld [vmem:[%s15979_s1 + $0x210] sm:$0xff]  }
  0xae   : > { %10640 = vmatprep.subr.bf16.mxu0 %v10906_v12  ;;  %1800 = vmatmul.mubr.bf16.vlgmr.msra.gmra.mxu1 %v11457_v27  ;;  %v10911_v27 = vld [vmem:[%s15979_s1 + $0x208] sm:$0xff]  }
  0xaf   : > { %1807 = vmatprep.mubr.bf16.mxu1 %v11472_v43 }
  0xb1   : > { %10641 = vmatpush3.bf16.msra.mxu0 %v10906_v12 }
  0xb2   : > { %10642 = vmatprep.subr.bf16.mxu0 %v10907_v58 }
  0xb4   : > { %1647 = vmatmul.mubr.bf16.gmra.mxu0 %v11437_v9  ;;  %v16109_v9 = vld [vmem:[#allocation11_spill] sm:$0xff] }
  0xb5   : > { %1654 = vmatprep.mubr.bf16.mxu0 %v11554_v51  ;;  %10643 = vmatpush3.bf16.msra.mxu0 %v10907_v58 }
  0xb6   : > { %10644 = vmatprep.subr.bf16.mxu0 %v10908_v50  ;;  %1808 = vmatmul.mubr.bf16.gmra.mxu1 %v11483_v54  ;;  %v16112_v54 = vld [vmem:[#allocation13_spill] sm:$0xff] }
  0xb7   : > { %1815 = vmatprep.mubr.bf16.mxu1 %v16110_v56 }
  0xb9   : > { %10645 = vmatpush3.bf16.msra.mxu0 %v10908_v50 }
  0xba   : > { %10646 = vmatprep.subr.bf16.mxu0 %v10909_v44 }
  0xbc   : > { %1655 = vmatmul.mubr.bf16.gmra.mxu0 %v11472_v43  ;;  %v16111_v43 = vld [vmem:[#allocation5_spill] sm:$0xff] }
  0xbd   : > { %1662 = vmatprep.mubr.bf16.mxu0 %v16109_v9  ;;  %10647 = vmatpush3.bf16.msra.mxu0 %v10909_v44 }
  0xbe   : > { %10648 = vmatprep.subr.bf16.mxu0 %v10910_v18  ;;  %1816 = vmatmul.mubr.bf16.gmra.mxu1 %v16111_v43 }
  0xbf   : > { %1823 = vmatprep.mubr.bf16.mxu1 %v16113_v35 }
  0xc1   : > { %10649 = vmatpush3.bf16.msra.mxu0 %v10910_v18  ;;  %v10913_v18 = vld [vmem:[%s15979_s1 + $0x2b8] sm:$0xff]  }
  0xc2   : > { %10650 = vmatprep.subr.bf16.mxu0 %v10911_v27  ;;  %9222 = vmatprep.subr.bf16.mxu1 %v10913_v18 }
  0xc4   : > { %1663 = vmatmul.mubr.bf16.gmra.mxu0 %v16110_v56 }
  0xc5   : > { %1670 = vmatprep.mubr.bf16.mxu0 %v16112_v54  ;;  %10651 = vmatpush3.bf16.msra.mxu0 %v10911_v27  ;;  %v10914_v27 = vld [vmem:[%s15979_s1 + $0x278] sm:$0xff]  }
  0xc6   : > { %10652 = vmatprep.subr.bf16.mxu0 %v10912_v62  ;;  %1824 = vmatmul.mubr.bf16.gmra.mxu1 %v16114_v24 }
  0xc7   : > { %1831 = vmatprep.mubr.bf16.mxu1 %v16116_v33  ;;  %9223 = vmatpush3.bf16.msra.mxu1 %v10914_v27 }
  0xc9   : > { %10653 = vmatpush3.bf16.msra.mxu0 %v10912_v62 }
  0xcc   : > { %1671 = vmatmul.mubr.bf16.gmra.mxu0 %v16113_v35 }
  0xcd   : > { %1678 = vmatprep.mubr.bf16.mxu0 %v16115_v1 }
  0xce   : > { %1832 = vmatmul.mubr.bf16.gmra.mxu1 %v16117_v11 }
  0xcf   : > { %1839 = vmatprep.mubr.bf16.mxu1 %v16119_v5 }
  0xd4   : > { %1679 = vmatmul.mubr.bf16.gmra.mxu0 %v16116_v33 }
  0xd5   : > { %1686 = vmatprep.mubr.bf16.mxu0 %v16118_v60 }
  0xd6   : > { %1840 = vmatmul.mubr.bf16.gmra.mxu1 %v16120_v25 }
  0xd7   : > { %1847 = vmatprep.mubr.bf16.mxu1 %v16121_v39 }
  0xdc   : > { %1687 = vmatmul.mubr.bf16.gmra.mxu0 %v16119_v5 }
  0xdd   : > { %1694 = vmatprep.mubr.bf16.mxu0 %v11801_v21 }
  0xde   : > { %1848 = vmatmul.mubr.bf16.gmra.mxu1 %v16122_v48 }
  0xdf   : > { %1855 = vmatprep.mubr.bf16.mxu1 %v11634_v4 }
  0xe4   : > { %1695 = vmatmul.mubr.bf16.gmra.mxu0 %v16121_v39 }
  0xe5   : > { %1702 = vmatprep.mubr.bf16.mxu0 %v11831_v42 }
  0xe6   : > { %1856 = vmatmul.mubr.bf16.gmra.mxu1 %v11750_v13 }
  0xe7   : > { %1863 = vmatprep.mubr.bf16.mxu1 %v11681_v3 }
  0xec   : > { %v8766_v29 = vpop.f32.mrf.mxu0  ;;  %1703 = vmatmul.mubr.bf16.gmra.mxu0 %v11634_v4 }
  0xed   : > { %1710 = vmatprep.mubr.bf16.mxu0 %v11849_v19 }
  0xee   : > { %v8767_v36 = vpop.f32.mrf.mxu0  ;;  %v8878_v4 = vpop.f32.mrf.mxu1  ;;  %1864 = vmatmul.mubr.bf16.gmra.mxu1 %v11811_v38 }
  0xef   : > { %v8768_v45 = vadd.f32 %v8767_v36, %v8766_v29  ;;  %1871 = vmatprep.mubr.bf16.mxu1 %v11711_v37 }
  0xf0   : > { %v8769_v40 = vpop.f32.mrf.mxu0  ;;  %v8879_v59 = vpop.f32.mrf.mxu1 }
  0xf1   : > { %v1319_v13 = vadd.f32 %v8768_v45, %v11989_v26  ;;  %v8880_v57 = vadd.f32 %v8879_v59, %v8878_v4 }
  0xf2   : > { %v8770_v32 = vpop.f32.mrf.mxu0  ;;  %v8881_v10 = vpop.f32.mrf.mxu1 }
  0xf3   : > { %v8771_v41 = vadd.f32 %v8770_v32, %v8769_v40  ;;  %v11996_v52 = vadd.f32 %v8880_v57, %v1319_v13 }
  0xf4   : > { %v8772_v16 = vpop.f32.mrf.mxu0  ;;  %1711 = vmatmul.mubr.bf16.gmra.mxu0 %v11681_v3  ;;  %v8882_v12 = vpop.f32.mrf.mxu1 }
  0xf5   : > { %1718 = vmatprep.mubr.bf16.mxu0 %v11867_v31  ;;  %v1322_v14 = vadd.f32 %v8771_v41, %v11989_v26  ;;  %v8883_v38 = vadd.f32 %v8882_v12, %v8881_v10  ;;  %v10915_v12 = vld [vmem:[%s15979_s1 + $0x2b0] sm:$0xff]  }
  0xf6   : > { %v8773_v28 = vpop.f32.mrf.mxu0  ;;  %v8884_v44 = vpop.f32.mrf.mxu1  ;;  %1872 = vmatmul.mubr.bf16.gmra.mxu1 %v11834_v22  ;;  %9224 = vmatprep.subr.bf16.mxu1 %v10915_v12  ;;  %v10917_v12 = vld [vmem:[%s15979_s1 + $0x2a8] sm:$0xff]  }
  0xf7   : > { %v8774_v8 = vadd.f32 %v8773_v28, %v8772_v16  ;;  %v12008_v56 = vadd.f32 %v8883_v38, %v1322_v14  ;;  %1879 = vmatprep.mubr.bf16.mxu1 %v11734_v61 }
  0xf8   : > { %v8775_v55 = vpop.f32.mrf.mxu0  ;;  %v8885_v43 = vpop.f32.mrf.mxu1 }
  0xf9   : > { %v1327_v62 = vadd.f32 %v8774_v8, %v11989_v26  ;;  %v8886_v22 = vadd.f32 %v8885_v43, %v8884_v44  ;;  %v840_v44 = vshll.u32 %v11911_v23, 16 }
  0xfa   : > { %v8776_v3 = vpop.f32.mrf.mxu0  ;;  %v8887_v33 = vpop.f32.mrf.mxu1 }
  0xfb   : > { %v8777_v58 = vadd.f32 %v8776_v3, %v8775_v55  ;;  %v12012_v11 = vadd.f32 %v8886_v22, %v1327_v62 }
  0xfc   : > { %v8778_v50 = vpop.f32.mrf.mxu0  ;;  %1719 = vmatmul.mubr.bf16.gmra.mxu0 %v11711_v37  ;;  %v8888_v39 = vpop.f32.mrf.mxu1 }
  0xfd   : > { %1726 = vmatprep.mubr.bf16.mxu0 %v11881_v2  ;;  %v1330_v5 = vadd.f32 %v8777_v58, %v11989_v26  ;;  %v8889_v29 = vadd.f32 %v8888_v39, %v8887_v33  ;;  %v10916_v58 = vld [vmem:[%s15979_s1 + $0x270] sm:$0xff]   ;;  %v842_v33 = vrot.slane %v840_v44, 1 }
  0xfe   : > { %v8779_v37 = vpop.f32.mrf.mxu0  ;;  %v8890_v45 = vpop.f32.mrf.mxu1  ;;  %1880 = vmatmul.mubr.bf16.gmra.mxu1 %v11852_v6 }
  0xff   : > { %v8780_v35 = vadd.f32 %v8779_v37, %v8778_v50  ;;  %v12018_v40 = vadd.f32 %v8889_v29, %v1330_v5  ;;  %1887 = vmatprep.mubr.bf16.mxu1 %v11752_v20  ;;  %9225 = vmatpush3.bf16.msra.mxu1 %v10916_v58  ;;  %v10918_v58 = vld [vmem:[%s15979_s1 + $0x268] sm:$0xff]  }
 0x100   : > { %v8781_v24 = vpop.f32.mrf.mxu0  ;;  %v8891_v16 = vpop.f32.mrf.mxu1  ;;  %9226 = vmatprep.subr.bf16.mxu1 %v10917_v12 }
 0x101   : > { %v1335_v32 = vadd.f32 %v8780_v35, %v11989_v26  ;;  %v8892_v13 = vadd.f32 %v8891_v16, %v8890_v45 }
 0x102   : > { %v8782_v25 = vpop.f32.mrf.mxu0  ;;  %v8893_v59 = vpop.f32.mrf.mxu1 }
 0x103   : > { %v8783_v48 = vadd.f32 %v8782_v25, %v8781_v24  ;;  %v12022_v8 = vadd.f32 %v8892_v13, %v1335_v32  ;;  %v838_v24 = vshrl.u32 %v11911_v23, 16  ;;  %9227 = vmatpush3.bf16.msra.mxu1 %v10918_v58 }
 0x104   : > { %v8784_v36 = vpop.f32.mrf.mxu0  ;;  %1727 = vmatmul.mubr.bf16.gmra.mxu0 %v11734_v61  ;;  %v8894_v6 = vpop.f32.mrf.mxu1 }
 0x105   : > { %1734 = vmatprep.mubr.bf16.mxu0 %v11896_v0  ;;  %v1338_v61 = vadd.f32 %v8783_v48, %v11989_v26  ;;  %v8895_v10 = vadd.f32 %v8894_v6, %v8893_v59 }
 0x106   : > { %v8785_v41 = vpop.f32.mrf.mxu0  ;;  %v8896_v3 = vpop.f32.mrf.mxu1  ;;  %1888 = vmatmul.mubr.bf16.gmra.mxu1 %v11870_v47 }
 0x107   : > { %v8786_v4 = vadd.f32 %v8785_v41, %v8784_v36  ;;  %v12034_v38 = vadd.f32 %v8895_v10, %v1338_v61  ;;  %1895 = vmatprep.mubr.bf16.mxu1 %v11770_v7  ;;  %v843_v41 = vor.u32 %v842_v33, %v838_v24 }
 0x108   : > { %v8787_v28 = vpop.f32.mrf.mxu0  ;;  %v8897_v47 = vpop.f32.mrf.mxu1 }
 0x109   : > { %v1343_v50 = vadd.f32 %v8786_v4, %v11989_v26  ;;  %v8898_v27 = vadd.f32 %v8897_v47, %v8896_v3 }
 0x10a   : > { %v8788_v57 = vpop.f32.mrf.mxu0  ;;  %v8899_v37 = vpop.f32.mrf.mxu1 }
 0x10b   : > { %v8789_v55 = vadd.f32 %v8788_v57, %v8787_v28  ;;  %v12039_v43 = vadd.f32 %v8898_v27, %v1343_v50  ;;  %v12055_v57 = vsel %vm679_vm1, %v843_v41, %v11422_v46 }
 0x10c   : > { %v8790_v14 = vpop.f32.mrf.mxu0  ;;  %1735 = vmatmul.mubr.bf16.gmra.mxu0 %v11752_v20  ;;  %v8900_v5 = vpop.f32.mrf.mxu1 }
 0x10d   : > { %1742 = vmatprep.mubr.bf16.mxu0 %v11915_v30  ;;  %v1346_v35 = vadd.f32 %v8789_v55, %v11989_v26  ;;  %v8901_v39 = vadd.f32 %v8900_v5, %v8899_v37 }
 0x10e   : > { %v8791_v20 = vpop.f32.mrf.mxu0  ;;  %v8902_v29 = vpop.f32.mrf.mxu1  ;;  %1896 = vmatmul.mubr.bf16.gmra.mxu1 %v11884_v53 }
 0x10f   : > { %v8792_v18 = vadd.f32 %v8791_v20, %v8790_v14  ;;  %v12046_v36 = vadd.f32 %v8901_v39, %v1346_v35  ;;  %1903 = vmatprep.mubr.bf16.mxu1 %v11813_v63 }
 0x110   : > { %v8793_v62 = vpop.f32.mrf.mxu0  ;;  %v8903_v16 = vpop.f32.mrf.mxu1 }
 0x111   : > { %v1351_v45 = vadd.f32 %v8792_v18, %v11989_v26  ;;  %v8904_v13 = vadd.f32 %v8903_v16, %v8902_v29  ;;  %v16123_v29 = vmov 0.0|0.0  }
 0x112   : > { %v8794_v22 = vpop.f32.mrf.mxu0  ;;  %v8905_v59 = vpop.f32.mrf.mxu1 }
 0x113   : > { %v8795_v25 = vadd.f32 %v8794_v22, %v8793_v62  ;;  %v12050_v61 = vadd.f32 %v8904_v13, %v1351_v45 }
 0x114   : > { %v8796_v48 = vpop.f32.mrf.mxu0  ;;  %1743 = vmatmul.mubr.bf16.gmra.mxu0 %v11770_v7  ;;  %v8906_v6 = vpop.f32.mrf.mxu1 }
 0x115   : > { %1750 = vmatprep.mubr.bf16.mxu0 %v11929_v34  ;;  %v1354_v7 = vadd.f32 %v8795_v25, %v11989_v26  ;;  %v8907_v10 = vadd.f32 %v8906_v6, %v8905_v59 }
 0x116   : > { %v8797_v32 = vpop.f32.mrf.mxu0  ;;  %v8908_v3 = vpop.f32.mrf.mxu1  ;;  %1904 = vmatmul.mubr.bf16.gmra.mxu1 %v11899_v15 }
 0x117   : > { %v8798_v4 = vadd.f32 %v8797_v32, %v8796_v48  ;;  %v12066_v50 = vadd.f32 %v8907_v10, %v1354_v7  ;;  %1911 = vmatprep.mubr.bf16.mxu1 %v11911_v23  ;;  %v10919_v10 = vld [vmem:[%s15979_s1 + $0x2a0] sm:$0xff]  }
 0x118   : > { %v8799_v28 = vpop.f32.mrf.mxu0  ;;  %v8909_v44 = vpop.f32.mrf.mxu1  ;;  %9228 = vmatprep.subr.bf16.mxu1 %v10919_v10 }
 0x119   : > { %v1359_v20 = vadd.f32 %v8798_v4, %v11989_v26  ;;  %v8910_v15 = vadd.f32 %v8909_v44, %v8908_v3 }
 0x11a   : > { %v8800_v53 = vpop.f32.mrf.mxu0  ;;  %v8911_v27 = vpop.f32.mrf.mxu1 }
 0x11b   : > { %v8801_v55 = vadd.f32 %v8800_v53, %v8799_v28  ;;  %v12070_v62 = vadd.f32 %v8910_v15, %v1359_v20 }
 0x11c   : > { %v8802_v14 = vpop.f32.mrf.mxu0  ;;  %1751 = vmatmul.mubr.bf16.gmra.mxu0 %v11813_v63  ;;  %v8912_v22 = vpop.f32.mrf.mxu1 }
 0x11d   : > { %1758 = vmatprep.mubr.bf16.mxu0 %v12055_v57  ;;  %v1362_v37 = vadd.f32 %v8801_v55, %v11989_v26  ;;  %v8913_v33 = vadd.f32 %v8912_v22, %v8911_v27  ;;  %v16124_v55 = vld [vmem:[#allocation2_spill] sm:$0xff] }
 0x11e   : > { %v8803_v63 = vpop.f32.mrf.mxu0  ;;  %v8914_v25 = vpop.f32.mrf.mxu1  ;;  %1912 = vmatmul.mubr.bf16.gmra.mxu1 %v11918_v49 }
 0x11f   : > { %v8804_v47 = vadd.f32 %v8803_v63, %v8802_v14  ;;  %v12076_v39 = vadd.f32 %v8913_v33, %v1362_v37  ;;  %1919 = vmatprep.mubr.bf16.mxu1 %v16123_v29  ;;  %v10920_v14 = vld [vmem:[%s15979_s1 + $0x260] sm:$0xff]  }
 0x120   : > { %v8805_v18 = vpop.f32.mrf.mxu0  ;;  %v8915_v32 = vpop.f32.mrf.mxu1  ;;  %9229 = vmatpush3.bf16.msra.mxu1 %v10920_v14 }
 0x121   : > { %v1367_v48 = vadd.f32 %v8804_v47, %v11989_v26  ;;  %v8916_v16 = vadd.f32 %v8915_v32, %v8914_v25 }
 0x122   : > { %v8806_v35 = vpop.f32.mrf.mxu0  ;;  %v8917_v13 = vpop.f32.mrf.mxu1 }
 0x123   : > { %v8807_v24 = vadd.f32 %v8806_v35, %v8805_v18  ;;  %v12080_v28 = vadd.f32 %v8916_v16, %v1367_v48 }
 0x124   : > { %v8808_v5 = vpop.f32.mrf.mxu0  ;;  %1759 = vmatmul.mubr.bf16.gmra.mxu0 %v11911_v23  ;;  %v8918_v49 = vpop.f32.mrf.mxu1 }
 0x125   : > { %10654 = vmatprep.mubr.bf16.mxu0 %v11513_v17  ;;  %v1370_v23 = vadd.f32 %v8807_v24, %v11989_v26  ;;  %v8919_v17 = vadd.f32 %v8918_v49, %v8917_v13 }
 0x126   : > { %v8809_v45 = vpop.f32.mrf.mxu0  ;;  %v8920_v6 = vpop.f32.mrf.mxu1  ;;  %1920 = vmatmul.mubr.bf16.gmra.mxu1 %v16124_v55 }
 0x127   : > { %v8810_v41 = vadd.f32 %v8809_v45, %v8808_v5  ;;  %v12092_v3 = vadd.f32 %v8919_v17, %v1370_v23  ;;  %3186 = vmatprep.mubr.bf16.mxu1 %v16123_v29  ;;  %v10921_v17 = vld [vmem:[%s15979_s1 + $0x298] sm:$0xff]  }
 0x128   : > { %v8811_v4 = vpop.f32.mrf.mxu0  ;;  %9230 = vmatprep.subr.bf16.mxu1 %v10921_v17 }
 0x129   : > { %v1375_v12 = vadd.f32 %v8810_v41, %v11989_v26 }
 0x12a   : > { %v8812_v59 = vpop.f32.mrf.mxu0 }
 0x12b   : > { %v8813_v7 = vadd.f32 %v8812_v59, %v8811_v4 }
 0x12c   : > { %v8814_v53 = vpop.f32.mrf.mxu0  ;;  %10655 = vmatmul.mubr.bf16.vlgmr.msra.gmra.mxu0 %v11554_v51  ;;  %v8921_v51 = vpop.f32.mrf.mxu1 }
 0x12d   : > { %10658 = vmatprep.mubr.bf16.mxu0 %v16109_v9  ;;  %v8922_v63 = vadd.f32 %v8921_v51, %v8920_v6  ;;  %v1378_v15 = vadd.f32 %v8813_v7, %v11989_v26 }
 0x12e   : > { %v8815_v58 = vpop.f32.mrf.mxu0  ;;  %v8923_v44 = vpop.f32.mrf.mxu1 }
 0x12f   : > { %v8816_v20 = vadd.f32 %v8815_v58, %v8814_v53  ;;  %v12096_v47 = vadd.f32 %v8922_v63, %v1375_v12  ;;  %v10922_v53 = vld [vmem:[%s15979_s1 + $0x258] sm:$0xff]  }
 0x130   : > { %v8817_v9 = vpop.f32.mrf.mxu0  ;;  %v8924_v27 = vpop.f32.mrf.mxu1  ;;  %9231 = vmatpush3.bf16.msra.mxu1 %v10922_v53 }
 0x131   : > { %v8925_v35 = vadd.f32 %v8924_v27, %v8923_v44  ;;  %v1383_v5 = vadd.f32 %v8816_v20, %v11989_v26 }
 0x132   : > { %v8818_v18 = vpop.f32.mrf.mxu0  ;;  %v8926_v24 = vpop.f32.mrf.mxu1 }
 0x133   : > { %v8819_v37 = vadd.f32 %v8818_v18, %v8817_v9  ;;  %v12101_v33 = vadd.f32 %v8925_v35, %v1378_v15 }
 0x134   : > { %v8820_v22 = vpop.f32.mrf.mxu0  ;;  %10659 = vmatmul.mubr.bf16.gmra.mxu0 %v16112_v54  ;;  %v8927_v48 = vpop.f32.mrf.mxu1 }
 0x135   : > { %10662 = vmatprep.mubr.bf16.mxu0 %v16115_v1  ;;  %v8928_v32 = vadd.f32 %v8927_v48, %v8926_v24  ;;  %v1386_v13 = vadd.f32 %v8819_v37, %v11989_v26 }
 0x136   : > { %v8821_v25 = vpop.f32.mrf.mxu0  ;;  %v8929_v16 = vpop.f32.mrf.mxu1 }
 0x137   : > { %v8822_v45 = vadd.f32 %v8821_v25, %v8820_v22  ;;  %v12104_v4 = vadd.f32 %v8928_v32, %v1383_v5 }
 0x138   : > { %v8823_v41 = vpop.f32.mrf.mxu0  ;;  %v8930_v59 = vpop.f32.mrf.mxu1 }
 0x139   : > { %v8931_v49 = vadd.f32 %v8930_v59, %v8929_v16  ;;  %v1391_v10 = vadd.f32 %v8822_v45, %v11989_v26 }
 0x13a   : > { %v8824_v23 = vpop.f32.mrf.mxu0  ;;  %v8932_v1 = vpop.f32.mrf.mxu1 }
 0x13b   : > { %v8825_v54 = vadd.f32 %v8824_v23, %v8823_v41  ;;  %v12115_v6 = vadd.f32 %v8931_v49, %v1386_v13  ;;  %v10923_v49 = vld [vmem:[%s15979_s1 + $0x290] sm:$0xff]  }
 0x13c   : > { %v8826_v7 = vpop.f32.mrf.mxu0  ;;  %10663 = vmatmul.mubr.bf16.gmra.mxu0 %v16118_v60  ;;  %v8933_v12 = vpop.f32.mrf.mxu1  ;;  %9232 = vmatprep.subr.bf16.mxu1 %v10923_v49 }
 0x13d   : > { %10666 = vmatprep.mubr.bf16.mxu0 %v11801_v21  ;;  %v8934_v60 = vadd.f32 %v8933_v12, %v8932_v1  ;;  %v1394_v63 = vadd.f32 %v8825_v54, %v11989_v26 }
 0x13e   : > { %v8827_v14 = vpop.f32.mrf.mxu0  ;;  %v8935_v21 = vpop.f32.mrf.mxu1 }
 0x13f   : > { %v8828_v58 = vadd.f32 %v8827_v14, %v8826_v7  ;;  %v12118_v20 = vadd.f32 %v8934_v60, %v1391_v10  ;;  %v10924_v7 = vld [vmem:[%s15979_s1 + $0x250] sm:$0xff]  }
 0x140   : > { %v8829_v51 = vpop.f32.mrf.mxu0  ;;  %v8936_v44 = vpop.f32.mrf.mxu1  ;;  %9233 = vmatpush3.bf16.msra.mxu1 %v10924_v7 }
 0x141   : > { %v8937_v18 = vadd.f32 %v8936_v44, %v8935_v21  ;;  %v1399_v22 = vadd.f32 %v8828_v58, %v11989_v26 }
 0x142   : > { %v8830_v9 = vpop.f32.mrf.mxu0  ;;  %v8938_v37 = vpop.f32.mrf.mxu1 }
 0x143   : > { %v8831_v15 = vadd.f32 %v8830_v9, %v8829_v51  ;;  %v12123_v35 = vadd.f32 %v8937_v18, %v1394_v63 }
 0x144   : > { %v8832_v27 = vpop.f32.mrf.mxu0  ;;  %10667 = vmatmul.mubr.bf16.gmra.mxu0 %v11831_v42  ;;  %v8939_v5 = vpop.f32.mrf.mxu1 }
 0x145   : > { %10670 = vmatprep.mubr.bf16.mxu0 %v11849_v19  ;;  %v8940_v48 = vadd.f32 %v8939_v5, %v8938_v37  ;;  %v1402_v16 = vadd.f32 %v8831_v15, %v11989_v26 }
 0x146   : > { %v8833_v24 = vpop.f32.mrf.mxu0  ;;  %v8941_v32 = vpop.f32.mrf.mxu1 }
 0x147   : > { %v8834_v25 = vadd.f32 %v8833_v24, %v8832_v27  ;;  %v12126_v41 = vadd.f32 %v8940_v48, %v1399_v22 }
 0x148   : > { %v8835_v45 = vpop.f32.mrf.mxu0  ;;  %v8942_v23 = vpop.f32.mrf.mxu1 }
 0x149   : > { %v8943_v59 = vadd.f32 %v8942_v23, %v8941_v32  ;;  %v1407_v17 = vadd.f32 %v8834_v25, %v11989_v26 }
 0x14a   : > { %v8836_v13 = vpop.f32.mrf.mxu0  ;;  %v8944_v19 = vpop.f32.mrf.mxu1 }
 0x14b   : > { %v8837_v42 = vadd.f32 %v8836_v13, %v8835_v45  ;;  %v12137_v1 = vadd.f32 %v8943_v59, %v1402_v16  ;;  %v10926_v59 = vld [vmem:[%s15979_s1 + $0x248] sm:$0xff]  }
 0x14c   : > { %v8838_v54 = vpop.f32.mrf.mxu0  ;;  %10671 = vmatmul.mubr.bf16.gmra.mxu0 %v11867_v31  ;;  %v8945_v10 = vpop.f32.mrf.mxu1 }
 0x14d   : > { %10674 = vmatprep.mubr.bf16.mxu0 %v11881_v2  ;;  %v8946_v31 = vadd.f32 %v8945_v10, %v8944_v19  ;;  %v1410_v60 = vadd.f32 %v8837_v42, %v11989_v26  ;;  %v10925_v42 = vld [vmem:[%s15979_s1 + $0x288] sm:$0xff]  }
 0x14e   : > { %v8839_v53 = vpop.f32.mrf.mxu0  ;;  %v8947_v2 = vpop.f32.mrf.mxu1  ;;  %9234 = vmatprep.subr.bf16.mxu1 %v10925_v42 }
 0x14f   : > { %v8840_v14 = vadd.f32 %v8839_v53, %v8838_v54  ;;  %v12140_v58 = vadd.f32 %v8946_v31, %v1407_v17  ;;  %9235 = vmatpush3.bf16.msra.mxu1 %v10926_v59 }
 0x150   : > { %v8841_v12 = vpop.f32.mrf.mxu0  ;;  %v8948_v21 = vpop.f32.mrf.mxu1 }
 0x151   : > { %v8949_v63 = vadd.f32 %v8948_v21, %v8947_v2  ;;  %v1415_v18 = vadd.f32 %v8840_v14, %v11989_v26  ;;  %v10927_v21 = vld [vmem:[%s15979_s1 + $0x338] sm:$0xff]  }
 0x152   : > { %v8842_v51 = vpop.f32.mrf.mxu0  ;;  %v8950_v44 = vpop.f32.mrf.mxu1  ;;  %9334 = vmatprep.subr.bf16.mxu0 %v10927_v21  ;;  %v10935_v21 = vld [vmem:[%s15979_s1 + $0x320] sm:$0xff]  }
 0x153   : > { %v12145_v15 = vadd.f32 %v8949_v63, %v1410_v60  ;;  %v8843_v27 = vadd.f32 %v8842_v51, %v8841_v12 }
 0x154   : > { %v8844_v9 = vpop.f32.mrf.mxu0  ;;  %10675 = vmatmul.mubr.bf16.gmra.mxu0 %v11896_v0  ;;  %v8951_v22 = vpop.f32.mrf.mxu1 }
 0x155   : > { %10678 = vmatprep.mubr.bf16.mxu0 %v11915_v30  ;;  %v8952_v5 = vadd.f32 %v8951_v22, %v8950_v44  ;;  %v1418_v32 = vadd.f32 %v8843_v27, %v11989_v26 }
 0x156   : > { %v8845_v37 = vpop.f32.mrf.mxu0  ;;  %v8953_v48 = vpop.f32.mrf.mxu1 }
 0x157   : > { %v8846_v24 = vadd.f32 %v8845_v37, %v8844_v9  ;;  %v12148_v45 = vadd.f32 %v8952_v5, %v1415_v18  ;;  %v10928_v9 = vld [vmem:[%s15979_s1 + $0x2f8] sm:$0xff]  }
 0x158   : > { %v8847_v25 = vpop.f32.mrf.mxu0  ;;  %v8954_v0 = vpop.f32.mrf.mxu1  ;;  %9335 = vmatpush3.bf16.msra.mxu0 %v10928_v9 }
 0x159   : > { %v8955_v13 = vadd.f32 %v8954_v0, %v8953_v48  ;;  %v1423_v19 = vadd.f32 %v8846_v24, %v11989_v26  ;;  %v10929_v48 = vld [vmem:[%s15979_s1 + $0x330] sm:$0xff]  }
 0x15a   : > { %v8848_v16 = vpop.f32.mrf.mxu0  ;;  %v8956_v30 = vpop.f32.mrf.mxu1  ;;  %9336 = vmatprep.subr.bf16.mxu0 %v10929_v48 }
 0x15b   : > { %v12159_v54 = vadd.f32 %v8955_v13, %v1418_v32  ;;  %v8849_v49 = vadd.f32 %v8848_v16, %v8847_v25  ;;  %v10930_v16 = vld [vmem:[%s15979_s1 + $0x2f0] sm:$0xff]  }
 0x15c   : > { %v8850_v23 = vpop.f32.mrf.mxu0  ;;  %10679 = vmatmul.mubr.bf16.gmra.mxu0 %v11929_v34  ;;  %v8957_v17 = vpop.f32.mrf.mxu1 }
 0x15d   : > { %10682 = vmatprep.mubr.bf16.mxu0 %v12055_v57  ;;  %v8958_v34 = vadd.f32 %v8957_v17, %v8956_v30  ;;  %v1426_v31 = vadd.f32 %v8849_v49, %v11989_v26  ;;  %9337 = vmatpush3.bf16.msra.mxu0 %v10930_v16  ;;  %v10932_v17 = vld [vmem:[%s15979_s1 + $0x240] sm:$0xff]  }
 0x15e   : > { %v8851_v7 = vpop.f32.mrf.mxu0  ;;  %v8959_v57 = vpop.f32.mrf.mxu1 }
 0x15f   : > { %v8852_v53 = vadd.f32 %v8851_v7, %v8850_v23  ;;  %v12162_v14 = vadd.f32 %v8958_v34, %v1423_v19  ;;  %v10933_v19 = vld [vmem:[%s15979_s1 + $0x328] sm:$0xff]   ;;  %v10931_v7 = vld [vmem:[%s15979_s1 + $0x280] sm:$0xff]  }
 0x160   : > { %v8853_v10 = vpop.f32.mrf.mxu0  ;;  %v8960_v2 = vpop.f32.mrf.mxu1  ;;  %9338 = vmatprep.subr.bf16.mxu0 %v10933_v19  ;;  %9236 = vmatprep.subr.bf16.mxu1 %v10931_v7  ;;  %v10939_v19 = vld [vmem:[%s15979_s1 + $0x310] sm:$0xff]  }
 0x161   : > { %v8961_v60 = vadd.f32 %v8960_v2, %v8959_v57  ;;  %v1431_v18 = vadd.f32 %v8852_v53, %v11989_v26  ;;  %v10934_v53 = vld [vmem:[%s15979_s1 + $0x2e8] sm:$0xff]   ;;  %9237 = vmatpush3.bf16.msra.mxu1 %v10932_v17  ;;  %v10940_v7 = vld [vmem:[%s15979_s1 + $0x2d0] sm:$0xff]  }
 0x162   : > { %v8854_v12 = vpop.f32.mrf.mxu0  ;;  %v8962_v63 = vpop.f32.mrf.mxu1  ;;  %9339 = vmatpush3.bf16.msra.mxu0 %v10934_v53 }
 0x163   : > { %v12172_v44 = vadd.f32 %v8961_v60, %v1426_v31  ;;  %v8855_v27 = vadd.f32 %v8854_v12, %v8853_v10  ;;  %9340 = vmatprep.subr.bf16.mxu0 %v10935_v21 }
 0x164   : > { %v8856_v51 = vpop.f32.mrf.mxu0  ;;  %10683 = vmatmul.mubr.bf16.gmra.mxu0 %v11422_v46  ;;  %v8963_v22 = vpop.f32.mrf.mxu1  ;;  %3187 = vmatmul.mubr.bf16.vlgmr.msra.gmra.mxu1 %v16124_v55 }
 0x165   : > { %v8964_v5 = vadd.f32 %v8963_v22, %v8962_v63  ;;  %v1434_v13 = vadd.f32 %v8855_v27, %v11989_v26 }
 0x166   : > { %v8857_v37 = vpop.f32.mrf.mxu0  ;;  %v8965_v32 = vpop.f32.mrf.mxu1 }
 0x167   : > { %v8858_v24 = vadd.f32 %v8857_v37, %v8856_v51  ;;  %v12181_v0 = vadd.f32 %v8964_v5, %v1431_v18  ;;  %v10936_v18 = vld [vmem:[%s15979_s1 + $0x2e0] sm:$0xff]  }
 0x168   : > { %v8859_v25 = vpop.f32.mrf.mxu0  ;;  %v8966_v30 = vpop.f32.mrf.mxu1  ;;  %9341 = vmatpush3.bf16.msra.mxu0 %v10936_v18 }
 0x169   : > { %v8967_v42 = vadd.f32 %v8966_v30, %v8965_v32  ;;  %v1439_v10 = vadd.f32 %v8858_v24, %v11989_v26 }
 0x16a   : > { %v8860_v23 = vpop.f32.mrf.mxu0  ;;  %v8968_v49 = vpop.f32.mrf.mxu1 }
 0x16b   : > { %v12196_v34 = vadd.f32 %v8967_v42, %v1434_v13  ;;  %v8861_v57 = vadd.f32 %v8860_v23, %v8859_v25 }
 0x16c   : > { %v8990_v59 = vpop.f32.mrf.mxu0  ;;  %v8969_v12 = vpop.f32.mrf.mxu1 }
 0x16d   : > { %v8970_v60 = vadd.f32 %v8969_v12, %v8968_v49  ;;  %v1442_v37 = vadd.f32 %v8861_v57, %v11989_v26  ;;  %v10938_v26 = vld [vmem:[%s15979_s1 + $0x2d8] sm:$0xff]  }
 0x16e   : > { %v8991_v31 = vpop.f32.mrf.mxu0  ;;  %v8971_v63 = vpop.f32.mrf.mxu1 }
 0x16f   : > { %v8992_v2 = vadd.f32 %v8991_v31, %v8990_v59  ;;  %v12208_v27 = vadd.f32 %v8970_v60, %v1439_v10  ;;  %v10942_v31 = vld [vmem:[%s15979_s1 + $0x308] sm:$0xff]   ;;  %v10943_v60 = vld [vmem:[%s15979_s1 + $0x378] sm:$0xff]  }
 0x170   : > { %v8993_v51 = vpop.f32.mrf.mxu0  ;;  %v8972_v24 = vpop.f32.mrf.mxu1 }
 0x171   : > { %v12203_v9 = vadd.f32 %v8992_v2, %v11996_v52  ;;  %v8973_v25 = vadd.f32 %v8972_v24, %v8971_v63  ;;  %v10937_v52 = vld [vmem:[%s15979_s1 + $0x318] sm:$0xff]  }
 0x172   : > { %v8994_v22 = vpop.f32.mrf.mxu0  ;;  %v12215_v32 = vpop.f32.mrf.mxu1  ;;  %9342 = vmatprep.subr.bf16.mxu0 %v10937_v52  ;;  %v10941_v2 = vld [vmem:[%s15979_s1 + $0x3b8] sm:$0xff]  }
 0x173   : > { %v8995_v5 = vadd.f32 %v8994_v22, %v8993_v51  ;;  %v12223_v13 = vadd.f32 %v8973_v25, %v1442_v37  ;;  %9343 = vmatpush3.bf16.msra.mxu0 %v10938_v26  ;;  %v10944_v51 = vld [vmem:[%s15979_s1 + $0x2c8] sm:$0xff]   ;;  %9446 = vmatprep.subr.bf16.mxu1 %v10941_v2  ;;  %v10945_v37 = vld [vmem:[%s15979_s1 + $0x300] sm:$0xff]  }
 0x174   : > { %v8996_v48 = vpop.f32.mrf.mxu0  ;;  %v12225_v30 = vpop.f32.mrf.mxu1  ;;  %9344 = vmatprep.subr.bf16.mxu0 %v10939_v19  ;;  %9447 = vmatpush3.bf16.msra.mxu1 %v10943_v60 }
 0x175   : > { %v12218_v16 = vadd.f32 %v8995_v5, %v12008_v56  ;;  %16125 = vst [vmem:[#allocation11_spill] sm:$0xff] %v12223_v13  ;;  %v10946_v5 = vld [vmem:[%s15979_s1 + $0x2c0] sm:$0xff]  }
 0x176   : > { %v8997_v23 = vpop.f32.mrf.mxu0  ;;  %v12230_v49 = vpop.f32.mrf.mxu1 }
 0x177   : > { %v8998_v42 = vadd.f32 %v8997_v23, %v8996_v48  ;;  %9345 = vmatpush3.bf16.msra.mxu0 %v10940_v7 }
 0x178   : > { %v8999_v59 = vpop.f32.mrf.mxu0  ;;  %v12238_v53 = vpop.f32.mrf.mxu1  ;;  %9346 = vmatprep.subr.bf16.mxu0 %v10942_v31 }
 0x179   : > { %v12233_v56 = vadd.f32 %v8998_v42, %v12012_v11 }
 0x17a   : > { %v9000_v17 = vpop.f32.mrf.mxu0  ;;  %v12243_v12 = vpop.f32.mrf.mxu1 }
 0x17b   : > { %v9001_v10 = vadd.f32 %v9000_v17, %v8999_v59  ;;  %9347 = vmatpush3.bf16.msra.mxu0 %v10944_v51 }
 0x17c   : > { %v9002_v57 = vpop.f32.mrf.mxu0  ;;  %v12257_v63 = vpop.f32.mrf.mxu1  ;;  %9348 = vmatprep.subr.bf16.mxu0 %v10945_v37 }
 0x17d   : > { %v12246_v11 = vadd.f32 %v9001_v10, %v12018_v40 }
 0x17e   : > { %v9003_v21 = vpop.f32.mrf.mxu0  ;;  %v12262_v22 = vpop.f32.mrf.mxu1 }
 0x17f   : > { %v9004_v18 = vadd.f32 %v9003_v21, %v9002_v57  ;;  %9349 = vmatpush3.bf16.msra.mxu0 %v10946_v5  ;;  %v10947_v21 = vld [vmem:[%s15979_s1 + $0x3b0] sm:$0xff]  }
 0x180   : > { %v9005_v40 = vpop.f32.mrf.mxu0  ;;  %v12270_v48 = vpop.f32.mrf.mxu1  ;;  %9448 = vmatprep.subr.bf16.mxu1 %v10947_v21 }
 0x181   : > { %v12265_v24 = vadd.f32 %v9004_v18, %v12022_v8  ;;  %v10948_v18 = vld [vmem:[%s15979_s1 + $0x370] sm:$0xff]  }
 0x182   : > { %v9006_v25 = vpop.f32.mrf.mxu0  ;;  %v12272_v23 = vpop.f32.mrf.mxu1  ;;  %9449 = vmatpush3.bf16.msra.mxu1 %v10948_v18 }
 0x183   : > { %v9007_v52 = vadd.f32 %v9006_v25, %v9005_v40 }
 0x184   : > { %v9008_v26 = vpop.f32.mrf.mxu0  ;;  %v12277_v19 = vpop.f32.mrf.mxu1 }
 0x185   : > { %v12275_v42 = vadd.f32 %v9007_v52, %v12034_v38 }
 0x186   : > { %v9009_v59 = vpop.f32.mrf.mxu0  ;;  %v12279_v17 = vpop.f32.mrf.mxu1 }
 0x187   : > { %v9010_v8 = vadd.f32 %v9009_v59, %v9008_v26 }
 0x188   : > { %v9011_v7 = vpop.f32.mrf.mxu0  ;;  %v12284_v31 = vpop.f32.mrf.mxu1 }
 0x189   : > { %v12282_v10 = vadd.f32 %v9010_v8, %v12039_v43 }
 0x18a   : > { %v9012_v57 = vpop.f32.mrf.mxu0  ;;  %v12286_v51 = vpop.f32.mrf.mxu1 }
 0x18b   : > { %v9013_v2 = vadd.f32 %v9012_v57, %v9011_v7 }
 0x18c   : > { %v9014_v60 = vpop.f32.mrf.mxu0  ;;  %v12297_v40 = vpop.f32.mrf.mxu1 }
 0x18d   : > { %v12289_v38 = vadd.f32 %v9013_v2, %v12046_v36 }
 0x18e   : > { %v9015_v43 = vpop.f32.mrf.mxu0  ;;  %v12299_v25 = vpop.f32.mrf.mxu1 }
 0x18f   : > { %v9016_v37 = vadd.f32 %v9015_v43, %v9014_v60 }
 0x190   : > { %v9017_v5 = vpop.f32.mrf.mxu0  ;;  %v12304_v26 = vpop.f32.mrf.mxu1 }
 0x191   : > { %v12302_v36 = vadd.f32 %v9016_v37, %v12050_v61 }
 0x192   : > { %v9018_v52 = vpop.f32.mrf.mxu0  ;;  %v12306_v7 = vpop.f32.mrf.mxu1 }
 0x193   : > { %16126 = vst [vmem:[#allocation4_spill] sm:$0xff] %v12302_v36  ;;  %v9019_v59 = vadd.f32 %v9018_v52, %v9017_v5 }
 0x194   : > { %v9020_v8 = vpop.f32.mrf.mxu0  ;;  %v12311_v60 = vpop.f32.mrf.mxu1 }
 0x195   : > { %v12309_v57 = vadd.f32 %v9019_v59, %v12066_v50  ;;  %v10949_v59 = vld [vmem:[%s15979_s1 + $0x3a8] sm:$0xff]  }
 0x196   : > { %v9021_v2 = vpop.f32.mrf.mxu0  ;;  %v12313_v43 = vpop.f32.mrf.mxu1  ;;  %9450 = vmatprep.subr.bf16.mxu1 %v10949_v59 }
 0x197   : > { %16127 = vst [vmem:[#allocation5_spill] sm:$0xff] %v12309_v57  ;;  %v9022_v21 = vadd.f32 %v9021_v2, %v9020_v8  ;;  %v10950_v8 = vld [vmem:[%s15979_s1 + $0x368] sm:$0xff]  }
 0x198   : > { %v9023_v18 = vpop.f32.mrf.mxu0  ;;  %v12318_v55 = vpop.f32.mrf.mxu1  ;;  %9451 = vmatpush3.bf16.msra.mxu1 %v10950_v8 }
 0x199   : > { %v12316_v61 = vadd.f32 %v9022_v21, %v12070_v62 }
 0x19a   : > { %v9024_v37 = vpop.f32.mrf.mxu0  ;;  %v12320_v29 = vpop.f32.mrf.mxu1 }
 0x19b   : > { %16128 = vst [vmem:[#allocation13_spill] sm:$0xff] %v12316_v61  ;;  %v9025_v5 = vadd.f32 %v9024_v37, %v9023_v18 }
 0x19c   : > { %v9026_v52 = vpop.f32.mrf.mxu0  ;;  %v12331_v2 = vpop.f32.mrf.mxu1 }
 0x19d   : > { %v12323_v50 = vadd.f32 %v9025_v5, %v12076_v39 }
 0x19e   : > { %v9027_v62 = vpop.f32.mrf.mxu0  ;;  %v12333_v37 = vpop.f32.mrf.mxu1 }
 0x19f   : > { %16129 = vst [vmem:[#allocation6_spill] sm:$0xff] %v12323_v50  ;;  %v9028_v21 = vadd.f32 %v9027_v62, %v9026_v52 }
 0x1a0   : > { %v9029_v18 = vpop.f32.mrf.mxu0  ;;  %v12338_v46 = vpop.f32.mrf.mxu1 }
 0x1a1   : > { %v12336_v39 = vadd.f32 %v9028_v21, %v12080_v28  ;;  %16131 = vst [vmem:[#allocation15_spill] sm:$0xff] %v12338_v46 }
 0x1a2   : > { %v9030_v5 = vpop.f32.mrf.mxu0  ;;  %v12340_v57 = vpop.f32.mrf.mxu1 }
 0x1a3   : > { %16130 = vst [vmem:[#allocation8_spill] sm:$0xff] %v12336_v39  ;;  %v9031_v50 = vadd.f32 %v9030_v5, %v9029_v18 }
 0x1a4   : > { %v9032_v13 = vpop.f32.mrf.mxu0  ;;  %v12345_v52 = vpop.f32.mrf.mxu1 }
 0x1a5   : > { %v12343_v36 = vadd.f32 %v9031_v50, %v12092_v3 }
 0x1a6   : > { %v9033_v61 = vpop.f32.mrf.mxu0  ;;  %v12347_v62 = vpop.f32.mrf.mxu1 }
 0x1a7   : > { %16132 = vst [vmem:[#allocation7_spill] sm:$0xff] %v12343_v36  ;;  %v9034_v59 = vadd.f32 %v9033_v61, %v9032_v13  ;;  %v10951_v13 = vld [vmem:[%s15979_s1 + $0x3a0] sm:$0xff]  }
 0x1a8   : > { %v9035_v8 = vpop.f32.mrf.mxu0  ;;  %v12352_v39 = vpop.f32.mrf.mxu1  ;;  %9452 = vmatprep.subr.bf16.mxu1 %v10951_v13 }
 0x1a9   : > { %v12350_v28 = vadd.f32 %v9034_v59, %v12096_v47  ;;  %16134 = vst [vmem:[#allocation17_spill] sm:$0xff] %v12352_v39  ;;  %v10952_v47 = vld [vmem:[%s15979_s1 + $0x360] sm:$0xff]  }
 0x1aa   : > { %v9036_v21 = vpop.f32.mrf.mxu0  ;;  %v12354_v46 = vpop.f32.mrf.mxu1  ;;  %9453 = vmatpush3.bf16.msra.mxu1 %v10952_v47 }
 0x1ab   : > { %16133 = vst [vmem:[#allocation12_spill] sm:$0xff] %v12350_v28  ;;  %v9037_v18 = vadd.f32 %v9036_v21, %v9035_v8  ;;  %16135 = vst [vmem:[#allocation9_spill] sm:$0xff] %v12354_v46 }
 0x1ac   : > { %v9038_v5 = vpop.f32.mrf.mxu0  ;;  %v12362_v61 = vpop.f32.mrf.mxu1 }
 0x1ad   : > { %v12357_v3 = vadd.f32 %v9037_v18, %v12101_v33  ;;  %16137 = vst [vmem:[#allocation10_spill] sm:$0xff] %v12362_v61 }
 0x1ae   : > { %v9039_v50 = vpop.f32.mrf.mxu0  ;;  %v12367_v8 = vpop.f32.mrf.mxu1 }
 0x1af   : > { %16136 = vst [vmem:[#allocation14_spill] sm:$0xff] %v12357_v3  ;;  %v9040_v36 = vadd.f32 %v9039_v50, %v9038_v5 }
 0x1b0   : > { %v9041_v59 = vpop.f32.mrf.mxu0  ;;  %v12372_v18 = vpop.f32.mrf.mxu1 }
 0x1b1   : > { %v12370_v21 = vadd.f32 %v9040_v36, %v12104_v4  ;;  %v10953_v4 = vld [vmem:[%s15979_s1 + $0x398] sm:$0xff]  }
 0x1b2   : > { %v9042_v33 = vpop.f32.mrf.mxu0  ;;  %v12374_v46 = vpop.f32.mrf.mxu1  ;;  %9454 = vmatprep.subr.bf16.mxu1 %v10953_v4 }
 0x1b3   : > { %16138 = vst [vmem:[#allocation16_spill] sm:$0xff] %v12370_v21  ;;  %v9043_v3 = vadd.f32 %v9042_v33, %v9041_v59 }
 0x1b4   : > { %v9044_v28 = vpop.f32.mrf.mxu0  ;;  %v12379_v61 = vpop.f32.mrf.mxu1 }
 0x1b5   : > { %v12377_v5 = vadd.f32 %v9043_v3, %v12115_v6  ;;  %16140 = vst [vmem:[#allocation19_spill] sm:$0xff] %v12379_v61 }
 0x1b6   : > { %v9045_v50 = vpop.f32.mrf.mxu0  ;;  %v12384_v36 = vpop.f32.mrf.mxu1 }
 0x1b7   : > { %16139 = vst [vmem:[#allocation18_spill] sm:$0xff] %v12377_v5  ;;  %v9046_v13 = vadd.f32 %v9045_v50, %v9044_v28 }
 0x1b8   : > { %v9047_v39 = vpop.f32.mrf.mxu0  ;;  %v12389_v33 = vpop.f32.mrf.mxu1 }
 0x1b9   : > { %v12387_v47 = vadd.f32 %v9046_v13, %v12118_v20  ;;  %16142 = vst [vmem:[#allocation21_spill] sm:$0xff] %v12389_v33  ;;  %v10954_v20 = vld [vmem:[%s15979_s1 + $0x358] sm:$0xff]  }
 0x1ba   : > { %v9048_v59 = vpop.f32.mrf.mxu0  ;;  %v12391_v5 = vpop.f32.mrf.mxu1  ;;  %9455 = vmatpush3.bf16.msra.mxu1 %v10954_v20 }
 0x1bb   : > { %16141 = vst [vmem:[#allocation20_spill] sm:$0xff] %v12387_v47  ;;  %v9049_v6 = vadd.f32 %v9048_v59, %v9047_v39  ;;  %16143 = vst [vmem:[#allocation22_spill] sm:$0xff] %v12391_v5 }
 0x1bc   : > { %v9050_v3 = vpop.f32.mrf.mxu0  ;;  %v12396_v21 = vpop.f32.mrf.mxu1 }
 0x1bd   : > { %v12394_v28 = vadd.f32 %v9049_v6, %v12123_v35  ;;  %16145 = vst [vmem:[#allocation24_spill] sm:$0xff] %v12396_v21 }
 0x1be   : > { %v9051_v50 = vpop.f32.mrf.mxu0  ;;  %v12401_v47 = vpop.f32.mrf.mxu1 }
 0x1bf   : > { %16144 = vst [vmem:[#allocation23_spill] sm:$0xff] %v12394_v28  ;;  %v9052_v61 = vadd.f32 %v9051_v50, %v9050_v3 }
 0x1c0   : > { %v9053_v13 = vpop.f32.mrf.mxu0  ;;  %v12406_v59 = vpop.f32.mrf.mxu1 }
 0x1c1   : > { %v12404_v4 = vadd.f32 %v9052_v61, %v12126_v41  ;;  %v10955_v41 = vld [vmem:[%s15979_s1 + $0x390] sm:$0xff]  }
 0x1c2   : > { %v9054_v39 = vpop.f32.mrf.mxu0  ;;  %v12408_v28 = vpop.f32.mrf.mxu1  ;;  %9456 = vmatprep.subr.bf16.mxu1 %v10955_v41 }
 0x1c3   : > { %16146 = vst [vmem:[#allocation25_spill] sm:$0xff] %v12404_v4  ;;  %v9055_v35 = vadd.f32 %v9054_v39, %v9053_v13 }
 0x1c4   : > { %v9056_v6 = vpop.f32.mrf.mxu0  ;;  %v12413_v21 = vpop.f32.mrf.mxu1 }
 0x1c5   : > { %v12411_v3 = vadd.f32 %v9055_v35, %v12137_v1  ;;  %16148 = vst [vmem:[#allocation27_spill] sm:$0xff] %v12413_v21 }
 0x1c6   : > { %v9057_v50 = vpop.f32.mrf.mxu0  ;;  %v12418_v61 = vpop.f32.mrf.mxu1 }
 0x1c7   : > { %16147 = vst [vmem:[#allocation26_spill] sm:$0xff] %v12411_v3  ;;  %v9058_v5 = vadd.f32 %v9057_v50, %v9056_v6 }
 0x1c8   : > { %v9059_v33 = vpop.f32.mrf.mxu0  ;;  %v12423_v39 = vpop.f32.mrf.mxu1 }
 0x1c9   : > { %v12421_v20 = vadd.f32 %v9058_v5, %v12140_v58  ;;  %16150 = vst [vmem:[#allocation29_spill] sm:$0xff] %v12423_v39  ;;  %v10956_v58 = vld [vmem:[%s15979_s1 + $0x350] sm:$0xff]  }
 0x1ca   : > { %v9060_v13 = vpop.f32.mrf.mxu0  ;;  %v12425_v3 = vpop.f32.mrf.mxu1  ;;  %9457 = vmatpush3.bf16.msra.mxu1 %v10956_v58 }
 0x1cb   : > { %16149 = vst [vmem:[#allocation28_spill] sm:$0xff] %v12421_v20  ;;  %v9061_v1 = vadd.f32 %v9060_v13, %v9059_v33  ;;  %16151 = vst [vmem:[#allocation30_spill] sm:$0xff] %v12425_v3 }
 0x1cc   : > { %v9062_v35 = vpop.f32.mrf.mxu0  ;;  %v12430_v4 = vpop.f32.mrf.mxu1 }
 0x1cd   : > { %v12428_v6 = vadd.f32 %v9061_v1, %v12145_v15  ;;  %16153 = vst [vmem:[#allocation32_spill] sm:$0xff] %v12430_v4 }
 0x1ce   : > { %v9063_v50 = vpop.f32.mrf.mxu0  ;;  %v12435_v20 = vpop.f32.mrf.mxu1 }
 0x1cf   : > { %16152 = vst [vmem:[#allocation31_spill] sm:$0xff] %v12428_v6  ;;  %v9064_v21 = vadd.f32 %v9063_v50, %v9062_v35 }
 0x1d0   : > { %v9065_v5 = vpop.f32.mrf.mxu0  ;;  %v12440_v13 = vpop.f32.mrf.mxu1 }
 0x1d1   : > { %v12438_v41 = vadd.f32 %v9064_v21, %v12148_v45  ;;  %v10957_v45 = vld [vmem:[%s15979_s1 + $0x388] sm:$0xff]  }
 0x1d2   : > { %v9066_v33 = vpop.f32.mrf.mxu0  ;;  %v12442_v6 = vpop.f32.mrf.mxu1  ;;  %9458 = vmatprep.subr.bf16.mxu1 %v10957_v45 }
 0x1d3   : > { %16154 = vst [vmem:[#allocation33_spill] sm:$0xff] %v12438_v41  ;;  %v9067_v15 = vadd.f32 %v9066_v33, %v9065_v5 }
 0x1d4   : > { %v9068_v1 = vpop.f32.mrf.mxu0  ;;  %v12447_v4 = vpop.f32.mrf.mxu1 }
 0x1d5   : > { %v12445_v35 = vadd.f32 %v9067_v15, %v12159_v54  ;;  %16156 = vst [vmem:[#allocation35_spill] sm:$0xff] %v12447_v4 }
 0x1d6   : > { %v9069_v50 = vpop.f32.mrf.mxu0  ;;  %v12452_v21 = vpop.f32.mrf.mxu1 }
 0x1d7   : > { %16155 = vst [vmem:[#allocation34_spill] sm:$0xff] %v12445_v35  ;;  %v9070_v3 = vadd.f32 %v9069_v50, %v9068_v1 }
 0x1d8   : > { %v9071_v39 = vpop.f32.mrf.mxu0  ;;  %v12457_v33 = vpop.f32.mrf.mxu1 }
 0x1d9   : > { %v12455_v58 = vadd.f32 %v9070_v3, %v12162_v14  ;;  %v10958_v14 = vld [vmem:[%s15979_s1 + $0x348] sm:$0xff]  }
 0x1da   : > { %v9072_v5 = vpop.f32.mrf.mxu0  ;;  %v12459_v35 = vpop.f32.mrf.mxu1  ;;  %9459 = vmatpush3.bf16.msra.mxu1 %v10958_v14  ;;  %v9119_v14 = vadd.f32 %v12284_v31, %v12279_v17 }
 0x1db   : > { %16157 = vst [vmem:[#allocation36_spill] sm:$0xff] %v12455_v58  ;;  %v9073_v54 = vadd.f32 %v9072_v5, %v9071_v39 }
 0x1dc   : > { %v9074_v15 = vpop.f32.mrf.mxu0  ;;  %v12464_v41 = vpop.f32.mrf.mxu1 }
 0x1dd   : > { %v12462_v1 = vadd.f32 %v9073_v54, %v12172_v44  ;;  %v9104_v44 = vadd.f32 %v12225_v30, %v12215_v32  ;;  %v9122_v32 = vadd.f32 %v12297_v40, %v12286_v51  ;;  %v9125_v30 = vadd.f32 %v12304_v26, %v12299_v25 }
 0x1de   : > { %v9075_v50 = vpop.f32.mrf.mxu0  ;;  %v12472_v39 = vpop.f32.mrf.mxu1 }
 0x1df   : > { %16158 = vst [vmem:[#allocation37_spill] sm:$0xff] %v12462_v1  ;;  %v9076_v4 = vadd.f32 %v9075_v50, %v9074_v15  ;;  %v9107_v15 = vadd.f32 %v12238_v53, %v12230_v49  ;;  %v9110_v50 = vadd.f32 %v12257_v63, %v12243_v12  ;;  %v9113_v1 = vadd.f32 %v12270_v48, %v12262_v22  ;;  %v10959_v48 = vld [vmem:[%s15979_s1 + $0x438] sm:$0xff]  }
 0x1e0   : > { %v9077_v3 = vpop.f32.mrf.mxu0  ;;  %v12493_v49 = vpop.f32.mrf.mxu1  ;;  %v9128_v12 = vadd.f32 %v12311_v60, %v12306_v7  ;;  %v9134_v63 = vadd.f32 %v12331_v2, %v12320_v29  ;;  %9558 = vmatprep.subr.bf16.mxu0 %v10959_v48  ;;  %v10963_v29 = vld [vmem:[%s15979_s1 + $0x380] sm:$0xff]   ;;  %v12517_v26 = vadd.f32 %v9122_v32, %v12282_v10  ;;  %v16160_v60 = vld [vmem:[#allocation4_spill] sm:$0xff]  ;;  %v16161_v2 = vld [vmem:[#allocation5_spill] sm:$0xff] }
 0x1e1   : > { %v12470_v45 = vadd.f32 %v9076_v4, %v12181_v0  ;;  %v9116_v4 = vadd.f32 %v12277_v19, %v12272_v23  ;;  %v1802_v19 = vadd.f32 %v9104_v44, %v12203_v9  ;;  %v1810_v31 = vadd.f32 %v9110_v50, %v12233_v56  ;;  %9460 = vmatprep.subr.bf16.mxu1 %v10963_v29  ;;  %v16166_v50 = vld [vmem:[#allocation19_spill] sm:$0xff]  ;;  %v16173_v48 = vld [vmem:[#allocation30_spill] sm:$0xff] }
 0x1e2   : > { %v9078_v5 = vpop.f32.mrf.mxu0  ;;  %v1813_v51 = vadd.f32 %v9113_v1, %v12246_v11  ;;  %v12514_v40 = vpop.f32.mrf.mxu1  ;;  %v12526_v56 = vadd.f32 %v9119_v14, %v12275_v42  ;;  %v16159_v11 = vld [vmem:[#allocation13_spill] sm:$0xff]  ;;  %v16167_v14 = vld [vmem:[#allocation11_spill] sm:$0xff]  ;;  %v16175_v29 = vmov 0.0  }
 0x1e3   : > { %v9079_v58 = vadd.f32 %v9078_v5, %v9077_v3  ;;  %v12520_v9 = vadd.f32 %v9116_v4, %v12265_v24  ;;  %v12529_v7 = vadd.f32 %v9134_v63, %v16159_v11  ;;  %v16162_v24 = vld [vmem:[#allocation15_spill] sm:$0xff]  ;;  %v16163_v42 = vld [vmem:[#allocation17_spill] sm:$0xff]  ;;  %v16165_v5 = vld [vmem:[#allocation10_spill] sm:$0xff]  ;;  %v9152_v4 = vadd.f32 %v16166_v50, %v12374_v46 }
 0x1e4   : > { %v9080_v54 = vpop.f32.mrf.mxu0  ;;  %v9137_v10 = vadd.f32 %v16162_v24, %v12333_v37  ;;  %v9143_v1 = vadd.f32 %v16163_v42, %v12347_v62  ;;  %v16164_v3 = vld [vmem:[#allocation9_spill] sm:$0xff]  ;;  %v16181_v50 = vld [vmem:[#allocation16_spill] sm:$0xff] }
 0x1e5   : > { %v12483_v0 = vadd.f32 %v9079_v58, %v12196_v34  ;;  %v9131_v34 = vadd.f32 %v12318_v55, %v12313_v43  ;;  %v1805_v55 = vadd.f32 %v9107_v15, %v12218_v16  ;;  %v12532_v43 = vadd.f32 %v9128_v12, %v16160_v60  ;;  %v16172_v46 = vld [vmem:[#allocation29_spill] sm:$0xff] }
 0x1e6   : > { %v9081_v53 = vpop.f32.mrf.mxu0  ;;  %v9146_v44 = vadd.f32 %v16165_v5, %v16164_v3  ;;  %v9149_v15 = vadd.f32 %v12372_v18, %v12367_v8  ;;  %v9161_v12 = vadd.f32 %v12406_v59, %v12401_v47  ;;  %v12560_v8 = vpop.f32.mrf.mxu1  ;;  %v16176_v59 = vld [vmem:[#allocation6_spill] sm:$0xff] }
 0x1e7   : > { %v9082_v22 = vadd.f32 %v9081_v53, %v9080_v54  ;;  %v12535_v58 = vadd.f32 %v9131_v34, %v16161_v2  ;;  %v16170_v53 = vld [vmem:[#allocation24_spill] sm:$0xff]  ;;  %v16171_v34 = vld [vmem:[#allocation27_spill] sm:$0xff]  ;;  %v12571_v11 = vadd.f32 %v9137_v10, %v16176_v59  ;;  %v16180_v5 = vld [vmem:[#allocation14_spill] sm:$0xff] }
 0x1e8   : > { %v9083_v23 = vpop.f32.mrf.mxu0  ;;  %v9164_v63 = vadd.f32 %v16171_v34, %v12408_v28  ;;  %v16177_v28 = vld [vmem:[#allocation12_spill] sm:$0xff]  ;;  %v12589_v10 = vpop.f32.mrf.mxu1 }
 0x1e9   : > { %v12506_v17 = vadd.f32 %v9082_v22, %v12208_v27  ;;  %v12523_v27 = vadd.f32 %v9125_v30, %v12289_v38  ;;  %v9140_v38 = vadd.f32 %v12345_v52, %v12340_v57  ;;  %v16168_v30 = vld [vmem:[#allocation21_spill] sm:$0xff]  ;;  %v16169_v52 = vld [vmem:[#allocation22_spill] sm:$0xff]  ;;  %v9167_v22 = vadd.f32 %v16172_v46, %v12418_v61  ;;  %v16178_v2 = vld [vmem:[#allocation8_spill] sm:$0xff] }
 0x1ea   : > { %v9084_v25 = vpop.f32.mrf.mxu0  ;;  %v9155_v57 = vadd.f32 %v16168_v30, %v12384_v36  ;;  %v9158_v62 = vadd.f32 %v16170_v53, %v16169_v52  ;;  %v12574_v60 = vadd.f32 %v9146_v44, %v16177_v28  ;;  %v16179_v61 = vld [vmem:[#allocation7_spill] sm:$0xff]  ;;  %v16182_v30 = vld [vmem:[#allocation20_spill] sm:$0xff] }
 0x1eb   : > { %v9085_v16 = vadd.f32 %v9084_v25, %v9083_v23  ;;  %v16174_v23 = vld [vmem:[#allocation32_spill] sm:$0xff]  ;;  %v12577_v24 = vadd.f32 %v9140_v38, %v16178_v2  ;;  %v12580_v42 = vadd.f32 %v9143_v1, %v16179_v61  ;;  %v16183_v38 = vld [vmem:[#allocation23_spill] sm:$0xff]  ;;  %v16184_v1 = vld [vmem:[#allocation18_spill] sm:$0xff]  ;;  %v9190_v61 = vpop.f32.mrf.mxu1 }
 0x1ec   : > { %v10656_v54 = vpop.f32.mrf.mxu0  ;;  %v12592_v52 = vadd.f32 %v9158_v62, %v16182_v30  ;;  %v12595_v53 = vadd.f32 %v9161_v12, %v16183_v38  ;;  %v12598_v34 = vadd.f32 %v9155_v57, %v16184_v1  ;;  %v9173_v62 = vadd.f32 %v12440_v13, %v12435_v20  ;;  %v16189_v28 = vld [vmem:[#allocation35_spill] sm:$0xff] }
 0x1ed   : > { %v12550_v32 = vadd.f32 %v9085_v16, %v16167_v14  ;;  %v1971_v37 = vadd.f32 %v10656_v54, %v1810_v31  ;;  %v9170_v31 = vadd.f32 %v16174_v23, %v16173_v48  ;;  %v10964_v16 = vld [vmem:[%s15979_s1 + $0x340] sm:$0xff]   ;;  %v12584_v54 = vadd.f32 %v9149_v15, %v16180_v5 }
 0x1ee   : > { %v1962_v18 = vpop.f32.mrf.mxu0  ;;  %v12587_v14 = vadd.f32 %v9152_v4, %v16181_v50  ;;  %9461 = vmatpush3.bf16.msra.mxu1 %v10964_v16  ;;  %v16186_v4 = vld [vmem:[#allocation28_spill] sm:$0xff]  ;;  %v16187_v23 = vld [vmem:[#allocation26_spill] sm:$0xff]  ;;  %v9182_v13 = vadd.f32 %v12464_v41, %v12459_v35  ;;  %v12628_v41 = vld [vmem:[%s15979_s1 + $0x478] sm:$0xff]   ;;  %v9192_v35 = vpop.f32.mrf.mxu1 }
 0x1ef   : > { %v2238_v36 = vpack.c.bf16 %v1971_v37, %v16175_v29  ;;  %v1963_v25 = vadd.f32 %v1962_v18, %v1802_v19  ;;  %v12604_v48 = vadd.f32 %v9170_v31, %v16186_v4  ;;  %v12607_v16 = vadd.f32 %v9167_v22, %v16187_v23  ;;  %16191 = vst [vmem:[#allocation5_spill] sm:$0xff] %v12628_v41 }
 0x1f0   : > { %v10657_v47 = vpop.f32.mrf.mxu0  ;;  %10686 = vmatprep.subr.bf16.mxu1 %v12628_v41 }
 0x1f1   : > { %v2236_v3 = vpack.c.bf16 %v1963_v25, %v16175_v29  ;;  %v1974_v19 = vadd.f32 %v10657_v47, %v1813_v51  ;;  %v16185_v51 = vld [vmem:[#allocation25_spill] sm:$0xff]  ;;  %v2302_v15 = vshrl.u32 %v2238_v36, 16  ;;  %v2305_v46 = vshll.u32 %v2238_v36, 16 }
 0x1f2   : > { %v1965_v44 = vpop.f32.mrf.mxu0  ;;  %v12601_v18 = vadd.f32 %v9164_v63, %v16185_v51  ;;  %v9176_v63 = vadd.f32 %v16189_v28, %v12442_v6  ;;  %v9179_v36 = vadd.f32 %v12457_v33, %v12452_v21 }
 0x1f3   : > { %v2239_v47 = vpack.c.bf16 %v1974_v19, %v1974_v19  ;;  %v12611_v12 = vpack.c.bf16 %v1974_v19, %v1971_v37  ;;  %v1966_v59 = vadd.f32 %v1965_v44, %v1805_v55  ;;  %v2285_v2 = vshrl.u32 %v2236_v3, 16 }
 0x1f4   : > { %v10660_v57 = vpop.f32.mrf.mxu0  ;;  %v2288_v31 = vshll.u32 %v2236_v3, 16  ;;  %v2304_v55 = vrot.slane %v2302_v15, 3  ;;  %v2307_v37 = vrot.slane %v2305_v46, 4 }
 0x1f5   : > { %16188 = vst [vmem:[#allocation13_spill] sm:$0xff] %v12611_v12  ;;  %v2310_v5 = vshrl.u32 %v2239_v47, 16  ;;  %v2313_v22 = vshll.u32 %v2239_v47, 16  ;;  %v2237_v50 = vpack.c.bf16 %v1966_v59, %v1966_v59  ;;  %v12617_v30 = vpack.c.bf16 %v1966_v59, %v1963_v25  ;;  %v16192_v59 = vld [vmem:[#allocation31_spill] sm:$0xff] }
 0x1f6   : > { %v1978_v20 = vpop.f32.mrf.mxu0  ;;  %v2287_v3 = vrot.slane %v2285_v2, 3  ;;  %v2290_v1 = vrot.slane %v2288_v31, 4  ;;  %v1987_v46 = vadd.f32 %v10660_v57, %v12517_v26  ;;  %v2308_v47 = vor.u32 %v2307_v37, %v2304_v55  ;;  %v16193_v2 = vld [vmem:[#allocation33_spill] sm:$0xff]  ;;  %v16196_v57 = vld [vmem:[#allocation36_spill] sm:$0xff] }
 0x1f7   : > { %16190 = vst [vmem:[#allocation4_spill] sm:$0xff] %v12617_v30  ;;  %v1979_v19 = vadd.f32 %v1978_v20, %v12520_v9  ;;  %v2312_v6 = vrot.slane %v2310_v5, 3  ;;  %v2315_v44 = vrot.slane %v2313_v22, 4  ;;  %v2293_v38 = vshrl.u32 %v2237_v50, 16  ;;  %3194 = vmatprep.mubr.bf16.mxu1 %v12617_v30 }
 0x1f8   : > { %v2296_v21 = vshll.u32 %v2237_v50, 16  ;;  %v10661_v33 = vpop.f32.mrf.mxu0  ;;  %v12632_v28 = vadd.f32 %v9173_v62, %v16192_v59  ;;  %v12635_v31 = vadd.f32 %v9176_v63, %v16193_v2  ;;  %v2291_v55 = vor.u32 %v2290_v1, %v2287_v3 }
 0x1f9   : > { %v2240_v25 = vpack.c.bf16 %v1979_v19, %v16175_v29  ;;  %v1990_v51 = vadd.f32 %v10661_v33, %v12523_v27  ;;  %v2295_v9 = vrot.slane %v2293_v38, 3  ;;  %v2316_v23 = vor.u32 %v2315_v44, %v2312_v6  ;;  %v16194_v27 = vld [vmem:[#allocation34_spill] sm:$0xff]  ;;  %v9193_v38 = vpop.f32.mrf.mxu1 }
 0x1fa   : > { %v2298_v15 = vrot.slane %v2296_v21, 4  ;;  %v1981_v4 = vpop.f32.mrf.mxu0  ;;  %v12638_v5 = vadd.f32 %v9179_v36, %v16194_v27  ;;  %v12645_v6 = vadd.f32 %v9182_v13, %v16196_v57  ;;  %v9185_v36 = vadd.f32 %v12493_v49, %v12472_v39  ;;  %v10960_v13 = vld [vmem:[%s15979_s1 + $0x3f8] sm:$0xff]   ;;  %v10961_v49 = vld [vmem:[%s15979_s1 + $0x430] sm:$0xff]   ;;  %v10965_v57 = vld [vmem:[%s15979_s1 + $0x428] sm:$0xff]  }
 0x1fb   : > { %v12641_v22 = vpack.c.bf16 %v1990_v51, %v1987_v46  ;;  %v1982_v50 = vadd.f32 %v1981_v4, %v12526_v56  ;;  %v2319_v62 = vshrl.u32 %v2240_v25, 16  ;;  %v2322_v37 = vshll.u32 %v2240_v25, 16  ;;  %v9195_v27 = vpop.f32.mrf.mxu1 }
 0x1fc   : > { %v10664_v20 = vpop.f32.mrf.mxu0  ;;  %v2299_v26 = vor.u32 %v2298_v15, %v2295_v9  ;;  %v12648_v63 = vsel %vm398_vm0, %v2308_v47, %v2316_v23  ;;  %v9188_v44 = vadd.f32 %v12560_v8, %v12514_v40  ;;  %v2242_v3 = vpack.c.bf16 %v1987_v46, %v16175_v29 }
 0x1fd   : > { %16195 = vst [vmem:[#allocation15_spill] sm:$0xff] %v12641_v22  ;;  %16197 = vst [vmem:[#allocation17_spill] sm:$0xff] %v12648_v63  ;;  %v2241_v21 = vpack.c.bf16 %v1982_v50, %v1982_v50  ;;  %v12654_v56 = vpack.c.bf16 %v1982_v50, %v1979_v19  ;;  %v2003_v1 = vadd.f32 %v10664_v20, %v12529_v7  ;;  %v2557_v39 = vshll.u32 %v12617_v30, 16  ;;  %v16199_v7 = vld [vmem:[#allocation3_spill] sm:$0xff] }
 0x1fe   : > { %v1994_v33 = vpop.f32.mrf.mxu0  ;;  %v2300_v25 = vsel %vm398_vm0, %v2291_v55, %v2299_v26  ;;  %v9191_v40 = vadd.f32 %v9190_v61, %v12589_v10  ;;  %v2243_v8 = vpack.c.bf16 %v1990_v51, %v1990_v51  ;;  %v9194_v4 = vadd.f32 %v9193_v38, %v9192_v35  ;;  %v10962_v35 = vld [vmem:[%s15979_s1 + $0x3f0] sm:$0xff]  }
 0x1ff   : > { %16198 = vst [vmem:[#allocation9_spill] sm:$0xff] %v12654_v56  ;;  %v2327_v19 = vshrl.u32 %v2241_v21, 16  ;;  %v2330_v9 = vshll.u32 %v2241_v21, 16  ;;  %3195 = vmatmul.mubr.bf16.gmra.mxu1 %v2300_v25  ;;  %3347 = vmatprep.mubr.bf16.mxu0 %v2300_v25  ;;  %v2321_v46 = vrot.slane %v2319_v62, 3  ;;  %v2324_v23 = vrot.slane %v2322_v37, 4 }
 0x200   : > { %v10665_v15 = vpop.f32.mrf.mxu0  ;;  %3202 = vmatprep.mubr.bf16.mxu1 %v12611_v12  ;;  %3348 = vmatmul.mubr.bf16.vlgmr.msra.gmra.mxu0 %v16199_v7  ;;  %v2555_v61 = vshrl.u32 %v12617_v30, 16  ;;  %v2559_v51 = vrot.slane %v2557_v39, 1  ;;  %v2336_v50 = vshrl.u32 %v2242_v3, 16  ;;  %v2339_v20 = vshll.u32 %v2242_v3, 16  ;;  %v16200_v39 = vld [vmem:[#allocation37_spill] sm:$0xff] }
 0x201   : > { %v2006_v47 = vadd.f32 %v10665_v15, %v12571_v11  ;;  %v2329_v59 = vrot.slane %v2327_v19, 3  ;;  %v2332_v2 = vrot.slane %v2330_v9, 4  ;;  %3355 = vmatprep.mubr.bf16.mxu0 %v12648_v63  ;;  %9559 = vmatpush3.bf16.msra.mxu0 %v10960_v13  ;;  %v12676_v26 = vpack.c.bf16 %v2003_v1, %v16175_v29 }
 0x202   : > { %v1997_v10 = vpop.f32.mrf.mxu0  ;;  %v1995_v11 = vadd.f32 %v1994_v33, %v12532_v43  ;;  %9560 = vmatprep.subr.bf16.mxu0 %v10961_v49  ;;  %v2344_v55 = vshrl.u32 %v2243_v8, 16  ;;  %v2560_v21 = vor.u32 %v2559_v51, %v2555_v61  ;;  %v2347_v13 = vshll.u32 %v2243_v8, 16  ;;  %v9196_v8 = vpop.f32.mrf.mxu1 }
 0x203   : > { %v12682_v62 = vpack.c.bf16 %v2006_v47, %v2003_v1  ;;  %v1998_v37 = vadd.f32 %v1997_v10, %v12535_v58  ;;  %v2325_v25 = vor.u32 %v2324_v23, %v2321_v46  ;;  %v2333_v3 = vor.u32 %v2332_v2, %v2329_v59  ;;  %v10966_v58 = vld [vmem:[%s15979_s1 + $0x3e8] sm:$0xff]  }
 0x204   : > { %v10668_v38 = vpop.f32.mrf.mxu0  ;;  %v12686_v19 = vadd.f32 %v9185_v36, %v16200_v39  ;;  %v12691_v33 = vadd.f32 %v9194_v4, %v12506_v17  ;;  %v12694_v49 = vadd.f32 %v9188_v44, %v12470_v45  ;;  %v12697_v1 = vadd.f32 %v9191_v40, %v12483_v0  ;;  %v10967_v45 = vld [vmem:[%s15979_s1 + $0x420] sm:$0xff]  }
 0x205   : > { %v12688_v9 = vpack.c.bf16 %v1998_v37, %v1995_v11  ;;  %9561 = vmatpush3.bf16.msra.mxu0 %v10962_v35  ;;  %v2370_v36 = vshrl.u32 %v12676_v26, 16  ;;  %v2244_v15 = vpack.c.bf16 %v1995_v11, %v16175_v29  ;;  %v2019_v46 = vadd.f32 %v10668_v38, %v12574_v60 }
 0x206   : > { %v2010_v43 = vpop.f32.mrf.mxu0  ;;  %v12706_v17 = vsel %vm398_vm0, %v2325_v25, %v2333_v3  ;;  %9562 = vmatprep.subr.bf16.mxu0 %v10965_v57  ;;  %v2338_v0 = vrot.slane %v2336_v50, 3  ;;  %v2341_v44 = vrot.slane %v2339_v20, 4  ;;  %v2346_v40 = vrot.slane %v2344_v55, 3  ;;  %v10969_v57 = vld [vmem:[%s15979_s1 + $0x418] sm:$0xff]  }
 0x207   : > { %16201 = vst [vmem:[#allocation10_spill] sm:$0xff] %v12688_v9  ;;  %16202 = vst [vmem:[#allocation19_spill] sm:$0xff] %v12706_v17  ;;  %3203 = vmatmul.mubr.bf16.gmra.mxu1 %v12648_v63  ;;  %v12714_v4 = vsel %vm679_vm1, %v2560_v21, %v16199_v7  ;;  %v2349_v59 = vrot.slane %v2347_v13, 4  ;;  %v2247_v60 = vpack.c.bf16 %v2006_v47, %v2006_v47  ;;  %v2563_v50 = vshrl.u32 %v12611_v12, 16 }
 0x208   : > { %v10669_v23 = vpop.f32.mrf.mxu0  ;;  %v2011_v2 = vadd.f32 %v2010_v43, %v12577_v24  ;;  %3210 = vmatprep.mubr.bf16.mxu1 %v12654_v56  ;;  %3356 = vmatmul.mubr.bf16.gmra.mxu0 %v12714_v4  ;;  %v12720_v61 = vadd.f32 %v9196_v8, %v9195_v27  ;;  %v2245_v51 = vpack.c.bf16 %v1998_v37, %v1998_v37  ;;  %v2565_v20 = vshll.u32 %v12611_v12, 16  ;;  %v10968_v24 = vld [vmem:[%s15979_s1 + $0x3e0] sm:$0xff]  }
 0x209   : > { %v2022_v10 = vadd.f32 %v10669_v23, %v12584_v54  ;;  %3363 = vmatprep.mubr.bf16.mxu0 %v12706_v17  ;;  %9563 = vmatpush3.bf16.msra.mxu0 %v10966_v58  ;;  %v12728_v47 = vrot.slane %v2370_v36, 3  ;;  %v2373_v11 = vshll.u32 %v12676_v26, 16  ;;  %v2353_v54 = vshrl.u32 %v2244_v15, 16 }
 0x20a   : > { %v2013_v35 = vpop.f32.mrf.mxu0  ;;  %v2250_v27 = vpack.c.bf16 %v2019_v46, %v16175_v29  ;;  %9564 = vmatprep.subr.bf16.mxu0 %v10967_v45  ;;  %v2356_v55 = vshll.u32 %v2244_v15, 16  ;;  %v2567_v13 = vrot.slane %v2565_v20, 1  ;;  %v2378_v25 = vshrl.u32 %v2247_v60, 16 }
 0x20b   : > { %v12735_v37 = vpack.c.bf16 %v2022_v10, %v2019_v46  ;;  %v2014_v38 = vadd.f32 %v2013_v35, %v12580_v42  ;;  %v2248_v3 = vpack.c.bf16 %v2011_v2, %v16175_v29  ;;  %v2342_v39 = vor.u32 %v2341_v44, %v2338_v0  ;;  %v10970_v0 = vld [vmem:[%s15979_s1 + $0x3d8] sm:$0xff]  }
 0x20c   : > { %v10672_v21 = vpop.f32.mrf.mxu0  ;;  %v2350_v26 = vor.u32 %v2349_v59, %v2346_v40  ;;  %v2381_v43 = vshll.u32 %v2247_v60, 16  ;;  %v2361_v58 = vshrl.u32 %v2245_v51, 16  ;;  %v12739_v8 = vpack.c.bf16 %v2022_v10, %v2022_v10  ;;  %v10971_v10 = vld [vmem:[%s15979_s1 + $0x410] sm:$0xff]  }
 0x20d   : > { %v12741_v36 = vpack.c.bf16 %v2014_v38, %v2011_v2  ;;  %9565 = vmatpush3.bf16.msra.mxu0 %v10968_v24  ;;  %v2364_v15 = vshll.u32 %v2245_v51, 16  ;;  %v2404_v46 = vshrl.u32 %v2250_v27, 16  ;;  %v2568_v23 = vor.u32 %v2567_v13, %v2563_v50  ;;  %v10972_v13 = vld [vmem:[%s15979_s1 + $0x3d0] sm:$0xff]  }
 0x20e   : > { %v2026_v45 = vpop.f32.mrf.mxu0  ;;  %v12744_v42 = vsel %vm398_vm0, %v2342_v39, %v2350_v26  ;;  %9566 = vmatprep.subr.bf16.mxu0 %v10969_v57  ;;  %v12749_v44 = vrot.slane %v2373_v11, 4  ;;  %v12751_v40 = vrot.slane %v2353_v54, 3  ;;  %v12753_v59 = vrot.slane %v2356_v55, 4 }
 0x20f   : > { %16203 = vst [vmem:[#allocation11_spill] sm:$0xff] %v12744_v42  ;;  %v2407_v60 = vshll.u32 %v2250_v27, 16  ;;  %3211 = vmatmul.mubr.bf16.gmra.mxu1 %v12706_v17  ;;  %v2387_v51 = vshrl.u32 %v2248_v3, 16  ;;  %v2035_v35 = vadd.f32 %v10672_v21, %v12592_v52  ;;  %v2027_v50 = vadd.f32 %v2026_v45, %v12587_v14 }
 0x210   : > { %v10673_v2 = vpop.f32.mrf.mxu0  ;;  %3218 = vmatprep.mubr.bf16.mxu1 %v12641_v22  ;;  %v12764_v20 = vsel %vm679_vm1, %v2568_v23, %v16199_v7  ;;  %v12766_v24 = vrot.slane %v2378_v25, 3  ;;  %v2390_v11 = vshll.u32 %v2248_v3, 16  ;;  %v2412_v54 = vshrl.u32 %v12739_v8, 16 }
 0x211   : > { %16204 = vst [vmem:[#allocation21_spill] sm:$0xff] %v12764_v20  ;;  %3364 = vmatmul.mubr.bf16.gmra.mxu0 %v12764_v20  ;;  %v2038_v27 = vadd.f32 %v10673_v2, %v12595_v53  ;;  %v12771_v55 = vrot.slane %v2381_v43, 4  ;;  %v2363_v52 = vrot.slane %v2361_v58, 3  ;;  %v2366_v14 = vrot.slane %v2364_v15, 4  ;;  %v10974_v43 = vld [vmem:[%s15979_s1 + $0x408] sm:$0xff]  }
 0x212   : > { %v2029_v57 = vpop.f32.mrf.mxu0  ;;  %v12773_v21 = vrot.slane %v2404_v46, 3  ;;  %3371 = vmatprep.mubr.bf16.mxu0 %v12744_v42  ;;  %9567 = vmatpush3.bf16.msra.mxu0 %v10970_v0  ;;  %v2249_v25 = vpack.c.bf16 %v2014_v38, %v2014_v38  ;;  %v2573_v26 = vshll.u32 %v12654_v56, 16  ;;  %v12786_v58 = vrot.slane %v2407_v60, 4 }
 0x213   : > { %v12779_v3 = vpack.c.bf16 %v2038_v27, %v2035_v35  ;;  %v2030_v39 = vadd.f32 %v2029_v57, %v12598_v34  ;;  %9568 = vmatprep.subr.bf16.mxu0 %v10971_v10  ;;  %v12788_v45 = vrot.slane %v2387_v51, 3  ;;  %v2254_v15 = vpack.c.bf16 %v2035_v35, %v16175_v29  ;;  %v10975_v51 = vld [vmem:[%s15979_s1 + $0x3c8] sm:$0xff]  }
 0x214   : > { %v10676_v53 = vpop.f32.mrf.mxu0  ;;  %v2252_v38 = vpack.c.bf16 %v2027_v50, %v16175_v29  ;;  %v12792_v46 = vrot.slane %v2390_v11, 4  ;;  %v12794_v23 = vrot.slane %v2412_v54, 3  ;;  %v2415_v34 = vshll.u32 %v12739_v8, 16 }
 0x215   : > { %v12797_v0 = vpack.c.bf16 %v2030_v39, %v2027_v50  ;;  %v2255_v10 = vpack.c.bf16 %v2038_v27, %v2038_v27  ;;  %v2571_v57 = vshrl.u32 %v12654_v56, 16  ;;  %v2575_v60 = vrot.slane %v2573_v26, 1  ;;  %v10976_v27 = vld [vmem:[%s15979_s1 + $0x400] sm:$0xff]  }
 0x216   : > { %v2042_v2 = vpop.f32.mrf.mxu0  ;;  %v2367_v17 = vor.u32 %v2366_v14, %v2363_v52  ;;  %9569 = vmatpush3.bf16.msra.mxu0 %v10972_v13  ;;  %v2395_v35 = vshrl.u32 %v2249_v25, 16  ;;  %v2398_v11 = vshll.u32 %v2249_v25, 16  ;;  %v2051_v54 = vadd.f32 %v10676_v53, %v12604_v48 }
 0x217   : > { %3219 = vmatmul.mubr.bf16.gmra.mxu1 %v12744_v42  ;;  %v2359_v50 = vor.u32 %v12753_v59, %v12751_v40  ;;  %9570 = vmatprep.subr.bf16.mxu0 %v10974_v43  ;;  %v2438_v52 = vshrl.u32 %v2254_v15, 16  ;;  %v2441_v14 = vshll.u32 %v2254_v15, 16  ;;  %v2421_v13 = vshrl.u32 %v2252_v38, 16  ;;  %v10977_v15 = vld [vmem:[%s15979_s1 + $0x3c0] sm:$0xff]  }
 0x218   : > { %v10677_v8 = vpop.f32.mrf.mxu0  ;;  %3226 = vmatprep.mubr.bf16.mxu1 %v12688_v9  ;;  %v2576_v26 = vor.u32 %v2575_v60, %v2571_v57  ;;  %v2424_v25 = vshll.u32 %v2252_v38, 16  ;;  %v2253_v56 = vpack.c.bf16 %v2030_v39, %v2030_v39  ;;  %v12815_v40 = vrot.slane %v2415_v34, 4 }
 0x219   : > { %v2054_v48 = vadd.f32 %v10677_v8, %v12632_v28  ;;  %v12813_v53 = vsel %vm398_vm0, %v2359_v50, %v2367_v17  ;;  %v2446_v59 = vshrl.u32 %v2255_v10, 16  ;;  %v2449_v43 = vshll.u32 %v2255_v10, 16 }
 0x21a   : > { %16205 = vst [vmem:[#allocation22_spill] sm:$0xff] %v12813_v53  ;;  %v2045_v42 = vpop.f32.mrf.mxu0  ;;  %v2043_v63 = vadd.f32 %v2042_v2, %v12601_v18  ;;  %9571 = vmatpush3.bf16.msra.mxu0 %v10975_v51  ;;  %v2258_v38 = vpack.c.bf16 %v2051_v54, %v16175_v29  ;;  %v12824_v28 = vsel %vm679_vm1, %v2576_v26, %v16199_v7  ;;  %v12829_v10 = vrot.slane %v2395_v35, 3 }
 0x21b   : > { %16206 = vst [vmem:[#allocation24_spill] sm:$0xff] %v12824_v28  ;;  %v12826_v17 = vpack.c.bf16 %v2054_v48, %v2051_v54  ;;  %v2046_v39 = vadd.f32 %v2045_v42, %v12607_v16  ;;  %9572 = vmatprep.subr.bf16.mxu0 %v10976_v27  ;;  %v12831_v18 = vrot.slane %v2398_v11, 4  ;;  %v12833_v2 = vrot.slane %v2438_v52, 3  ;;  %3372 = vmatmul.mubr.bf16.gmra.mxu0 %v12824_v28 }
 0x21c   : > { %v10680_v34 = vpop.f32.mrf.mxu0  ;;  %v12835_v57 = vrot.slane %v2441_v14, 4  ;;  %v12838_v60 = vrot.slane %v2421_v13, 3  ;;  %v12840_v51 = vrot.slane %v2424_v25, 4  ;;  %v2429_v54 = vshrl.u32 %v2253_v56, 16  ;;  %3379 = vmatprep.mubr.bf16.mxu0 %v12813_v53 }
 0x21d   : > { %v12843_v16 = vpack.c.bf16 %v2046_v39, %v2043_v63  ;;  %v2432_v35 = vshll.u32 %v2253_v56, 16  ;;  %v2256_v11 = vpack.c.bf16 %v2043_v63, %v16175_v29  ;;  %v2067_v8 = vadd.f32 %v10680_v34, %v12645_v6 }
 0x21e   : > { %v2058_v42 = vpop.f32.mrf.mxu0  ;;  %v2581_v50 = vshll.u32 %v12641_v22, 16  ;;  %9573 = vmatpush3.bf16.msra.mxu0 %v10977_v15  ;;  %v12848_v27 = vrot.slane %v2446_v59, 3  ;;  %v12850_v52 = vrot.slane %v2449_v43, 4  ;;  %v2472_v14 = vshrl.u32 %v2258_v38, 16 }
 0x21f   : > { %v2475_v13 = vshll.u32 %v2258_v38, 16  ;;  %3227 = vmatmul.mubr.bf16.gmra.mxu1 %v12813_v53  ;;  %v2259_v25 = vpack.c.bf16 %v2054_v48, %v2054_v48  ;;  %v2257_v28 = vpack.c.bf16 %v2046_v39, %v2046_v39  ;;  %v2579_v63 = vshrl.u32 %v12641_v22, 16 }
 0x220   : > { %v10681_v26 = vpop.f32.mrf.mxu0  ;;  %3234 = vmatprep.mubr.bf16.mxu1 %v12682_v62  ;;  %v2583_v56 = vrot.slane %v2581_v50, 1  ;;  %v2059_v6 = vadd.f32 %v2058_v42, %v12635_v31  ;;  %v2376_v59 = vor.u32 %v12749_v44, %v12728_v47  ;;  %v2384_v43 = vor.u32 %v12771_v55, %v12766_v24 }
 0x221   : > { %v2070_v15 = vadd.f32 %v10681_v26, %v12686_v19  ;;  %v12861_v34 = vrot.slane %v2429_v54, 3  ;;  %v12863_v48 = vrot.slane %v2432_v35, 4  ;;  %v2455_v39 = vshrl.u32 %v2256_v11, 16 }
 0x222   : > { %v2061_v38 = vpop.f32.mrf.mxu0  ;;  %v2262_v53 = vpack.c.bf16 %v2067_v8, %v16175_v29  ;;  %v2458_v22 = vshll.u32 %v2256_v11, 16  ;;  %v2584_v50 = vor.u32 %v2583_v56, %v2579_v63  ;;  %v12869_v31 = vsel %vm398_vm0, %v2376_v59, %v2384_v43 }
 0x223   : > { %v12866_v12 = vpack.c.bf16 %v2070_v15, %v2067_v8  ;;  %16207 = vst [vmem:[#allocation27_spill] sm:$0xff] %v12869_v31  ;;  %v2480_v47 = vshrl.u32 %v2259_v25, 16  ;;  %v2483_v44 = vshll.u32 %v2259_v25, 16  ;;  %v2463_v42 = vshrl.u32 %v2257_v28, 16 }
 0x224   : > { %v10684_v19 = vpop.f32.mrf.mxu0  ;;  %v2062_v24 = vadd.f32 %v2061_v38, %v12638_v5  ;;  %v12872_v55 = vrot.slane %v2472_v14, 3  ;;  %v12874_v54 = vrot.slane %v2475_v13, 4  ;;  %v2260_v35 = vpack.c.bf16 %v2059_v6, %v16175_v29 }
 0x225   : > { %v12879_v11 = vsel %vm679_vm1, %v2584_v50, %v16199_v7  ;;  %v12881_v26 = vrot.slane %v2455_v39, 3  ;;  %v2466_v63 = vshll.u32 %v2257_v28, 16  ;;  %v2506_v56 = vshrl.u32 %v2262_v53, 16 }
 0x226   : > { %16208 = vst [vmem:[#allocation29_spill] sm:$0xff] %v12879_v11  ;;  %v2074_v8 = vpop.f32.mrf.mxu0  ;;  %3380 = vmatmul.mubr.bf16.gmra.mxu0 %v12879_v11  ;;  %v12884_v25 = vpack.c.bf16 %v2062_v24, %v2059_v6  ;;  %v12886_v5 = vrot.slane %v2458_v22, 4  ;;  %v2263_v14 = vpack.c.bf16 %v2070_v15, %v2070_v15  ;;  %v2589_v13 = vshll.u32 %v12688_v9, 16 }
 0x227   : > { %3387 = vmatprep.mubr.bf16.mxu0 %v12869_v31  ;;  %3235 = vmatmul.mubr.bf16.gmra.mxu1 %v12869_v31  ;;  %v1925_v59 = vadd.f32 %v12720_v61, %v12550_v32  ;;  %v12893_v38 = vrot.slane %v2480_v47, 3  ;;  %v12895_v28 = vrot.slane %v2483_v44, 4  ;;  %v12897_v39 = vrot.slane %v2463_v42, 3 }
 0x228   : > { %v10685_v43 = vpop.f32.mrf.mxu0  ;;  %v2509_v6 = vshll.u32 %v2262_v53, 16  ;;  %3242 = vmatprep.mubr.bf16.mxu1 %v12741_v36  ;;  %v2489_v22 = vshrl.u32 %v2260_v35, 16  ;;  %v2587_v15 = vshrl.u32 %v12688_v9, 16  ;;  %v2591_v50 = vrot.slane %v2589_v13, 1 }
 0x229   : > { %v2086_v31 = vadd.f32 %v10685_v43, %v1925_v59  ;;  %v12901_v41 = vrot.slane %v2466_v63, 4  ;;  %v12903_v20 = vrot.slane %v2506_v56, 3  ;;  %v2261_v32 = vpack.c.bf16 %v2062_v24, %v2062_v24 }
 0x22a   : > { %v2077_v11 = vpop.f32.mrf.mxu0  ;;  %v2083_v61 = vadd.f32 %v10684_v19, %v12691_v33  ;;  %v2492_v47 = vshll.u32 %v2260_v35, 16  ;;  %v2514_v44 = vshrl.u32 %v2263_v14, 16  ;;  %v2075_v42 = vadd.f32 %v2074_v8, %v12694_v49 }
 0x22b   : > { %v2592_v53 = vor.u32 %v2591_v50, %v2587_v15  ;;  %v2393_v9 = vor.u32 %v12792_v46, %v12788_v45  ;;  %v2401_v13 = vor.u32 %v12831_v18, %v12829_v10  ;;  %v2078_v63 = vadd.f32 %v2077_v11, %v12697_v1 }
 0x22c   : > { %v12907_v30 = vpack.c.bf16 %v2086_v31, %v2083_v61  ;;  %v12914_v56 = vrot.slane %v2509_v6, 4  ;;  %v12916_v24 = vrot.slane %v2489_v22, 3  ;;  %v2517_v33 = vshll.u32 %v2263_v14, 16 }
 0x22d   : > { %v12920_v19 = vsel %vm679_vm1, %v2592_v53, %v16199_v7  ;;  %v2497_v49 = vshrl.u32 %v2261_v32, 16  ;;  %v2266_v35 = vpack.c.bf16 %v2083_v61, %v16175_v29  ;;  %v12925_v45 = vsel %vm398_vm0, %v2393_v9, %v2401_v13 }
 0x22e   : > { %3388 = vmatmul.mubr.bf16.gmra.mxu0 %v12920_v19  ;;  %v12927_v46 = vpack.c.bf16 %v2078_v63, %v2075_v42  ;;  %v2264_v1 = vpack.c.bf16 %v2075_v42, %v16175_v29  ;;  %v2597_v10 = vshll.u32 %v12682_v62, 16  ;;  %v2410_v18 = vor.u32 %v12786_v58, %v12773_v21 }
 0x22f   : > { %3395 = vmatprep.mubr.bf16.mxu0 %v12925_v45  ;;  %3243 = vmatmul.mubr.bf16.gmra.mxu1 %v12925_v45  ;;  %v2418_v11 = vor.u32 %v12815_v40, %v12794_v23  ;;  %v2494_v8 = vrot.slane %v2492_v47, 4  ;;  %v2516_v14 = vrot.slane %v2514_v44, 3  ;;  %v2500_v9 = vshll.u32 %v2261_v32, 16 }
 0x230   : > { %3250 = vmatprep.mubr.bf16.mxu1 %v12735_v37  ;;  %v2595_v59 = vshrl.u32 %v12682_v62, 16  ;;  %v2265_v43 = vpack.c.bf16 %v2078_v63, %v2078_v63  ;;  %v2599_v6 = vrot.slane %v2597_v10, 1  ;;  %v2605_v15 = vshll.u32 %v12741_v36, 16 }
 0x231   : > { %v12940_v22 = vsel %vm398_vm0, %v2410_v18, %v2418_v11  ;;  %v2519_v50 = vrot.slane %v2517_v33, 4  ;;  %v2690_v61 = vshrl.u32 %v2266_v35, 16  ;;  %v2427_v21 = vor.u32 %v12840_v51, %v12838_v60 }
 0x232   : > { %v2435_v58 = vor.u32 %v12863_v48, %v12861_v34  ;;  %v2499_v23 = vrot.slane %v2497_v49, 3  ;;  %v2523_v40 = vshrl.u32 %v2264_v1, 16  ;;  %v2267_v32 = vpack.c.bf16 %v2086_v31, %v2086_v31 }
 0x233   : > { %v2600_v47 = vor.u32 %v2599_v6, %v2595_v59  ;;  %v2502_v44 = vrot.slane %v2500_v9, 4  ;;  %v2444_v53 = vor.u32 %v12835_v57, %v12833_v2  ;;  %v2452_v13 = vor.u32 %v12850_v52, %v12848_v27 }
 0x234   : > { %v12948_v42 = vsel %vm398_vm0, %v2427_v21, %v2435_v58  ;;  %v2526_v63 = vshll.u32 %v2264_v1, 16  ;;  %v2531_v33 = vshrl.u32 %v2265_v43, 16  ;;  %v2607_v51 = vrot.slane %v2605_v15, 1 }
 0x235   : > { %v12956_v60 = vsel %vm679_vm1, %v2600_v47, %v16199_v7  ;;  %v2534_v34 = vshll.u32 %v2265_v43, 16  ;;  %v12960_v48 = vsel %vm398_vm0, %v2444_v53, %v2452_v13  ;;  %v2461_v31 = vor.u32 %v12886_v5, %v12881_v26 }
 0x236   : > { %3396 = vmatmul.mubr.bf16.gmra.mxu0 %v12956_v60  ;;  %v2469_v2 = vor.u32 %v12901_v41, %v12897_v39  ;;  %v2693_v57 = vshll.u32 %v2266_v35, 16  ;;  %v2525_v27 = vrot.slane %v2523_v40, 3  ;;  %v2698_v52 = vshrl.u32 %v2267_v32, 16 }
 0x237   : > { %3403 = vmatprep.mubr.bf16.mxu0 %v12940_v22  ;;  %3251 = vmatmul.mubr.bf16.gmra.mxu1 %v12940_v22  ;;  %v2603_v49 = vshrl.u32 %v12741_v36, 16  ;;  %v2701_v1 = vshll.u32 %v2267_v32, 16  ;;  %v2478_v26 = vor.u32 %v12874_v54, %v12872_v55  ;;  %v2486_v41 = vor.u32 %v12895_v28, %v12893_v38  ;;  %v9238_v28 = vpop.f32.mrf.mxu1 }
 0x238   : > { %3258 = vmatprep.mubr.bf16.mxu1 %v12797_v0  ;;  %v12971_v10 = vsel %vm398_vm0, %v2461_v31, %v2469_v2  ;;  %v2528_v5 = vrot.slane %v2526_v63, 4  ;;  %v2533_v39 = vrot.slane %v2531_v33, 3  ;;  %v2613_v18 = vshll.u32 %v12735_v37, 16 }
 0x239   : > { %v2608_v35 = vor.u32 %v2607_v51, %v2603_v49  ;;  %v2536_v11 = vrot.slane %v2534_v34, 4  ;;  %v12979_v9 = vsel %vm398_vm0, %v2478_v26, %v2486_v41  ;;  %v2495_v59 = vor.u32 %v2494_v8, %v12916_v24 }
 0x23a   : > { %v2503_v43 = vor.u32 %v2502_v44, %v2499_v23  ;;  %v2692_v6 = vrot.slane %v2690_v61, 3  ;;  %v2695_v15 = vrot.slane %v2693_v57, 4  ;;  %v2700_v21 = vrot.slane %v2698_v52, 3  ;;  %v9239_v23 = vpop.f32.mrf.mxu1 }
 0x23b   : > { %v2703_v58 = vrot.slane %v2701_v1, 4  ;;  %v2512_v54 = vor.u32 %v12914_v56, %v12903_v20  ;;  %v2520_v38 = vor.u32 %v2519_v50, %v2516_v14  ;;  %v12989_v40 = vsel %vm679_vm1, %v2608_v35, %v16199_v7 }
 0x23c   : > { %v12983_v55 = vsel %vm398_vm0, %v2495_v59, %v2503_v43  ;;  %v2615_v32 = vrot.slane %v2613_v18, 1  ;;  %v2529_v8 = vor.u32 %v2528_v5, %v2525_v27  ;;  %v2537_v61 = vor.u32 %v2536_v11, %v2533_v39 }
 0x23d   : > { %v12993_v24 = vsel %vm398_vm0, %v2512_v54, %v2520_v38  ;;  %v2611_v20 = vshrl.u32 %v12735_v37, 16  ;;  %v2696_v14 = vor.u32 %v2695_v15, %v2692_v6  ;;  %v2704_v50 = vor.u32 %v2703_v58, %v2700_v21 }
 0x23e   : > { %3404 = vmatmul.mubr.bf16.gmra.mxu0 %v12989_v40  ;;  %v13000_v56 = vsel %vm398_vm0, %v2529_v8, %v2537_v61  ;;  %v2621_v44 = vshll.u32 %v12797_v0, 16  ;;  %v13003_v53 = vadd.f32 %v9239_v23, %v9238_v28  ;;  %v2619_v51 = vshrl.u32 %v12797_v0, 16  ;;  %v16209_v23 = vld [vmem:[#allocation4_spill] sm:$0xff] }
 0x23f   : > { %3411 = vmatprep.mubr.bf16.mxu0 %v12948_v42  ;;  %3259 = vmatmul.mubr.bf16.gmra.mxu1 %v12948_v42  ;;  %v2616_v47 = vor.u32 %v2615_v32, %v2611_v20  ;;  %v13006_v13 = vsel %vm398_vm0, %v2696_v14, %v2704_v50  ;;  %v2629_v31 = vshll.u32 %v12779_v3, 16  ;;  %v2627_v27 = vshrl.u32 %v12779_v3, 16  ;;  %v10978_v50 = vld [vmem:[%s15979_s1 + $0x470] sm:$0xff]  }
 0x240   : > { %3266 = vmatprep.mubr.bf16.mxu1 %v12779_v3  ;;  %v2623_v33 = vrot.slane %v2621_v44, 1  ;;  %v2637_v49 = vshll.u32 %v12843_v16, 16  ;;  %v2635_v41 = vshrl.u32 %v12843_v16, 16  ;;  %v2645_v39 = vshll.u32 %v12826_v17, 16  ;;  %v16211_v44 = vld [vmem:[#allocation5_spill] sm:$0xff] }
 0x241   : > { %v13010_v63 = vsel %vm679_vm1, %v2616_v47, %v16199_v7  ;;  %v2631_v57 = vrot.slane %v2629_v31, 1  ;;  %v2643_v11 = vshrl.u32 %v12826_v17, 16  ;;  %v2653_v43 = vshll.u32 %v12884_v25, 16  ;;  %v16210_v47 = vld [vmem:[#allocation21_spill] sm:$0xff]  ;;  %v10980_v31 = vld [vmem:[%s15979_s1 + $0x460] sm:$0xff]  }
 0x242   : > { %v2624_v34 = vor.u32 %v2623_v33, %v2619_v51  ;;  %v2639_v26 = vrot.slane %v2637_v49, 1  ;;  %v2647_v18 = vrot.slane %v2645_v39, 1  ;;  %v2651_v21 = vshrl.u32 %v12884_v25, 16  ;;  %v10979_v51 = vld [vmem:[%s15979_s1 + $0x468] sm:$0xff]   ;;  %v10982_v49 = vld [vmem:[%s15979_s1 + $0x450] sm:$0xff]  }
 0x243   : > { %v2632_v52 = vor.u32 %v2631_v57, %v2627_v27  ;;  %v2655_v15 = vrot.slane %v2653_v43, 1  ;;  %v2661_v54 = vshll.u32 %v12866_v12, 16  ;;  %v2659_v32 = vshrl.u32 %v12866_v12, 16  ;;  %v16212_v57 = vld [vmem:[#allocation13_spill] sm:$0xff]  ;;  %v16213_v27 = vld [vmem:[#allocation24_spill] sm:$0xff]  ;;  %v10983_v39 = vld [vmem:[%s15979_s1 + $0x448] sm:$0xff]  }
 0x244   : > { %v13020_v2 = vsel %vm679_vm1, %v2624_v34, %v16199_v7  ;;  %v2640_v5 = vor.u32 %v2639_v26, %v2635_v41  ;;  %v2648_v59 = vor.u32 %v2647_v18, %v2643_v11  ;;  %v2669_v61 = vshll.u32 %v12927_v46, 16  ;;  %v16214_v26 = vld [vmem:[#allocation17_spill] sm:$0xff]  ;;  %v10984_v18 = vld [vmem:[%s15979_s1 + $0x440] sm:$0xff]   ;;  %v16217_v11 = vld [vmem:[#allocation19_spill] sm:$0xff] }
 0x245   : > { %v13030_v1 = vsel %vm679_vm1, %v2632_v52, %v16199_v7  ;;  %v2656_v58 = vor.u32 %v2655_v15, %v2651_v21  ;;  %v2663_v28 = vrot.slane %v2661_v54, 1  ;;  %v10981_v52 = vld [vmem:[%s15979_s1 + $0x458] sm:$0xff]   ;;  %v16219_v43 = vld [vmem:[#allocation11_spill] sm:$0xff]  ;;  %v16220_v15 = vld [vmem:[#allocation10_spill] sm:$0xff] }
 0x246   : > { %3412 = vmatmul.mubr.bf16.gmra.mxu0 %v13010_v63  ;;  %v13040_v35 = vsel %vm679_vm1, %v2640_v5, %v16199_v7  ;;  %v13050_v6 = vsel %vm679_vm1, %v2648_v59, %v16199_v7  ;;  %v2671_v14 = vrot.slane %v2669_v61, 1  ;;  %v16215_v41 = vld [vmem:[#allocation9_spill] sm:$0xff]  ;;  %v16218_v59 = vld [vmem:[#allocation15_spill] sm:$0xff]  ;;  %v16221_v21 = vld [vmem:[#allocation22_spill] sm:$0xff] }
 0x247   : > { %3419 = vmatprep.mubr.bf16.mxu0 %v12960_v48  ;;  %3267 = vmatmul.mubr.bf16.gmra.mxu1 %v12960_v48  ;;  %v13060_v38 = vsel %vm679_vm1, %v2656_v58, %v16199_v7  ;;  %v2664_v8 = vor.u32 %v2663_v28, %v2659_v32  ;;  %v16216_v5 = vld [vmem:[#allocation29_spill] sm:$0xff]  ;;  %v16222_v58 = vld [vmem:[#allocation27_spill] sm:$0xff] }
 0x248   : > { %3274 = vmatprep.mubr.bf16.mxu1 %v12843_v16 }
 0x249   : > { %v13070_v20 = vsel %vm679_vm1, %v2664_v8, %v16199_v7 }
 0x24e   : > { %3420 = vmatmul.mubr.bf16.gmra.mxu0 %v13020_v2 }
 0x24f   : > { %3427 = vmatprep.mubr.bf16.mxu0 %v12971_v10  ;;  %3275 = vmatmul.mubr.bf16.gmra.mxu1 %v12971_v10 }
 0x250   : > { %3282 = vmatprep.mubr.bf16.mxu1 %v12826_v17 }
 0x256   : > { %3428 = vmatmul.mubr.bf16.gmra.mxu0 %v13030_v1 }
 0x257   : > { %3435 = vmatprep.mubr.bf16.mxu0 %v12979_v9  ;;  %3283 = vmatmul.mubr.bf16.gmra.mxu1 %v12979_v9 }
 0x258   : > { %3290 = vmatprep.mubr.bf16.mxu1 %v12884_v25 }
 0x25e   : > { %3436 = vmatmul.mubr.bf16.gmra.mxu0 %v13040_v35 }
 0x25f   : > { %3443 = vmatprep.mubr.bf16.mxu0 %v12983_v55  ;;  %3291 = vmatmul.mubr.bf16.gmra.mxu1 %v12983_v55 }
 0x260   : > { %3298 = vmatprep.mubr.bf16.mxu1 %v12866_v12 }
 0x266   : > { %3444 = vmatmul.mubr.bf16.gmra.mxu0 %v13050_v6 }
 0x267   : > { %3451 = vmatprep.mubr.bf16.mxu0 %v12993_v24  ;;  %3299 = vmatmul.mubr.bf16.gmra.mxu1 %v12993_v24 }
 0x268   : > { %3306 = vmatprep.mubr.bf16.mxu1 %v12927_v46 }
 0x26e   : > { %3452 = vmatmul.mubr.bf16.gmra.mxu0 %v13060_v38 }
 0x26f   : > { %3459 = vmatprep.mubr.bf16.mxu0 %v13000_v56  ;;  %3307 = vmatmul.mubr.bf16.gmra.mxu1 %v13000_v56 }
 0x270   : > { %3508 = vmatprep.mubr.bf16.mxu1 %v12714_v4  ;;  %v2667_v4 = vshrl.u32 %v12927_v46, 16 }
 0x272   : > { %v2672_v33 = vor.u32 %v2671_v14, %v2667_v4 }
 0x274   : > { %v13086_v34 = vsel %vm679_vm1, %v2672_v33, %v16199_v7 }
 0x276   : > { %3460 = vmatmul.mubr.bf16.gmra.mxu0 %v13070_v20 }
 0x277   : > { %3467 = vmatprep.mubr.bf16.mxu0 %v13006_v13  ;;  %3509 = vmatmul.mubr.bf16.vlgmr.msra.gmra.mxu1 %v16209_v23 }
 0x278   : > { %3516 = vmatprep.mubr.bf16.mxu1 %v16210_v47  ;;  %10687 = vmatpush3.bf16.msra.mxu1 %v16211_v44 }
 0x279   : > { %10688 = vmatprep.subr.bf16.mxu1 %v10978_v50 }
 0x27c   : > { %10689 = vmatpush3.bf16.msra.mxu1 %v10978_v50 }
 0x27d   : > { %10690 = vmatprep.subr.bf16.mxu1 %v10979_v51 }
 0x27e   : > { %3468 = vmatmul.mubr.bf16.gmra.mxu0 %v13086_v34 }
 0x27f   : > { %3669 = vmatprep.mubr.bf16.mxu0 %v16212_v57  ;;  %3517 = vmatmul.mubr.bf16.gmra.mxu1 %v16212_v57 }
 0x280   : > { %3524 = vmatprep.mubr.bf16.mxu1 %v16213_v27  ;;  %10691 = vmatpush3.bf16.msra.mxu1 %v10979_v51 }
 0x281   : > { %10692 = vmatprep.subr.bf16.mxu1 %v10980_v31 }
 0x284   : > { %10693 = vmatpush3.bf16.msra.mxu1 %v10980_v31 }
 0x285   : > { %10694 = vmatprep.subr.bf16.mxu1 %v10981_v52 }
 0x286   : > { %3670 = vmatmul.mubr.bf16.vlgmr.msra.gmra.mxu0 %v16214_v26 }
 0x287   : > { %3677 = vmatprep.mubr.bf16.mxu0 %v16215_v41  ;;  %3525 = vmatmul.mubr.bf16.gmra.mxu1 %v16215_v41 }
 0x288   : > { %3532 = vmatprep.mubr.bf16.mxu1 %v16216_v5  ;;  %10695 = vmatpush3.bf16.msra.mxu1 %v10981_v52  ;;  %v10986_v52 = vld [vmem:[%s15979_s1 + $0x4b8] sm:$0xff]  }
 0x289   : > { %10696 = vmatprep.subr.bf16.mxu1 %v10982_v49 }
 0x28c   : > { %10697 = vmatpush3.bf16.msra.mxu1 %v10982_v49 }
 0x28d   : > { %10698 = vmatprep.subr.bf16.mxu1 %v10983_v39 }
 0x28e   : > { %3678 = vmatmul.mubr.bf16.gmra.mxu0 %v16217_v11 }
 0x28f   : > { %3685 = vmatprep.mubr.bf16.mxu0 %v16218_v59  ;;  %3533 = vmatmul.mubr.bf16.gmra.mxu1 %v16218_v59 }
 0x290   : > { %3540 = vmatprep.mubr.bf16.mxu1 %v12920_v19  ;;  %10699 = vmatpush3.bf16.msra.mxu1 %v10983_v39 }
 0x291   : > { %10700 = vmatprep.subr.bf16.mxu1 %v10984_v18 }
 0x294   : > { %10701 = vmatpush3.bf16.msra.mxu1 %v10984_v18 }
 0x296   : > { %3686 = vmatmul.mubr.bf16.gmra.mxu0 %v16219_v43 }
 0x297   : > { %3693 = vmatprep.mubr.bf16.mxu0 %v16220_v15  ;;  %3541 = vmatmul.mubr.bf16.gmra.mxu1 %v16220_v15 }
 0x298   : > { %3548 = vmatprep.mubr.bf16.mxu1 %v12956_v60 }
 0x29e   : > { %3694 = vmatmul.mubr.bf16.gmra.mxu0 %v16221_v21 }
 0x29f   : > { %3701 = vmatprep.mubr.bf16.mxu0 %v12682_v62  ;;  %3549 = vmatmul.mubr.bf16.gmra.mxu1 %v12682_v62  ;;  %v9241_v62 = vpop.f32.mrf.mxu1 }
 0x2a0   : > { %3556 = vmatprep.mubr.bf16.mxu1 %v12989_v40 }
 0x2a6   : > { %3702 = vmatmul.mubr.bf16.gmra.mxu0 %v16222_v58 }
 0x2a7   : > { %3709 = vmatprep.mubr.bf16.mxu0 %v12741_v36  ;;  %3557 = vmatmul.mubr.bf16.gmra.mxu1 %v12741_v36  ;;  %v9242_v36 = vpop.f32.mrf.mxu1 }
 0x2a8   : > { %3564 = vmatprep.mubr.bf16.mxu1 %v13010_v63 }
 0x2ae   : > { %3710 = vmatmul.mubr.bf16.gmra.mxu0 %v12925_v45 }
 0x2af   : > { %3717 = vmatprep.mubr.bf16.mxu0 %v12735_v37  ;;  %3565 = vmatmul.mubr.bf16.gmra.mxu1 %v12735_v37  ;;  %v13141_v37 = vld [vmem:[%s15980_s2 + $0x1] ss:$0 sm:$0xff] }
 0x2b0   : > { %3572 = vmatprep.mubr.bf16.mxu1 %v13020_v2  ;;  %v3189_v32 = vadd.f32 %v13003_v53, %v13141_v37  ;;  %v10985_v53 = vld [vmem:[%s15979_s1 + $0x4f8] sm:$0xff]  }
 0x2b1   : > { %9694 = vmatprep.subr.bf16.mxu0 %v10985_v53 }
 0x2b2   : > { %9695 = vmatpush3.bf16.msra.mxu0 %v10986_v52 }
 0x2b6   : > { %3718 = vmatmul.mubr.bf16.gmra.mxu0 %v12940_v22 }
 0x2b7   : > { %3725 = vmatprep.mubr.bf16.mxu0 %v12797_v0  ;;  %3573 = vmatmul.mubr.bf16.gmra.mxu1 %v12797_v0 }
 0x2b8   : > { %3580 = vmatprep.mubr.bf16.mxu1 %v13030_v1 }
 0x2be   : > { %3726 = vmatmul.mubr.bf16.gmra.mxu0 %v12948_v42  ;;  %v9243_v42 = vadd.f32 %v9242_v36, %v9241_v62 }
 0x2bf   : > { %3733 = vmatprep.mubr.bf16.mxu0 %v12779_v3  ;;  %v9244_v45 = vpop.f32.mrf.mxu1  ;;  %3581 = vmatmul.mubr.bf16.gmra.mxu1 %v12779_v3 }
 0x2c0   : > { %v9350_v22 = vpop.f32.mrf.mxu0  ;;  %3588 = vmatprep.mubr.bf16.mxu1 %v13040_v35  ;;  %v3192_v44 = vadd.f32 %v9243_v42, %v13141_v37 }
 0x2c1   : > { %v9245_v0 = vpop.f32.mrf.mxu1 }
 0x2c2   : > { %v9246_v54 = vadd.f32 %v9245_v0, %v9244_v45  ;;  %v9351_v28 = vpop.f32.mrf.mxu0 }
 0x2c3   : > { %v9352_v8 = vadd.f32 %v9351_v28, %v9350_v22  ;;  %v9247_v61 = vpop.f32.mrf.mxu1 }
 0x2c4   : > { %v9353_v14 = vpop.f32.mrf.mxu0  ;;  %v3197_v41 = vadd.f32 %v9246_v54, %v13141_v37 }
 0x2c5   : > { %v13146_v50 = vadd.f32 %v9352_v8, %v3189_v32  ;;  %v9248_v3 = vpop.f32.mrf.mxu1 }
 0x2c6   : > { %3734 = vmatmul.mubr.bf16.gmra.mxu0 %v12960_v48  ;;  %v9249_v23 = vadd.f32 %v9248_v3, %v9247_v61  ;;  %v9354_v4 = vpop.f32.mrf.mxu0 }
 0x2c7   : > { %3741 = vmatprep.mubr.bf16.mxu0 %v12843_v16  ;;  %v9355_v33 = vadd.f32 %v9354_v4, %v9353_v14  ;;  %v9250_v51 = vpop.f32.mrf.mxu1  ;;  %3589 = vmatmul.mubr.bf16.gmra.mxu1 %v12843_v16 }
 0x2c8   : > { %v9356_v31 = vpop.f32.mrf.mxu0  ;;  %3596 = vmatprep.mubr.bf16.mxu1 %v13050_v6  ;;  %v3200_v21 = vadd.f32 %v9249_v23, %v13141_v37 }
 0x2c9   : > { %v13156_v57 = vadd.f32 %v9355_v33, %v3192_v44  ;;  %v9251_v48 = vpop.f32.mrf.mxu1  ;;  %v10988_v33 = vld [vmem:[%s15979_s1 + $0x4b0] sm:$0xff]  }
 0x2ca   : > { %v9252_v49 = vadd.f32 %v9251_v48, %v9250_v51  ;;  %v9357_v26 = vpop.f32.mrf.mxu0  ;;  %v2710_v48 = vshll.u32 %v12907_v30, 16 }
 0x2cb   : > { %v9358_v16 = vadd.f32 %v9357_v26, %v9356_v31  ;;  %v9253_v39 = vpop.f32.mrf.mxu1 }
 0x2cc   : > { %v9359_v18 = vpop.f32.mrf.mxu0 }
 0x2cd   : > { %v13162_v11 = vadd.f32 %v9358_v16, %v3197_v41  ;;  %v9254_v59 = vpop.f32.mrf.mxu1 }
 0x2ce   : > { %3742 = vmatmul.mubr.bf16.gmra.mxu0 %v12971_v10  ;;  %v9255_v43 = vadd.f32 %v9254_v59, %v9253_v39  ;;  %v9360_v15 = vpop.f32.mrf.mxu0  ;;  %v3205_v10 = vadd.f32 %v9252_v49, %v13141_v37 }
 0x2cf   : > { %3749 = vmatprep.mubr.bf16.mxu0 %v12826_v17  ;;  %v9361_v58 = vadd.f32 %v9360_v15, %v9359_v18  ;;  %v9256_v62 = vpop.f32.mrf.mxu1  ;;  %3597 = vmatmul.mubr.bf16.gmra.mxu1 %v12826_v17  ;;  %v10987_v17 = vld [vmem:[%s15979_s1 + $0x4f0] sm:$0xff]   ;;  %v2712_v18 = vrot.slane %v2710_v48, 1 }
 0x2d0   : > { %3604 = vmatprep.mubr.bf16.mxu1 %v13060_v38  ;;  %v3208_v4 = vadd.f32 %v9255_v43, %v13141_v37  ;;  %9696 = vmatprep.subr.bf16.mxu0 %v10987_v17 }
 0x2d1   : > { %v13169_v36 = vadd.f32 %v9361_v58, %v3200_v21  ;;  %v9362_v45 = vpop.f32.mrf.mxu0  ;;  %v9257_v22 = vpop.f32.mrf.mxu1  ;;  %9697 = vmatpush3.bf16.msra.mxu0 %v10988_v33  ;;  %v2708_v21 = vshrl.u32 %v12907_v30, 16 }
 0x2d2   : > { %v9258_v0 = vadd.f32 %v9257_v22, %v9256_v62 }
 0x2d3   : > { %v9363_v54 = vpop.f32.mrf.mxu0  ;;  %v9259_v28 = vpop.f32.mrf.mxu1 }
 0x2d4   : > { %v9364_v32 = vadd.f32 %v9363_v54, %v9362_v45  ;;  %v3213_v41 = vadd.f32 %v9258_v0, %v13141_v37  ;;  %v2713_v0 = vor.u32 %v2712_v18, %v2708_v21 }
 0x2d5   : > { %v9365_v42 = vpop.f32.mrf.mxu0  ;;  %v9260_v8 = vpop.f32.mrf.mxu1 }
 0x2d6   : > { %3750 = vmatmul.mubr.bf16.gmra.mxu0 %v12979_v9  ;;  %v13173_v61 = vadd.f32 %v9364_v32, %v3205_v10  ;;  %v9261_v14 = vadd.f32 %v9260_v8, %v9259_v28  ;;  %v10989_v32 = vld [vmem:[%s15979_s1 + $0x4e8] sm:$0xff]   ;;  %v13207_v8 = vsel %vm679_vm1, %v2713_v0, %v16199_v7 }
 0x2d7   : > { %3757 = vmatprep.mubr.bf16.mxu0 %v12884_v25  ;;  %v9366_v3 = vpop.f32.mrf.mxu0  ;;  %v9262_v23 = vpop.f32.mrf.mxu1  ;;  %3605 = vmatmul.mubr.bf16.gmra.mxu1 %v12884_v25 }
 0x2d8   : > { %v9367_v44 = vadd.f32 %v9366_v3, %v9365_v42  ;;  %3612 = vmatprep.mubr.bf16.mxu1 %v13070_v20  ;;  %v3216_v62 = vadd.f32 %v9261_v14, %v13141_v37  ;;  %9698 = vmatprep.subr.bf16.mxu0 %v10989_v32 }
 0x2d9   : > { %v9263_v9 = vpop.f32.mrf.mxu1 }
 0x2da   : > { %v13185_v51 = vadd.f32 %v9367_v44, %v3208_v4  ;;  %v9264_v53 = vadd.f32 %v9263_v9, %v9262_v23  ;;  %v10990_v23 = vld [vmem:[%s15979_s1 + $0x4a8] sm:$0xff]  }
 0x2db   : > { %v9265_v31 = vpop.f32.mrf.mxu1  ;;  %v9368_v52 = vpop.f32.mrf.mxu0  ;;  %9699 = vmatpush3.bf16.msra.mxu0 %v10990_v23 }
 0x2dd   : > { %v9266_v25 = vpop.f32.mrf.mxu1  ;;  %v9369_v49 = vpop.f32.mrf.mxu0 }
 0x2de   : > { %3758 = vmatmul.mubr.bf16.gmra.mxu0 %v12983_v55  ;;  %v9267_v26 = vadd.f32 %v9266_v25, %v9265_v31  ;;  %v9370_v16 = vadd.f32 %v9369_v49, %v9368_v52 }
 0x2df   : > { %3765 = vmatprep.mubr.bf16.mxu0 %v12866_v12  ;;  %v9268_v39 = vpop.f32.mrf.mxu1  ;;  %3613 = vmatmul.mubr.bf16.gmra.mxu1 %v12866_v12  ;;  %v9371_v59 = vpop.f32.mrf.mxu0 }
 0x2e0   : > { %3620 = vmatprep.mubr.bf16.mxu1 %v13086_v34  ;;  %v13193_v43 = vadd.f32 %v9370_v16, %v3213_v41  ;;  %v3224_v31 = vadd.f32 %v9267_v26, %v13141_v37 }
 0x2e1   : > { %v9269_v15 = vpop.f32.mrf.mxu1  ;;  %v9372_v55 = vpop.f32.mrf.mxu0 }
 0x2e2   : > { %v9270_v58 = vadd.f32 %v9269_v15, %v9268_v39  ;;  %v9373_v45 = vadd.f32 %v9372_v55, %v9371_v59 }
 0x2e3   : > { %v9271_v22 = vpop.f32.mrf.mxu1 }
 0x2e4   : > { %v13197_v54 = vadd.f32 %v9373_v45, %v3216_v62  ;;  %v3229_v39 = vadd.f32 %v9270_v58, %v13141_v37 }
 0x2e5   : > { %v9272_v28 = vpop.f32.mrf.mxu1 }
 0x2e6   : > { %v9374_v12 = vpop.f32.mrf.mxu0  ;;  %3766 = vmatmul.mubr.bf16.gmra.mxu0 %v12993_v24  ;;  %v9273_v10 = vadd.f32 %v9272_v28, %v9271_v22  ;;  %v3221_v24 = vadd.f32 %v9264_v53, %v13141_v37 }
 0x2e7   : > { %3773 = vmatprep.mubr.bf16.mxu0 %v12927_v46  ;;  %v9274_v42 = vpop.f32.mrf.mxu1  ;;  %3621 = vmatmul.mubr.bf16.gmra.mxu1 %v12927_v46 }
 0x2e8   : > { %v9375_v14 = vpop.f32.mrf.mxu0  ;;  %3628 = vmatprep.mubr.bf16.mxu1 %v13207_v8  ;;  %v3232_v62 = vadd.f32 %v9273_v10, %v13141_v37 }
 0x2e9   : > { %v9376_v17 = vadd.f32 %v9375_v14, %v9374_v12  ;;  %v9275_v3 = vpop.f32.mrf.mxu1  ;;  %v16223_v12 = vmov 0.0|0.0   ;;  %v10992_v14 = vld [vmem:[%s15979_s1 + $0x4a0] sm:$0xff]  }
 0x2ea   : > { %v9377_v4 = vpop.f32.mrf.mxu0  ;;  %v9276_v44 = vadd.f32 %v9275_v3, %v9274_v42 }
 0x2eb   : > { %v13214_v9 = vadd.f32 %v9376_v17, %v3221_v24  ;;  %v9277_v46 = vpop.f32.mrf.mxu1 }
 0x2ec   : > { %v9378_v33 = vpop.f32.mrf.mxu0  ;;  %v3237_v10 = vadd.f32 %v9276_v44, %v13141_v37 }
 0x2ed   : > { %v9379_v48 = vadd.f32 %v9378_v33, %v9377_v4  ;;  %v9278_v52 = vpop.f32.mrf.mxu1 }
 0x2ee   : > { %v9380_v25 = vpop.f32.mrf.mxu0  ;;  %3774 = vmatmul.mubr.bf16.gmra.mxu0 %v13000_v56  ;;  %v9279_v53 = vadd.f32 %v9278_v52, %v9277_v46 }
 0x2ef   : > { %v13218_v49 = vadd.f32 %v9379_v48, %v3224_v31  ;;  %3781 = vmatprep.mubr.bf16.mxu0 %v12907_v30  ;;  %v9280_v41 = vpop.f32.mrf.mxu1  ;;  %3629 = vmatmul.mubr.bf16.gmra.mxu1 %v12907_v30  ;;  %v16224_v31 = vld [vmem:[#allocation2_spill] sm:$0xff] }
 0x2f0   : > { %v9381_v16 = vpop.f32.mrf.mxu0  ;;  %10702 = vmatprep.mubr.bf16.mxu1 %v16210_v47  ;;  %v10991_v47 = vld [vmem:[%s15979_s1 + $0x4e0] sm:$0xff]  }
 0x2f1   : > { %v9382_v18 = vadd.f32 %v9381_v16, %v9380_v25  ;;  %v9281_v26 = vpop.f32.mrf.mxu1  ;;  %9700 = vmatprep.subr.bf16.mxu0 %v10991_v47 }
 0x2f2   : > { %v9383_v59 = vpop.f32.mrf.mxu0  ;;  %v9282_v15 = vadd.f32 %v9281_v26, %v9280_v41  ;;  %9701 = vmatpush3.bf16.msra.mxu0 %v10992_v14 }
 0x2f3   : > { %v13224_v21 = vadd.f32 %v9382_v18, %v3229_v39  ;;  %v9283_v56 = vpop.f32.mrf.mxu1 }
 0x2f4   : > { %v9384_v55 = vpop.f32.mrf.mxu0  ;;  %v3245_v41 = vadd.f32 %v9282_v15, %v13141_v37 }
 0x2f5   : > { %v9385_v45 = vadd.f32 %v9384_v55, %v9383_v59  ;;  %v9284_v22 = vpop.f32.mrf.mxu1 }
 0x2f6   : > { %v9386_v0 = vpop.f32.mrf.mxu0  ;;  %3782 = vmatmul.mubr.bf16.gmra.mxu0 %v13006_v13  ;;  %v9285_v30 = vadd.f32 %v9284_v22, %v9283_v56 }
 0x2f7   : > { %v13231_v58 = vadd.f32 %v9385_v45, %v3232_v62  ;;  %v9286_v28 = vpop.f32.mrf.mxu1  ;;  %3789 = vmatprep.mubr.bf16.mxu0 %v16223_v12  ;;  %10703 = vmatmul.mubr.bf16.vlgmr.msra.gmra.mxu1 %v16213_v27  ;;  %v3240_v27 = vadd.f32 %v9279_v53, %v13141_v37 }
 0x2f8   : > { %v9387_v32 = vpop.f32.mrf.mxu0  ;;  %10706 = vmatprep.mubr.bf16.mxu1 %v16216_v5  ;;  %v3248_v55 = vadd.f32 %v9285_v30, %v13141_v37 }
 0x2f9   : > { %v9388_v42 = vadd.f32 %v9387_v32, %v9386_v0  ;;  %v9287_v13 = vpop.f32.mrf.mxu1 }
 0x2fa   : > { %v9389_v24 = vpop.f32.mrf.mxu0  ;;  %v9288_v17 = vadd.f32 %v9287_v13, %v9286_v28 }
 0x2fb   : > { %v13240_v3 = vadd.f32 %v9388_v42, %v3237_v10  ;;  %v9289_v23 = vpop.f32.mrf.mxu1  ;;  %v10994_v10 = vld [vmem:[%s15979_s1 + $0x498] sm:$0xff]  }
 0x2fc   : > { %v9390_v4 = vpop.f32.mrf.mxu0  ;;  %v3253_v28 = vadd.f32 %v9288_v17, %v13141_v37 }
 0x2fd   : > { %v9391_v46 = vadd.f32 %v9390_v4, %v9389_v24  ;;  %v9290_v5 = vpop.f32.mrf.mxu1 }
 0x2fe   : > { %v9392_v33 = vpop.f32.mrf.mxu0  ;;  %3790 = vmatmul.mubr.bf16.gmra.mxu0 %v16224_v31  ;;  %v9291_v44 = vadd.f32 %v9290_v5, %v9289_v23 }
 0x2ff   : > { %v13244_v48 = vadd.f32 %v9391_v46, %v3240_v27  ;;  %v9292_v52 = vpop.f32.mrf.mxu1  ;;  %10707 = vmatmul.mubr.bf16.gmra.mxu1 %v12920_v19  ;;  %5056 = vmatprep.mubr.bf16.mxu0 %v16223_v12 }
 0x300   : > { %v9393_v25 = vpop.f32.mrf.mxu0  ;;  %10710 = vmatprep.mubr.bf16.mxu1 %v12956_v60  ;;  %v10993_v60 = vld [vmem:[%s15979_s1 + $0x4d8] sm:$0xff]  }
 0x301   : > { %v9394_v16 = vadd.f32 %v9393_v25, %v9392_v33  ;;  %v9293_v53 = vpop.f32.mrf.mxu1  ;;  %9702 = vmatprep.subr.bf16.mxu0 %v10993_v60 }
 0x302   : > { %v9395_v39 = vpop.f32.mrf.mxu0  ;;  %v9294_v18 = vadd.f32 %v9293_v53, %v9292_v52  ;;  %9703 = vmatpush3.bf16.msra.mxu0 %v10994_v10 }
 0x303   : > { %v13250_v26 = vadd.f32 %v9394_v16, %v3245_v41  ;;  %v9295_v59 = vpop.f32.mrf.mxu1 }
 0x304   : > { %v9396_v56 = vpop.f32.mrf.mxu0  ;;  %v3261_v52 = vadd.f32 %v9294_v18, %v13141_v37 }
 0x305   : > { %v9397_v62 = vadd.f32 %v9396_v56, %v9395_v39  ;;  %v9296_v45 = vpop.f32.mrf.mxu1 }
 0x306   : > { %v9398_v19 = vpop.f32.mrf.mxu0  ;;  %v9297_v22 = vadd.f32 %v9296_v45, %v9295_v59 }
 0x307   : > { %v13256_v0 = vadd.f32 %v9397_v62, %v3248_v55  ;;  %v9298_v15 = vpop.f32.mrf.mxu1  ;;  %10711 = vmatmul.mubr.bf16.gmra.mxu1 %v12989_v40  ;;  %v3256_v40 = vadd.f32 %v9291_v44, %v13141_v37 }
 0x308   : > { %v9399_v47 = vpop.f32.mrf.mxu0  ;;  %10714 = vmatprep.mubr.bf16.mxu1 %v13010_v63  ;;  %v3264_v56 = vadd.f32 %v9297_v22, %v13141_v37 }
 0x309   : > { %v9400_v30 = vadd.f32 %v9399_v47, %v9398_v19  ;;  %v9299_v32 = vpop.f32.mrf.mxu1 }
 0x30a   : > { %v9401_v42 = vpop.f32.mrf.mxu0  ;;  %v9300_v13 = vadd.f32 %v9299_v32, %v9298_v15 }
 0x30b   : > { %v13264_v14 = vadd.f32 %v9400_v30, %v3253_v28  ;;  %v9301_v24 = vpop.f32.mrf.mxu1  ;;  %v10996_v28 = vld [vmem:[%s15979_s1 + $0x490] sm:$0xff]  }
 0x30c   : > { %v9402_v23 = vpop.f32.mrf.mxu0  ;;  %v3269_v15 = vadd.f32 %v9300_v13, %v13141_v37 }
 0x30d   : > { %v9403_v4 = vadd.f32 %v9402_v23, %v9401_v42  ;;  %v9302_v63 = vpop.f32.mrf.mxu1 }
 0x30e   : > { %v9404_v27 = vpop.f32.mrf.mxu0  ;;  %v9303_v46 = vadd.f32 %v9302_v63, %v9301_v24 }
 0x30f   : > { %v13267_v17 = vadd.f32 %v9403_v4, %v3256_v40  ;;  %v9304_v5 = vpop.f32.mrf.mxu1  ;;  %10715 = vmatmul.mubr.bf16.gmra.mxu1 %v13020_v2  ;;  %v10995_v2 = vld [vmem:[%s15979_s1 + $0x4d0] sm:$0xff]  }
 0x310   : > { %v9405_v33 = vpop.f32.mrf.mxu0  ;;  %10718 = vmatprep.mubr.bf16.mxu1 %v13030_v1  ;;  %9704 = vmatprep.subr.bf16.mxu0 %v10995_v2 }
 0x311   : > { %v9406_v25 = vadd.f32 %v9405_v33, %v9404_v27  ;;  %v9305_v41 = vpop.f32.mrf.mxu1  ;;  %9705 = vmatpush3.bf16.msra.mxu0 %v10996_v28 }
 0x312   : > { %v9407_v16 = vpop.f32.mrf.mxu0  ;;  %v9306_v53 = vadd.f32 %v9305_v41, %v9304_v5 }
 0x313   : > { %v13272_v39 = vadd.f32 %v9406_v25, %v3261_v52  ;;  %v9307_v44 = vpop.f32.mrf.mxu1 }
 0x314   : > { %v9408_v59 = vpop.f32.mrf.mxu0  ;;  %v3277_v27 = vadd.f32 %v9306_v53, %v13141_v37 }
 0x315   : > { %v9409_v55 = vadd.f32 %v9408_v59, %v9407_v16  ;;  %v9308_v62 = vpop.f32.mrf.mxu1 }
 0x316   : > { %v9410_v45 = vpop.f32.mrf.mxu0  ;;  %v9309_v19 = vadd.f32 %v9308_v62, %v9307_v44 }
 0x317   : > { %v13278_v1 = vadd.f32 %v9409_v55, %v3264_v56  ;;  %v9310_v18 = vpop.f32.mrf.mxu1  ;;  %10719 = vmatmul.mubr.bf16.gmra.mxu1 %v13040_v35  ;;  %v3272_v35 = vadd.f32 %v9303_v46, %v13141_v37 }
 0x318   : > { %v9411_v60 = vpop.f32.mrf.mxu0  ;;  %10722 = vmatprep.mubr.bf16.mxu1 %v13050_v6  ;;  %v3280_v44 = vadd.f32 %v9309_v19, %v13141_v37 }
 0x319   : > { %v9412_v22 = vadd.f32 %v9411_v60, %v9410_v45  ;;  %v9311_v47 = vpop.f32.mrf.mxu1  ;;  %v10998_v60 = vld [vmem:[%s15979_s1 + $0x488] sm:$0xff]  }
 0x31a   : > { %v9413_v30 = vpop.f32.mrf.mxu0  ;;  %v9312_v32 = vadd.f32 %v9311_v47, %v9310_v18 }
 0x31b   : > { %v13286_v10 = vadd.f32 %v9412_v22, %v3269_v15  ;;  %v9313_v42 = vpop.f32.mrf.mxu1 }
 0x31c   : > { %v9414_v24 = vpop.f32.mrf.mxu0  ;;  %v3285_v45 = vadd.f32 %v9312_v32, %v13141_v37 }
 0x31d   : > { %v9415_v23 = vadd.f32 %v9414_v24, %v9413_v30  ;;  %v9314_v6 = vpop.f32.mrf.mxu1 }
 0x31e   : > { %v9416_v40 = vpop.f32.mrf.mxu0  ;;  %v9315_v2 = vadd.f32 %v9314_v6, %v9313_v42 }
 0x31f   : > { %v13289_v4 = vadd.f32 %v9415_v23, %v3272_v35  ;;  %v9316_v13 = vpop.f32.mrf.mxu1  ;;  %10723 = vmatmul.mubr.bf16.gmra.mxu1 %v13060_v38  ;;  %v10997_v38 = vld [vmem:[%s15979_s1 + $0x4c8] sm:$0xff]  }
 0x320   : > { %v9417_v63 = vpop.f32.mrf.mxu0  ;;  %10726 = vmatprep.mubr.bf16.mxu1 %v13070_v20  ;;  %9706 = vmatprep.subr.bf16.mxu0 %v10997_v38  ;;  %v3288_v30 = vadd.f32 %v9315_v2, %v13141_v37  ;;  %v11002_v38 = vld [vmem:[%s15979_s1 + $0x530] sm:$0xff]  }
 0x321   : > { %v9418_v5 = vadd.f32 %v9417_v63, %v9416_v40  ;;  %v9317_v33 = vpop.f32.mrf.mxu1  ;;  %9707 = vmatpush3.bf16.msra.mxu0 %v10998_v60 }
 0x322   : > { %v9419_v52 = vpop.f32.mrf.mxu0  ;;  %v9318_v25 = vadd.f32 %v9317_v33, %v9316_v13 }
 0x323   : > { %v13294_v41 = vadd.f32 %v9418_v5, %v3277_v27  ;;  %v9319_v46 = vpop.f32.mrf.mxu1  ;;  %v10999_v27 = vld [vmem:[%s15979_s1 + $0x578] sm:$0xff]  }
 0x324   : > { %v9420_v16 = vpop.f32.mrf.mxu0  ;;  %v3293_v6 = vadd.f32 %v9318_v25, %v13141_v37  ;;  %v11000_v5 = vld [vmem:[%s15979_s1 + $0x538] sm:$0xff]   ;;  %9806 = vmatprep.subr.bf16.mxu1 %v10999_v27  ;;  %v11007_v27 = vld [vmem:[%s15979_s1 + $0x560] sm:$0xff]  }
 0x325   : > { %v9421_v59 = vadd.f32 %v9420_v16, %v9419_v52  ;;  %v9320_v56 = vpop.f32.mrf.mxu1  ;;  %9807 = vmatpush3.bf16.msra.mxu1 %v11000_v5 }
 0x326   : > { %v9422_v55 = vpop.f32.mrf.mxu0  ;;  %v9321_v40 = vadd.f32 %v9320_v56, %v9319_v46 }
 0x327   : > { %v13300_v20 = vadd.f32 %v9421_v59, %v3280_v44  ;;  %v9322_v53 = vpop.f32.mrf.mxu1  ;;  %10727 = vmatmul.mubr.bf16.gmra.mxu1 %v13086_v34 }
 0x328   : > { %v9423_v62 = vpop.f32.mrf.mxu0  ;;  %10730 = vmatprep.mubr.bf16.mxu1 %v13207_v8  ;;  %v3296_v25 = vadd.f32 %v9321_v40, %v13141_v37 }
 0x329   : > { %v9424_v19 = vadd.f32 %v9423_v62, %v9422_v55  ;;  %v9323_v18 = vpop.f32.mrf.mxu1  ;;  %v11001_v55 = vld [vmem:[%s15979_s1 + $0x570] sm:$0xff]   ;;  %v11003_v62 = vld [vmem:[%s15979_s1 + $0x4c0] sm:$0xff]  }
 0x32a   : > { %v9425_v15 = vpop.f32.mrf.mxu0  ;;  %v9324_v22 = vadd.f32 %v9323_v18, %v9322_v53  ;;  %9808 = vmatprep.subr.bf16.mxu1 %v11001_v55  ;;  %9708 = vmatprep.subr.bf16.mxu0 %v11003_v62 }
 0x32b   : > { %v13308_v47 = vadd.f32 %v9424_v19, %v3285_v45  ;;  %v9325_v28 = vpop.f32.mrf.mxu1  ;;  %9809 = vmatpush3.bf16.msra.mxu1 %v11002_v38 }
 0x32c   : > { %v9426_v34 = vpop.f32.mrf.mxu0  ;;  %v3301_v18 = vadd.f32 %v9324_v22, %v13141_v37 }
 0x32d   : > { %v9427_v8 = vadd.f32 %v9426_v34, %v9425_v15  ;;  %v9326_v24 = vpop.f32.mrf.mxu1 }
 0x32e   : > { %v9428_v35 = vpop.f32.mrf.mxu0  ;;  %v9327_v60 = vadd.f32 %v9326_v24, %v9325_v28 }
 0x32f   : > { %v13311_v32 = vadd.f32 %v9427_v8, %v3288_v30  ;;  %v9328_v42 = vpop.f32.mrf.mxu1  ;;  %10731 = vmatmul.mubr.bf16.gmra.mxu1 %v16199_v7  ;;  %v11004_v30 = vld [vmem:[%s15979_s1 + $0x480] sm:$0xff]   ;;  %v11005_v8 = vld [vmem:[%s15979_s1 + $0x568] sm:$0xff]  }
 0x330   : > { %v9429_v23 = vpop.f32.mrf.mxu0  ;;  %9709 = vmatpush3.bf16.msra.mxu0 %v11004_v30  ;;  %9810 = vmatprep.subr.bf16.mxu1 %v11005_v8  ;;  %v3304_v40 = vadd.f32 %v9327_v60, %v13141_v37  ;;  %v11009_v60 = vld [vmem:[%s15979_s1 + $0x558] sm:$0xff]  }
 0x331   : > { %v9430_v13 = vadd.f32 %v9429_v23, %v9428_v35  ;;  %v9329_v63 = vpop.f32.mrf.mxu1  ;;  %v11006_v35 = vld [vmem:[%s15979_s1 + $0x528] sm:$0xff]  }
 0x332   : > { %v9431_v33 = vpop.f32.mrf.mxu0  ;;  %v9330_v52 = vadd.f32 %v9329_v63, %v9328_v42  ;;  %9811 = vmatpush3.bf16.msra.mxu1 %v11006_v35  ;;  %v11011_v35 = vld [vmem:[%s15979_s1 + $0x550] sm:$0xff]  }
 0x333   : > { %v13321_v16 = vadd.f32 %v9430_v13, %v3293_v6  ;;  %v9331_v44 = vpop.f32.mrf.mxu1  ;;  %5057 = vmatmul.mubr.bf16.vlgmr.msra.gmra.mxu0 %v16224_v31  ;;  %9812 = vmatprep.subr.bf16.mxu1 %v11007_v27  ;;  %v11015_v27 = vld [vmem:[%s15979_s1 + $0x5b8] sm:$0xff]  }
 0x334   : > { %v9432_v59 = vpop.f32.mrf.mxu0  ;;  %v3309_v38 = vadd.f32 %v9330_v52, %v13141_v37 }
 0x335   : > { %v9433_v46 = vadd.f32 %v9432_v59, %v9431_v33  ;;  %v9332_v56 = vpop.f32.mrf.mxu1  ;;  %v11008_v59 = vld [vmem:[%s15979_s1 + $0x520] sm:$0xff]  }
 0x336   : > { %v9434_v53 = vpop.f32.mrf.mxu0  ;;  %9813 = vmatpush3.bf16.msra.mxu1 %v11008_v59 }
 0x337   : > { %v13333_v45 = vadd.f32 %v9433_v46, %v3296_v25  ;;  %v9462_v2 = vpop.f32.mrf.mxu1  ;;  %9814 = vmatprep.subr.bf16.mxu1 %v11009_v60 }
 0x338   : > { %v9435_v19 = vpop.f32.mrf.mxu0 }
 0x339   : > { %v9436_v15 = vadd.f32 %v9435_v19, %v9434_v53  ;;  %v9463_v34 = vpop.f32.mrf.mxu1  ;;  %v9333_v53 = vadd.f32 %v9332_v56, %v9331_v44 }
 0x33a   : > { %v9437_v42 = vpop.f32.mrf.mxu0  ;;  %v9464_v23 = vadd.f32 %v9463_v34, %v9462_v2 }
 0x33b   : > { %v13345_v6 = vadd.f32 %v9436_v15, %v3301_v18  ;;  %v9465_v22 = vpop.f32.mrf.mxu1  ;;  %v3312_v52 = vadd.f32 %v9333_v53, %v13141_v37 }
 0x33c   : > { %v9438_v28 = vpop.f32.mrf.mxu0  ;;  %v13348_v24 = vadd.f32 %v9464_v23, %v13146_v50 }
 0x33d   : > { %v9439_v13 = vadd.f32 %v9438_v28, %v9437_v42  ;;  %v9466_v63 = vpop.f32.mrf.mxu1 }
 0x33e   : > { %v9440_v5 = vpop.f32.mrf.mxu0  ;;  %v9467_v33 = vadd.f32 %v9466_v63, %v9465_v22  ;;  %v11012_v22 = vld [vmem:[%s15979_s1 + $0x510] sm:$0xff]   ;;  %v11014_v63 = vld [vmem:[%s15979_s1 + $0x548] sm:$0xff]  }
 0x33f   : > { %v13358_v25 = vadd.f32 %v9439_v13, %v3304_v40  ;;  %v9468_v50 = vpop.f32.mrf.mxu1  ;;  %v11013_v13 = vld [vmem:[%s15979_s1 + $0x5f8] sm:$0xff]  }
 0x340   : > { %v9441_v46 = vpop.f32.mrf.mxu0  ;;  %v13361_v55 = vadd.f32 %v9467_v33, %v13156_v57  ;;  %v11010_v57 = vld [vmem:[%s15979_s1 + $0x518] sm:$0xff]   ;;  %9918 = vmatprep.subr.bf16.mxu0 %v11013_v13 }
 0x341   : > { %v9442_v62 = vadd.f32 %v9441_v46, %v9440_v5  ;;  %v9469_v2 = vpop.f32.mrf.mxu1  ;;  %9815 = vmatpush3.bf16.msra.mxu1 %v11010_v57  ;;  %9919 = vmatpush3.bf16.msra.mxu0 %v11015_v27  ;;  %v11019_v27 = vld [vmem:[%s15979_s1 + $0x5f0] sm:$0xff]  }
 0x342   : > { %v9443_v19 = vpop.f32.mrf.mxu0  ;;  %v9470_v18 = vadd.f32 %v9469_v2, %v9468_v50  ;;  %9816 = vmatprep.subr.bf16.mxu1 %v11011_v35  ;;  %v11016_v50 = vld [vmem:[%s15979_s1 + $0x508] sm:$0xff]   ;;  %9920 = vmatprep.subr.bf16.mxu0 %v11019_v27 }
 0x343   : > { %v13367_v15 = vadd.f32 %v9442_v62, %v3309_v38  ;;  %v9471_v34 = vpop.f32.mrf.mxu1  ;;  %v11017_v62 = vld [vmem:[%s15979_s1 + $0x540] sm:$0xff]  }
 0x344   : > { %v9444_v30 = vpop.f32.mrf.mxu0  ;;  %v13373_v8 = vadd.f32 %v9470_v18, %v13162_v11  ;;  %v11018_v18 = vld [vmem:[%s15979_s1 + $0x500] sm:$0xff]  }
 0x345   : > { %v9445_v44 = vadd.f32 %v9444_v30, %v9443_v19  ;;  %v9472_v56 = vpop.f32.mrf.mxu1  ;;  %9817 = vmatpush3.bf16.msra.mxu1 %v11012_v22 }
 0x346   : > { %v13379_v42 = vpop.f32.mrf.mxu0  ;;  %v9473_v23 = vadd.f32 %v9472_v56, %v9471_v34  ;;  %9818 = vmatprep.subr.bf16.mxu1 %v11014_v63 }
 0x347   : > { %v13384_v28 = vadd.f32 %v9445_v44, %v3312_v52  ;;  %v9474_v11 = vpop.f32.mrf.mxu1 }
 0x348   : > { %v13386_v40 = vpop.f32.mrf.mxu0  ;;  %v13389_v37 = vadd.f32 %v9473_v23, %v13169_v36 }
 0x349   : > { %16225 = vst [vmem:[#allocation30_spill] sm:$0xff] %v13384_v28  ;;  %v9475_v5 = vpop.f32.mrf.mxu1  ;;  %9819 = vmatpush3.bf16.msra.mxu1 %v11016_v50 }
 0x34a   : > { %v13400_v33 = vpop.f32.mrf.mxu0  ;;  %v9476_v59 = vadd.f32 %v9475_v5, %v9474_v11  ;;  %9820 = vmatprep.subr.bf16.mxu1 %v11017_v62  ;;  %v11020_v5 = vld [vmem:[%s15979_s1 + $0x5b0] sm:$0xff]  }
 0x34b   : > { %v9477_v36 = vpop.f32.mrf.mxu1  ;;  %9921 = vmatpush3.bf16.msra.mxu0 %v11020_v5 }
 0x34c   : > { %v13405_v46 = vpop.f32.mrf.mxu0  ;;  %v13408_v38 = vadd.f32 %v9476_v59, %v13173_v61 }
 0x34d   : > { %v9478_v53 = vpop.f32.mrf.mxu1  ;;  %9821 = vmatpush3.bf16.msra.mxu1 %v11018_v18 }
 0x34e   : > { %v13413_v2 = vpop.f32.mrf.mxu0  ;;  %v9479_v19 = vadd.f32 %v9478_v53, %v9477_v36 }
 0x34f   : > { %v9480_v60 = vpop.f32.mrf.mxu1 }
 0x350   : > { %v13418_v34 = vpop.f32.mrf.mxu0  ;;  %v13421_v61 = vadd.f32 %v9479_v19, %v13185_v51 }
 0x351   : > { %v9481_v57 = vpop.f32.mrf.mxu1 }
 0x352   : > { %v13423_v30 = vpop.f32.mrf.mxu0  ;;  %v9482_v52 = vadd.f32 %v9481_v57, %v9480_v60 }
 0x353   : > { %v9483_v44 = vpop.f32.mrf.mxu1 }
 0x354   : > { %v13425_v56 = vpop.f32.mrf.mxu0  ;;  %v13428_v35 = vadd.f32 %v9482_v52, %v13193_v43 }
 0x355   : > { %v9484_v23 = vpop.f32.mrf.mxu1 }
 0x356   : > { %v13430_v22 = vpop.f32.mrf.mxu0  ;;  %v9485_v11 = vadd.f32 %v9484_v23, %v9483_v44 }
 0x357   : > { %v9486_v13 = vpop.f32.mrf.mxu1 }
 0x358   : > { %v13432_v63 = vpop.f32.mrf.mxu0  ;;  %v13435_v51 = vadd.f32 %v9485_v11, %v13197_v54 }
 0x359   : > { %v9487_v43 = vpop.f32.mrf.mxu1 }
 0x35a   : > { %v13443_v59 = vpop.f32.mrf.mxu0  ;;  %v9488_v36 = vadd.f32 %v9487_v43, %v9486_v13 }
 0x35b   : > { %v9489_v50 = vpop.f32.mrf.mxu1 }
 0x35c   : > { %v13445_v53 = vpop.f32.mrf.mxu0  ;;  %v13448_v54 = vadd.f32 %v9488_v36, %v13214_v9 }
 0x35d   : > { %v9490_v62 = vpop.f32.mrf.mxu1 }
 0x35e   : > { %v13450_v19 = vpop.f32.mrf.mxu0  ;;  %v9491_v18 = vadd.f32 %v9490_v62, %v9489_v50 }
 0x35f   : > { %v9492_v60 = vpop.f32.mrf.mxu1 }
 0x360   : > { %v13452_v57 = vpop.f32.mrf.mxu0  ;;  %v13455_v52 = vadd.f32 %v9491_v18, %v13218_v49  ;;  %v11021_v18 = vld [vmem:[%s15979_s1 + $0x5e8] sm:$0xff]  }
 0x361   : > { %v9493_v44 = vpop.f32.mrf.mxu1  ;;  %9922 = vmatprep.subr.bf16.mxu0 %v11021_v18 }
 0x362   : > { %v13457_v23 = vpop.f32.mrf.mxu0  ;;  %v9494_v11 = vadd.f32 %v9493_v44, %v9492_v60 }
 0x363   : > { %v9495_v13 = vpop.f32.mrf.mxu1 }
 0x364   : > { %v13459_v27 = vpop.f32.mrf.mxu0  ;;  %v13462_v9 = vadd.f32 %v9494_v11, %v13224_v21  ;;  %v11022_v21 = vld [vmem:[%s15979_s1 + $0x5a8] sm:$0xff]  }
 0x365   : > { %v9496_v5 = vpop.f32.mrf.mxu1  ;;  %9923 = vmatpush3.bf16.msra.mxu0 %v11022_v21 }
 0x366   : > { %16226 = vst [vmem:[#allocation32_spill] sm:$0xff] %v13462_v9  ;;  %v13464_v43 = vpop.f32.mrf.mxu0  ;;  %v9497_v36 = vadd.f32 %v9496_v5, %v9495_v13 }
 0x367   : > { %v9498_v50 = vpop.f32.mrf.mxu1 }
 0x368   : > { %v13466_v62 = vpop.f32.mrf.mxu0  ;;  %v13469_v49 = vadd.f32 %v9497_v36, %v13231_v58 }
 0x369   : > { %v9499_v60 = vpop.f32.mrf.mxu1 }
 0x36a   : > { %16227 = vst [vmem:[#allocation6_spill] sm:$0xff] %v13469_v49  ;;  %v13474_v44 = vpop.f32.mrf.mxu0  ;;  %v9500_v31 = vadd.f32 %v9499_v60, %v9498_v50 }
 0x36b   : > { %v9501_v11 = vpop.f32.mrf.mxu1 }
 0x36c   : > { %v13479_v13 = vpop.f32.mrf.mxu0  ;;  %v13482_v5 = vadd.f32 %v9500_v31, %v13240_v3 }
 0x36d   : > { %v9502_v58 = vpop.f32.mrf.mxu1 }
 0x36e   : > { %16228 = vst [vmem:[#allocation12_spill] sm:$0xff] %v13482_v5  ;;  %v13484_v36 = vpop.f32.mrf.mxu0  ;;  %v9503_v12 = vadd.f32 %v9502_v58, %v9501_v11 }
 0x36f   : > { %v9504_v7 = vpop.f32.mrf.mxu1 }
 0x370   : > { %v13486_v49 = vpop.f32.mrf.mxu0  ;;  %v13489_v50 = vadd.f32 %v9503_v12, %v13244_v48 }
 0x371   : > { %v9505_v18 = vpop.f32.mrf.mxu1 }
 0x372   : > { %16229 = vst [vmem:[#allocation8_spill] sm:$0xff] %v13489_v50  ;;  %v13491_v60 = vpop.f32.mrf.mxu0  ;;  %v9506_v9 = vadd.f32 %v9505_v18, %v9504_v7  ;;  %v11023_v7 = vld [vmem:[%s15979_s1 + $0x5e0] sm:$0xff]  }
 0x373   : > { %v9507_v29 = vpop.f32.mrf.mxu1  ;;  %9924 = vmatprep.subr.bf16.mxu0 %v11023_v7 }
 0x374   : > { %v13493_v28 = vpop.f32.mrf.mxu0  ;;  %v13496_v3 = vadd.f32 %v9506_v9, %v13250_v26  ;;  %v11024_v26 = vld [vmem:[%s15979_s1 + $0x5a0] sm:$0xff]  }
 0x375   : > { %v9508_v31 = vpop.f32.mrf.mxu1  ;;  %9925 = vmatpush3.bf16.msra.mxu0 %v11024_v26 }
 0x376   : > { %16230 = vst [vmem:[#allocation7_spill] sm:$0xff] %v13496_v3  ;;  %v13498_v21 = vpop.f32.mrf.mxu0  ;;  %v9509_v11 = vadd.f32 %v9508_v31, %v9507_v29 }
 0x377   : > { %16231 = vst [vmem:[#allocation14_spill] sm:$0xff] %v13498_v21  ;;  %v9510_v58 = vpop.f32.mrf.mxu1 }
 0x378   : > { %v13500_v5 = vpop.f32.mrf.mxu0  ;;  %v13503_v12 = vadd.f32 %v9509_v11, %v13256_v0 }
 0x379   : > { %16232 = vst [vmem:[#allocation16_spill] sm:$0xff] %v13500_v5  ;;  %v9511_v48 = vpop.f32.mrf.mxu1 }
 0x37a   : > { %16233 = vst [vmem:[#allocation20_spill] sm:$0xff] %v13503_v12  ;;  %v13508_v18 = vpop.f32.mrf.mxu0  ;;  %v9512_v50 = vadd.f32 %v9511_v48, %v9510_v58 }
 0x37b   : > { %16234 = vst [vmem:[#allocation23_spill] sm:$0xff] %v13508_v18  ;;  %v9513_v9 = vpop.f32.mrf.mxu1 }
 0x37c   : > { %v13513_v29 = vpop.f32.mrf.mxu0  ;;  %v13516_v31 = vadd.f32 %v9512_v50, %v13264_v14  ;;  %v11025_v14 = vld [vmem:[%s15979_s1 + $0x5d8] sm:$0xff]  }
 0x37d   : > { %v9514_v0 = vpop.f32.mrf.mxu1  ;;  %9926 = vmatprep.subr.bf16.mxu0 %v11025_v14 }
 0x37e   : > { %16235 = vst [vmem:[#allocation18_spill] sm:$0xff] %v13516_v31  ;;  %v13518_v11 = vpop.f32.mrf.mxu0  ;;  %v9515_v12 = vadd.f32 %v9514_v0, %v9513_v9 }
 0x37f   : > { %v9516_v3 = vpop.f32.mrf.mxu1 }
 0x380   : > { %v13520_v5 = vpop.f32.mrf.mxu0  ;;  %v13523_v58 = vadd.f32 %v9515_v12, %v13267_v17 }
 0x381   : > { %v9517_v48 = vpop.f32.mrf.mxu1 }
 0x382   : > { %16236 = vst [vmem:[#allocation25_spill] sm:$0xff] %v13523_v58  ;;  %v13525_v18 = vpop.f32.mrf.mxu0  ;;  %v9518_v7 = vadd.f32 %v9517_v48, %v9516_v3 }
 0x383   : > { %16237 = vst [vmem:[#allocation28_spill] sm:$0xff] %v13525_v18  ;;  %v9519_v21 = vpop.f32.mrf.mxu1 }
 0x384   : > { %v13530_v50 = vpop.f32.mrf.mxu0  ;;  %v13533_v26 = vadd.f32 %v9518_v7, %v13272_v39  ;;  %v11026_v39 = vld [vmem:[%s15979_s1 + $0x598] sm:$0xff]  }
 0x385   : > { %v9520_v9 = vpop.f32.mrf.mxu1  ;;  %9927 = vmatpush3.bf16.msra.mxu0 %v11026_v39 }
 0x386   : > { %16238 = vst [vmem:[#allocation26_spill] sm:$0xff] %v13533_v26  ;;  %v13535_v0 = vpop.f32.mrf.mxu0  ;;  %v9521_v17 = vadd.f32 %v9520_v9, %v9519_v21 }
 0x387   : > { %16239 = vst [vmem:[#allocation35_spill] sm:$0xff] %v13535_v0  ;;  %v9522_v12 = vpop.f32.mrf.mxu1 }
 0x388   : > { %v13537_v58 = vpop.f32.mrf.mxu0  ;;  %v13540_v3 = vadd.f32 %v9521_v17, %v13278_v1 }
 0x389   : > { %16240 = vst [vmem:[#allocation31_spill] sm:$0xff] %v13537_v58  ;;  %v9523_v48 = vpop.f32.mrf.mxu1 }
 0x38a   : > { %16241 = vst [vmem:[#allocation33_spill] sm:$0xff] %v13540_v3  ;;  %v13542_v31 = vpop.f32.mrf.mxu0  ;;  %v9524_v18 = vadd.f32 %v9523_v48, %v9522_v12 }
 0x38b   : > { %16242 = vst [vmem:[#allocation34_spill] sm:$0xff] %v13542_v31  ;;  %v9525_v7 = vpop.f32.mrf.mxu1 }
 0x38c   : > { %v13547_v26 = vpop.f32.mrf.mxu0  ;;  %v13550_v14 = vadd.f32 %v9524_v18, %v13286_v10  ;;  %v11027_v10 = vld [vmem:[%s15979_s1 + $0x5d0] sm:$0xff]  }
 0x38d   : > { %v9526_v21 = vpop.f32.mrf.mxu1  ;;  %9928 = vmatprep.subr.bf16.mxu0 %v11027_v10 }
 0x38e   : > { %16243 = vst [vmem:[#allocation36_spill] sm:$0xff] %v13550_v14  ;;  %v13552_v9 = vpop.f32.mrf.mxu0  ;;  %v9527_v1 = vadd.f32 %v9526_v21, %v9525_v7 }
 0x38f   : > { %v9528_v17 = vpop.f32.mrf.mxu1 }
 0x390   : > { %v13554_v3 = vpop.f32.mrf.mxu0  ;;  %v13557_v12 = vadd.f32 %v9527_v1, %v13289_v4 }
 0x391   : > { %v9529_v48 = vpop.f32.mrf.mxu1 }
 0x392   : > { %16244 = vst [vmem:[#allocation37_spill] sm:$0xff] %v13557_v12  ;;  %v13559_v31 = vpop.f32.mrf.mxu0  ;;  %v9530_v58 = vadd.f32 %v9529_v48, %v9528_v17 }
 0x393   : > { %16245 = vst [vmem:[#allocation4_spill] sm:$0xff] %v13559_v31  ;;  %v9531_v0 = vpop.f32.mrf.mxu1 }
 0x394   : > { %v13564_v18 = vpop.f32.mrf.mxu0  ;;  %v13567_v39 = vadd.f32 %v9530_v58, %v13294_v41  ;;  %v11028_v41 = vld [vmem:[%s15979_s1 + $0x590] sm:$0xff]  }
 0x395   : > { %v9532_v7 = vpop.f32.mrf.mxu1  ;;  %9929 = vmatpush3.bf16.msra.mxu0 %v11028_v41 }
 0x396   : > { %16246 = vst [vmem:[#allocation21_spill] sm:$0xff] %v13567_v39  ;;  %v13569_v21 = vpop.f32.mrf.mxu0  ;;  %v9533_v4 = vadd.f32 %v9532_v7, %v9531_v0 }
 0x397   : > { %16247 = vst [vmem:[#allocation5_spill] sm:$0xff] %v13569_v21  ;;  %v9534_v1 = vpop.f32.mrf.mxu1 }
 0x398   : > { %v13571_v12 = vpop.f32.mrf.mxu0  ;;  %v13574_v17 = vadd.f32 %v9533_v4, %v13300_v20 }
 0x399   : > { %16248 = vst [vmem:[#allocation13_spill] sm:$0xff] %v13571_v12  ;;  %v9535_v48 = vpop.f32.mrf.mxu1 }
 0x39a   : > { %16249 = vst [vmem:[#allocation24_spill] sm:$0xff] %v13574_v17  ;;  %v13576_v14 = vpop.f32.mrf.mxu0  ;;  %v9536_v31 = vadd.f32 %v9535_v48, %v9534_v1 }
 0x39b   : > { %16250 = vst [vmem:[#allocation17_spill] sm:$0xff] %v13576_v14  ;;  %v9537_v58 = vpop.f32.mrf.mxu1 }
 0x39c   : > { %v13581_v39 = vpop.f32.mrf.mxu0  ;;  %v13584_v10 = vadd.f32 %v9536_v31, %v13308_v47  ;;  %v11029_v47 = vld [vmem:[%s15979_s1 + $0x5c8] sm:$0xff]  }
 0x39d   : > { %v9538_v0 = vpop.f32.mrf.mxu1  ;;  %9930 = vmatprep.subr.bf16.mxu0 %v11029_v47 }
 0x39e   : > { %16251 = vst [vmem:[#allocation9_spill] sm:$0xff] %v13584_v10  ;;  %v13586_v7 = vpop.f32.mrf.mxu0  ;;  %v9539_v20 = vadd.f32 %v9538_v0, %v9537_v58 }
 0x39f   : > { %v9540_v4 = vpop.f32.mrf.mxu1 }
 0x3a0   : > { %v13588_v17 = vpop.f32.mrf.mxu0  ;;  %v13591_v1 = vadd.f32 %v9539_v20, %v13311_v32 }
 0x3a1   : > { %v9541_v48 = vpop.f32.mrf.mxu1 }
 0x3a2   : > { %16252 = vst [vmem:[#allocation29_spill] sm:$0xff] %v13591_v1  ;;  %v13593_v14 = vpop.f32.mrf.mxu0  ;;  %v9542_v12 = vadd.f32 %v9541_v48, %v9540_v4 }
 0x3a3   : > { %16253 = vst [vmem:[#allocation19_spill] sm:$0xff] %v13593_v14  ;;  %v9543_v21 = vpop.f32.mrf.mxu1 }
 0x3a4   : > { %v13598_v31 = vpop.f32.mrf.mxu0  ;;  %v13601_v41 = vadd.f32 %v9542_v12, %v13321_v16  ;;  %v11030_v16 = vld [vmem:[%s15979_s1 + $0x588] sm:$0xff]  }
 0x3a5   : > { %v9544_v58 = vpop.f32.mrf.mxu1  ;;  %9931 = vmatpush3.bf16.msra.mxu0 %v11030_v16  ;;  %v9588_v16 = vadd.f32 %v13432_v63, %v13430_v22 }
 0x3a6   : > { %16254 = vst [vmem:[#allocation15_spill] sm:$0xff] %v13601_v41  ;;  %v13603_v0 = vpop.f32.mrf.mxu0  ;;  %v9545_v32 = vadd.f32 %v9544_v58, %v9543_v21 }
 0x3a7   : > { %v9546_v20 = vpop.f32.mrf.mxu1 }
 0x3a8   : > { %v13605_v1 = vpop.f32.mrf.mxu0  ;;  %v13608_v4 = vadd.f32 %v9545_v32, %v13333_v45 }
 0x3a9   : > { %v9547_v48 = vpop.f32.mrf.mxu1 }
 0x3aa   : > { %16255 = vst [vmem:[#allocation11_spill] sm:$0xff] %v13608_v4  ;;  %v13610_v10 = vpop.f32.mrf.mxu0  ;;  %v9548_v14 = vadd.f32 %v9547_v48, %v9546_v20  ;;  %v9576_v4 = vadd.f32 %v13386_v40, %v13379_v42  ;;  %v9579_v20 = vadd.f32 %v13405_v46, %v13400_v33  ;;  %v9582_v48 = vadd.f32 %v13418_v34, %v13413_v2 }
 0x3ab   : > { %16256 = vst [vmem:[#allocation10_spill] sm:$0xff] %v13610_v10  ;;  %v9549_v12 = vpop.f32.mrf.mxu1  ;;  %v9591_v42 = vadd.f32 %v13445_v53, %v13443_v59  ;;  %v9594_v40 = vadd.f32 %v13452_v57, %v13450_v19  ;;  %v9597_v46 = vadd.f32 %v13459_v27, %v13457_v23  ;;  %v9603_v2 = vadd.f32 %v13479_v13, %v13474_v44  ;;  %v11035_v23 = vld [vmem:[%s15979_s1 + $0x5c0] sm:$0xff]  }
 0x3ac   : > { %v13615_v41 = vpop.f32.mrf.mxu0  ;;  %v13618_v47 = vadd.f32 %v9548_v14, %v13345_v6  ;;  %v9585_v14 = vadd.f32 %v13425_v56, %v13423_v30  ;;  %v11031_v56 = vld [vmem:[%s15979_s1 + $0x678] sm:$0xff]   ;;  %v3680_v53 = vadd.f32 %v9582_v48, %v13373_v8  ;;  %v3672_v19 = vadd.f32 %v9576_v4, %v13348_v24  ;;  %9932 = vmatprep.subr.bf16.mxu0 %v11035_v23  ;;  %v16258_v4 = vld [vmem:[#allocation16_spill] sm:$0xff]  ;;  %v16261_v48 = vld [vmem:[#allocation30_spill] sm:$0xff] }
 0x3ad   : > { %v9550_v21 = vpop.f32.mrf.mxu1  ;;  %v3675_v57 = vadd.f32 %v9579_v20, %v13361_v55  ;;  %10030 = vmatprep.subr.bf16.mxu1 %v11031_v56  ;;  %v13671_v8 = vadd.f32 %v9591_v42, %v13421_v61  ;;  %v13676_v44 = vadd.f32 %v9597_v46, %v13435_v51  ;;  %v9609_v61 = vadd.f32 %v13493_v28, %v13491_v60  ;;  %v16262_v28 = vld [vmem:[#allocation35_spill] sm:$0xff]  ;;  %v16270_v23 = vld [vmem:[#allocation32_spill] sm:$0xff] }
 0x3ae   : > { %v13620_v58 = vpop.f32.mrf.mxu0  ;;  %v9551_v45 = vadd.f32 %v9550_v21, %v9549_v12  ;;  %v16259_v21 = vld [vmem:[#allocation23_spill] sm:$0xff] }
 0x3af   : > { %v9552_v32 = vpop.f32.mrf.mxu1  ;;  %v9615_v51 = vadd.f32 %v13513_v29, %v16259_v21  ;;  %v16263_v60 = vld [vmem:[#allocation31_spill] sm:$0xff]  ;;  %v9630_v29 = vadd.f32 %v13554_v3, %v13552_v9  ;;  %v16271_v9 = vld [vmem:[#allocation6_spill] sm:$0xff] }
 0x3b0   : > { %v13628_v10 = vpop.f32.mrf.mxu0  ;;  %v13631_v6 = vadd.f32 %v9551_v45, %v13358_v25  ;;  %v9600_v25 = vadd.f32 %v13466_v62, %v13464_v43  ;;  %v3683_v43 = vadd.f32 %v9585_v14, %v13389_v37  ;;  %v13665_v62 = vadd.f32 %v9594_v40, %v13428_v35  ;;  %v16257_v35 = vld [vmem:[#allocation14_spill] sm:$0xff]  ;;  %v16265_v40 = vld [vmem:[#allocation4_spill] sm:$0xff] }
 0x3b1   : > { %v9553_v33 = vpop.f32.mrf.mxu1  ;;  %v13682_v37 = vadd.f32 %v9603_v2, %v13455_v52  ;;  %v9612_v12 = vadd.f32 %v16258_v4, %v16257_v35  ;;  %v9624_v14 = vadd.f32 %v16263_v60, %v16262_v28  ;;  %v16273_v35 = vld [vmem:[#allocation8_spill] sm:$0xff]  ;;  %v16276_v28 = vld [vmem:[#allocation26_spill] sm:$0xff] }
 0x3b2   : > { %v13647_v34 = vpop.f32.mrf.mxu0  ;;  %v9554_v30 = vadd.f32 %v9553_v33, %v9552_v32  ;;  %v13679_v13 = vadd.f32 %v9600_v25, %v13448_v54  ;;  %v9618_v54 = vadd.f32 %v13520_v5, %v13518_v11  ;;  %v16260_v32 = vld [vmem:[#allocation28_spill] sm:$0xff]  ;;  %v9633_v5 = vadd.f32 %v13564_v18, %v16265_v40  ;;  %v16267_v33 = vld [vmem:[#allocation13_spill] sm:$0xff] }
 0x3b3   : > { %v9555_v22 = vpop.f32.mrf.mxu1  ;;  %v9621_v52 = vadd.f32 %v13530_v50, %v16260_v32  ;;  %v16266_v50 = vld [vmem:[#allocation5_spill] sm:$0xff]  ;;  %v13721_v18 = vadd.f32 %v9609_v61, %v16271_v9  ;;  %v13727_v4 = vadd.f32 %v9615_v51, %v16273_v35  ;;  %v13739_v60 = vadd.f32 %v9630_v29, %v16276_v28  ;;  %v16283_v9 = vld [vmem:[#allocation19_spill] sm:$0xff] }
 0x3b4   : > { %v13652_v63 = vpop.f32.mrf.mxu0  ;;  %v13655_v59 = vadd.f32 %v9554_v30, %v13367_v15  ;;  %v13668_v15 = vadd.f32 %v9588_v16, %v13408_v38  ;;  %v9606_v38 = vadd.f32 %v13486_v49, %v13484_v36  ;;  %v16264_v16 = vld [vmem:[#allocation34_spill] sm:$0xff]  ;;  %v9636_v46 = vadd.f32 %v16267_v33, %v16266_v50  ;;  %v16268_v25 = vld [vmem:[#allocation17_spill] sm:$0xff]  ;;  %v16280_v33 = vld [vmem:[#allocation36_spill] sm:$0xff] }
 0x3b5   : > { %v9556_v27 = vpop.f32.mrf.mxu1  ;;  %v9627_v42 = vadd.f32 %v13547_v26, %v16264_v16  ;;  %v9639_v2 = vadd.f32 %v13581_v39, %v16268_v25  ;;  %v16269_v30 = vmov 0.0   ;;  %v11036_v26 = vld [vmem:[%s15979_s1 + $0x580] sm:$0xff]   ;;  %v16278_v51 = vld [vmem:[#allocation33_spill] sm:$0xff]  ;;  %v9642_v29 = vadd.f32 %v13588_v17, %v13586_v7 }
 0x3b6   : > { %v13673_v24 = vpop.f32.mrf.mxu0  ;;  %v9557_v55 = vadd.f32 %v9556_v27, %v9555_v22  ;;  %v13718_v3 = vadd.f32 %v9606_v38, %v16270_v23  ;;  %v16272_v27 = vld [vmem:[#allocation12_spill] sm:$0xff]  ;;  %9933 = vmatpush3.bf16.msra.mxu0 %v11036_v26  ;;  %v13745_v40 = vadd.f32 %v9633_v5, %v16278_v51  ;;  %v13751_v25 = vadd.f32 %v9636_v46, %v16280_v33 }
 0x3b7   : > { %v10704_v45 = vpop.f32.mrf.mxu1 }
 0x3b8   : > { %v13696_v20 = vpop.f32.mrf.mxu0  ;;  %v13699_v49 = vadd.f32 %v9557_v55, %v16261_v48  ;;  %v3841_v36 = vadd.f32 %v10704_v45, %v3680_v53  ;;  %v13724_v55 = vadd.f32 %v9612_v12, %v16272_v27  ;;  %v16274_v45 = vld [vmem:[#allocation7_spill] sm:$0xff]  ;;  %v16275_v48 = vld [vmem:[#allocation20_spill] sm:$0xff]  ;;  %v16277_v12 = vld [vmem:[#allocation18_spill] sm:$0xff] }
 0x3b9   : > { %v3832_v11 = vpop.f32.mrf.mxu1  ;;  %v13733_v32 = vadd.f32 %v9618_v54, %v16274_v45  ;;  %v13736_v38 = vadd.f32 %v9621_v52, %v16275_v48  ;;  %v13742_v16 = vadd.f32 %v9624_v14, %v16277_v12  ;;  %v16281_v52 = vld [vmem:[#allocation37_spill] sm:$0xff] }
 0x3ba   : > { %v4108_v56 = vpack.c.bf16 %v3841_v36, %v16269_v30  ;;  %v3833_v22 = vadd.f32 %v3832_v11, %v3672_v19  ;;  %v13729_v39 = vpop.f32.mrf.mxu0  ;;  %v16279_v11 = vld [vmem:[#allocation25_spill] sm:$0xff]  ;;  %v13754_v26 = vadd.f32 %v9639_v2, %v16281_v52  ;;  %v16284_v2 = vld [vmem:[#allocation10_spill] sm:$0xff] }
 0x3bb   : > { %v10705_v53 = vpop.f32.mrf.mxu1  ;;  %v13748_v50 = vadd.f32 %v9627_v42, %v16279_v11  ;;  %v9645_v42 = vadd.f32 %v13598_v31, %v16283_v9  ;;  %v9651_v45 = vadd.f32 %v13615_v41, %v16284_v2  ;;  %v9654_v9 = vadd.f32 %v13628_v10, %v13620_v58 }
 0x3bc   : > { %v4106_v19 = vpack.c.bf16 %v3833_v22, %v16269_v30  ;;  %v3844_v21 = vadd.f32 %v10705_v53, %v3683_v43  ;;  %v4172_v43 = vshrl.u32 %v4108_v56, 16  ;;  %v4175_v54 = vshll.u32 %v4108_v56, 16  ;;  %v13764_v27 = vpop.f32.mrf.mxu0 }
 0x3bd   : > { %v3835_v61 = vpop.f32.mrf.mxu1  ;;  %v9648_v56 = vadd.f32 %v13605_v1, %v13603_v0 }
 0x3be   : > { %v4109_v53 = vpack.c.bf16 %v3844_v21, %v3844_v21  ;;  %v13758_v14 = vpack.c.bf16 %v3844_v21, %v3841_v36  ;;  %v3836_v23 = vadd.f32 %v3835_v61, %v3675_v57  ;;  %v4155_v46 = vshrl.u32 %v4106_v19, 16  ;;  %v13771_v11 = vpop.f32.mrf.mxu0 }
 0x3bf   : > { %v10708_v5 = vpop.f32.mrf.mxu1  ;;  %v4158_v35 = vshll.u32 %v4106_v19, 16  ;;  %v4174_v21 = vrot.slane %v4172_v43, 3  ;;  %v4177_v57 = vrot.slane %v4175_v54, 4 }
 0x3c0   : > { %16282 = vst [vmem:[#allocation22_spill] sm:$0xff] %v13758_v14  ;;  %v4180_v48 = vshrl.u32 %v4109_v53, 16  ;;  %v4183_v17 = vshll.u32 %v4109_v53, 16  ;;  %v4107_v7 = vpack.c.bf16 %v3836_v23, %v3836_v23  ;;  %v13768_v61 = vpack.c.bf16 %v3836_v23, %v3833_v22  ;;  %v13779_v22 = vld [vmem:[%s15979_s1 + $0x6b8] sm:$0xff]   ;;  %v13796_v10 = vpop.f32.mrf.mxu0 }
 0x3c1   : > { %v3848_v36 = vpop.f32.mrf.mxu1  ;;  %v4157_v19 = vrot.slane %v4155_v46, 3  ;;  %v4160_v33 = vrot.slane %v4158_v35, 4  ;;  %16286 = vst [vmem:[#allocation14_spill] sm:$0xff] %v13779_v22  ;;  %v3857_v52 = vadd.f32 %v10708_v5, %v13665_v62  ;;  %v4178_v46 = vor.u32 %v4177_v57, %v4174_v21  ;;  %v16287_v35 = vld [vmem:[#allocation21_spill] sm:$0xff]  ;;  %10734 = vmatprep.subr.bf16.mxu0 %v13779_v22 }
 0x3c2   : > { %16285 = vst [vmem:[#allocation27_spill] sm:$0xff] %v13768_v61  ;;  %v3849_v31 = vadd.f32 %v3848_v36, %v13668_v15  ;;  %v4182_v28 = vrot.slane %v4180_v48, 3  ;;  %v4185_v12 = vrot.slane %v4183_v17, 4  ;;  %v4163_v1 = vshrl.u32 %v4107_v7, 16  ;;  %5064 = vmatprep.mubr.bf16.mxu0 %v13768_v61  ;;  %v16288_v48 = vld [vmem:[#allocation24_spill] sm:$0xff] }
 0x3c3   : > { %v4166_v0 = vshll.u32 %v4107_v7, 16  ;;  %v10709_v51 = vpop.f32.mrf.mxu1  ;;  %v13785_v2 = vadd.f32 %v9642_v29, %v16287_v35  ;;  %v9657_v17 = vadd.f32 %v13652_v63, %v13647_v34  ;;  %v16293_v63 = vld [vmem:[#allocation29_spill] sm:$0xff]  ;;  %v16296_v35 = vld [vmem:[#allocation11_spill] sm:$0xff] }
 0x3c4   : > { %v4110_v41 = vpack.c.bf16 %v3849_v31, %v16269_v30  ;;  %v3860_v43 = vadd.f32 %v10709_v51, %v13676_v44  ;;  %v4165_v15 = vrot.slane %v4163_v1, 3  ;;  %v4186_v23 = vor.u32 %v4185_v12, %v4182_v28  ;;  %v16292_v1 = vld [vmem:[#allocation9_spill] sm:$0xff] }
 0x3c5   : > { %v4168_v54 = vrot.slane %v4166_v0, 4  ;;  %v3851_v53 = vpop.f32.mrf.mxu1  ;;  %v13788_v44 = vadd.f32 %v9645_v42, %v16288_v48  ;;  %v4161_v28 = vor.u32 %v4160_v33, %v4157_v19  ;;  %v13804_v34 = vadd.f32 %v9648_v56, %v16292_v1  ;;  %v11033_v56 = vld [vmem:[%s15979_s1 + $0x670] sm:$0xff]  }
 0x3c6   : > { %v13793_v7 = vpack.c.bf16 %v3860_v43, %v3857_v52  ;;  %v3852_v62 = vadd.f32 %v3851_v53, %v13671_v8  ;;  %v4189_v58 = vshrl.u32 %v4110_v41, 16  ;;  %v4192_v29 = vshll.u32 %v4110_v41, 16  ;;  %v11032_v8 = vld [vmem:[%s15979_s1 + $0x638] sm:$0xff]   ;;  %v16294_v53 = vld [vmem:[#allocation15_spill] sm:$0xff] }
 0x3c7   : > { %v10712_v5 = vpop.f32.mrf.mxu1  ;;  %v4169_v36 = vor.u32 %v4168_v54, %v4165_v15  ;;  %v13799_v21 = vsel %vm398_vm0, %v4178_v46, %v4186_v23  ;;  %v13807_v0 = vadd.f32 %v9651_v45, %v16293_v63  ;;  %v9660_v51 = vadd.f32 %v13696_v20, %v13673_v24  ;;  %v9667_v20 = vpop.f32.mrf.mxu0 }
 0x3c8   : > { %16289 = vst [vmem:[#allocation16_spill] sm:$0xff] %v13793_v7  ;;  %16290 = vst [vmem:[#allocation23_spill] sm:$0xff] %v13799_v21  ;;  %v4111_v42 = vpack.c.bf16 %v3852_v62, %v3852_v62  ;;  %v13801_v57 = vpack.c.bf16 %v3852_v62, %v3849_v31  ;;  %v13815_v19 = vpack.c.bf16 %v3857_v52, %v16269_v30  ;;  %v4191_v52 = vrot.slane %v4189_v58, 3 }
 0x3c9   : > { %v3864_v12 = vpop.f32.mrf.mxu1  ;;  %v3873_v31 = vadd.f32 %v10712_v5, %v13718_v3  ;;  %v4170_v33 = vsel %vm398_vm0, %v4161_v28, %v4169_v36  ;;  %v13824_v24 = vadd.f32 %v9654_v9, %v16294_v53  ;;  %v4194_v23 = vrot.slane %v4192_v29, 4  ;;  %v16295_v3 = vld [vmem:[#allocation3_spill] sm:$0xff]  ;;  %v11034_v28 = vld [vmem:[%s15979_s1 + $0x630] sm:$0xff]  }
 0x3ca   : > { %16291 = vst [vmem:[#allocation28_spill] sm:$0xff] %v13801_v57  ;;  %v4197_v45 = vshrl.u32 %v4111_v42, 16  ;;  %v4200_v41 = vshll.u32 %v4111_v42, 16  ;;  %v3865_v15 = vadd.f32 %v3864_v12, %v13679_v13  ;;  %5065 = vmatmul.mubr.bf16.gmra.mxu0 %v4170_v33  ;;  %5217 = vmatprep.mubr.bf16.mxu1 %v4170_v33  ;;  %v13830_v48 = vadd.f32 %v9657_v17, %v16296_v35  ;;  %v11037_v29 = vld [vmem:[%s15979_s1 + $0x668] sm:$0xff]  }
 0x3cb   : > { %v10713_v54 = vpop.f32.mrf.mxu1  ;;  %5072 = vmatprep.mubr.bf16.mxu0 %v13758_v14  ;;  %5218 = vmatmul.mubr.bf16.vlgmr.msra.gmra.mxu1 %v16295_v3  ;;  %v4113_v62 = vpack.c.bf16 %v3860_v43, %v3860_v43  ;;  %v4427_v9 = vshll.u32 %v13768_v61, 16  ;;  %v9663_v58 = vadd.f32 %v13764_v27, %v13729_v39  ;;  %v4116_v17 = vpack.c.bf16 %v3873_v31, %v16269_v30  ;;  %v9668_v27 = vpop.f32.mrf.mxu0 }
 0x3cc   : > { %v3876_v46 = vadd.f32 %v10713_v54, %v13721_v18  ;;  %v4199_v13 = vrot.slane %v4197_v45, 3  ;;  %v4202_v5 = vrot.slane %v4200_v41, 4  ;;  %5225 = vmatprep.mubr.bf16.mxu1 %v13799_v21  ;;  %10031 = vmatpush3.bf16.msra.mxu1 %v11032_v8  ;;  %v4206_v18 = vshrl.u32 %v13815_v19, 16 }
 0x3cd   : > { %v3867_v36 = vpop.f32.mrf.mxu1  ;;  %v13842_v43 = vadd.f32 %v9660_v51, %v13618_v47  ;;  %10032 = vmatprep.subr.bf16.mxu1 %v11033_v56  ;;  %v4114_v42 = vpack.c.bf16 %v3865_v15, %v16269_v30  ;;  %v4429_v39 = vrot.slane %v4427_v9, 1  ;;  %v4209_v8 = vshll.u32 %v13815_v19, 16  ;;  %v11038_v19 = vld [vmem:[%s15979_s1 + $0x628] sm:$0xff]  }
 0x3ce   : > { %v13848_v12 = vpack.c.bf16 %v3876_v46, %v3873_v31  ;;  %v3868_v1 = vadd.f32 %v3867_v36, %v13682_v37  ;;  %v4425_v33 = vshrl.u32 %v13768_v61, 16  ;;  %v4195_v47 = vor.u32 %v4194_v23, %v4191_v52 }
 0x3cf   : > { %v10716_v63 = vpop.f32.mrf.mxu1  ;;  %v4203_v51 = vor.u32 %v4202_v5, %v4199_v13  ;;  %v4214_v56 = vshrl.u32 %v4113_v62, 16  ;;  %v4217_v45 = vshll.u32 %v4113_v62, 16  ;;  %v13853_v41 = vpack.c.bf16 %v3876_v46, %v3876_v46  ;;  %v11039_v13 = vld [vmem:[%s15979_s1 + $0x660] sm:$0xff]  }
 0x3d0   : > { %v13855_v54 = vpack.c.bf16 %v3868_v1, %v3865_v15  ;;  %10033 = vmatpush3.bf16.msra.mxu1 %v11034_v28  ;;  %v4240_v31 = vshrl.u32 %v4116_v17, 16  ;;  %v4243_v35 = vshll.u32 %v4116_v17, 16  ;;  %v4430_v37 = vor.u32 %v4429_v39, %v4425_v33  ;;  %v11041_v33 = vld [vmem:[%s15979_s1 + $0x658] sm:$0xff]  }
 0x3d1   : > { %v3880_v53 = vpop.f32.mrf.mxu1  ;;  %v13858_v36 = vsel %vm398_vm0, %v4195_v47, %v4203_v51  ;;  %10034 = vmatprep.subr.bf16.mxu1 %v11037_v29  ;;  %v13865_v52 = vadd.f32 %v13796_v10, %v13771_v11  ;;  %v13867_v23 = vadd.f32 %v9668_v27, %v9667_v20  ;;  %v4223_v15 = vshrl.u32 %v4114_v42, 16 }
 0x3d2   : > { %16297 = vst [vmem:[#allocation30_spill] sm:$0xff] %v13858_v36  ;;  %5073 = vmatmul.mubr.bf16.gmra.mxu0 %v13799_v21  ;;  %v13871_v62 = vadd.f32 %v9663_v58, %v13631_v6  ;;  %v4226_v5 = vshll.u32 %v4114_v42, 16  ;;  %v3889_v9 = vadd.f32 %v10716_v63, %v13733_v32  ;;  %v3881_v28 = vadd.f32 %v3880_v53, %v13724_v55 }
 0x3d3   : > { %v10717_v46 = vpop.f32.mrf.mxu1  ;;  %5080 = vmatprep.mubr.bf16.mxu0 %v13801_v57  ;;  %v13881_v11 = vsel %vm679_vm1, %v4430_v37, %v16295_v3  ;;  %v4208_v10 = vrot.slane %v4206_v18, 3  ;;  %v4211_v20 = vrot.slane %v4209_v8, 4  ;;  %v4248_v6 = vshrl.u32 %v13853_v41, 16  ;;  %v11040_v18 = vld [vmem:[%s15979_s1 + $0x620] sm:$0xff]  }
 0x3d4   : > { %16298 = vst [vmem:[#allocation35_spill] sm:$0xff] %v13881_v11  ;;  %5226 = vmatmul.mubr.bf16.gmra.mxu1 %v13881_v11  ;;  %v3892_v58 = vadd.f32 %v10717_v46, %v13736_v38  ;;  %v4216_v29 = vrot.slane %v4214_v56, 3  ;;  %v4219_v42 = vrot.slane %v4217_v45, 4  ;;  %v13886_v32 = vrot.slane %v4240_v31, 3 }
 0x3d5   : > { %v3883_v17 = vpop.f32.mrf.mxu1  ;;  %v13888_v55 = vrot.slane %v4243_v35, 4  ;;  %5233 = vmatprep.mubr.bf16.mxu1 %v13858_v36  ;;  %10035 = vmatpush3.bf16.msra.mxu1 %v11038_v19  ;;  %v4115_v63 = vpack.c.bf16 %v3868_v1, %v3868_v1  ;;  %v4435_v8 = vshll.u32 %v13758_v14, 16  ;;  %v13901_v47 = vrot.slane %v4223_v15, 3 }
 0x3d6   : > { %v13894_v39 = vpack.c.bf16 %v3892_v58, %v3889_v9  ;;  %v3884_v27 = vadd.f32 %v3883_v17, %v13727_v4  ;;  %10036 = vmatprep.subr.bf16.mxu1 %v11039_v13  ;;  %v13903_v51 = vrot.slane %v4226_v5, 4  ;;  %v4120_v56 = vpack.c.bf16 %v3889_v9, %v16269_v30  ;;  %v11042_v13 = vld [vmem:[%s15979_s1 + $0x618] sm:$0xff]  }
 0x3d7   : > { %v10720_v38 = vpop.f32.mrf.mxu1  ;;  %v4118_v1 = vpack.c.bf16 %v3881_v28, %v16269_v30  ;;  %v13907_v45 = vrot.slane %v4248_v6, 3  ;;  %v4251_v4 = vshll.u32 %v13853_v41, 16  ;;  %v4121_v53 = vpack.c.bf16 %v3892_v58, %v3892_v58 }
 0x3d8   : > { %v13910_v31 = vpack.c.bf16 %v3884_v27, %v3881_v28  ;;  %v3905_v37 = vadd.f32 %v10720_v38, %v13739_v60  ;;  %v4433_v19 = vshrl.u32 %v13758_v14, 16  ;;  %v4437_v15 = vrot.slane %v4435_v8, 1  ;;  %v11043_v60 = vld [vmem:[%s15979_s1 + $0x650] sm:$0xff]  }
 0x3d9   : > { %v3896_v35 = vpop.f32.mrf.mxu1  ;;  %v4220_v46 = vor.u32 %v4219_v42, %v4216_v29  ;;  %10037 = vmatpush3.bf16.msra.mxu1 %v11040_v18  ;;  %v4231_v5 = vshrl.u32 %v4115_v63, 16  ;;  %v4234_v9 = vshll.u32 %v4115_v63, 16  ;;  %v4212_v28 = vor.u32 %v4211_v20, %v4208_v10 }
 0x3da   : > { %v3897_v6 = vadd.f32 %v3896_v35, %v13742_v16  ;;  %5081 = vmatmul.mubr.bf16.gmra.mxu0 %v13858_v36  ;;  %10038 = vmatprep.subr.bf16.mxu1 %v11041_v33  ;;  %v4274_v58 = vshrl.u32 %v4120_v56, 16  ;;  %v4277_v17 = vshll.u32 %v4120_v56, 16  ;;  %v4257_v29 = vshrl.u32 %v4118_v1, 16  ;;  %v11044_v56 = vld [vmem:[%s15979_s1 + $0x610] sm:$0xff]  }
 0x3db   : > { %v10721_v41 = vpop.f32.mrf.mxu1  ;;  %5088 = vmatprep.mubr.bf16.mxu0 %v13793_v7  ;;  %v4438_v42 = vor.u32 %v4437_v15, %v4433_v19  ;;  %v4260_v18 = vshll.u32 %v4118_v1, 16  ;;  %v4282_v38 = vshrl.u32 %v4121_v53, 16  ;;  %v13925_v16 = vsel %vm398_vm0, %v4212_v28, %v4220_v46 }
 0x3dc   : > { %v3908_v63 = vadd.f32 %v10721_v41, %v13745_v40  ;;  %16299 = vst [vmem:[#allocation31_spill] sm:$0xff] %v13925_v16  ;;  %v13927_v10 = vrot.slane %v4251_v4, 4  ;;  %v4285_v20 = vshll.u32 %v4121_v53, 16  ;;  %v4119_v33 = vpack.c.bf16 %v3884_v27, %v3884_v27  ;;  %v11046_v27 = vld [vmem:[%s15979_s1 + $0x648] sm:$0xff]  }
 0x3dd   : > { %v3899_v8 = vpop.f32.mrf.mxu1  ;;  %v4124_v35 = vpack.c.bf16 %v3905_v37, %v16269_v30  ;;  %10039 = vmatpush3.bf16.msra.mxu1 %v11042_v13  ;;  %v4122_v1 = vpack.c.bf16 %v3897_v6, %v16269_v30  ;;  %v13936_v40 = vsel %vm679_vm1, %v4438_v42, %v16295_v3  ;;  %v4233_v53 = vrot.slane %v4231_v5, 3 }
 0x3de   : > { %16300 = vst [vmem:[#allocation34_spill] sm:$0xff] %v13936_v40  ;;  %v13938_v19 = vpack.c.bf16 %v3908_v63, %v3905_v37  ;;  %v3900_v4 = vadd.f32 %v3899_v8, %v13748_v50  ;;  %10040 = vmatprep.subr.bf16.mxu1 %v11043_v60  ;;  %v4236_v46 = vrot.slane %v4234_v9, 4  ;;  %v13944_v13 = vrot.slane %v4274_v58, 3  ;;  %5234 = vmatmul.mubr.bf16.gmra.mxu1 %v13936_v40 }
 0x3df   : > { %v10724_v15 = vpop.f32.mrf.mxu1  ;;  %v13946_v41 = vrot.slane %v4277_v17, 4  ;;  %v13949_v28 = vrot.slane %v4257_v29, 3  ;;  %v13951_v37 = vrot.slane %v4260_v18, 4  ;;  %v13953_v42 = vrot.slane %v4282_v38, 3  ;;  %5241 = vmatprep.mubr.bf16.mxu1 %v13925_v16  ;;  %v11047_v17 = vld [vmem:[%s15979_s1 + $0x608] sm:$0xff]  }
 0x3e0   : > { %v13956_v50 = vpack.c.bf16 %v3900_v4, %v3897_v6  ;;  %v13958_v8 = vrot.slane %v4285_v20, 4  ;;  %v4265_v5 = vshrl.u32 %v4119_v33, 16  ;;  %v4125_v9 = vpack.c.bf16 %v3908_v63, %v3908_v63  ;;  %v11048_v20 = vld [vmem:[%s15979_s1 + $0x640] sm:$0xff]  }
 0x3e1   : > { %v3912_v60 = vpop.f32.mrf.mxu1  ;;  %v4443_v58 = vshll.u32 %v13801_v57, 16  ;;  %10041 = vmatpush3.bf16.msra.mxu1 %v11044_v56  ;;  %v4268_v29 = vshll.u32 %v4119_v33, 16  ;;  %v4308_v18 = vshrl.u32 %v4124_v35, 16  ;;  %v4311_v38 = vshll.u32 %v4124_v35, 16 }
 0x3e2   : > { %v4291_v36 = vshrl.u32 %v4122_v1, 16  ;;  %5089 = vmatmul.mubr.bf16.gmra.mxu0 %v13925_v16  ;;  %10042 = vmatprep.subr.bf16.mxu1 %v11046_v27  ;;  %v4294_v63 = vshll.u32 %v4122_v1, 16  ;;  %v13968_v21 = vpack.c.bf16 %v3900_v4, %v3900_v4  ;;  %v3921_v56 = vadd.f32 %v10724_v15, %v13785_v2 }
 0x3e3   : > { %v10725_v6 = vpop.f32.mrf.mxu1  ;;  %5096 = vmatprep.mubr.bf16.mxu0 %v13855_v54  ;;  %v4445_v14 = vrot.slane %v4443_v58, 1  ;;  %v4441_v33 = vshrl.u32 %v13801_v57, 16  ;;  %v4229_v16 = vor.u32 %v13903_v51, %v13901_v47  ;;  %v4237_v27 = vor.u32 %v4236_v46, %v4233_v53 }
 0x3e4   : > { %v3924_v35 = vadd.f32 %v10725_v6, %v13788_v44  ;;  %v13976_v40 = vrot.slane %v4265_v5, 3  ;;  %v4316_v61 = vshrl.u32 %v4125_v9, 16  ;;  %v4319_v1 = vshll.u32 %v4125_v9, 16 }
 0x3e5   : > { %v3915_v22 = vpop.f32.mrf.mxu1  ;;  %v3913_v4 = vadd.f32 %v3912_v60, %v13751_v25  ;;  %10043 = vmatpush3.bf16.msra.mxu1 %v11047_v17  ;;  %v13979_v2 = vrot.slane %v4268_v29, 4  ;;  %v4446_v15 = vor.u32 %v4445_v14, %v4441_v33  ;;  %v13984_v57 = vsel %vm398_vm0, %v4229_v16, %v4237_v27  ;;  %v11049_v25 = vld [vmem:[%s15979_s1 + $0x600] sm:$0xff]  }
 0x3e6   : > { %v13981_v58 = vpack.c.bf16 %v3924_v35, %v3921_v56  ;;  %16301 = vst [vmem:[#allocation4_spill] sm:$0xff] %v13984_v57  ;;  %10044 = vmatprep.subr.bf16.mxu1 %v11048_v20  ;;  %v13986_v47 = vrot.slane %v4308_v18, 3  ;;  %v4299_v51 = vshrl.u32 %v13968_v21, 16  ;;  %v4128_v53 = vpack.c.bf16 %v3921_v56, %v16269_v30 }
 0x3e7   : > { %v10728_v44 = vpop.f32.mrf.mxu1  ;;  %v3916_v46 = vadd.f32 %v3915_v22, %v13754_v26  ;;  %v13994_v14 = vrot.slane %v4311_v38, 4  ;;  %v13996_v60 = vrot.slane %v4291_v36, 3  ;;  %v13998_v16 = vrot.slane %v4294_v63, 4 }
 0x3e8   : > { %v14002_v5 = vsel %vm679_vm1, %v4446_v15, %v16295_v3  ;;  %v14004_v17 = vrot.slane %v4316_v61, 3  ;;  %v14006_v29 = vrot.slane %v4319_v1, 4  ;;  %v4126_v26 = vpack.c.bf16 %v3913_v4, %v16269_v30 }
 0x3e9   : > { %16302 = vst [vmem:[#allocation5_spill] sm:$0xff] %v14002_v5  ;;  %v3928_v9 = vpop.f32.mrf.mxu1  ;;  %5242 = vmatmul.mubr.bf16.gmra.mxu1 %v14002_v5  ;;  %v14010_v22 = vpack.c.bf16 %v3916_v46, %v3913_v4  ;;  %v4302_v36 = vshll.u32 %v13968_v21, 16  ;;  %v4129_v18 = vpack.c.bf16 %v3924_v35, %v3924_v35  ;;  %v3937_v38 = vadd.f32 %v10728_v44, %v13824_v24 }
 0x3ea   : > { %5249 = vmatprep.mubr.bf16.mxu1 %v13984_v57  ;;  %5097 = vmatmul.mubr.bf16.gmra.mxu0 %v13984_v57  ;;  %v4451_v61 = vshll.u32 %v13793_v7, 16  ;;  %v14017_v20 = vrot.slane %v4299_v51, 3  ;;  %v4342_v63 = vshrl.u32 %v4128_v53, 16  ;;  %v4345_v56 = vshll.u32 %v4128_v53, 16 }
 0x3eb   : > { %v10729_v6 = vpop.f32.mrf.mxu1  ;;  %v4127_v33 = vpack.c.bf16 %v3916_v46, %v3916_v46  ;;  %5104 = vmatprep.mubr.bf16.mxu0 %v13848_v12  ;;  %10045 = vmatpush3.bf16.msra.mxu1 %v11049_v25  ;;  %v4449_v21 = vshrl.u32 %v13793_v7, 16  ;;  %v4254_v24 = vor.u32 %v13927_v10, %v13907_v45  ;;  %v4325_v4 = vshrl.u32 %v4126_v26, 16 }
 0x3ec   : > { %v4453_v35 = vrot.slane %v4451_v61, 1  ;;  %v3940_v27 = vadd.f32 %v10729_v6, %v13830_v48  ;;  %v4328_v15 = vshll.u32 %v4126_v26, 16  ;;  %v3929_v44 = vadd.f32 %v3928_v9, %v13804_v34 }
 0x3ed   : > { %v3931_v1 = vpop.f32.mrf.mxu1  ;;  %v4246_v51 = vor.u32 %v13888_v55, %v13886_v32  ;;  %v4350_v53 = vshrl.u32 %v4129_v18, 16  ;;  %v4353_v46 = vshll.u32 %v4129_v18, 16  ;;  %v4132_v25 = vpack.c.bf16 %v3937_v38, %v16269_v30 }
 0x3ee   : > { %v4454_v57 = vor.u32 %v4453_v35, %v4449_v21  ;;  %v4333_v61 = vshrl.u32 %v4127_v33, 16  ;;  %v14028_v5 = vpack.c.bf16 %v3940_v27, %v3937_v38  ;;  %v3932_v45 = vadd.f32 %v3931_v1, %v13807_v0 }
 0x3ef   : > { %v10732_v7 = vpop.f32.mrf.mxu1  ;;  %v14031_v48 = vsel %vm398_vm0, %v4246_v51, %v4254_v24  ;;  %v14034_v10 = vrot.slane %v4302_v36, 4  ;;  %v14036_v34 = vrot.slane %v4342_v63, 3  ;;  %v14038_v9 = vrot.slane %v4345_v56, 4 }
 0x3f0   : > { %16303 = vst [vmem:[#allocation13_spill] sm:$0xff] %v14028_v5  ;;  %16304 = vst [vmem:[#allocation17_spill] sm:$0xff] %v14031_v48  ;;  %v14042_v32 = vsel %vm679_vm1, %v4454_v57, %v16295_v3  ;;  %v14044_v26 = vrot.slane %v4325_v4, 3  ;;  %v4336_v18 = vshll.u32 %v4127_v33, 16  ;;  %v4130_v38 = vpack.c.bf16 %v3929_v44, %v16269_v30 }
 0x3f1   : > { %16305 = vst [vmem:[#allocation32_spill] sm:$0xff] %v14042_v32  ;;  %v3944_v55 = vpop.f32.mrf.mxu1  ;;  %5250 = vmatmul.mubr.bf16.gmra.mxu1 %v14042_v32  ;;  %v14048_v6 = vpack.c.bf16 %v3932_v45, %v3929_v44  ;;  %v14050_v0 = vrot.slane %v4328_v15, 4  ;;  %v14052_v36 = vrot.slane %v4350_v53, 3  ;;  %v4133_v63 = vpack.c.bf16 %v3940_v27, %v3940_v27 }
 0x3f2   : > { %5257 = vmatprep.mubr.bf16.mxu1 %v14031_v48  ;;  %5105 = vmatmul.mubr.bf16.gmra.mxu0 %v14031_v48  ;;  %v4459_v57 = vshll.u32 %v13855_v54, 16  ;;  %v14057_v21 = vrot.slane %v4353_v46, 4  ;;  %v14059_v33 = vrot.slane %v4333_v61, 3  ;;  %v4376_v35 = vshrl.u32 %v4132_v25, 16 }
 0x3f3   : > { %v10733_v56 = vpop.f32.mrf.mxu1  ;;  %v4379_v24 = vshll.u32 %v4132_v25, 16  ;;  %5112 = vmatprep.mubr.bf16.mxu0 %v13910_v31  ;;  %v3792_v1 = vadd.f32 %v13865_v52, %v13655_v59  ;;  %v4457_v27 = vshrl.u32 %v13855_v54, 16  ;;  %v3795_v15 = vadd.f32 %v13867_v23, %v13699_v49 }
 0x3f4   : > { %v4461_v4 = vrot.slane %v4459_v57, 1  ;;  %v14067_v51 = vrot.slane %v4336_v18, 4  ;;  %v4359_v53 = vshrl.u32 %v4130_v38, 16  ;;  %v4362_v46 = vshll.u32 %v4130_v38, 16 }
 0x3f5   : > { %v3947_v44 = vpop.f32.mrf.mxu1  ;;  %v4131_v61 = vpack.c.bf16 %v3932_v45, %v3932_v45  ;;  %v4384_v48 = vshrl.u32 %v4133_v63, 16  ;;  %v3953_v32 = vadd.f32 %v10732_v7, %v3792_v1  ;;  %v3956_v11 = vadd.f32 %v10733_v56, %v3795_v15 }
 0x3f6   : > { %v4462_v25 = vor.u32 %v4461_v4, %v4457_v27  ;;  %v3945_v5 = vadd.f32 %v3944_v55, %v13842_v43  ;;  %v4263_v59 = vor.u32 %v13951_v37, %v13949_v28  ;;  %v4271_v52 = vor.u32 %v13979_v2, %v13976_v40 }
 0x3f7   : > { %v3948_v49 = vadd.f32 %v3947_v44, %v13871_v62  ;;  %v14075_v23 = vrot.slane %v4376_v35, 3  ;;  %v14077_v18 = vrot.slane %v4379_v24, 4  ;;  %v4387_v38 = vshll.u32 %v4133_v63, 16 }
 0x3f8   : > { %v14081_v7 = vsel %vm679_vm1, %v4462_v25, %v16295_v3  ;;  %v4367_v45 = vshrl.u32 %v4131_v61, 16  ;;  %v14084_v43 = vpack.c.bf16 %v3956_v11, %v3953_v32  ;;  %v14087_v28 = vsel %vm398_vm0, %v4263_v59, %v4271_v52 }
 0x3f9   : > { %5258 = vmatmul.mubr.bf16.gmra.mxu1 %v14081_v7  ;;  %v14089_v40 = vpack.c.bf16 %v3948_v49, %v3945_v5  ;;  %v14091_v62 = vrot.slane %v4359_v53, 3  ;;  %v14093_v37 = vrot.slane %v4362_v46, 4  ;;  %v4370_v2 = vshll.u32 %v4131_v61, 16 }
 0x3fa   : > { %5265 = vmatprep.mubr.bf16.mxu1 %v14087_v28  ;;  %5113 = vmatmul.mubr.bf16.gmra.mxu0 %v14087_v28  ;;  %v4467_v55 = vshll.u32 %v13848_v12, 16  ;;  %v14098_v63 = vrot.slane %v4384_v48, 3  ;;  %v4136_v57 = vpack.c.bf16 %v3953_v32, %v16269_v30  ;;  %v4280_v56 = vor.u32 %v13946_v41, %v13944_v13 }
 0x3fb   : > { %5120 = vmatprep.mubr.bf16.mxu0 %v13894_v39  ;;  %v4288_v35 = vor.u32 %v13958_v8, %v13953_v42  ;;  %v4389_v24 = vrot.slane %v4387_v38, 4  ;;  %v4134_v1 = vpack.c.bf16 %v3945_v5, %v16269_v30  ;;  %v4465_v27 = vshrl.u32 %v13848_v12, 16 }
 0x3fc   : > { %v4469_v4 = vrot.slane %v4467_v55, 1  ;;  %v4369_v15 = vrot.slane %v4367_v45, 3  ;;  %v4135_v44 = vpack.c.bf16 %v3948_v49, %v3948_v49  ;;  %v4475_v32 = vshll.u32 %v13910_v31, 16 }
 0x3fd   : > { %v14109_v48 = vsel %vm398_vm0, %v4280_v56, %v4288_v35  ;;  %v4372_v53 = vrot.slane %v4370_v2, 4  ;;  %v4297_v13 = vor.u32 %v13998_v16, %v13996_v60  ;;  %v4305_v41 = vor.u32 %v14034_v10, %v14017_v20 }
 0x3fe   : > { %v4470_v46 = vor.u32 %v4469_v4, %v4465_v27  ;;  %v4560_v42 = vshrl.u32 %v4136_v57, 16  ;;  %v4137_v8 = vpack.c.bf16 %v3956_v11, %v3956_v11  ;;  %v4314_v5 = vor.u32 %v13994_v14, %v13986_v47 }
 0x3ff   : > { %v4322_v61 = vor.u32 %v14006_v29, %v14004_v17  ;;  %v4563_v25 = vshll.u32 %v4136_v57, 16  ;;  %v4477_v52 = vrot.slane %v4475_v32, 1  ;;  %v14125_v49 = vsel %vm398_vm0, %v4297_v13, %v4305_v41  ;;  %v9710_v41 = vpop.f32.mrf.mxu0 }
 0x400   : > { %v14122_v59 = vsel %vm679_vm1, %v4470_v46, %v16295_v3  ;;  %v4393_v60 = vshrl.u32 %v4134_v1, 16  ;;  %v4396_v16 = vshll.u32 %v4134_v1, 16  ;;  %v4401_v20 = vshrl.u32 %v4135_v44, 16 }
 0x401   : > { %5266 = vmatmul.mubr.bf16.gmra.mxu1 %v14122_v59  ;;  %v14129_v11 = vsel %vm398_vm0, %v4314_v5, %v4322_v61  ;;  %v4404_v47 = vshll.u32 %v4135_v44, 16  ;;  %v4473_v14 = vshrl.u32 %v13910_v31, 16  ;;  %v4331_v17 = vor.u32 %v14050_v0, %v14044_v26 }
 0x402   : > { %5273 = vmatprep.mubr.bf16.mxu1 %v14109_v48  ;;  %5121 = vmatmul.mubr.bf16.gmra.mxu0 %v14109_v48  ;;  %v4339_v29 = vor.u32 %v14067_v51, %v14059_v33  ;;  %v4568_v10 = vshrl.u32 %v4137_v8, 16  ;;  %v4571_v38 = vshll.u32 %v4137_v8, 16  ;;  %v4348_v45 = vor.u32 %v14038_v9, %v14036_v34  ;;  %v9711_v8 = vpop.f32.mrf.mxu0 }
 0x403   : > { %5128 = vmatprep.mubr.bf16.mxu0 %v13956_v50  ;;  %v4356_v2 = vor.u32 %v14057_v21, %v14052_v36  ;;  %v4562_v55 = vrot.slane %v4560_v42, 3  ;;  %v4478_v57 = vor.u32 %v4477_v52, %v4473_v14  ;;  %v4483_v56 = vshll.u32 %v13894_v39, 16 }
 0x404   : > { %v14145_v35 = vsel %vm398_vm0, %v4331_v17, %v4339_v29  ;;  %v4565_v26 = vrot.slane %v4563_v25, 4  ;;  %v4395_v0 = vrot.slane %v4393_v60, 3  ;;  %v4398_v33 = vrot.slane %v4396_v16, 4 }
 0x405   : > { %v14148_v51 = vsel %vm398_vm0, %v4348_v45, %v4356_v2  ;;  %v4403_v1 = vrot.slane %v4401_v20, 3  ;;  %v4406_v27 = vrot.slane %v4404_v47, 4  ;;  %v4365_v34 = vor.u32 %v14093_v37, %v14091_v62 }
 0x406   : > { %v4373_v9 = vor.u32 %v4372_v53, %v4369_v15  ;;  %v4570_v36 = vrot.slane %v4568_v10, 3  ;;  %v4573_v21 = vrot.slane %v4571_v38, 4  ;;  %v4382_v4 = vor.u32 %v14077_v18, %v14075_v23 }
 0x407   : > { %v4390_v44 = vor.u32 %v4389_v24, %v14098_v63  ;;  %v14157_v32 = vsel %vm679_vm1, %v4478_v57, %v16295_v3  ;;  %v4485_v46 = vrot.slane %v4483_v56, 1  ;;  %v4481_v23 = vshrl.u32 %v13894_v39, 16 }
 0x408   : > { %v14160_v13 = vsel %vm398_vm0, %v4365_v34, %v4373_v9  ;;  %v4399_v18 = vor.u32 %v4398_v33, %v4395_v0  ;;  %v4407_v37 = vor.u32 %v4406_v27, %v4403_v1  ;;  %v4566_v63 = vor.u32 %v4565_v26, %v4562_v55  ;;  %v16306_v33 = vld [vmem:[#allocation13_spill] sm:$0xff] }
 0x409   : > { %5274 = vmatmul.mubr.bf16.gmra.mxu1 %v14157_v32  ;;  %v14164_v62 = vsel %vm398_vm0, %v4382_v4, %v4390_v44  ;;  %v4574_v24 = vor.u32 %v4573_v21, %v4570_v36  ;;  %v4486_v15 = vor.u32 %v4485_v46, %v4481_v23  ;;  %v4491_v53 = vshll.u32 %v13956_v50, 16  ;;  %v16307_v23 = vld [vmem:[#allocation35_spill] sm:$0xff] }
 0x40a   : > { %5281 = vmatprep.mubr.bf16.mxu1 %v14125_v49  ;;  %5129 = vmatmul.mubr.bf16.gmra.mxu0 %v14125_v49  ;;  %v14172_v42 = vsel %vm398_vm0, %v4399_v18, %v4407_v37  ;;  %v14177_v61 = vadd.f32 %v9711_v8, %v9710_v41  ;;  %v4489_v60 = vshrl.u32 %v13956_v50, 16  ;;  %v4499_v20 = vshll.u32 %v13938_v19, 16 }
 0x40b   : > { %5136 = vmatprep.mubr.bf16.mxu0 %v13938_v19  ;;  %v14175_v5 = vsel %vm398_vm0, %v4566_v63, %v4574_v24  ;;  %v14181_v25 = vsel %vm679_vm1, %v4486_v15, %v16295_v3  ;;  %v4493_v52 = vrot.slane %v4491_v53, 1  ;;  %v4497_v17 = vshrl.u32 %v13938_v19, 16  ;;  %v11050_v15 = vld [vmem:[%s15979_s1 + $0x6b0] sm:$0xff]   ;;  %v16308_v53 = vld [vmem:[#allocation27_spill] sm:$0xff] }
 0x40c   : > { %v4501_v14 = vrot.slane %v4499_v20, 1  ;;  %v4507_v10 = vshll.u32 %v14010_v22, 16  ;;  %v4505_v2 = vshrl.u32 %v14010_v22, 16  ;;  %v4515_v57 = vshll.u32 %v13981_v58, 16  ;;  %v11051_v20 = vld [vmem:[%s15979_s1 + $0x6a8] sm:$0xff]  }
 0x40d   : > { %v4494_v16 = vor.u32 %v4493_v52, %v4489_v60  ;;  %v4513_v0 = vshrl.u32 %v13981_v58, 16  ;;  %v4523_v27 = vshll.u32 %v14048_v6, 16  ;;  %v4521_v36 = vshrl.u32 %v14048_v6, 16  ;;  %v16309_v52 = vld [vmem:[#allocation34_spill] sm:$0xff] }
 0x40e   : > { %v4502_v29 = vor.u32 %v4501_v14, %v4497_v17  ;;  %v4509_v45 = vrot.slane %v4507_v10, 1  ;;  %v4517_v26 = vrot.slane %v4515_v57, 1  ;;  %v4531_v4 = vshll.u32 %v16306_v33, 16  ;;  %v16310_v60 = vld [vmem:[#allocation14_spill] sm:$0xff]  ;;  %v16312_v10 = vld [vmem:[#allocation5_spill] sm:$0xff]  ;;  %v16314_v57 = vld [vmem:[#allocation28_spill] sm:$0xff] }
 0x40f   : > { %v14191_v47 = vsel %vm679_vm1, %v4494_v16, %v16295_v3  ;;  %v4525_v9 = vrot.slane %v4523_v27, 1  ;;  %v4529_v41 = vshrl.u32 %v16306_v33, 16  ;;  %v4539_v37 = vshll.u32 %v14089_v40, 16  ;;  %v11052_v17 = vld [vmem:[%s15979_s1 + $0x6a0] sm:$0xff]  }
 0x410   : > { %v14201_v38 = vsel %vm679_vm1, %v4502_v29, %v16295_v3  ;;  %v4510_v55 = vor.u32 %v4509_v45, %v4505_v2  ;;  %v4518_v1 = vor.u32 %v4517_v26, %v4513_v0  ;;  %v4533_v46 = vrot.slane %v4531_v4, 1  ;;  %v16311_v29 = vld [vmem:[#allocation22_spill] sm:$0xff]  ;;  %v11053_v45 = vld [vmem:[%s15979_s1 + $0x698] sm:$0xff]   ;;  %v11054_v2 = vld [vmem:[%s15979_s1 + $0x690] sm:$0xff]  }
 0x411   : > { %5282 = vmatmul.mubr.bf16.gmra.mxu1 %v14181_v25  ;;  %v4526_v21 = vor.u32 %v4525_v9, %v4521_v36  ;;  %v4541_v24 = vrot.slane %v4539_v37, 1  ;;  %v4537_v8 = vshrl.u32 %v14089_v40, 16  ;;  %v16315_v26 = vld [vmem:[#allocation32_spill] sm:$0xff]  ;;  %v11055_v0 = vld [vmem:[%s15979_s1 + $0x688] sm:$0xff]   ;;  %v16316_v27 = vld [vmem:[#allocation30_spill] sm:$0xff] }
 0x412   : > { %5289 = vmatprep.mubr.bf16.mxu1 %v14129_v11  ;;  %5137 = vmatmul.mubr.bf16.gmra.mxu0 %v14129_v11  ;;  %v14211_v56 = vsel %vm679_vm1, %v4510_v55, %v16295_v3  ;;  %v14221_v34 = vsel %vm679_vm1, %v4518_v1, %v16295_v3  ;;  %v4534_v18 = vor.u32 %v4533_v46, %v4529_v41  ;;  %v16313_v55 = vld [vmem:[#allocation23_spill] sm:$0xff]  ;;  %v11056_v1 = vld [vmem:[%s15979_s1 + $0x680] sm:$0xff]   ;;  %v16317_v9 = vld [vmem:[#allocation16_spill] sm:$0xff] }
 0x413   : > { %5144 = vmatprep.mubr.bf16.mxu0 %v14010_v22  ;;  %v14231_v44 = vsel %vm679_vm1, %v4526_v21, %v16295_v3  ;;  %v4542_v16 = vor.u32 %v4541_v24, %v4537_v8  ;;  %v16318_v36 = vld [vmem:[#allocation31_spill] sm:$0xff]  ;;  %v16319_v21 = vld [vmem:[#allocation4_spill] sm:$0xff]  ;;  %v16320_v4 = vld [vmem:[#allocation17_spill] sm:$0xff] }
 0x414   : > { %v14241_v63 = vsel %vm679_vm1, %v4534_v18, %v16295_v3 }
 0x415   : > { %v14257_v14 = vsel %vm679_vm1, %v4542_v16, %v16295_v3 }
 0x419   : > { %5290 = vmatmul.mubr.bf16.gmra.mxu1 %v14191_v47 }
 0x41a   : > { %5297 = vmatprep.mubr.bf16.mxu1 %v14145_v35  ;;  %5145 = vmatmul.mubr.bf16.gmra.mxu0 %v14145_v35 }
 0x41b   : > { %5152 = vmatprep.mubr.bf16.mxu0 %v13981_v58 }
 0x421   : > { %5298 = vmatmul.mubr.bf16.gmra.mxu1 %v14201_v38 }
 0x422   : > { %5305 = vmatprep.mubr.bf16.mxu1 %v14148_v51  ;;  %5153 = vmatmul.mubr.bf16.gmra.mxu0 %v14148_v51 }
 0x423   : > { %5160 = vmatprep.mubr.bf16.mxu0 %v14048_v6 }
 0x429   : > { %5306 = vmatmul.mubr.bf16.gmra.mxu1 %v14211_v56 }
 0x42a   : > { %5313 = vmatprep.mubr.bf16.mxu1 %v14160_v13  ;;  %5161 = vmatmul.mubr.bf16.gmra.mxu0 %v14160_v13 }
 0x42b   : > { %5168 = vmatprep.mubr.bf16.mxu0 %v16306_v33 }
 0x431   : > { %5314 = vmatmul.mubr.bf16.gmra.mxu1 %v14221_v34 }
 0x432   : > { %5321 = vmatprep.mubr.bf16.mxu1 %v14164_v62  ;;  %5169 = vmatmul.mubr.bf16.gmra.mxu0 %v14164_v62 }
 0x433   : > { %5176 = vmatprep.mubr.bf16.mxu0 %v14089_v40 }
 0x439   : > { %5322 = vmatmul.mubr.bf16.gmra.mxu1 %v14231_v44 }
 0x43a   : > { %5329 = vmatprep.mubr.bf16.mxu1 %v14172_v42  ;;  %5177 = vmatmul.mubr.bf16.gmra.mxu0 %v14172_v42 }
 0x43b   : > { %5378 = vmatprep.mubr.bf16.mxu0 %v16307_v23 }
 0x441   : > { %5330 = vmatmul.mubr.bf16.gmra.mxu1 %v14241_v63 }
 0x442   : > { %5337 = vmatprep.mubr.bf16.mxu1 %v14175_v5  ;;  %5379 = vmatmul.mubr.bf16.vlgmr.msra.gmra.mxu0 %v16308_v53 }
 0x443   : > { %5386 = vmatprep.mubr.bf16.mxu0 %v16309_v52  ;;  %10735 = vmatpush3.bf16.msra.mxu0 %v16310_v60 }
 0x444   : > { %10736 = vmatprep.subr.bf16.mxu0 %v11050_v15 }
 0x447   : > { %10737 = vmatpush3.bf16.msra.mxu0 %v11050_v15 }
 0x448   : > { %10738 = vmatprep.subr.bf16.mxu0 %v11051_v20 }
 0x449   : > { %5338 = vmatmul.mubr.bf16.gmra.mxu1 %v14257_v14 }
 0x44a   : > { %5539 = vmatprep.mubr.bf16.mxu1 %v16311_v29  ;;  %5387 = vmatmul.mubr.bf16.gmra.mxu0 %v16311_v29  ;;  %v11058_v29 = vld [vmem:[%s15979_s1 + $0x6f8] sm:$0xff]  }
 0x44b   : > { %5394 = vmatprep.mubr.bf16.mxu0 %v16312_v10  ;;  %10739 = vmatpush3.bf16.msra.mxu0 %v11051_v20 }
 0x44c   : > { %10740 = vmatprep.subr.bf16.mxu0 %v11052_v17 }
 0x44f   : > { %10741 = vmatpush3.bf16.msra.mxu0 %v11052_v17 }
 0x450   : > { %10742 = vmatprep.subr.bf16.mxu0 %v11053_v45 }
 0x451   : > { %5540 = vmatmul.mubr.bf16.vlgmr.msra.gmra.mxu1 %v16313_v55 }
 0x452   : > { %5547 = vmatprep.mubr.bf16.mxu1 %v16314_v57  ;;  %5395 = vmatmul.mubr.bf16.gmra.mxu0 %v16314_v57 }
 0x453   : > { %5402 = vmatprep.mubr.bf16.mxu0 %v16315_v26  ;;  %10743 = vmatpush3.bf16.msra.mxu0 %v11053_v45 }
 0x454   : > { %10744 = vmatprep.subr.bf16.mxu0 %v11054_v2 }
 0x457   : > { %10745 = vmatpush3.bf16.msra.mxu0 %v11054_v2 }
 0x458   : > { %10746 = vmatprep.subr.bf16.mxu0 %v11055_v0 }
 0x459   : > { %5548 = vmatmul.mubr.bf16.gmra.mxu1 %v16316_v27 }
 0x45a   : > { %5555 = vmatprep.mubr.bf16.mxu1 %v16317_v9  ;;  %5403 = vmatmul.mubr.bf16.gmra.mxu0 %v16317_v9 }
 0x45b   : > { %5410 = vmatprep.mubr.bf16.mxu0 %v14081_v7  ;;  %10747 = vmatpush3.bf16.msra.mxu0 %v11055_v0 }
 0x45c   : > { %10748 = vmatprep.subr.bf16.mxu0 %v11056_v1 }
 0x45f   : > { %10749 = vmatpush3.bf16.msra.mxu0 %v11056_v1 }
 0x461   : > { %5556 = vmatmul.mubr.bf16.gmra.mxu1 %v16318_v36 }
 0x462   : > { %5563 = vmatprep.mubr.bf16.mxu1 %v13855_v54  ;;  %5411 = vmatmul.mubr.bf16.gmra.mxu0 %v13855_v54 }
 0x463   : > { %5418 = vmatprep.mubr.bf16.mxu0 %v14122_v59 }
 0x469   : > { %5564 = vmatmul.mubr.bf16.gmra.mxu1 %v16319_v21 }
 0x46a   : > { %5571 = vmatprep.mubr.bf16.mxu1 %v13848_v12  ;;  %5419 = vmatmul.mubr.bf16.gmra.mxu0 %v13848_v12  ;;  %v9713_v12 = vpop.f32.mrf.mxu0 }
 0x46b   : > { %5426 = vmatprep.mubr.bf16.mxu0 %v14157_v32 }
 0x46c   : > { %v9714_v54 = vpop.f32.mrf.mxu0 }
 0x471   : > { %5572 = vmatmul.mubr.bf16.gmra.mxu1 %v16320_v4 }
 0x472   : > { %5579 = vmatprep.mubr.bf16.mxu1 %v13910_v31  ;;  %5427 = vmatmul.mubr.bf16.gmra.mxu0 %v13910_v31 }
 0x473   : > { %5434 = vmatprep.mubr.bf16.mxu0 %v14181_v25 }
 0x479   : > { %5580 = vmatmul.mubr.bf16.gmra.mxu1 %v14087_v28 }
 0x47a   : > { %5587 = vmatprep.mubr.bf16.mxu1 %v13894_v39  ;;  %5435 = vmatmul.mubr.bf16.gmra.mxu0 %v13894_v39  ;;  %v14312_v39 = vld [vmem:[%s15980_s2 + $0x2] ss:$0 sm:$0xff] }
 0x47b   : > { %5442 = vmatprep.mubr.bf16.mxu0 %v14191_v47  ;;  %v5059_v41 = vadd.f32 %v14177_v61, %v14312_v39  ;;  %v11057_v61 = vld [vmem:[%s15979_s1 + $0x738] sm:$0xff]  }
 0x47c   : > { %10166 = vmatprep.subr.bf16.mxu1 %v11057_v61 }
 0x47d   : > { %10167 = vmatpush3.bf16.msra.mxu1 %v11058_v29 }
 0x481   : > { %5588 = vmatmul.mubr.bf16.gmra.mxu1 %v14109_v48 }
 0x482   : > { %5595 = vmatprep.mubr.bf16.mxu1 %v13956_v50  ;;  %5443 = vmatmul.mubr.bf16.gmra.mxu0 %v13956_v50 }
 0x483   : > { %5450 = vmatprep.mubr.bf16.mxu0 %v14201_v38 }
 0x489   : > { %5596 = vmatmul.mubr.bf16.gmra.mxu1 %v14125_v49  ;;  %v9715_v49 = vadd.f32 %v9714_v54, %v9713_v12 }
 0x48a   : > { %5603 = vmatprep.mubr.bf16.mxu1 %v13938_v19  ;;  %v9716_v31 = vpop.f32.mrf.mxu0  ;;  %5451 = vmatmul.mubr.bf16.gmra.mxu0 %v13938_v19 }
 0x48b   : > { %v9822_v28 = vpop.f32.mrf.mxu1  ;;  %5458 = vmatprep.mubr.bf16.mxu0 %v14211_v56  ;;  %v5062_v8 = vadd.f32 %v9715_v49, %v14312_v39 }
 0x48c   : > { %v9717_v50 = vpop.f32.mrf.mxu0 }
 0x48d   : > { %v9718_v48 = vadd.f32 %v9717_v50, %v9716_v31  ;;  %v9823_v46 = vpop.f32.mrf.mxu1 }
 0x48e   : > { %v9824_v23 = vadd.f32 %v9823_v46, %v9822_v28  ;;  %v9719_v18 = vpop.f32.mrf.mxu0 }
 0x48f   : > { %v9825_v37 = vpop.f32.mrf.mxu1 }
 0x490   : > { %v14317_v24 = vadd.f32 %v9824_v23, %v5059_v41  ;;  %v9720_v19 = vpop.f32.mrf.mxu0 }
 0x491   : > { %5604 = vmatmul.mubr.bf16.gmra.mxu1 %v14129_v11  ;;  %v9721_v15 = vadd.f32 %v9720_v19, %v9719_v18  ;;  %v9826_v53 = vpop.f32.mrf.mxu1 }
 0x492   : > { %5611 = vmatprep.mubr.bf16.mxu1 %v14010_v22  ;;  %v9827_v60 = vadd.f32 %v9826_v53, %v9825_v37  ;;  %v9722_v16 = vpop.f32.mrf.mxu0  ;;  %5459 = vmatmul.mubr.bf16.gmra.mxu0 %v14010_v22  ;;  %v5067_v22 = vadd.f32 %v9718_v48, %v14312_v39 }
 0x493   : > { %5466 = vmatprep.mubr.bf16.mxu0 %v14221_v34  ;;  %v5070_v4 = vadd.f32 %v9721_v15, %v14312_v39  ;;  %v11060_v15 = vld [vmem:[%s15979_s1 + $0x6f0] sm:$0xff]  }
 0x494   : > { %v14327_v20 = vadd.f32 %v9827_v60, %v5062_v8  ;;  %v9828_v17 = vpop.f32.mrf.mxu1  ;;  %v9723_v11 = vpop.f32.mrf.mxu0 }
 0x495   : > { %v9724_v45 = vadd.f32 %v9723_v11, %v9722_v16 }
 0x496   : > { %v9829_v2 = vpop.f32.mrf.mxu1  ;;  %v9725_v55 = vpop.f32.mrf.mxu0 }
 0x497   : > { %v9830_v57 = vadd.f32 %v9829_v2, %v9828_v17  ;;  %v5075_v49 = vadd.f32 %v9724_v45, %v14312_v39  ;;  %v4580_v17 = vshll.u32 %v14084_v43, 16 }
 0x498   : > { %v9831_v0 = vpop.f32.mrf.mxu1  ;;  %v9726_v1 = vpop.f32.mrf.mxu0 }
 0x499   : > { %5612 = vmatmul.mubr.bf16.gmra.mxu1 %v14145_v35  ;;  %v14334_v27 = vadd.f32 %v9830_v57, %v5067_v22  ;;  %v9727_v9 = vadd.f32 %v9726_v1, %v9725_v55  ;;  %v4582_v55 = vrot.slane %v4580_v17, 1 }
 0x49a   : > { %5619 = vmatprep.mubr.bf16.mxu1 %v13981_v58  ;;  %v9832_v36 = vpop.f32.mrf.mxu1  ;;  %v9728_v21 = vpop.f32.mrf.mxu0  ;;  %5467 = vmatmul.mubr.bf16.gmra.mxu0 %v13981_v58  ;;  %v11059_v58 = vld [vmem:[%s15979_s1 + $0x730] sm:$0xff]  }
 0x49b   : > { %v9833_v12 = vadd.f32 %v9832_v36, %v9831_v0  ;;  %5474 = vmatprep.mubr.bf16.mxu0 %v14231_v44  ;;  %10168 = vmatprep.subr.bf16.mxu1 %v11059_v58  ;;  %v5078_v60 = vadd.f32 %v9727_v9, %v14312_v39  ;;  %v4578_v9 = vshrl.u32 %v14084_v43, 16 }
 0x49c   : > { %v9729_v54 = vpop.f32.mrf.mxu0  ;;  %10169 = vmatpush3.bf16.msra.mxu1 %v11060_v15 }
 0x49d   : > { %v14340_v31 = vadd.f32 %v9833_v12, %v5070_v4  ;;  %v9730_v28 = vadd.f32 %v9729_v54, %v9728_v21  ;;  %v4583_v12 = vor.u32 %v4582_v55, %v4578_v9 }
 0x49e   : > { %v9731_v50 = vpop.f32.mrf.mxu0  ;;  %v9834_v35 = vpop.f32.mrf.mxu1 }
 0x49f   : > { %v5083_v57 = vadd.f32 %v9730_v28, %v14312_v39  ;;  %v11061_v28 = vld [vmem:[%s15979_s1 + $0x728] sm:$0xff]  }
 0x4a0   : > { %v9732_v48 = vpop.f32.mrf.mxu0  ;;  %v9835_v46 = vpop.f32.mrf.mxu1  ;;  %10170 = vmatprep.subr.bf16.mxu1 %v11061_v28 }
 0x4a1   : > { %5620 = vmatmul.mubr.bf16.gmra.mxu1 %v14148_v51  ;;  %v9733_v41 = vadd.f32 %v9732_v48, %v9731_v50  ;;  %v9836_v23 = vadd.f32 %v9835_v46, %v9834_v35 }
 0x4a2   : > { %5627 = vmatprep.mubr.bf16.mxu1 %v14048_v6  ;;  %v9734_v18 = vpop.f32.mrf.mxu0  ;;  %5475 = vmatmul.mubr.bf16.gmra.mxu0 %v14048_v6  ;;  %v9837_v37 = vpop.f32.mrf.mxu1 }
 0x4a3   : > { %5482 = vmatprep.mubr.bf16.mxu0 %v14241_v63  ;;  %v14350_v19 = vadd.f32 %v9836_v23, %v5075_v49  ;;  %v5086_v50 = vadd.f32 %v9733_v41, %v14312_v39  ;;  %v14378_v41 = vsel %vm679_vm1, %v4583_v12, %v16295_v3 }
 0x4a4   : > { %v9735_v51 = vpop.f32.mrf.mxu0  ;;  %v9838_v53 = vpop.f32.mrf.mxu1 }
 0x4a5   : > { %v9736_v8 = vadd.f32 %v9735_v51, %v9734_v18  ;;  %v9839_v16 = vadd.f32 %v9838_v53, %v9837_v37  ;;  %v11062_v51 = vld [vmem:[%s15979_s1 + $0x6e8] sm:$0xff]  }
 0x4a6   : > { %v9737_v61 = vpop.f32.mrf.mxu0  ;;  %10171 = vmatpush3.bf16.msra.mxu1 %v11062_v51 }
 0x4a7   : > { %v14357_v6 = vadd.f32 %v9839_v16, %v5078_v60 }
 0x4a8   : > { %v9738_v11 = vpop.f32.mrf.mxu0 }
 0x4a9   : > { %v9840_v29 = vpop.f32.mrf.mxu1  ;;  %5628 = vmatmul.mubr.bf16.gmra.mxu1 %v14160_v13  ;;  %v9739_v45 = vadd.f32 %v9738_v11, %v9737_v61 }
 0x4aa   : > { %5635 = vmatprep.mubr.bf16.mxu1 %v16306_v33  ;;  %v9740_v2 = vpop.f32.mrf.mxu0  ;;  %5483 = vmatmul.mubr.bf16.gmra.mxu0 %v16306_v33 }
 0x4ab   : > { %v9841_v22 = vpop.f32.mrf.mxu1  ;;  %5490 = vmatprep.mubr.bf16.mxu0 %v14257_v14  ;;  %v5094_v61 = vadd.f32 %v9739_v45, %v14312_v39 }
 0x4ac   : > { %v9842_v0 = vadd.f32 %v9841_v22, %v9840_v29  ;;  %v9741_v1 = vpop.f32.mrf.mxu0 }
 0x4ad   : > { %v9843_v36 = vpop.f32.mrf.mxu1  ;;  %v9742_v21 = vadd.f32 %v9741_v1, %v9740_v2 }
 0x4ae   : > { %v14365_v4 = vadd.f32 %v9842_v0, %v5083_v57  ;;  %v9743_v13 = vpop.f32.mrf.mxu0 }
 0x4af   : > { %v9844_v54 = vpop.f32.mrf.mxu1  ;;  %v5099_v57 = vadd.f32 %v9742_v21, %v14312_v39 }
 0x4b0   : > { %v9845_v33 = vadd.f32 %v9844_v54, %v9843_v36  ;;  %v9744_v35 = vpop.f32.mrf.mxu0 }
 0x4b1   : > { %v9846_v48 = vpop.f32.mrf.mxu1  ;;  %5636 = vmatmul.mubr.bf16.gmra.mxu1 %v14164_v62  ;;  %v9745_v46 = vadd.f32 %v9744_v35, %v9743_v13  ;;  %v5091_v62 = vadd.f32 %v9736_v8, %v14312_v39 }
 0x4b2   : > { %v14372_v58 = vadd.f32 %v9845_v33, %v5086_v50  ;;  %5643 = vmatprep.mubr.bf16.mxu1 %v14089_v40  ;;  %v9746_v49 = vpop.f32.mrf.mxu0  ;;  %5491 = vmatmul.mubr.bf16.gmra.mxu0 %v14089_v40 }
 0x4b3   : > { %v9847_v23 = vpop.f32.mrf.mxu1  ;;  %5498 = vmatprep.mubr.bf16.mxu0 %v14378_v41  ;;  %v5102_v12 = vadd.f32 %v9745_v46, %v14312_v39 }
 0x4b4   : > { %v9848_v18 = vadd.f32 %v9847_v23, %v9846_v48  ;;  %v9747_v37 = vpop.f32.mrf.mxu0  ;;  %v16321_v48 = vmov 0.0|0.0   ;;  %v11064_v23 = vld [vmem:[%s15979_s1 + $0x6e0] sm:$0xff]  }
 0x4b5   : > { %v9849_v15 = vpop.f32.mrf.mxu1  ;;  %v9748_v53 = vadd.f32 %v9747_v37, %v9746_v49 }
 0x4b6   : > { %v14385_v60 = vadd.f32 %v9848_v18, %v5091_v62  ;;  %v9749_v40 = vpop.f32.mrf.mxu0 }
 0x4b7   : > { %v9850_v16 = vpop.f32.mrf.mxu1  ;;  %v5107_v46 = vadd.f32 %v9748_v53, %v14312_v39 }
 0x4b8   : > { %v9851_v17 = vadd.f32 %v9850_v16, %v9849_v15  ;;  %v9750_v11 = vpop.f32.mrf.mxu0 }
 0x4b9   : > { %v9852_v29 = vpop.f32.mrf.mxu1  ;;  %5644 = vmatmul.mubr.bf16.gmra.mxu1 %v14172_v42  ;;  %v9751_v8 = vadd.f32 %v9750_v11, %v9749_v40 }
 0x4ba   : > { %v14389_v2 = vadd.f32 %v9851_v17, %v5094_v61  ;;  %5651 = vmatprep.mubr.bf16.mxu1 %v14084_v43  ;;  %v9752_v55 = vpop.f32.mrf.mxu0  ;;  %5499 = vmatmul.mubr.bf16.gmra.mxu0 %v14084_v43  ;;  %v16322_v61 = vld [vmem:[#allocation2_spill] sm:$0xff] }
 0x4bb   : > { %v9853_v22 = vpop.f32.mrf.mxu1  ;;  %10750 = vmatprep.mubr.bf16.mxu0 %v16309_v52  ;;  %v11063_v52 = vld [vmem:[%s15979_s1 + $0x720] sm:$0xff]  }
 0x4bc   : > { %v9854_v0 = vadd.f32 %v9853_v22, %v9852_v29  ;;  %v9753_v45 = vpop.f32.mrf.mxu0  ;;  %10172 = vmatprep.subr.bf16.mxu1 %v11063_v52 }
 0x4bd   : > { %v9855_v1 = vpop.f32.mrf.mxu1  ;;  %v9754_v9 = vadd.f32 %v9753_v45, %v9752_v55  ;;  %10173 = vmatpush3.bf16.msra.mxu1 %v11064_v23 }
 0x4be   : > { %v14395_v36 = vadd.f32 %v9854_v0, %v5099_v57  ;;  %v9755_v42 = vpop.f32.mrf.mxu0 }
 0x4bf   : > { %v9856_v13 = vpop.f32.mrf.mxu1  ;;  %v5115_v55 = vadd.f32 %v9754_v9, %v14312_v39 }
 0x4c0   : > { %v9857_v54 = vadd.f32 %v9856_v13, %v9855_v1  ;;  %v9756_v50 = vpop.f32.mrf.mxu0 }
 0x4c1   : > { %v9858_v33 = vpop.f32.mrf.mxu1  ;;  %5652 = vmatmul.mubr.bf16.gmra.mxu1 %v14175_v5  ;;  %v9757_v43 = vadd.f32 %v9756_v50, %v9755_v42 }
 0x4c2   : > { %v14402_v21 = vadd.f32 %v9857_v54, %v5102_v12  ;;  %v9758_v35 = vpop.f32.mrf.mxu0  ;;  %5659 = vmatprep.mubr.bf16.mxu1 %v16321_v48  ;;  %10751 = vmatmul.mubr.bf16.vlgmr.msra.gmra.mxu0 %v16312_v10  ;;  %v5110_v10 = vadd.f32 %v9751_v8, %v14312_v39 }
 0x4c3   : > { %v9859_v28 = vpop.f32.mrf.mxu1  ;;  %10754 = vmatprep.mubr.bf16.mxu0 %v16315_v26  ;;  %v5118_v13 = vadd.f32 %v9757_v43, %v14312_v39 }
 0x4c4   : > { %v9860_v49 = vadd.f32 %v9859_v28, %v9858_v33  ;;  %v9759_v5 = vpop.f32.mrf.mxu0 }
 0x4c5   : > { %v9861_v62 = vpop.f32.mrf.mxu1  ;;  %v9760_v18 = vadd.f32 %v9759_v5, %v9758_v35 }
 0x4c6   : > { %v14411_v37 = vadd.f32 %v9860_v49, %v5107_v46  ;;  %v9761_v51 = vpop.f32.mrf.mxu0  ;;  %v11066_v46 = vld [vmem:[%s15979_s1 + $0x6d8] sm:$0xff]  }
 0x4c7   : > { %v9862_v15 = vpop.f32.mrf.mxu1  ;;  %v5123_v35 = vadd.f32 %v9760_v18, %v14312_v39 }
 0x4c8   : > { %v9863_v40 = vadd.f32 %v9862_v15, %v9861_v62  ;;  %v9762_v26 = vpop.f32.mrf.mxu0 }
 0x4c9   : > { %v9864_v16 = vpop.f32.mrf.mxu1  ;;  %5660 = vmatmul.mubr.bf16.gmra.mxu1 %v16322_v61  ;;  %v9763_v53 = vadd.f32 %v9762_v26, %v9761_v51 }
 0x4ca   : > { %v14415_v17 = vadd.f32 %v9863_v40, %v5110_v10  ;;  %v9764_v11 = vpop.f32.mrf.mxu0  ;;  %10755 = vmatmul.mubr.bf16.gmra.mxu0 %v14081_v7  ;;  %6926 = vmatprep.mubr.bf16.mxu1 %v16321_v48 }
 0x4cb   : > { %v9865_v29 = vpop.f32.mrf.mxu1  ;;  %10758 = vmatprep.mubr.bf16.mxu0 %v14122_v59  ;;  %v11065_v59 = vld [vmem:[%s15979_s1 + $0x718] sm:$0xff]  }
 0x4cc   : > { %v9866_v22 = vadd.f32 %v9865_v29, %v9864_v16  ;;  %v9765_v8 = vpop.f32.mrf.mxu0  ;;  %10174 = vmatprep.subr.bf16.mxu1 %v11065_v59 }
 0x4cd   : > { %v9867_v57 = vpop.f32.mrf.mxu1  ;;  %v9766_v0 = vadd.f32 %v9765_v8, %v9764_v11  ;;  %10175 = vmatpush3.bf16.msra.mxu1 %v11066_v46 }
 0x4ce   : > { %v14421_v45 = vadd.f32 %v9866_v22, %v5115_v55  ;;  %v9767_v1 = vpop.f32.mrf.mxu0 }
 0x4cf   : > { %v9868_v42 = vpop.f32.mrf.mxu1  ;;  %v5131_v11 = vadd.f32 %v9766_v0, %v14312_v39 }
 0x4d0   : > { %v9869_v12 = vadd.f32 %v9868_v42, %v9867_v57  ;;  %v9768_v54 = vpop.f32.mrf.mxu0 }
 0x4d1   : > { %v9870_v7 = vpop.f32.mrf.mxu1  ;;  %v9769_v50 = vadd.f32 %v9768_v54, %v9767_v1 }
 0x4d2   : > { %v14427_v33 = vadd.f32 %v9869_v12, %v5118_v13  ;;  %v9770_v9 = vpop.f32.mrf.mxu0  ;;  %10759 = vmatmul.mubr.bf16.gmra.mxu0 %v14157_v32  ;;  %v5126_v32 = vadd.f32 %v9763_v53, %v14312_v39 }
 0x4d3   : > { %v9871_v52 = vpop.f32.mrf.mxu1  ;;  %10762 = vmatprep.mubr.bf16.mxu0 %v14181_v25  ;;  %v5134_v42 = vadd.f32 %v9769_v50, %v14312_v39 }
 0x4d4   : > { %v9872_v43 = vadd.f32 %v9871_v52, %v9870_v7  ;;  %v9771_v28 = vpop.f32.mrf.mxu0 }
 0x4d5   : > { %v9873_v49 = vpop.f32.mrf.mxu1  ;;  %v9772_v5 = vadd.f32 %v9771_v28, %v9770_v9 }
 0x4d6   : > { %v14435_v23 = vadd.f32 %v9872_v43, %v5123_v35  ;;  %v9773_v62 = vpop.f32.mrf.mxu0  ;;  %v11068_v35 = vld [vmem:[%s15979_s1 + $0x6d0] sm:$0xff]  }
 0x4d7   : > { %v9874_v51 = vpop.f32.mrf.mxu1  ;;  %v5139_v9 = vadd.f32 %v9772_v5, %v14312_v39 }
 0x4d8   : > { %v9875_v15 = vadd.f32 %v9874_v51, %v9873_v49  ;;  %v9774_v25 = vpop.f32.mrf.mxu0 }
 0x4d9   : > { %v9876_v10 = vpop.f32.mrf.mxu1  ;;  %v9775_v40 = vadd.f32 %v9774_v25, %v9773_v62 }
 0x4da   : > { %v14438_v18 = vadd.f32 %v9875_v15, %v5126_v32  ;;  %v9776_v26 = vpop.f32.mrf.mxu0  ;;  %10763 = vmatmul.mubr.bf16.gmra.mxu0 %v14191_v47  ;;  %v11067_v47 = vld [vmem:[%s15979_s1 + $0x710] sm:$0xff]  }
 0x4db   : > { %v9877_v16 = vpop.f32.mrf.mxu1  ;;  %10766 = vmatprep.mubr.bf16.mxu0 %v14201_v38  ;;  %10176 = vmatprep.subr.bf16.mxu1 %v11067_v47 }
 0x4dc   : > { %v9878_v29 = vadd.f32 %v9877_v16, %v9876_v10  ;;  %v9777_v55 = vpop.f32.mrf.mxu0  ;;  %10177 = vmatpush3.bf16.msra.mxu1 %v11068_v35 }
 0x4dd   : > { %v9879_v22 = vpop.f32.mrf.mxu1  ;;  %v9778_v8 = vadd.f32 %v9777_v55, %v9776_v26 }
 0x4de   : > { %v14443_v57 = vadd.f32 %v9878_v29, %v5131_v11  ;;  %v9779_v53 = vpop.f32.mrf.mxu0 }
 0x4df   : > { %v9880_v1 = vpop.f32.mrf.mxu1  ;;  %v5147_v10 = vadd.f32 %v9778_v8, %v14312_v39 }
 0x4e0   : > { %v9881_v13 = vadd.f32 %v9880_v1, %v9879_v22  ;;  %v9780_v12 = vpop.f32.mrf.mxu0 }
 0x4e1   : > { %v9882_v54 = vpop.f32.mrf.mxu1  ;;  %v9781_v7 = vadd.f32 %v9780_v12, %v9779_v53 }
 0x4e2   : > { %v14449_v38 = vadd.f32 %v9881_v13, %v5134_v42  ;;  %v9782_v0 = vpop.f32.mrf.mxu0  ;;  %10767 = vmatmul.mubr.bf16.gmra.mxu0 %v14211_v56  ;;  %v5142_v56 = vadd.f32 %v9775_v40, %v14312_v39 }
 0x4e3   : > { %v9883_v59 = vpop.f32.mrf.mxu1  ;;  %10770 = vmatprep.mubr.bf16.mxu0 %v14221_v34  ;;  %v5150_v53 = vadd.f32 %v9781_v7, %v14312_v39 }
 0x4e4   : > { %v9884_v50 = vadd.f32 %v9883_v59, %v9882_v54  ;;  %v9783_v52 = vpop.f32.mrf.mxu0  ;;  %v11070_v59 = vld [vmem:[%s15979_s1 + $0x6c8] sm:$0xff]  }
 0x4e5   : > { %v9885_v43 = vpop.f32.mrf.mxu1  ;;  %v9784_v28 = vadd.f32 %v9783_v52, %v9782_v0 }
 0x4e6   : > { %v14457_v46 = vadd.f32 %v9884_v50, %v5139_v9  ;;  %v9785_v49 = vpop.f32.mrf.mxu0 }
 0x4e7   : > { %v9886_v62 = vpop.f32.mrf.mxu1  ;;  %v5155_v54 = vadd.f32 %v9784_v28, %v14312_v39 }
 0x4e8   : > { %v9887_v51 = vadd.f32 %v9886_v62, %v9885_v43  ;;  %v9786_v34 = vpop.f32.mrf.mxu0 }
 0x4e9   : > { %v9888_v32 = vpop.f32.mrf.mxu1  ;;  %v9787_v47 = vadd.f32 %v9786_v34, %v9785_v49 }
 0x4ea   : > { %v14460_v15 = vadd.f32 %v9887_v51, %v5142_v56  ;;  %v9788_v5 = vpop.f32.mrf.mxu0  ;;  %10771 = vmatmul.mubr.bf16.gmra.mxu0 %v14231_v44  ;;  %v11069_v44 = vld [vmem:[%s15979_s1 + $0x708] sm:$0xff]  }
 0x4eb   : > { %v9889_v25 = vpop.f32.mrf.mxu1  ;;  %10774 = vmatprep.mubr.bf16.mxu0 %v14241_v63  ;;  %10178 = vmatprep.subr.bf16.mxu1 %v11069_v44  ;;  %v5158_v43 = vadd.f32 %v9787_v47, %v14312_v39  ;;  %v11074_v44 = vld [vmem:[%s15979_s1 + $0x770] sm:$0xff]  }
 0x4ec   : > { %v9890_v26 = vadd.f32 %v9889_v25, %v9888_v32  ;;  %v9789_v16 = vpop.f32.mrf.mxu0  ;;  %10179 = vmatpush3.bf16.msra.mxu1 %v11070_v59 }
 0x4ed   : > { %v9891_v11 = vpop.f32.mrf.mxu1  ;;  %v9790_v29 = vadd.f32 %v9789_v16, %v9788_v5 }
 0x4ee   : > { %v14465_v55 = vadd.f32 %v9890_v26, %v5147_v10  ;;  %v9791_v40 = vpop.f32.mrf.mxu0  ;;  %v11071_v10 = vld [vmem:[%s15979_s1 + $0x7b8] sm:$0xff]  }
 0x4ef   : > { %v9892_v22 = vpop.f32.mrf.mxu1  ;;  %v5163_v34 = vadd.f32 %v9790_v29, %v14312_v39  ;;  %v11072_v26 = vld [vmem:[%s15979_s1 + $0x778] sm:$0xff]   ;;  %10278 = vmatprep.subr.bf16.mxu0 %v11071_v10  ;;  %v11079_v10 = vld [vmem:[%s15979_s1 + $0x7a0] sm:$0xff]  }
 0x4f0   : > { %v9893_v1 = vadd.f32 %v9892_v22, %v9891_v11  ;;  %v9792_v42 = vpop.f32.mrf.mxu0  ;;  %10279 = vmatpush3.bf16.msra.mxu0 %v11072_v26 }
 0x4f1   : > { %v9894_v13 = vpop.f32.mrf.mxu1  ;;  %v9793_v32 = vadd.f32 %v9792_v42, %v9791_v40 }
 0x4f2   : > { %v14471_v63 = vadd.f32 %v9893_v1, %v5150_v53  ;;  %v9794_v8 = vpop.f32.mrf.mxu0  ;;  %10775 = vmatmul.mubr.bf16.gmra.mxu0 %v14257_v14 }
 0x4f3   : > { %v9895_v12 = vpop.f32.mrf.mxu1  ;;  %10778 = vmatprep.mubr.bf16.mxu0 %v14378_v41  ;;  %v5166_v29 = vadd.f32 %v9793_v32, %v14312_v39 }
 0x4f4   : > { %v9896_v7 = vadd.f32 %v9895_v12, %v9894_v13  ;;  %v9795_v0 = vpop.f32.mrf.mxu0  ;;  %v11073_v13 = vld [vmem:[%s15979_s1 + $0x7b0] sm:$0xff]   ;;  %v11075_v12 = vld [vmem:[%s15979_s1 + $0x700] sm:$0xff]  }
 0x4f5   : > { %v9897_v9 = vpop.f32.mrf.mxu1  ;;  %v9796_v50 = vadd.f32 %v9795_v0, %v9794_v8  ;;  %10280 = vmatprep.subr.bf16.mxu0 %v11073_v13  ;;  %10180 = vmatprep.subr.bf16.mxu1 %v11075_v12 }
 0x4f6   : > { %v14479_v52 = vadd.f32 %v9896_v7, %v5155_v54  ;;  %v9797_v35 = vpop.f32.mrf.mxu0  ;;  %10281 = vmatpush3.bf16.msra.mxu0 %v11074_v44 }
 0x4f7   : > { %v9898_v14 = vpop.f32.mrf.mxu1  ;;  %v5171_v0 = vadd.f32 %v9796_v50, %v14312_v39 }
 0x4f8   : > { %v9899_v41 = vadd.f32 %v9898_v14, %v9897_v9  ;;  %v9798_v62 = vpop.f32.mrf.mxu0 }
 0x4f9   : > { %v9900_v56 = vpop.f32.mrf.mxu1  ;;  %v9799_v59 = vadd.f32 %v9798_v62, %v9797_v35 }
 0x4fa   : > { %v14482_v28 = vadd.f32 %v9899_v41, %v5158_v43  ;;  %v9800_v49 = vpop.f32.mrf.mxu0  ;;  %10779 = vmatmul.mubr.bf16.gmra.mxu0 %v16295_v3  ;;  %v11076_v43 = vld [vmem:[%s15979_s1 + $0x6c0] sm:$0xff]   ;;  %v11077_v41 = vld [vmem:[%s15979_s1 + $0x7a8] sm:$0xff]  }
 0x4fb   : > { %v9901_v51 = vpop.f32.mrf.mxu1  ;;  %10181 = vmatpush3.bf16.msra.mxu1 %v11076_v43  ;;  %10282 = vmatprep.subr.bf16.mxu0 %v11077_v41  ;;  %v5174_v32 = vadd.f32 %v9799_v59, %v14312_v39  ;;  %v11081_v59 = vld [vmem:[%s15979_s1 + $0x798] sm:$0xff]  }
 0x4fc   : > { %v9902_v5 = vadd.f32 %v9901_v51, %v9900_v56  ;;  %v9801_v25 = vpop.f32.mrf.mxu0  ;;  %v11078_v56 = vld [vmem:[%s15979_s1 + $0x768] sm:$0xff]  }
 0x4fd   : > { %v9903_v16 = vpop.f32.mrf.mxu1  ;;  %v9802_v11 = vadd.f32 %v9801_v25, %v9800_v49  ;;  %10283 = vmatpush3.bf16.msra.mxu0 %v11078_v56  ;;  %v11083_v56 = vld [vmem:[%s15979_s1 + $0x790] sm:$0xff]  }
 0x4fe   : > { %v14492_v22 = vadd.f32 %v9902_v5, %v5163_v34  ;;  %v9803_v53 = vpop.f32.mrf.mxu0  ;;  %6927 = vmatmul.mubr.bf16.vlgmr.msra.gmra.mxu1 %v16322_v61  ;;  %10284 = vmatprep.subr.bf16.mxu0 %v11079_v10  ;;  %v11087_v10 = vld [vmem:[%s15979_s1 + $0x7f8] sm:$0xff]  }
 0x4ff   : > { %v9904_v1 = vpop.f32.mrf.mxu1  ;;  %v5179_v44 = vadd.f32 %v9802_v11, %v14312_v39 }
 0x500   : > { %v9905_v40 = vadd.f32 %v9904_v1, %v9903_v16  ;;  %v9804_v42 = vpop.f32.mrf.mxu0  ;;  %v11080_v1 = vld [vmem:[%s15979_s1 + $0x760] sm:$0xff]  }
 0x501   : > { %v9906_v8 = vpop.f32.mrf.mxu1  ;;  %10285 = vmatpush3.bf16.msra.mxu0 %v11080_v1 }
 0x502   : > { %v14504_v54 = vadd.f32 %v9905_v40, %v5166_v29  ;;  %v9934_v47 = vpop.f32.mrf.mxu0  ;;  %10286 = vmatprep.subr.bf16.mxu0 %v11081_v59 }
 0x503   : > { %v9907_v7 = vpop.f32.mrf.mxu1 }
 0x504   : > { %v9908_v9 = vadd.f32 %v9907_v7, %v9906_v8  ;;  %v9935_v14 = vpop.f32.mrf.mxu0  ;;  %v9805_v8 = vadd.f32 %v9804_v42, %v9803_v53 }
 0x505   : > { %v9909_v49 = vpop.f32.mrf.mxu1  ;;  %v9936_v51 = vadd.f32 %v9935_v14, %v9934_v47 }
 0x506   : > { %v14516_v34 = vadd.f32 %v9908_v9, %v5171_v0  ;;  %v9937_v50 = vpop.f32.mrf.mxu0  ;;  %v5182_v11 = vadd.f32 %v9805_v8, %v14312_v39 }
 0x507   : > { %v9910_v35 = vpop.f32.mrf.mxu1  ;;  %v14519_v62 = vadd.f32 %v9936_v51, %v14317_v24 }
 0x508   : > { %v9911_v5 = vadd.f32 %v9910_v35, %v9909_v49  ;;  %v9938_v25 = vpop.f32.mrf.mxu0 }
 0x509   : > { %v9912_v26 = vpop.f32.mrf.mxu1  ;;  %v9939_v16 = vadd.f32 %v9938_v25, %v9937_v50  ;;  %v11084_v50 = vld [vmem:[%s15979_s1 + $0x750] sm:$0xff]   ;;  %v11086_v25 = vld [vmem:[%s15979_s1 + $0x788] sm:$0xff]  }
 0x50a   : > { %v14529_v29 = vadd.f32 %v9911_v5, %v5174_v32  ;;  %v9940_v24 = vpop.f32.mrf.mxu0  ;;  %v11085_v5 = vld [vmem:[%s15979_s1 + $0x838] sm:$0xff]  }
 0x50b   : > { %v9913_v40 = vpop.f32.mrf.mxu1  ;;  %v14532_v13 = vadd.f32 %v9939_v16, %v14327_v20  ;;  %v11082_v20 = vld [vmem:[%s15979_s1 + $0x758] sm:$0xff]   ;;  %10390 = vmatprep.subr.bf16.mxu1 %v11085_v5 }
 0x50c   : > { %v9914_v12 = vadd.f32 %v9913_v40, %v9912_v26  ;;  %v9941_v47 = vpop.f32.mrf.mxu0  ;;  %10287 = vmatpush3.bf16.msra.mxu0 %v11082_v20  ;;  %10391 = vmatpush3.bf16.msra.mxu1 %v11087_v10  ;;  %v11091_v10 = vld [vmem:[%s15979_s1 + $0x830] sm:$0xff]  }
 0x50d   : > { %v9915_v7 = vpop.f32.mrf.mxu1  ;;  %v9942_v0 = vadd.f32 %v9941_v47, %v9940_v24  ;;  %10288 = vmatprep.subr.bf16.mxu0 %v11083_v56  ;;  %v11088_v24 = vld [vmem:[%s15979_s1 + $0x748] sm:$0xff]   ;;  %10392 = vmatprep.subr.bf16.mxu1 %v11091_v10 }
 0x50e   : > { %v14538_v9 = vadd.f32 %v9914_v12, %v5179_v44  ;;  %v9943_v14 = vpop.f32.mrf.mxu0  ;;  %v11089_v12 = vld [vmem:[%s15979_s1 + $0x780] sm:$0xff]  }
 0x50f   : > { %v9916_v43 = vpop.f32.mrf.mxu1  ;;  %v14544_v41 = vadd.f32 %v9942_v0, %v14334_v27  ;;  %v11090_v0 = vld [vmem:[%s15979_s1 + $0x740] sm:$0xff]  }
 0x510   : > { %v9917_v53 = vadd.f32 %v9916_v43, %v9915_v7  ;;  %v9944_v42 = vpop.f32.mrf.mxu0  ;;  %10289 = vmatpush3.bf16.msra.mxu0 %v11084_v50 }
 0x511   : > { %v14550_v49 = vpop.f32.mrf.mxu1  ;;  %v9945_v51 = vadd.f32 %v9944_v42, %v9943_v14  ;;  %10290 = vmatprep.subr.bf16.mxu0 %v11086_v25 }
 0x512   : > { %v14555_v35 = vadd.f32 %v9917_v53, %v5182_v11  ;;  %v9946_v27 = vpop.f32.mrf.mxu0 }
 0x513   : > { %v14557_v32 = vpop.f32.mrf.mxu1  ;;  %v14560_v39 = vadd.f32 %v9945_v51, %v14340_v31 }
 0x514   : > { %16323 = vst [vmem:[#allocation6_spill] sm:$0xff] %v14555_v35  ;;  %v9947_v26 = vpop.f32.mrf.mxu0  ;;  %10291 = vmatpush3.bf16.msra.mxu0 %v11088_v24 }
 0x515   : > { %v14571_v16 = vpop.f32.mrf.mxu1  ;;  %v9948_v1 = vadd.f32 %v9947_v26, %v9946_v27  ;;  %10292 = vmatprep.subr.bf16.mxu0 %v11089_v12  ;;  %v11092_v26 = vld [vmem:[%s15979_s1 + $0x7f0] sm:$0xff]  }
 0x516   : > { %v9949_v31 = vpop.f32.mrf.mxu0  ;;  %10393 = vmatpush3.bf16.msra.mxu1 %v11092_v26 }
 0x517   : > { %v14576_v40 = vpop.f32.mrf.mxu1  ;;  %v14579_v44 = vadd.f32 %v9948_v1, %v14350_v19 }
 0x518   : > { %v9950_v8 = vpop.f32.mrf.mxu0  ;;  %10293 = vmatpush3.bf16.msra.mxu0 %v11090_v0 }
 0x519   : > { %v14584_v47 = vpop.f32.mrf.mxu1  ;;  %v9951_v7 = vadd.f32 %v9950_v8, %v9949_v31 }
 0x51a   : > { %v9952_v59 = vpop.f32.mrf.mxu0 }
 0x51b   : > { %v14589_v14 = vpop.f32.mrf.mxu1  ;;  %v14592_v19 = vadd.f32 %v9951_v7, %v14357_v6 }
 0x51c   : > { %v9953_v20 = vpop.f32.mrf.mxu0 }
 0x51d   : > { %v14594_v43 = vpop.f32.mrf.mxu1  ;;  %v9954_v11 = vadd.f32 %v9953_v20, %v9952_v59 }
 0x51e   : > { %v9955_v53 = vpop.f32.mrf.mxu0 }
 0x51f   : > { %v14596_v42 = vpop.f32.mrf.mxu1  ;;  %v14599_v56 = vadd.f32 %v9954_v11, %v14365_v4 }
 0x520   : > { %v9956_v51 = vpop.f32.mrf.mxu0 }
 0x521   : > { %v14601_v50 = vpop.f32.mrf.mxu1  ;;  %v9957_v27 = vadd.f32 %v9956_v51, %v9955_v53 }
 0x522   : > { %v9958_v5 = vpop.f32.mrf.mxu0 }
 0x523   : > { %v14603_v25 = vpop.f32.mrf.mxu1  ;;  %v14606_v6 = vadd.f32 %v9957_v27, %v14372_v58 }
 0x524   : > { %v9959_v4 = vpop.f32.mrf.mxu0 }
 0x525   : > { %v14614_v1 = vpop.f32.mrf.mxu1  ;;  %v9960_v31 = vadd.f32 %v9959_v4, %v9958_v5 }
 0x526   : > { %v9961_v24 = vpop.f32.mrf.mxu0 }
 0x527   : > { %v14616_v8 = vpop.f32.mrf.mxu1  ;;  %v14619_v58 = vadd.f32 %v9960_v31, %v14385_v60 }
 0x528   : > { %v9962_v12 = vpop.f32.mrf.mxu0 }
 0x529   : > { %v14621_v7 = vpop.f32.mrf.mxu1  ;;  %v9963_v0 = vadd.f32 %v9962_v12, %v9961_v24 }
 0x52a   : > { %v9964_v59 = vpop.f32.mrf.mxu0 }
 0x52b   : > { %v14623_v20 = vpop.f32.mrf.mxu1  ;;  %v14626_v11 = vadd.f32 %v9963_v0, %v14389_v2  ;;  %v11093_v0 = vld [vmem:[%s15979_s1 + $0x828] sm:$0xff]  }
 0x52c   : > { %v9965_v53 = vpop.f32.mrf.mxu0  ;;  %10394 = vmatprep.subr.bf16.mxu1 %v11093_v0 }
 0x52d   : > { %v14628_v51 = vpop.f32.mrf.mxu1  ;;  %v9966_v27 = vadd.f32 %v9965_v53, %v9964_v59 }
 0x52e   : > { %v9967_v5 = vpop.f32.mrf.mxu0 }
 0x52f   : > { %v14630_v10 = vpop.f32.mrf.mxu1  ;;  %v14633_v60 = vadd.f32 %v9966_v27, %v14395_v36  ;;  %v11094_v36 = vld [vmem:[%s15979_s1 + $0x7e8] sm:$0xff]  }
 0x530   : > { %v9968_v26 = vpop.f32.mrf.mxu0  ;;  %10395 = vmatpush3.bf16.msra.mxu1 %v11094_v36 }
 0x531   : > { %16324 = vst [vmem:[#allocation12_spill] sm:$0xff] %v14633_v60  ;;  %v14635_v4 = vpop.f32.mrf.mxu1  ;;  %v9969_v31 = vadd.f32 %v9968_v26, %v9967_v5 }
 0x532   : > { %v9970_v24 = vpop.f32.mrf.mxu0 }
 0x533   : > { %v14637_v12 = vpop.f32.mrf.mxu1  ;;  %v14640_v2 = vadd.f32 %v9969_v31, %v14402_v21 }
 0x534   : > { %v9971_v59 = vpop.f32.mrf.mxu0 }
 0x535   : > { %16325 = vst [vmem:[#allocation8_spill] sm:$0xff] %v14640_v2  ;;  %v14645_v53 = vpop.f32.mrf.mxu1  ;;  %v9972_v61 = vadd.f32 %v9971_v59, %v9970_v24 }
 0x536   : > { %v9973_v27 = vpop.f32.mrf.mxu0 }
 0x537   : > { %v14650_v5 = vpop.f32.mrf.mxu1  ;;  %v14653_v26 = vadd.f32 %v9972_v61, %v14411_v37 }
 0x538   : > { %v9974_v21 = vpop.f32.mrf.mxu0 }
 0x539   : > { %16326 = vst [vmem:[#allocation7_spill] sm:$0xff] %v14653_v26  ;;  %v14655_v31 = vpop.f32.mrf.mxu1  ;;  %v9975_v48 = vadd.f32 %v9974_v21, %v9973_v27 }
 0x53a   : > { %v9976_v3 = vpop.f32.mrf.mxu0 }
 0x53b   : > { %v14657_v2 = vpop.f32.mrf.mxu1  ;;  %v14660_v24 = vadd.f32 %v9975_v48, %v14415_v17 }
 0x53c   : > { %v9977_v0 = vpop.f32.mrf.mxu0 }
 0x53d   : > { %16327 = vst [vmem:[#allocation20_spill] sm:$0xff] %v14660_v24  ;;  %v14662_v59 = vpop.f32.mrf.mxu1  ;;  %v9978_v60 = vadd.f32 %v9977_v0, %v9976_v3  ;;  %v11095_v3 = vld [vmem:[%s15979_s1 + $0x820] sm:$0xff]  }
 0x53e   : > { %v9979_v30 = vpop.f32.mrf.mxu0  ;;  %10396 = vmatprep.subr.bf16.mxu1 %v11095_v3 }
 0x53f   : > { %v14664_v35 = vpop.f32.mrf.mxu1  ;;  %v14667_v37 = vadd.f32 %v9978_v60, %v14421_v45  ;;  %v11096_v45 = vld [vmem:[%s15979_s1 + $0x7e0] sm:$0xff]  }
 0x540   : > { %v9980_v61 = vpop.f32.mrf.mxu0  ;;  %10397 = vmatpush3.bf16.msra.mxu1 %v11096_v45 }
 0x541   : > { %16328 = vst [vmem:[#allocation26_spill] sm:$0xff] %v14667_v37  ;;  %v14669_v36 = vpop.f32.mrf.mxu1  ;;  %v9981_v27 = vadd.f32 %v9980_v61, %v9979_v30 }
 0x542   : > { %16329 = vst [vmem:[#allocation18_spill] sm:$0xff] %v14669_v36  ;;  %v9982_v21 = vpop.f32.mrf.mxu0 }
 0x543   : > { %v14671_v26 = vpop.f32.mrf.mxu1  ;;  %v14674_v48 = vadd.f32 %v9981_v27, %v14427_v33 }
 0x544   : > { %16330 = vst [vmem:[#allocation33_spill] sm:$0xff] %v14671_v26  ;;  %v9983_v17 = vpop.f32.mrf.mxu0 }
 0x545   : > { %16331 = vst [vmem:[#allocation25_spill] sm:$0xff] %v14674_v48  ;;  %v14679_v0 = vpop.f32.mrf.mxu1  ;;  %v9984_v24 = vadd.f32 %v9983_v17, %v9982_v21 }
 0x546   : > { %16332 = vst [vmem:[#allocation36_spill] sm:$0xff] %v14679_v0  ;;  %v9985_v60 = vpop.f32.mrf.mxu0 }
 0x547   : > { %v14684_v30 = vpop.f32.mrf.mxu1  ;;  %v14687_v61 = vadd.f32 %v9984_v24, %v14435_v23  ;;  %v11097_v23 = vld [vmem:[%s15979_s1 + $0x8b8] sm:$0xff]  }
 0x548   : > { %v9986_v33 = vpop.f32.mrf.mxu0  ;;  %v11099_v24 = vld [vmem:[%s15979_s1 + $0x818] sm:$0xff]   ;;  %10502 = vmatprep.subr.bf16.mxu0 %v11097_v23 }
 0x549   : > { %16333 = vst [vmem:[#allocation37_spill] sm:$0xff] %v14687_v61  ;;  %v14689_v27 = vpop.f32.mrf.mxu1  ;;  %v9987_v48 = vadd.f32 %v9986_v33, %v9985_v60  ;;  %10398 = vmatprep.subr.bf16.mxu1 %v11099_v24 }
 0x54a   : > { %v9988_v37 = vpop.f32.mrf.mxu0 }
 0x54b   : > { %v14691_v26 = vpop.f32.mrf.mxu1  ;;  %v14694_v21 = vadd.f32 %v9987_v48, %v14438_v18 }
 0x54c   : > { %16334 = vst [vmem:[#allocation19_spill] sm:$0xff] %v14691_v26  ;;  %v9989_v17 = vpop.f32.mrf.mxu0 }
 0x54d   : > { %16335 = vst [vmem:[#allocation10_spill] sm:$0xff] %v14694_v21  ;;  %v14696_v0 = vpop.f32.mrf.mxu1  ;;  %v9990_v3 = vadd.f32 %v9989_v17, %v9988_v37 }
 0x54e   : > { %16336 = vst [vmem:[#allocation21_spill] sm:$0xff] %v14696_v0  ;;  %v9991_v36 = vpop.f32.mrf.mxu0 }
 0x54f   : > { %v14704_v45 = vpop.f32.mrf.mxu1  ;;  %v14707_v60 = vadd.f32 %v9990_v3, %v14443_v57  ;;  %v11100_v57 = vld [vmem:[%s15979_s1 + $0x7d8] sm:$0xff]  }
 0x550   : > { %v9992_v18 = vpop.f32.mrf.mxu0  ;;  %10399 = vmatpush3.bf16.msra.mxu1 %v11100_v57 }
 0x551   : > { %16337 = vst [vmem:[#allocation24_spill] sm:$0xff] %v14707_v60  ;;  %v14709_v48 = vpop.f32.mrf.mxu1  ;;  %v9993_v37 = vadd.f32 %v9992_v18, %v9991_v36 }
 0x552   : > { %v9994_v33 = vpop.f32.mrf.mxu0 }
 0x553   : > { %v14711_v17 = vpop.f32.mrf.mxu1  ;;  %v14714_v21 = vadd.f32 %v9993_v37, %v14449_v38 }
 0x554   : > { %16338 = vst [vmem:[#allocation9_spill] sm:$0xff] %v14711_v17  ;;  %v9995_v61 = vpop.f32.mrf.mxu0 }
 0x555   : > { %16339 = vst [vmem:[#allocation29_spill] sm:$0xff] %v14714_v21  ;;  %v14716_v0 = vpop.f32.mrf.mxu1  ;;  %v9996_v26 = vadd.f32 %v9995_v61, %v9994_v33 }
 0x556   : > { %16340 = vst [vmem:[#allocation15_spill] sm:$0xff] %v14716_v0  ;;  %v9997_v3 = vpop.f32.mrf.mxu0 }
 0x557   : > { %v14721_v23 = vpop.f32.mrf.mxu1  ;;  %v14724_v24 = vadd.f32 %v9996_v26, %v14457_v46  ;;  %v11103_v46 = vld [vmem:[%s15979_s1 + $0x810] sm:$0xff]  }
 0x558   : > { %v9998_v36 = vpop.f32.mrf.mxu0  ;;  %10400 = vmatprep.subr.bf16.mxu1 %v11103_v46 }
 0x559   : > { %16341 = vst [vmem:[#allocation11_spill] sm:$0xff] %v14724_v24  ;;  %v14726_v18 = vpop.f32.mrf.mxu1  ;;  %v9999_v38 = vadd.f32 %v9998_v36, %v9997_v3 }
 0x55a   : > { %v10000_v37 = vpop.f32.mrf.mxu0 }
 0x55b   : > { %v14728_v21 = vpop.f32.mrf.mxu1  ;;  %v14731_v61 = vadd.f32 %v9999_v38, %v14460_v15 }
 0x55c   : > { %v10001_v33 = vpop.f32.mrf.mxu0 }
 0x55d   : > { %16342 = vst [vmem:[#allocation13_spill] sm:$0xff] %v14731_v61  ;;  %v14733_v60 = vpop.f32.mrf.mxu1  ;;  %v10002_v0 = vadd.f32 %v10001_v33, %v10000_v37 }
 0x55e   : > { %16343 = vst [vmem:[#allocation35_spill] sm:$0xff] %v14733_v60  ;;  %v10003_v17 = vpop.f32.mrf.mxu0 }
 0x55f   : > { %v14738_v26 = vpop.f32.mrf.mxu1  ;;  %v14741_v57 = vadd.f32 %v10002_v0, %v14465_v55  ;;  %v11104_v55 = vld [vmem:[%s15979_s1 + $0x7d0] sm:$0xff]  }
 0x560   : > { %v10004_v3 = vpop.f32.mrf.mxu0  ;;  %10401 = vmatpush3.bf16.msra.mxu1 %v11104_v55 }
 0x561   : > { %16344 = vst [vmem:[#allocation27_spill] sm:$0xff] %v14741_v57  ;;  %v14743_v36 = vpop.f32.mrf.mxu1  ;;  %v10005_v15 = vadd.f32 %v10004_v3, %v10003_v17 }
 0x562   : > { %16345 = vst [vmem:[#allocation34_spill] sm:$0xff] %v14743_v36  ;;  %v10006_v38 = vpop.f32.mrf.mxu0 }
 0x563   : > { %v14745_v61 = vpop.f32.mrf.mxu1  ;;  %v14748_v37 = vadd.f32 %v10005_v15, %v14471_v63 }
 0x564   : > { %16346 = vst [vmem:[#allocation14_spill] sm:$0xff] %v14745_v61  ;;  %v10007_v33 = vpop.f32.mrf.mxu0 }
 0x565   : > { %16347 = vst [vmem:[#allocation22_spill] sm:$0xff] %v14748_v37  ;;  %v14750_v24 = vpop.f32.mrf.mxu1  ;;  %v10008_v60 = vadd.f32 %v10007_v33, %v10006_v38 }
 0x566   : > { %16348 = vst [vmem:[#allocation5_spill] sm:$0xff] %v14750_v24  ;;  %v10009_v0 = vpop.f32.mrf.mxu0 }
 0x567   : > { %v14755_v57 = vpop.f32.mrf.mxu1  ;;  %v14758_v46 = vadd.f32 %v10008_v60, %v14479_v52  ;;  %v11107_v52 = vld [vmem:[%s15979_s1 + $0x808] sm:$0xff]  }
 0x568   : > { %v10010_v17 = vpop.f32.mrf.mxu0  ;;  %10402 = vmatprep.subr.bf16.mxu1 %v11107_v52 }
 0x569   : > { %16349 = vst [vmem:[#allocation23_spill] sm:$0xff] %v14758_v46  ;;  %v14760_v3 = vpop.f32.mrf.mxu1  ;;  %v10011_v63 = vadd.f32 %v10010_v17, %v10009_v0 }
 0x56a   : > { %v10012_v15 = vpop.f32.mrf.mxu0 }
 0x56b   : > { %v14762_v37 = vpop.f32.mrf.mxu1  ;;  %v14765_v38 = vadd.f32 %v10011_v63, %v14482_v28 }
 0x56c   : > { %v10013_v33 = vpop.f32.mrf.mxu0 }
 0x56d   : > { %16350 = vst [vmem:[#allocation28_spill] sm:$0xff] %v14765_v38  ;;  %v14767_v24 = vpop.f32.mrf.mxu1  ;;  %v10014_v61 = vadd.f32 %v10013_v33, %v10012_v15 }
 0x56e   : > { %16351 = vst [vmem:[#allocation32_spill] sm:$0xff] %v14767_v24  ;;  %v10015_v36 = vpop.f32.mrf.mxu0 }
 0x56f   : > { %v14772_v60 = vpop.f32.mrf.mxu1  ;;  %v14775_v55 = vadd.f32 %v10014_v61, %v14492_v22  ;;  %v11108_v22 = vld [vmem:[%s15979_s1 + $0x7c8] sm:$0xff]  }
 0x570   : > { %v10016_v0 = vpop.f32.mrf.mxu0  ;;  %10403 = vmatpush3.bf16.msra.mxu1 %v11108_v22  ;;  %v10060_v22 = vadd.f32 %v14603_v25, %v14601_v50  ;;  %v11111_v50 = vld [vmem:[%s15979_s1 + $0x800] sm:$0xff]  }
 0x571   : > { %16352 = vst [vmem:[#allocation30_spill] sm:$0xff] %v14775_v55  ;;  %v14777_v17 = vpop.f32.mrf.mxu1  ;;  %v10017_v28 = vadd.f32 %v10016_v0, %v10015_v36  ;;  %10404 = vmatprep.subr.bf16.mxu1 %v11111_v50 }
 0x572   : > { %v10018_v63 = vpop.f32.mrf.mxu0 }
 0x573   : > { %v14779_v38 = vpop.f32.mrf.mxu1  ;;  %v14782_v15 = vadd.f32 %v10017_v28, %v14504_v54 }
 0x574   : > { %v10019_v33 = vpop.f32.mrf.mxu0 }
 0x575   : > { %16353 = vst [vmem:[#allocation16_spill] sm:$0xff] %v14782_v15  ;;  %v14784_v46 = vpop.f32.mrf.mxu1  ;;  %v10020_v24 = vadd.f32 %v10019_v33, %v10018_v63  ;;  %v10048_v15 = vadd.f32 %v14557_v32, %v14550_v49  ;;  %v10051_v63 = vadd.f32 %v14576_v40, %v14571_v16  ;;  %v10054_v33 = vadd.f32 %v14589_v14, %v14584_v47 }
 0x576   : > { %16354 = vst [vmem:[#allocation31_spill] sm:$0xff] %v14784_v46  ;;  %v10021_v61 = vpop.f32.mrf.mxu0  ;;  %v10063_v49 = vadd.f32 %v14616_v8, %v14614_v1  ;;  %v10066_v32 = vadd.f32 %v14623_v20, %v14621_v7  ;;  %v10069_v40 = vadd.f32 %v14630_v10, %v14628_v51  ;;  %v10075_v47 = vadd.f32 %v14650_v5, %v14645_v53  ;;  %v16356_v5 = vld [vmem:[#allocation33_spill] sm:$0xff] }
 0x577   : > { %v14789_v55 = vpop.f32.mrf.mxu1  ;;  %v14792_v52 = vadd.f32 %v10020_v24, %v14516_v34  ;;  %v10057_v24 = vadd.f32 %v14596_v42, %v14594_v43  ;;  %v5550_v8 = vadd.f32 %v10054_v33, %v14544_v41  ;;  %v5542_v7 = vadd.f32 %v10048_v15, %v14519_v62  ;;  %v16360_v33 = vld [vmem:[#allocation6_spill] sm:$0xff] }
 0x578   : > { %v10022_v36 = vpop.f32.mrf.mxu0  ;;  %v5545_v20 = vadd.f32 %v10051_v63, %v14532_v13  ;;  %v14842_v53 = vadd.f32 %v10063_v49, %v14592_v19  ;;  %v14847_v62 = vadd.f32 %v10069_v40, %v14606_v6  ;;  %v10081_v19 = vadd.f32 %v14664_v35, %v14662_v59  ;;  %v16361_v35 = vld [vmem:[#allocation9_spill] sm:$0xff]  ;;  %v16363_v49 = vld [vmem:[#allocation35_spill] sm:$0xff] }
 0x579   : > { %v14794_v0 = vpop.f32.mrf.mxu1  ;;  %v10023_v54 = vadd.f32 %v10022_v36, %v10021_v61  ;;  %v5553_v10 = vadd.f32 %v10057_v24, %v14560_v39  ;;  %v14853_v39 = vadd.f32 %v10075_v47, %v14626_v11  ;;  %v16357_v61 = vld [vmem:[#allocation36_spill] sm:$0xff]  ;;  %v10096_v59 = vadd.f32 %v16361_v35, %v14709_v48  ;;  %v16362_v24 = vld [vmem:[#allocation15_spill] sm:$0xff]  ;;  %v11112_v48 = vld [vmem:[%s15979_s1 + $0x7c0] sm:$0xff]  }
 0x57a   : > { %v10024_v28 = vpop.f32.mrf.mxu0  ;;  %v10087_v36 = vadd.f32 %v14684_v30, %v16357_v61  ;;  %v10102_v30 = vadd.f32 %v14728_v21, %v14726_v18  ;;  %v16369_v18 = vld [vmem:[#allocation8_spill] sm:$0xff]  ;;  %10405 = vmatpush3.bf16.msra.mxu1 %v11112_v48 }
 0x57b   : > { %v14802_v46 = vpop.f32.mrf.mxu1  ;;  %v14805_v34 = vadd.f32 %v10023_v54, %v14529_v29  ;;  %v10072_v29 = vadd.f32 %v14637_v12, %v14635_v4  ;;  %v14836_v4 = vadd.f32 %v10066_v32, %v14599_v56  ;;  %v14839_v12 = vadd.f32 %v10060_v22, %v14579_v44  ;;  %v16355_v56 = vld [vmem:[#allocation18_spill] sm:$0xff]  ;;  %v16358_v54 = vld [vmem:[#allocation19_spill] sm:$0xff] }
 0x57c   : > { %v10025_v16 = vpop.f32.mrf.mxu0  ;;  %v10078_v44 = vadd.f32 %v14657_v2, %v14655_v31  ;;  %v10084_v15 = vadd.f32 %v16356_v5, %v16355_v56  ;;  %v10099_v22 = vadd.f32 %v14721_v23, %v16362_v24  ;;  %v16371_v56 = vld [vmem:[#allocation20_spill] sm:$0xff] }
 0x57d   : > { %v14821_v14 = vpop.f32.mrf.mxu1  ;;  %v10026_v43 = vadd.f32 %v10025_v16, %v10024_v28  ;;  %v14850_v13 = vadd.f32 %v10072_v29, %v14619_v58  ;;  %v10090_v58 = vadd.f32 %v16358_v54, %v14689_v27  ;;  %v16359_v28 = vld [vmem:[#allocation21_spill] sm:$0xff]  ;;  %v10105_v27 = vadd.f32 %v14738_v26, %v16363_v49  ;;  %v16365_v16 = vld [vmem:[#allocation14_spill] sm:$0xff] }
 0x57e   : > { %v10027_v42 = vpop.f32.mrf.mxu0  ;;  %v10093_v11 = vadd.f32 %v14704_v45, %v16359_v28  ;;  %v16364_v45 = vld [vmem:[#allocation34_spill] sm:$0xff]  ;;  %v16366_v29 = vld [vmem:[#allocation5_spill] sm:$0xff]  ;;  %v14892_v26 = vadd.f32 %v10081_v19, %v16369_v18  ;;  %v14898_v5 = vadd.f32 %v10087_v36, %v16371_v56  ;;  %v16381_v18 = vld [vmem:[#allocation32_spill] sm:$0xff] }
 0x57f   : > { %v14826_v25 = vpop.f32.mrf.mxu1  ;;  %v14829_v1 = vadd.f32 %v10026_v43, %v14538_v9  ;;  %v10108_v40 = vadd.f32 %v16365_v16, %v16364_v45  ;;  %v10111_v47 = vadd.f32 %v14755_v57, %v16366_v29  ;;  %v16367_v43 = vmov 0.0   ;;  %v16373_v28 = vld [vmem:[#allocation25_spill] sm:$0xff]  ;;  %v16378_v16 = vld [vmem:[#allocation11_spill] sm:$0xff] }
 0x580   : > { %v10028_v51 = vpop.f32.mrf.mxu0  ;;  %v16376_v36 = vld [vmem:[#allocation29_spill] sm:$0xff] }
 0x581   : > { %v14844_v9 = vpop.f32.mrf.mxu1  ;;  %v10029_v41 = vadd.f32 %v10028_v51, %v10027_v42  ;;  %v16370_v51 = vld [vmem:[#allocation7_spill] sm:$0xff]  ;;  %v14916_v49 = vadd.f32 %v10105_v27, %v16376_v36  ;;  %v14922_v29 = vadd.f32 %v10108_v40, %v16378_v16 }
 0x582   : > { %v10752_v6 = vpop.f32.mrf.mxu0 }
 0x583   : > { %v14867_v63 = vpop.f32.mrf.mxu1  ;;  %v14870_v2 = vadd.f32 %v10029_v41, %v16360_v33  ;;  %v5711_v31 = vadd.f32 %v10752_v6, %v5550_v8  ;;  %v16368_v8 = vld [vmem:[#allocation12_spill] sm:$0xff]  ;;  %v14895_v41 = vadd.f32 %v10084_v15, %v16370_v51  ;;  %v16372_v6 = vld [vmem:[#allocation26_spill] sm:$0xff]  ;;  %v16375_v15 = vld [vmem:[#allocation37_spill] sm:$0xff] }
 0x584   : > { %v5702_v32 = vpop.f32.mrf.mxu0  ;;  %v14889_v21 = vadd.f32 %v10078_v44, %v16368_v8  ;;  %v14904_v54 = vadd.f32 %v10090_v58, %v16372_v6  ;;  %v14907_v44 = vadd.f32 %v10093_v11, %v16373_v28  ;;  %v16374_v33 = vld [vmem:[#allocation24_spill] sm:$0xff]  ;;  %v14913_v24 = vadd.f32 %v10096_v59, %v16375_v15  ;;  %v16379_v11 = vld [vmem:[#allocation13_spill] sm:$0xff] }
 0x585   : > { %v5978_v42 = vpack.c.bf16 %v5711_v31, %v16367_v43  ;;  %v5703_v50 = vadd.f32 %v5702_v32, %v5542_v7  ;;  %v14900_v57 = vpop.f32.mrf.mxu1  ;;  %v14910_v35 = vadd.f32 %v10102_v30, %v16374_v33  ;;  %v16377_v32 = vld [vmem:[#allocation10_spill] sm:$0xff]  ;;  %v14925_v48 = vadd.f32 %v10111_v47, %v16379_v11  ;;  %v16382_v47 = vld [vmem:[#allocation31_spill] sm:$0xff] }
 0x586   : > { %v10753_v23 = vpop.f32.mrf.mxu0  ;;  %v14919_v45 = vadd.f32 %v10099_v22, %v16377_v32  ;;  %v10114_v30 = vadd.f32 %v14762_v37, %v14760_v3  ;;  %v10117_v22 = vadd.f32 %v14772_v60, %v16381_v18  ;;  %v10123_v6 = vadd.f32 %v14789_v55, %v16382_v47 }
 0x587   : > { %v5976_v7 = vpack.c.bf16 %v5703_v50, %v16367_v43  ;;  %v5714_v61 = vadd.f32 %v10753_v23, %v5553_v10  ;;  %v6042_v10 = vshrl.u32 %v5978_v42, 16  ;;  %v6045_v58 = vshll.u32 %v5978_v42, 16  ;;  %v14935_v51 = vpop.f32.mrf.mxu1 }
 0x588   : > { %v5705_v19 = vpop.f32.mrf.mxu0  ;;  %v10120_v42 = vadd.f32 %v14779_v38, %v14777_v17  ;;  %v10126_v18 = vadd.f32 %v14802_v46, %v14794_v0 }
 0x589   : > { %v5979_v23 = vpack.c.bf16 %v5714_v61, %v5714_v61  ;;  %v14929_v59 = vpack.c.bf16 %v5714_v61, %v5711_v31  ;;  %v5706_v8 = vadd.f32 %v5705_v19, %v5545_v20  ;;  %v6025_v40 = vshrl.u32 %v5976_v7, 16  ;;  %v14942_v32 = vpop.f32.mrf.mxu1 }
 0x58a   : > { %v10756_v27 = vpop.f32.mrf.mxu0  ;;  %v6028_v56 = vshll.u32 %v5976_v7, 16  ;;  %v6044_v61 = vrot.slane %v6042_v10, 3  ;;  %v6047_v20 = vrot.slane %v6045_v58, 4 }
 0x58b   : > { %16380 = vst [vmem:[#allocation4_spill] sm:$0xff] %v14929_v59  ;;  %v6050_v28 = vshrl.u32 %v5979_v23, 16  ;;  %v6053_v37 = vshll.u32 %v5979_v23, 16  ;;  %v5977_v3 = vpack.c.bf16 %v5706_v8, %v5706_v8  ;;  %v14939_v19 = vpack.c.bf16 %v5706_v8, %v5703_v50  ;;  %v14950_v50 = vld [vmem:[%s15979_s1 + $0x8f8] sm:$0xff]   ;;  %v14967_v46 = vpop.f32.mrf.mxu1 }
 0x58c   : > { %v5718_v31 = vpop.f32.mrf.mxu0  ;;  %v6027_v7 = vrot.slane %v6025_v40, 3  ;;  %v6030_v16 = vrot.slane %v6028_v56, 4  ;;  %16384 = vst [vmem:[#allocation18_spill] sm:$0xff] %v14950_v50  ;;  %v5727_v11 = vadd.f32 %v10756_v27, %v14836_v4  ;;  %v6048_v40 = vor.u32 %v6047_v20, %v6044_v61  ;;  %v16385_v56 = vld [vmem:[#allocation27_spill] sm:$0xff]  ;;  %10782 = vmatprep.subr.bf16.mxu1 %v14950_v50 }
 0x58d   : > { %16383 = vst [vmem:[#allocation17_spill] sm:$0xff] %v14939_v19  ;;  %v5719_v60 = vadd.f32 %v5718_v31, %v14839_v12  ;;  %v6052_v33 = vrot.slane %v6050_v28, 3  ;;  %v6055_v15 = vrot.slane %v6053_v37, 4  ;;  %v6033_v38 = vshrl.u32 %v5977_v3, 16  ;;  %6934 = vmatprep.mubr.bf16.mxu1 %v14939_v19  ;;  %v16386_v28 = vld [vmem:[#allocation22_spill] sm:$0xff] }
 0x58e   : > { %v6036_v17 = vshll.u32 %v5977_v3, 16  ;;  %v10757_v36 = vpop.f32.mrf.mxu0  ;;  %v14956_v47 = vadd.f32 %v10114_v30, %v16385_v56  ;;  %v10129_v37 = vadd.f32 %v14826_v25, %v14821_v14  ;;  %v16391_v25 = vld [vmem:[#allocation28_spill] sm:$0xff] }
 0x58f   : > { %v5980_v55 = vpack.c.bf16 %v5719_v60, %v16367_v43  ;;  %v5730_v10 = vadd.f32 %v10757_v36, %v14847_v62  ;;  %v6035_v12 = vrot.slane %v6033_v38, 3  ;;  %v6056_v8 = vor.u32 %v6055_v15, %v6052_v33  ;;  %v16390_v38 = vld [vmem:[#allocation23_spill] sm:$0xff]  ;;  %v16394_v56 = vld [vmem:[#allocation16_spill] sm:$0xff] }
 0x590   : > { %v6038_v58 = vrot.slane %v6036_v17, 4  ;;  %v5721_v23 = vpop.f32.mrf.mxu0  ;;  %v14959_v62 = vadd.f32 %v10117_v22, %v16386_v28  ;;  %v6031_v33 = vor.u32 %v6030_v16, %v6027_v7  ;;  %v14975_v14 = vadd.f32 %v10120_v42, %v16390_v38  ;;  %v11101_v42 = vld [vmem:[%s15979_s1 + $0x8b0] sm:$0xff]  }
 0x591   : > { %v14964_v3 = vpack.c.bf16 %v5730_v10, %v5727_v11  ;;  %v5722_v4 = vadd.f32 %v5721_v23, %v14842_v53  ;;  %v6059_v0 = vshrl.u32 %v5980_v55, 16  ;;  %v6062_v30 = vshll.u32 %v5980_v55, 16  ;;  %v11098_v53 = vld [vmem:[%s15979_s1 + $0x878] sm:$0xff]   ;;  %v16392_v23 = vld [vmem:[#allocation30_spill] sm:$0xff] }
 0x592   : > { %v10760_v27 = vpop.f32.mrf.mxu0  ;;  %v6039_v31 = vor.u32 %v6038_v58, %v6035_v12  ;;  %v14970_v61 = vsel %vm398_vm0, %v6048_v40, %v6056_v8  ;;  %v14978_v17 = vadd.f32 %v10123_v6, %v16391_v25  ;;  %v10132_v36 = vadd.f32 %v14867_v63, %v14844_v9  ;;  %v10139_v63 = vpop.f32.mrf.mxu1 }
 0x593   : > { %16387 = vst [vmem:[#allocation33_spill] sm:$0xff] %v14964_v3  ;;  %16388 = vst [vmem:[#allocation36_spill] sm:$0xff] %v14970_v61  ;;  %v5981_v22 = vpack.c.bf16 %v5722_v4, %v5722_v4  ;;  %v14972_v20 = vpack.c.bf16 %v5722_v4, %v5719_v60  ;;  %v14986_v7 = vpack.c.bf16 %v5727_v11, %v16367_v43  ;;  %v6061_v11 = vrot.slane %v6059_v0, 3 }
 0x594   : > { %v5734_v15 = vpop.f32.mrf.mxu0  ;;  %v5743_v60 = vadd.f32 %v10760_v27, %v14889_v21  ;;  %v6040_v16 = vsel %vm398_vm0, %v6031_v33, %v6039_v31  ;;  %v14995_v9 = vadd.f32 %v10126_v18, %v16392_v23  ;;  %v6064_v8 = vrot.slane %v6062_v30, 4  ;;  %v16393_v21 = vld [vmem:[#allocation3_spill] sm:$0xff]  ;;  %v11102_v33 = vld [vmem:[%s15979_s1 + $0x870] sm:$0xff]  }
 0x595   : > { %16389 = vst [vmem:[#allocation19_spill] sm:$0xff] %v14972_v20  ;;  %v6067_v6 = vshrl.u32 %v5981_v22, 16  ;;  %v6070_v55 = vshll.u32 %v5981_v22, 16  ;;  %v5735_v12 = vadd.f32 %v5734_v15, %v14850_v13  ;;  %6935 = vmatmul.mubr.bf16.gmra.mxu1 %v6040_v16  ;;  %7087 = vmatprep.mubr.bf16.mxu0 %v6040_v16  ;;  %v15001_v28 = vadd.f32 %v10129_v37, %v16394_v56  ;;  %v11105_v30 = vld [vmem:[%s15979_s1 + $0x8a8] sm:$0xff]  }
 0x596   : > { %v10761_v58 = vpop.f32.mrf.mxu0  ;;  %6942 = vmatprep.mubr.bf16.mxu1 %v14929_v59  ;;  %7088 = vmatmul.mubr.bf16.vlgmr.msra.gmra.mxu0 %v16393_v21  ;;  %v5983_v4 = vpack.c.bf16 %v5730_v10, %v5730_v10  ;;  %v6297_v18 = vshll.u32 %v14939_v19, 16  ;;  %v10135_v0 = vadd.f32 %v14935_v51, %v14900_v57  ;;  %v5986_v37 = vpack.c.bf16 %v5743_v60, %v16367_v43  ;;  %v10140_v51 = vpop.f32.mrf.mxu1 }
 0x597   : > { %v5746_v40 = vadd.f32 %v10761_v58, %v14892_v26  ;;  %v6069_v13 = vrot.slane %v6067_v6, 3  ;;  %v6072_v27 = vrot.slane %v6070_v55, 4  ;;  %7095 = vmatprep.mubr.bf16.mxu0 %v14970_v61  ;;  %10503 = vmatpush3.bf16.msra.mxu0 %v11098_v53  ;;  %v6076_v26 = vshrl.u32 %v14986_v7, 16 }
 0x598   : > { %v5737_v31 = vpop.f32.mrf.mxu0  ;;  %v15013_v10 = vadd.f32 %v10132_v36, %v14792_v52  ;;  %10504 = vmatprep.subr.bf16.mxu0 %v11101_v42  ;;  %v5984_v22 = vpack.c.bf16 %v5735_v12, %v16367_v43  ;;  %v6299_v57 = vrot.slane %v6297_v18, 1  ;;  %v6079_v53 = vshll.u32 %v14986_v7, 16  ;;  %v11106_v7 = vld [vmem:[%s15979_s1 + $0x868] sm:$0xff]  }
 0x599   : > { %v15019_v15 = vpack.c.bf16 %v5746_v40, %v5743_v60  ;;  %v5738_v38 = vadd.f32 %v5737_v31, %v14853_v39  ;;  %v6295_v16 = vshrl.u32 %v14939_v19, 16  ;;  %v6065_v52 = vor.u32 %v6064_v8, %v6061_v11 }
 0x59a   : > { %v10764_v25 = vpop.f32.mrf.mxu0  ;;  %v6073_v36 = vor.u32 %v6072_v27, %v6069_v13  ;;  %v6084_v42 = vshrl.u32 %v5983_v4, 16  ;;  %v6087_v6 = vshll.u32 %v5983_v4, 16  ;;  %v15024_v55 = vpack.c.bf16 %v5746_v40, %v5746_v40  ;;  %v11109_v13 = vld [vmem:[%s15979_s1 + $0x8a0] sm:$0xff]  }
 0x59b   : > { %v15026_v58 = vpack.c.bf16 %v5738_v38, %v5735_v12  ;;  %10505 = vmatpush3.bf16.msra.mxu0 %v11102_v33  ;;  %v6110_v60 = vshrl.u32 %v5986_v37, 16  ;;  %v6113_v56 = vshll.u32 %v5986_v37, 16  ;;  %v6300_v39 = vor.u32 %v6299_v57, %v6295_v16  ;;  %v11113_v16 = vld [vmem:[%s15979_s1 + $0x898] sm:$0xff]  }
 0x59c   : > { %v5750_v23 = vpop.f32.mrf.mxu0  ;;  %v15029_v31 = vsel %vm398_vm0, %v6065_v52, %v6073_v36  ;;  %10506 = vmatprep.subr.bf16.mxu0 %v11105_v30  ;;  %v15036_v11 = vadd.f32 %v14967_v46, %v14942_v32  ;;  %v15038_v8 = vadd.f32 %v10140_v51, %v10139_v63  ;;  %v6093_v12 = vshrl.u32 %v5984_v22, 16 }
 0x59d   : > { %16395 = vst [vmem:[#allocation21_spill] sm:$0xff] %v15029_v31  ;;  %6943 = vmatmul.mubr.bf16.gmra.mxu1 %v14970_v61  ;;  %v15042_v4 = vadd.f32 %v10135_v0, %v14805_v34  ;;  %v6096_v27 = vshll.u32 %v5984_v22, 16  ;;  %v5759_v18 = vadd.f32 %v10764_v25, %v14904_v54  ;;  %v5751_v33 = vadd.f32 %v5750_v23, %v14895_v41 }
 0x59e   : > { %v10765_v40 = vpop.f32.mrf.mxu0  ;;  %6950 = vmatprep.mubr.bf16.mxu1 %v14972_v20  ;;  %v15052_v32 = vsel %vm679_vm1, %v6300_v39, %v16393_v21  ;;  %v6078_v46 = vrot.slane %v6076_v26, 3  ;;  %v6081_v63 = vrot.slane %v6079_v53, 4  ;;  %v6118_v34 = vshrl.u32 %v15024_v55, 16  ;;  %v11110_v26 = vld [vmem:[%s15979_s1 + $0x860] sm:$0xff]  }
 0x59f   : > { %16396 = vst [vmem:[#allocation6_spill] sm:$0xff] %v15052_v32  ;;  %7096 = vmatmul.mubr.bf16.gmra.mxu0 %v15052_v32  ;;  %v5762_v0 = vadd.f32 %v10765_v40, %v14907_v44  ;;  %v6086_v30 = vrot.slane %v6084_v42, 3  ;;  %v6089_v22 = vrot.slane %v6087_v6, 4  ;;  %v15057_v54 = vrot.slane %v6110_v60, 3 }
 0x5a0   : > { %v5753_v37 = vpop.f32.mrf.mxu0  ;;  %v15059_v41 = vrot.slane %v6113_v56, 4  ;;  %7103 = vmatprep.mubr.bf16.mxu0 %v15029_v31  ;;  %10507 = vmatpush3.bf16.msra.mxu0 %v11106_v7  ;;  %v5985_v25 = vpack.c.bf16 %v5738_v38, %v5738_v38  ;;  %v6305_v53 = vshll.u32 %v14929_v59, 16  ;;  %v15072_v52 = vrot.slane %v6093_v12, 3 }
 0x5a1   : > { %v15065_v57 = vpack.c.bf16 %v5762_v0, %v5759_v18  ;;  %v5754_v51 = vadd.f32 %v5753_v37, %v14898_v5  ;;  %10508 = vmatprep.subr.bf16.mxu0 %v11109_v13  ;;  %v15074_v36 = vrot.slane %v6096_v27, 4  ;;  %v5990_v42 = vpack.c.bf16 %v5759_v18, %v16367_v43  ;;  %v11114_v13 = vld [vmem:[%s15979_s1 + $0x858] sm:$0xff]  }
 0x5a2   : > { %v10768_v44 = vpop.f32.mrf.mxu0  ;;  %v5988_v38 = vpack.c.bf16 %v5751_v33, %v16367_v43  ;;  %v15078_v6 = vrot.slane %v6118_v34, 3  ;;  %v6121_v5 = vshll.u32 %v15024_v55, 16  ;;  %v5991_v23 = vpack.c.bf16 %v5762_v0, %v5762_v0 }
 0x5a3   : > { %v15081_v60 = vpack.c.bf16 %v5754_v51, %v5751_v33  ;;  %v5775_v39 = vadd.f32 %v10768_v44, %v14910_v35  ;;  %v6303_v7 = vshrl.u32 %v14929_v59, 16  ;;  %v6307_v12 = vrot.slane %v6305_v53, 1  ;;  %v11115_v35 = vld [vmem:[%s15979_s1 + $0x890] sm:$0xff]  }
 0x5a4   : > { %v5766_v56 = vpop.f32.mrf.mxu0  ;;  %v6090_v40 = vor.u32 %v6089_v22, %v6086_v30  ;;  %10509 = vmatpush3.bf16.msra.mxu0 %v11110_v26  ;;  %v6101_v27 = vshrl.u32 %v5985_v25, 16  ;;  %v6104_v18 = vshll.u32 %v5985_v25, 16  ;;  %v6082_v33 = vor.u32 %v6081_v63, %v6078_v46 }
 0x5a5   : > { %v5767_v34 = vadd.f32 %v5766_v56, %v14913_v24  ;;  %6951 = vmatmul.mubr.bf16.gmra.mxu1 %v15029_v31  ;;  %10510 = vmatprep.subr.bf16.mxu0 %v11113_v16  ;;  %v6144_v0 = vshrl.u32 %v5990_v42, 16  ;;  %v6147_v37 = vshll.u32 %v5990_v42, 16  ;;  %v6127_v30 = vshrl.u32 %v5988_v38, 16  ;;  %v11116_v42 = vld [vmem:[%s15979_s1 + $0x850] sm:$0xff]  }
 0x5a6   : > { %v10769_v55 = vpop.f32.mrf.mxu0  ;;  %6958 = vmatprep.mubr.bf16.mxu1 %v14964_v3  ;;  %v6308_v22 = vor.u32 %v6307_v12, %v6303_v7  ;;  %v6130_v26 = vshll.u32 %v5988_v38, 16  ;;  %v6152_v44 = vshrl.u32 %v5991_v23, 16  ;;  %v15096_v24 = vsel %vm398_vm0, %v6082_v33, %v6090_v40 }
 0x5a7   : > { %v5778_v25 = vadd.f32 %v10769_v55, %v14916_v49  ;;  %16397 = vst [vmem:[#allocation9_spill] sm:$0xff] %v15096_v24  ;;  %v15098_v46 = vrot.slane %v6121_v5, 4  ;;  %v6155_v63 = vshll.u32 %v5991_v23, 16  ;;  %v5989_v16 = vpack.c.bf16 %v5754_v51, %v5754_v51  ;;  %v11118_v51 = vld [vmem:[%s15979_s1 + $0x888] sm:$0xff]  }
 0x5a8   : > { %v5769_v53 = vpop.f32.mrf.mxu0  ;;  %v5994_v56 = vpack.c.bf16 %v5775_v39, %v16367_v43  ;;  %10511 = vmatpush3.bf16.msra.mxu0 %v11114_v13  ;;  %v5992_v38 = vpack.c.bf16 %v5767_v34, %v16367_v43  ;;  %v15107_v49 = vsel %vm679_vm1, %v6308_v22, %v16393_v21  ;;  %v6103_v23 = vrot.slane %v6101_v27, 3 }
 0x5a9   : > { %16398 = vst [vmem:[#allocation15_spill] sm:$0xff] %v15107_v49  ;;  %v15109_v7 = vpack.c.bf16 %v5778_v25, %v5775_v39  ;;  %v5770_v5 = vadd.f32 %v5769_v53, %v14919_v45  ;;  %10512 = vmatprep.subr.bf16.mxu0 %v11115_v35  ;;  %v6106_v40 = vrot.slane %v6104_v18, 4  ;;  %v15115_v13 = vrot.slane %v6144_v0, 3  ;;  %7104 = vmatmul.mubr.bf16.gmra.mxu0 %v15107_v49 }
 0x5aa   : > { %v10772_v12 = vpop.f32.mrf.mxu0  ;;  %v15117_v55 = vrot.slane %v6147_v37, 4  ;;  %v15120_v33 = vrot.slane %v6127_v30, 3  ;;  %v15122_v39 = vrot.slane %v6130_v26, 4  ;;  %v15124_v22 = vrot.slane %v6152_v44, 3  ;;  %7111 = vmatprep.mubr.bf16.mxu0 %v15096_v24  ;;  %v11119_v37 = vld [vmem:[%s15979_s1 + $0x848] sm:$0xff]  }
 0x5ab   : > { %v15127_v45 = vpack.c.bf16 %v5770_v5, %v5767_v34  ;;  %v15129_v53 = vrot.slane %v6155_v63, 4  ;;  %v6135_v27 = vshrl.u32 %v5989_v16, 16  ;;  %v5995_v18 = vpack.c.bf16 %v5778_v25, %v5778_v25  ;;  %v11120_v63 = vld [vmem:[%s15979_s1 + $0x880] sm:$0xff]  }
 0x5ac   : > { %v5782_v35 = vpop.f32.mrf.mxu0  ;;  %v6313_v0 = vshll.u32 %v14972_v20, 16  ;;  %10513 = vmatpush3.bf16.msra.mxu0 %v11116_v42  ;;  %v6138_v30 = vshll.u32 %v5989_v16, 16  ;;  %v6178_v26 = vshrl.u32 %v5994_v56, 16  ;;  %v6181_v44 = vshll.u32 %v5994_v56, 16 }
 0x5ad   : > { %v6161_v31 = vshrl.u32 %v5992_v38, 16  ;;  %6959 = vmatmul.mubr.bf16.gmra.mxu1 %v15096_v24  ;;  %10514 = vmatprep.subr.bf16.mxu0 %v11118_v51  ;;  %v6164_v25 = vshll.u32 %v5992_v38, 16  ;;  %v15139_v61 = vpack.c.bf16 %v5770_v5, %v5770_v5  ;;  %v5791_v42 = vadd.f32 %v10772_v12, %v14956_v47 }
 0x5ae   : > { %v10773_v34 = vpop.f32.mrf.mxu0  ;;  %6966 = vmatprep.mubr.bf16.mxu1 %v15026_v58  ;;  %v6315_v59 = vrot.slane %v6313_v0, 1  ;;  %v6311_v16 = vshrl.u32 %v14972_v20, 16  ;;  %v6099_v24 = vor.u32 %v15074_v36, %v15072_v52  ;;  %v6107_v51 = vor.u32 %v6106_v40, %v6103_v23 }
 0x5af   : > { %v5794_v56 = vadd.f32 %v10773_v34, %v14959_v62  ;;  %v15147_v49 = vrot.slane %v6135_v27, 3  ;;  %v6186_v19 = vshrl.u32 %v5995_v18, 16  ;;  %v6189_v38 = vshll.u32 %v5995_v18, 16 }
 0x5b0   : > { %v5785_v50 = vpop.f32.mrf.mxu0  ;;  %v5783_v5 = vadd.f32 %v5782_v35, %v14922_v29  ;;  %10515 = vmatpush3.bf16.msra.mxu0 %v11119_v37  ;;  %v15150_v47 = vrot.slane %v6138_v30, 4  ;;  %v6316_v12 = vor.u32 %v6315_v59, %v6311_v16  ;;  %v15155_v20 = vsel %vm398_vm0, %v6099_v24, %v6107_v51  ;;  %v11121_v29 = vld [vmem:[%s15979_s1 + $0x840] sm:$0xff]  }
 0x5b1   : > { %v15152_v0 = vpack.c.bf16 %v5794_v56, %v5791_v42  ;;  %16399 = vst [vmem:[#allocation35_spill] sm:$0xff] %v15155_v20  ;;  %10516 = vmatprep.subr.bf16.mxu0 %v11120_v63  ;;  %v15157_v52 = vrot.slane %v6178_v26, 3  ;;  %v6169_v36 = vshrl.u32 %v15139_v61, 16  ;;  %v5998_v23 = vpack.c.bf16 %v5791_v42, %v16367_v43 }
 0x5b2   : > { %v10776_v62 = vpop.f32.mrf.mxu0  ;;  %v5786_v40 = vadd.f32 %v5785_v50, %v14925_v48  ;;  %v15165_v59 = vrot.slane %v6181_v44, 4  ;;  %v15167_v35 = vrot.slane %v6161_v31, 3  ;;  %v15169_v24 = vrot.slane %v6164_v25, 4 }
 0x5b3   : > { %v15173_v27 = vsel %vm679_vm1, %v6316_v12, %v16393_v21  ;;  %v15175_v37 = vrot.slane %v6186_v19, 3  ;;  %v15177_v30 = vrot.slane %v6189_v38, 4  ;;  %v5996_v48 = vpack.c.bf16 %v5783_v5, %v16367_v43 }
 0x5b4   : > { %16400 = vst [vmem:[#allocation34_spill] sm:$0xff] %v15173_v27  ;;  %v5798_v18 = vpop.f32.mrf.mxu0  ;;  %7112 = vmatmul.mubr.bf16.gmra.mxu0 %v15173_v27  ;;  %v15181_v50 = vpack.c.bf16 %v5786_v40, %v5783_v5  ;;  %v6172_v31 = vshll.u32 %v15139_v61, 16  ;;  %v5999_v26 = vpack.c.bf16 %v5794_v56, %v5794_v56  ;;  %v5807_v44 = vadd.f32 %v10776_v62, %v14995_v9 }
 0x5b5   : > { %7119 = vmatprep.mubr.bf16.mxu0 %v15155_v20  ;;  %6967 = vmatmul.mubr.bf16.gmra.mxu1 %v15155_v20  ;;  %v6321_v19 = vshll.u32 %v14964_v3, 16  ;;  %v15188_v63 = vrot.slane %v6169_v36, 3  ;;  %v6212_v25 = vshrl.u32 %v5998_v23, 16  ;;  %v6215_v42 = vshll.u32 %v5998_v23, 16 }
 0x5b6   : > { %v10777_v34 = vpop.f32.mrf.mxu0  ;;  %v5997_v16 = vpack.c.bf16 %v5786_v40, %v5786_v40  ;;  %6974 = vmatprep.mubr.bf16.mxu1 %v15019_v15  ;;  %10517 = vmatpush3.bf16.msra.mxu0 %v11121_v29  ;;  %v6319_v61 = vshrl.u32 %v14964_v3, 16  ;;  %v6124_v9 = vor.u32 %v15098_v46, %v15078_v6  ;;  %v6195_v5 = vshrl.u32 %v5996_v48, 16 }
 0x5b7   : > { %v6323_v56 = vrot.slane %v6321_v19, 1  ;;  %v5810_v51 = vadd.f32 %v10777_v34, %v15001_v28  ;;  %v6198_v12 = vshll.u32 %v5996_v48, 16  ;;  %v5799_v62 = vadd.f32 %v5798_v18, %v14975_v14 }
 0x5b8   : > { %v5801_v38 = vpop.f32.mrf.mxu0  ;;  %v6116_v36 = vor.u32 %v15059_v41, %v15057_v54  ;;  %v6220_v23 = vshrl.u32 %v5999_v26, 16  ;;  %v6223_v40 = vshll.u32 %v5999_v26, 16  ;;  %v6002_v29 = vpack.c.bf16 %v5807_v44, %v16367_v43 }
 0x5b9   : > { %v6324_v20 = vor.u32 %v6323_v56, %v6319_v61  ;;  %v6203_v19 = vshrl.u32 %v5997_v16, 16  ;;  %v15199_v27 = vpack.c.bf16 %v5810_v51, %v5807_v44  ;;  %v5802_v6 = vadd.f32 %v5801_v38, %v14978_v17 }
 0x5ba   : > { %v10780_v3 = vpop.f32.mrf.mxu0  ;;  %v15202_v28 = vsel %vm398_vm0, %v6116_v36, %v6124_v9  ;;  %v15205_v46 = vrot.slane %v6172_v31, 4  ;;  %v15207_v14 = vrot.slane %v6212_v25, 3  ;;  %v15209_v18 = vrot.slane %v6215_v42, 4 }
 0x5bb   : > { %16401 = vst [vmem:[#allocation14_spill] sm:$0xff] %v15199_v27  ;;  %16402 = vst [vmem:[#allocation5_spill] sm:$0xff] %v15202_v28  ;;  %v15213_v54 = vsel %vm679_vm1, %v6324_v20, %v16393_v21  ;;  %v15215_v48 = vrot.slane %v6195_v5, 3  ;;  %v6206_v26 = vshll.u32 %v5997_v16, 16  ;;  %v6000_v44 = vpack.c.bf16 %v5799_v62, %v16367_v43 }
 0x5bc   : > { %16403 = vst [vmem:[#allocation12_spill] sm:$0xff] %v15213_v54  ;;  %v5814_v41 = vpop.f32.mrf.mxu0  ;;  %7120 = vmatmul.mubr.bf16.gmra.mxu0 %v15213_v54  ;;  %v15219_v34 = vpack.c.bf16 %v5802_v6, %v5799_v62  ;;  %v15221_v17 = vrot.slane %v6198_v12, 4  ;;  %v15223_v31 = vrot.slane %v6220_v23, 3  ;;  %v6003_v25 = vpack.c.bf16 %v5810_v51, %v5810_v51 }
 0x5bd   : > { %7127 = vmatprep.mubr.bf16.mxu0 %v15202_v28  ;;  %6975 = vmatmul.mubr.bf16.gmra.mxu1 %v15202_v28  ;;  %v6329_v20 = vshll.u32 %v15026_v58, 16  ;;  %v15228_v61 = vrot.slane %v6223_v40, 4  ;;  %v15230_v16 = vrot.slane %v6203_v19, 3  ;;  %v6246_v56 = vshrl.u32 %v6002_v29, 16 }
 0x5be   : > { %v10781_v42 = vpop.f32.mrf.mxu0  ;;  %v6249_v9 = vshll.u32 %v6002_v29, 16  ;;  %6982 = vmatprep.mubr.bf16.mxu1 %v15081_v60  ;;  %v5662_v38 = vadd.f32 %v15036_v11, %v14829_v1  ;;  %v6327_v51 = vshrl.u32 %v15026_v58, 16  ;;  %v5665_v12 = vadd.f32 %v15038_v8, %v14870_v2 }
 0x5bf   : > { %v6331_v5 = vrot.slane %v6329_v20, 1  ;;  %v15238_v36 = vrot.slane %v6206_v26, 4  ;;  %v6229_v23 = vshrl.u32 %v6000_v44, 16  ;;  %v6232_v40 = vshll.u32 %v6000_v44, 16 }
 0x5c0   : > { %v5817_v62 = vpop.f32.mrf.mxu0  ;;  %v6001_v19 = vpack.c.bf16 %v5802_v6, %v5802_v6  ;;  %v6254_v28 = vshrl.u32 %v6003_v25, 16  ;;  %v5823_v54 = vadd.f32 %v10780_v3, %v5662_v38  ;;  %v5826_v32 = vadd.f32 %v10781_v42, %v5665_v12 }
 0x5c1   : > { %v6332_v29 = vor.u32 %v6331_v5, %v6327_v51  ;;  %v5815_v27 = vadd.f32 %v5814_v41, %v15013_v10  ;;  %v6133_v1 = vor.u32 %v15122_v39, %v15120_v33  ;;  %v6141_v11 = vor.u32 %v15150_v47, %v15147_v49 }
 0x5c2   : > { %v5818_v2 = vadd.f32 %v5817_v62, %v15042_v4  ;;  %v15246_v8 = vrot.slane %v6246_v56, 3  ;;  %v15248_v26 = vrot.slane %v6249_v9, 4  ;;  %v6257_v44 = vshll.u32 %v6003_v25, 16 }
 0x5c3   : > { %v15252_v3 = vsel %vm679_vm1, %v6332_v29, %v16393_v21  ;;  %v6237_v6 = vshrl.u32 %v6001_v19, 16  ;;  %v15255_v10 = vpack.c.bf16 %v5826_v32, %v5823_v54  ;;  %v15258_v33 = vsel %vm398_vm0, %v6133_v1, %v6141_v11 }
 0x5c4   : > { %7128 = vmatmul.mubr.bf16.gmra.mxu0 %v15252_v3  ;;  %v15260_v49 = vpack.c.bf16 %v5818_v2, %v5815_v27  ;;  %v15262_v4 = vrot.slane %v6229_v23, 3  ;;  %v15264_v39 = vrot.slane %v6232_v40, 4  ;;  %v6240_v47 = vshll.u32 %v6001_v19, 16 }
 0x5c5   : > { %7135 = vmatprep.mubr.bf16.mxu0 %v15258_v33  ;;  %6983 = vmatmul.mubr.bf16.gmra.mxu1 %v15258_v33  ;;  %v6337_v41 = vshll.u32 %v15019_v15, 16  ;;  %v15269_v25 = vrot.slane %v6254_v28, 3  ;;  %v6006_v20 = vpack.c.bf16 %v5823_v54, %v16367_v43  ;;  %v6150_v42 = vor.u32 %v15117_v55, %v15115_v13 }
 0x5c6   : > { %6990 = vmatprep.mubr.bf16.mxu1 %v15065_v57  ;;  %v6158_v56 = vor.u32 %v15129_v53, %v15124_v22  ;;  %v6259_v9 = vrot.slane %v6257_v44, 4  ;;  %v6004_v38 = vpack.c.bf16 %v5815_v27, %v16367_v43  ;;  %v6335_v51 = vshrl.u32 %v15019_v15, 16 }
 0x5c7   : > { %v6339_v5 = vrot.slane %v6337_v41, 1  ;;  %v6239_v12 = vrot.slane %v6237_v6, 3  ;;  %v6005_v62 = vpack.c.bf16 %v5818_v2, %v5818_v2  ;;  %v6345_v54 = vshll.u32 %v15081_v60, 16 }
 0x5c8   : > { %v15280_v28 = vsel %vm398_vm0, %v6150_v42, %v6158_v56  ;;  %v6242_v23 = vrot.slane %v6240_v47, 4  ;;  %v6167_v13 = vor.u32 %v15169_v24, %v15167_v35  ;;  %v6175_v55 = vor.u32 %v15205_v46, %v15188_v63 }
 0x5c9   : > { %v6340_v40 = vor.u32 %v6339_v5, %v6335_v51  ;;  %v6430_v22 = vshrl.u32 %v6006_v20, 16  ;;  %v6007_v43 = vpack.c.bf16 %v5826_v32, %v5826_v32  ;;  %v6184_v53 = vor.u32 %v15165_v59, %v15157_v52 }
 0x5ca   : > { %v6192_v27 = vor.u32 %v15177_v30, %v15175_v37  ;;  %v6433_v19 = vshll.u32 %v6006_v20, 16  ;;  %v6347_v1 = vrot.slane %v6345_v54, 1  ;;  %v15296_v11 = vsel %vm398_vm0, %v6167_v13, %v6175_v55  ;;  %v10182_v13 = vpop.f32.mrf.mxu1 }
 0x5cb   : > { %v15293_v29 = vsel %vm679_vm1, %v6340_v40, %v16393_v21  ;;  %v6263_v35 = vshrl.u32 %v6004_v38, 16  ;;  %v6266_v24 = vshll.u32 %v6004_v38, 16  ;;  %v6271_v63 = vshrl.u32 %v6005_v62, 16 }
 0x5cc   : > { %7136 = vmatmul.mubr.bf16.gmra.mxu0 %v15293_v29  ;;  %v15300_v32 = vsel %vm398_vm0, %v6184_v53, %v6192_v27  ;;  %v6274_v52 = vshll.u32 %v6005_v62, 16  ;;  %v6343_v59 = vshrl.u32 %v15081_v60, 16  ;;  %v6201_v37 = vor.u32 %v15221_v17, %v15215_v48 }
 0x5cd   : > { %7143 = vmatprep.mubr.bf16.mxu0 %v15280_v28  ;;  %6991 = vmatmul.mubr.bf16.gmra.mxu1 %v15280_v28  ;;  %v6209_v30 = vor.u32 %v15238_v36, %v15230_v16  ;;  %v6438_v46 = vshrl.u32 %v6007_v43, 16  ;;  %v6441_v2 = vshll.u32 %v6007_v43, 16  ;;  %v6218_v44 = vor.u32 %v15209_v18, %v15207_v14 }
 0x5ce   : > { %6998 = vmatprep.mubr.bf16.mxu1 %v15127_v45  ;;  %v6226_v6 = vor.u32 %v15228_v61, %v15223_v31  ;;  %v6432_v47 = vrot.slane %v6430_v22, 3  ;;  %v6348_v41 = vor.u32 %v6347_v1, %v6343_v59  ;;  %v6353_v20 = vshll.u32 %v15065_v57, 16  ;;  %v10183_v22 = vpop.f32.mrf.mxu1 }
 0x5cf   : > { %v15316_v42 = vsel %vm398_vm0, %v6201_v37, %v6209_v30  ;;  %v6435_v48 = vrot.slane %v6433_v19, 4  ;;  %v6265_v17 = vrot.slane %v6263_v35, 3  ;;  %v6268_v16 = vrot.slane %v6266_v24, 4 }
 0x5d0   : > { %v15319_v36 = vsel %vm398_vm0, %v6218_v44, %v6226_v6  ;;  %v6273_v56 = vrot.slane %v6271_v63, 3  ;;  %v6276_v38 = vrot.slane %v6274_v52, 4  ;;  %v6235_v14 = vor.u32 %v15264_v39, %v15262_v4 }
 0x5d1   : > { %v6243_v18 = vor.u32 %v6242_v23, %v6239_v12  ;;  %v6440_v31 = vrot.slane %v6438_v46, 3  ;;  %v6443_v61 = vrot.slane %v6441_v2, 4  ;;  %v6252_v51 = vor.u32 %v15248_v26, %v15246_v8 }
 0x5d2   : > { %v6260_v5 = vor.u32 %v6259_v9, %v15269_v25  ;;  %v15328_v62 = vsel %vm679_vm1, %v6348_v41, %v16393_v21  ;;  %v6355_v54 = vrot.slane %v6353_v20, 1  ;;  %v6351_v8 = vshrl.u32 %v15065_v57, 16 }
 0x5d3   : > { %v15331_v40 = vsel %vm398_vm0, %v6235_v14, %v6243_v18  ;;  %v6269_v26 = vor.u32 %v6268_v16, %v6265_v17  ;;  %v6277_v39 = vor.u32 %v6276_v38, %v6273_v56  ;;  %v6436_v25 = vor.u32 %v6435_v48, %v6432_v47  ;;  %v16404_v17 = vld [vmem:[#allocation14_spill] sm:$0xff] }
 0x5d4   : > { %7144 = vmatmul.mubr.bf16.gmra.mxu0 %v15328_v62  ;;  %v15335_v4 = vsel %vm398_vm0, %v6252_v51, %v6260_v5  ;;  %v6444_v9 = vor.u32 %v6443_v61, %v6440_v31  ;;  %v6356_v12 = vor.u32 %v6355_v54, %v6351_v8  ;;  %v6361_v23 = vshll.u32 %v15127_v45, 16 }
 0x5d5   : > { %7151 = vmatprep.mubr.bf16.mxu0 %v15296_v11  ;;  %6999 = vmatmul.mubr.bf16.gmra.mxu1 %v15296_v11  ;;  %v15343_v55 = vsel %vm398_vm0, %v6269_v26, %v6277_v39  ;;  %v15348_v53 = vadd.f32 %v10183_v22, %v10182_v13  ;;  %v6359_v1 = vshrl.u32 %v15127_v45, 16  ;;  %v6369_v24 = vshll.u32 %v15109_v7, 16  ;;  %v16405_v13 = vld [vmem:[#allocation6_spill] sm:$0xff]  ;;  %v16407_v22 = vld [vmem:[#allocation15_spill] sm:$0xff] }
 0x5d6   : > { %7006 = vmatprep.mubr.bf16.mxu1 %v15109_v7  ;;  %v15346_v43 = vsel %vm398_vm0, %v6436_v25, %v6444_v9  ;;  %v15352_v27 = vsel %vm679_vm1, %v6356_v12, %v16393_v21  ;;  %v6363_v19 = vrot.slane %v6361_v23, 1  ;;  %v6367_v59 = vshrl.u32 %v15109_v7, 16  ;;  %v11122_v9 = vld [vmem:[%s15979_s1 + $0x8f0] sm:$0xff]   ;;  %v16406_v12 = vld [vmem:[#allocation17_spill] sm:$0xff] }
 0x5d7   : > { %v6371_v52 = vrot.slane %v6369_v24, 1  ;;  %v6377_v30 = vshll.u32 %v15181_v50, 16  ;;  %v6375_v44 = vshrl.u32 %v15181_v50, 16  ;;  %v6385_v47 = vshll.u32 %v15152_v0, 16 }
 0x5d8   : > { %v6364_v35 = vor.u32 %v6363_v19, %v6359_v1  ;;  %v6383_v48 = vshrl.u32 %v15152_v0, 16  ;;  %v6393_v56 = vshll.u32 %v15219_v34, 16  ;;  %v6391_v18 = vshrl.u32 %v15219_v34, 16  ;;  %v16408_v19 = vld [vmem:[#allocation18_spill] sm:$0xff] }
 0x5d9   : > { %v6372_v37 = vor.u32 %v6371_v52, %v6367_v59  ;;  %v6379_v2 = vrot.slane %v6377_v30, 1  ;;  %v6387_v20 = vrot.slane %v6385_v47, 1  ;;  %v6401_v61 = vshll.u32 %v16404_v17, 16  ;;  %v11124_v52 = vld [vmem:[%s15979_s1 + $0x8e0] sm:$0xff]   ;;  %v16409_v59 = vld [vmem:[#allocation4_spill] sm:$0xff]  ;;  %v11125_v30 = vld [vmem:[%s15979_s1 + $0x8d8] sm:$0xff]  }
 0x5da   : > { %v15362_v63 = vsel %vm679_vm1, %v6364_v35, %v16393_v21  ;;  %v6395_v14 = vrot.slane %v6393_v56, 1  ;;  %v6399_v54 = vshrl.u32 %v16404_v17, 16  ;;  %v6409_v26 = vshll.u32 %v15260_v49, 16  ;;  %v11123_v35 = vld [vmem:[%s15979_s1 + $0x8e8] sm:$0xff]   ;;  %v16413_v47 = vld [vmem:[#allocation12_spill] sm:$0xff]  ;;  %v16415_v56 = vld [vmem:[#allocation33_spill] sm:$0xff] }
 0x5db   : > { %v15372_v46 = vsel %vm679_vm1, %v6372_v37, %v16393_v21  ;;  %v6380_v6 = vor.u32 %v6379_v2, %v6375_v44  ;;  %v6388_v16 = vor.u32 %v6387_v20, %v6383_v48  ;;  %v6403_v5 = vrot.slane %v6401_v61, 1  ;;  %v16410_v37 = vld [vmem:[#allocation34_spill] sm:$0xff]  ;;  %v11126_v2 = vld [vmem:[%s15979_s1 + $0x8d0] sm:$0xff]   ;;  %v11127_v20 = vld [vmem:[%s15979_s1 + $0x8c8] sm:$0xff]  }
 0x5dc   : > { %7152 = vmatmul.mubr.bf16.gmra.mxu0 %v15352_v27  ;;  %v6396_v31 = vor.u32 %v6395_v14, %v6391_v18  ;;  %v6411_v25 = vrot.slane %v6409_v26, 1  ;;  %v6407_v23 = vshrl.u32 %v15260_v49, 16  ;;  %v16411_v44 = vld [vmem:[#allocation36_spill] sm:$0xff]  ;;  %v11128_v48 = vld [vmem:[%s15979_s1 + $0x8c0] sm:$0xff]   ;;  %v16416_v14 = vld [vmem:[#allocation9_spill] sm:$0xff] }
 0x5dd   : > { %7159 = vmatprep.mubr.bf16.mxu0 %v15300_v32  ;;  %7007 = vmatmul.mubr.bf16.gmra.mxu1 %v15300_v32  ;;  %v15382_v41 = vsel %vm679_vm1, %v6380_v6, %v16393_v21  ;;  %v15392_v38 = vsel %vm679_vm1, %v6388_v16, %v16393_v21  ;;  %v6404_v8 = vor.u32 %v6403_v5, %v6399_v54  ;;  %v16412_v6 = vld [vmem:[#allocation19_spill] sm:$0xff]  ;;  %v16414_v16 = vld [vmem:[#allocation21_spill] sm:$0xff] }
 0x5de   : > { %7014 = vmatprep.mubr.bf16.mxu1 %v15181_v50  ;;  %v15402_v51 = vsel %vm679_vm1, %v6396_v31, %v16393_v21  ;;  %v6412_v1 = vor.u32 %v6411_v25, %v6407_v23  ;;  %v16417_v18 = vld [vmem:[#allocation35_spill] sm:$0xff]  ;;  %v16418_v31 = vld [vmem:[#allocation5_spill] sm:$0xff] }
 0x5df   : > { %v15412_v39 = vsel %vm679_vm1, %v6404_v8, %v16393_v21 }
 0x5e0   : > { %v15428_v24 = vsel %vm679_vm1, %v6412_v1, %v16393_v21 }
 0x5e4   : > { %7160 = vmatmul.mubr.bf16.gmra.mxu0 %v15362_v63 }
 0x5e5   : > { %7167 = vmatprep.mubr.bf16.mxu0 %v15316_v42  ;;  %7015 = vmatmul.mubr.bf16.gmra.mxu1 %v15316_v42 }
 0x5e6   : > { %7022 = vmatprep.mubr.bf16.mxu1 %v15152_v0 }
 0x5ec   : > { %7168 = vmatmul.mubr.bf16.gmra.mxu0 %v15372_v46 }
 0x5ed   : > { %7175 = vmatprep.mubr.bf16.mxu0 %v15319_v36  ;;  %7023 = vmatmul.mubr.bf16.gmra.mxu1 %v15319_v36 }
 0x5ee   : > { %7030 = vmatprep.mubr.bf16.mxu1 %v15219_v34 }
 0x5f4   : > { %7176 = vmatmul.mubr.bf16.gmra.mxu0 %v15382_v41 }
 0x5f5   : > { %7183 = vmatprep.mubr.bf16.mxu0 %v15331_v40  ;;  %7031 = vmatmul.mubr.bf16.gmra.mxu1 %v15331_v40 }
 0x5f6   : > { %7038 = vmatprep.mubr.bf16.mxu1 %v16404_v17 }
 0x5fc   : > { %7184 = vmatmul.mubr.bf16.gmra.mxu0 %v15392_v38 }
 0x5fd   : > { %7191 = vmatprep.mubr.bf16.mxu0 %v15335_v4  ;;  %7039 = vmatmul.mubr.bf16.gmra.mxu1 %v15335_v4 }
 0x5fe   : > { %7046 = vmatprep.mubr.bf16.mxu1 %v15260_v49 }
 0x604   : > { %7192 = vmatmul.mubr.bf16.gmra.mxu0 %v15402_v51 }
 0x605   : > { %7199 = vmatprep.mubr.bf16.mxu0 %v15343_v55  ;;  %7047 = vmatmul.mubr.bf16.gmra.mxu1 %v15343_v55 }
 0x606   : > { %7248 = vmatprep.mubr.bf16.mxu1 %v16405_v13 }
 0x60c   : > { %7200 = vmatmul.mubr.bf16.gmra.mxu0 %v15412_v39 }
 0x60d   : > { %7207 = vmatprep.mubr.bf16.mxu0 %v15346_v43  ;;  %7249 = vmatmul.mubr.bf16.vlgmr.msra.gmra.mxu1 %v16406_v12 }
 0x60e   : > { %7256 = vmatprep.mubr.bf16.mxu1 %v16407_v22  ;;  %10783 = vmatpush3.bf16.msra.mxu1 %v16408_v19 }
 0x60f   : > { %10784 = vmatprep.subr.bf16.mxu1 %v11122_v9 }
 0x612   : > { %10785 = vmatpush3.bf16.msra.mxu1 %v11122_v9 }
 0x613   : > { %10786 = vmatprep.subr.bf16.mxu1 %v11123_v35 }
 0x614   : > { %7208 = vmatmul.mubr.bf16.gmra.mxu0 %v15428_v24 }
 0x615   : > { %7409 = vmatprep.mubr.bf16.mxu0 %v16409_v59  ;;  %7257 = vmatmul.mubr.bf16.gmra.mxu1 %v16409_v59 }
 0x616   : > { %7264 = vmatprep.mubr.bf16.mxu1 %v16410_v37  ;;  %10787 = vmatpush3.bf16.msra.mxu1 %v11123_v35 }
 0x617   : > { %10788 = vmatprep.subr.bf16.mxu1 %v11124_v52 }
 0x61a   : > { %10789 = vmatpush3.bf16.msra.mxu1 %v11124_v52 }
 0x61b   : > { %10790 = vmatprep.subr.bf16.mxu1 %v11125_v30 }
 0x61c   : > { %7410 = vmatmul.mubr.bf16.vlgmr.msra.gmra.mxu0 %v16411_v44 }
 0x61d   : > { %7417 = vmatprep.mubr.bf16.mxu0 %v16412_v6  ;;  %7265 = vmatmul.mubr.bf16.gmra.mxu1 %v16412_v6 }
 0x61e   : > { %7272 = vmatprep.mubr.bf16.mxu1 %v16413_v47  ;;  %10791 = vmatpush3.bf16.msra.mxu1 %v11125_v30 }
 0x61f   : > { %10792 = vmatprep.subr.bf16.mxu1 %v11126_v2 }
 0x622   : > { %10793 = vmatpush3.bf16.msra.mxu1 %v11126_v2 }
 0x623   : > { %10794 = vmatprep.subr.bf16.mxu1 %v11127_v20 }
 0x624   : > { %7418 = vmatmul.mubr.bf16.gmra.mxu0 %v16414_v16 }
 0x625   : > { %7425 = vmatprep.mubr.bf16.mxu0 %v16415_v56  ;;  %7273 = vmatmul.mubr.bf16.gmra.mxu1 %v16415_v56 }
 0x626   : > { %7280 = vmatprep.mubr.bf16.mxu1 %v15252_v3  ;;  %10795 = vmatpush3.bf16.msra.mxu1 %v11127_v20 }
 0x627   : > { %10796 = vmatprep.subr.bf16.mxu1 %v11128_v48 }
 0x62a   : > { %10797 = vmatpush3.bf16.msra.mxu1 %v11128_v48 }
 0x62c   : > { %7426 = vmatmul.mubr.bf16.gmra.mxu0 %v16416_v14 }
 0x62d   : > { %7433 = vmatprep.mubr.bf16.mxu0 %v15026_v58  ;;  %7281 = vmatmul.mubr.bf16.gmra.mxu1 %v15026_v58 }
 0x62e   : > { %7288 = vmatprep.mubr.bf16.mxu1 %v15293_v29 }
 0x634   : > { %7434 = vmatmul.mubr.bf16.gmra.mxu0 %v16417_v18 }
 0x635   : > { %7441 = vmatprep.mubr.bf16.mxu0 %v15019_v15  ;;  %7289 = vmatmul.mubr.bf16.gmra.mxu1 %v15019_v15  ;;  %v10185_v15 = vpop.f32.mrf.mxu1 }
 0x636   : > { %7296 = vmatprep.mubr.bf16.mxu1 %v15328_v62 }
 0x637   : > { %v10186_v58 = vpop.f32.mrf.mxu1 }
 0x63c   : > { %7442 = vmatmul.mubr.bf16.gmra.mxu0 %v16418_v31 }
 0x63d   : > { %7449 = vmatprep.mubr.bf16.mxu0 %v15081_v60  ;;  %7297 = vmatmul.mubr.bf16.gmra.mxu1 %v15081_v60 }
 0x63e   : > { %7304 = vmatprep.mubr.bf16.mxu1 %v15352_v27 }
 0x644   : > { %7450 = vmatmul.mubr.bf16.gmra.mxu0 %v15258_v33 }
 0x645   : > { %7457 = vmatprep.mubr.bf16.mxu0 %v15065_v57  ;;  %7305 = vmatmul.mubr.bf16.gmra.mxu1 %v15065_v57  ;;  %v15483_v57 = vld [vmem:[%s15980_s2 + $0x3] ss:$0 sm:$0xff] }
 0x646   : > { %7312 = vmatprep.mubr.bf16.mxu1 %v15362_v63  ;;  %v6929_v5 = vadd.f32 %v15348_v53, %v15483_v57 }
 0x64c   : > { %7458 = vmatmul.mubr.bf16.gmra.mxu0 %v15280_v28 }
 0x64d   : > { %7465 = vmatprep.mubr.bf16.mxu0 %v15127_v45  ;;  %7313 = vmatmul.mubr.bf16.gmra.mxu1 %v15127_v45 }
 0x64e   : > { %7320 = vmatprep.mubr.bf16.mxu1 %v15372_v46 }
 0x654   : > { %7466 = vmatmul.mubr.bf16.gmra.mxu0 %v15296_v11  ;;  %v10187_v11 = vadd.f32 %v10186_v58, %v10185_v15 }
 0x655   : > { %7473 = vmatprep.mubr.bf16.mxu0 %v15109_v7  ;;  %v10188_v60 = vpop.f32.mrf.mxu1  ;;  %7321 = vmatmul.mubr.bf16.gmra.mxu1 %v15109_v7 }
 0x656   : > { %v10294_v33 = vpop.f32.mrf.mxu0  ;;  %7328 = vmatprep.mubr.bf16.mxu1 %v15382_v41  ;;  %v6932_v12 = vadd.f32 %v10187_v11, %v15483_v57 }
 0x657   : > { %v10189_v45 = vpop.f32.mrf.mxu1 }
 0x658   : > { %v10190_v28 = vadd.f32 %v10189_v45, %v10188_v60  ;;  %v10295_v61 = vpop.f32.mrf.mxu0 }
 0x659   : > { %v10296_v54 = vadd.f32 %v10295_v61, %v10294_v33  ;;  %v10191_v13 = vpop.f32.mrf.mxu1 }
 0x65a   : > { %v10297_v8 = vpop.f32.mrf.mxu0 }
 0x65b   : > { %v15488_v26 = vadd.f32 %v10296_v54, %v6929_v5  ;;  %v10192_v7 = vpop.f32.mrf.mxu1 }
 0x65c   : > { %7474 = vmatmul.mubr.bf16.gmra.mxu0 %v15300_v32  ;;  %v10193_v25 = vadd.f32 %v10192_v7, %v10191_v13  ;;  %v10298_v9 = vpop.f32.mrf.mxu0  ;;  %v6937_v32 = vadd.f32 %v10190_v28, %v15483_v57 }
 0x65d   : > { %7481 = vmatprep.mubr.bf16.mxu0 %v15181_v50  ;;  %v10299_v23 = vadd.f32 %v10298_v9, %v10297_v8  ;;  %v10194_v19 = vpop.f32.mrf.mxu1  ;;  %7329 = vmatmul.mubr.bf16.gmra.mxu1 %v15181_v50  ;;  %v6450_v9 = vshll.u32 %v15255_v10, 16 }
 0x65e   : > { %7336 = vmatprep.mubr.bf16.mxu1 %v15392_v38  ;;  %v6940_v56 = vadd.f32 %v10193_v25, %v15483_v57 }
 0x65f   : > { %v15495_v53 = vadd.f32 %v10299_v23, %v6932_v12  ;;  %v10300_v1 = vpop.f32.mrf.mxu0  ;;  %v10195_v35 = vpop.f32.mrf.mxu1 }
 0x660   : > { %v10196_v52 = vadd.f32 %v10195_v35, %v10194_v19  ;;  %v6452_v35 = vrot.slane %v6450_v9, 1 }
 0x661   : > { %v10301_v59 = vpop.f32.mrf.mxu0  ;;  %v10197_v30 = vpop.f32.mrf.mxu1 }
 0x662   : > { %v10302_v2 = vadd.f32 %v10301_v59, %v10300_v1  ;;  %v6945_v28 = vadd.f32 %v10196_v52, %v15483_v57 }
 0x663   : > { %v10303_v44 = vpop.f32.mrf.mxu0  ;;  %v10198_v6 = vpop.f32.mrf.mxu1 }
 0x664   : > { %7482 = vmatmul.mubr.bf16.gmra.mxu0 %v15316_v42  ;;  %v15499_v20 = vadd.f32 %v10302_v2, %v6937_v32  ;;  %v10199_v48 = vadd.f32 %v10198_v6, %v10197_v30  ;;  %v6448_v2 = vshrl.u32 %v15255_v10, 16 }
 0x665   : > { %7489 = vmatprep.mubr.bf16.mxu0 %v15152_v0  ;;  %v10304_v50 = vpop.f32.mrf.mxu0  ;;  %v10200_v16 = vpop.f32.mrf.mxu1  ;;  %7337 = vmatmul.mubr.bf16.gmra.mxu1 %v15152_v0 }
 0x666   : > { %v10305_v14 = vadd.f32 %v10304_v50, %v10303_v44  ;;  %7344 = vmatprep.mubr.bf16.mxu1 %v15402_v51  ;;  %v6453_v50 = vor.u32 %v6452_v35, %v6448_v2 }
 0x667   : > { %v10201_v18 = vpop.f32.mrf.mxu1 }
 0x668   : > { %v15505_v31 = vadd.f32 %v10305_v14, %v6940_v56  ;;  %v10202_v15 = vadd.f32 %v10201_v18, %v10200_v16 }
 0x669   : > { %v10203_v58 = vpop.f32.mrf.mxu1  ;;  %v10306_v42 = vpop.f32.mrf.mxu0 }
 0x66a   : > { %v6953_v59 = vadd.f32 %v10202_v15, %v15483_v57 }
 0x66b   : > { %v10204_v60 = vpop.f32.mrf.mxu1  ;;  %v10307_v33 = vpop.f32.mrf.mxu0 }
 0x66c   : > { %7490 = vmatmul.mubr.bf16.gmra.mxu0 %v15319_v36  ;;  %v10205_v45 = vadd.f32 %v10204_v60, %v10203_v58  ;;  %v10308_v0 = vadd.f32 %v10307_v33, %v10306_v42  ;;  %v6948_v36 = vadd.f32 %v10199_v48, %v15483_v57  ;;  %v15534_v60 = vsel %vm679_vm1, %v6453_v50, %v16393_v21 }
 0x66d   : > { %7497 = vmatprep.mubr.bf16.mxu0 %v15219_v34  ;;  %v10206_v61 = vpop.f32.mrf.mxu1  ;;  %7345 = vmatmul.mubr.bf16.gmra.mxu1 %v15219_v34  ;;  %v10309_v5 = vpop.f32.mrf.mxu0 }
 0x66e   : > { %7352 = vmatprep.mubr.bf16.mxu1 %v15412_v39  ;;  %v15512_v11 = vadd.f32 %v10308_v0, %v6945_v28  ;;  %v6956_v56 = vadd.f32 %v10205_v45, %v15483_v57 }
 0x66f   : > { %v10207_v54 = vpop.f32.mrf.mxu1  ;;  %v10310_v13 = vpop.f32.mrf.mxu0 }
 0x670   : > { %v10208_v8 = vadd.f32 %v10207_v54, %v10206_v61  ;;  %v10311_v7 = vadd.f32 %v10310_v13, %v10309_v5 }
 0x671   : > { %v10209_v25 = vpop.f32.mrf.mxu1 }
 0x672   : > { %v15516_v12 = vadd.f32 %v10311_v7, %v6948_v36  ;;  %v6961_v45 = vadd.f32 %v10208_v8, %v15483_v57 }
 0x673   : > { %v10210_v23 = vpop.f32.mrf.mxu1 }
 0x674   : > { %v10312_v19 = vpop.f32.mrf.mxu0  ;;  %7498 = vmatmul.mubr.bf16.gmra.mxu0 %v15331_v40  ;;  %v10211_v34 = vadd.f32 %v10210_v23, %v10209_v25 }
 0x675   : > { %7505 = vmatprep.mubr.bf16.mxu0 %v16404_v17  ;;  %v10212_v1 = vpop.f32.mrf.mxu1  ;;  %7353 = vmatmul.mubr.bf16.gmra.mxu1 %v16404_v17 }
 0x676   : > { %v10313_v52 = vpop.f32.mrf.mxu0  ;;  %7360 = vmatprep.mubr.bf16.mxu1 %v15428_v24  ;;  %v6964_v36 = vadd.f32 %v10211_v34, %v15483_v57 }
 0x677   : > { %v10314_v30 = vadd.f32 %v10313_v52, %v10312_v19  ;;  %v10213_v32 = vpop.f32.mrf.mxu1 }
 0x678   : > { %v10315_v44 = vpop.f32.mrf.mxu0  ;;  %v10214_v6 = vadd.f32 %v10213_v32, %v10212_v1 }
 0x679   : > { %v15524_v48 = vadd.f32 %v10314_v30, %v6953_v59  ;;  %v10215_v40 = vpop.f32.mrf.mxu1 }
 0x67a   : > { %v10316_v16 = vpop.f32.mrf.mxu0  ;;  %v6969_v1 = vadd.f32 %v10214_v6, %v15483_v57  ;;  %v16419_v6 = vmov 0.0|0.0  }
 0x67b   : > { %v10317_v17 = vadd.f32 %v10316_v16, %v10315_v44  ;;  %v10216_v14 = vpop.f32.mrf.mxu1 }
 0x67c   : > { %v10318_v18 = vpop.f32.mrf.mxu0  ;;  %7506 = vmatmul.mubr.bf16.gmra.mxu0 %v15335_v4  ;;  %v10217_v58 = vadd.f32 %v10216_v14, %v10215_v40 }
 0x67d   : > { %v15528_v15 = vadd.f32 %v10317_v17, %v6956_v56  ;;  %7513 = vmatprep.mubr.bf16.mxu0 %v15260_v49  ;;  %v10218_v42 = vpop.f32.mrf.mxu1  ;;  %7361 = vmatmul.mubr.bf16.gmra.mxu1 %v15260_v49 }
 0x67e   : > { %v10319_v33 = vpop.f32.mrf.mxu0  ;;  %7368 = vmatprep.mubr.bf16.mxu1 %v15534_v60  ;;  %v6972_v2 = vadd.f32 %v10217_v58, %v15483_v57 }
 0x67f   : > { %v10320_v28 = vadd.f32 %v10319_v33, %v10318_v18  ;;  %v10219_v0 = vpop.f32.mrf.mxu1 }
 0x680   : > { %v10321_v4 = vpop.f32.mrf.mxu0  ;;  %v10220_v61 = vadd.f32 %v10219_v0, %v10218_v42 }
 0x681   : > { %v15538_v5 = vadd.f32 %v10320_v28, %v6961_v45  ;;  %v10221_v54 = vpop.f32.mrf.mxu1 }
 0x682   : > { %v10322_v13 = vpop.f32.mrf.mxu0  ;;  %v6977_v17 = vadd.f32 %v10220_v61, %v15483_v57 }
 0x683   : > { %v10323_v49 = vadd.f32 %v10322_v13, %v10321_v4  ;;  %v10222_v7 = vpop.f32.mrf.mxu1  ;;  %v16420_v13 = vld [vmem:[#allocation2_spill] sm:$0xff] }
 0x684   : > { %v10324_v25 = vpop.f32.mrf.mxu0  ;;  %7514 = vmatmul.mubr.bf16.gmra.mxu0 %v15343_v55  ;;  %v10223_v9 = vadd.f32 %v10222_v7, %v10221_v54 }
 0x685   : > { %v15542_v23 = vadd.f32 %v10323_v49, %v6964_v36  ;;  %7521 = vmatprep.mubr.bf16.mxu0 %v15255_v10  ;;  %v10224_v8 = vpop.f32.mrf.mxu1  ;;  %7369 = vmatmul.mubr.bf16.gmra.mxu1 %v15255_v10 }
 0x686   : > { %v10325_v19 = vpop.f32.mrf.mxu0  ;;  %10798 = vmatprep.mubr.bf16.mxu1 %v16407_v22  ;;  %v6980_v28 = vadd.f32 %v10223_v9, %v15483_v57 }
 0x687   : > { %v10326_v35 = vadd.f32 %v10325_v19, %v10324_v25  ;;  %v10225_v34 = vpop.f32.mrf.mxu1 }
 0x688   : > { %v10327_v52 = vpop.f32.mrf.mxu0  ;;  %v10226_v59 = vadd.f32 %v10225_v34, %v10224_v8 }
 0x689   : > { %v15548_v30 = vadd.f32 %v10326_v35, %v6969_v1  ;;  %v10227_v55 = vpop.f32.mrf.mxu1 }
 0x68a   : > { %v10328_v32 = vpop.f32.mrf.mxu0  ;;  %v6985_v49 = vadd.f32 %v10226_v59, %v15483_v57 }
 0x68b   : > { %v10329_v44 = vadd.f32 %v10328_v32, %v10327_v52  ;;  %v10228_v40 = vpop.f32.mrf.mxu1 }
 0x68c   : > { %v10330_v50 = vpop.f32.mrf.mxu0  ;;  %7522 = vmatmul.mubr.bf16.gmra.mxu0 %v15346_v43  ;;  %v10229_v10 = vadd.f32 %v10228_v40, %v10227_v55 }
 0x68d   : > { %v15552_v16 = vadd.f32 %v10329_v44, %v6972_v2  ;;  %v10230_v22 = vpop.f32.mrf.mxu1  ;;  %7529 = vmatprep.mubr.bf16.mxu0 %v16419_v6  ;;  %10799 = vmatmul.mubr.bf16.vlgmr.msra.gmra.mxu1 %v16410_v37 }
 0x68e   : > { %v10331_v56 = vpop.f32.mrf.mxu0  ;;  %10802 = vmatprep.mubr.bf16.mxu1 %v16413_v47  ;;  %v6988_v34 = vadd.f32 %v10229_v10, %v15483_v57 }
 0x68f   : > { %v10332_v14 = vadd.f32 %v10331_v56, %v10330_v50  ;;  %v10231_v18 = vpop.f32.mrf.mxu1 }
 0x690   : > { %v10333_v58 = vpop.f32.mrf.mxu0  ;;  %v10232_v42 = vadd.f32 %v10231_v18, %v10230_v22 }
 0x691   : > { %v15558_v33 = vadd.f32 %v10332_v14, %v6977_v17  ;;  %v10233_v43 = vpop.f32.mrf.mxu1 }
 0x692   : > { %v10334_v45 = vpop.f32.mrf.mxu0  ;;  %v6993_v59 = vadd.f32 %v10232_v42, %v15483_v57 }
 0x693   : > { %v10335_v0 = vadd.f32 %v10334_v45, %v10333_v58  ;;  %v10234_v4 = vpop.f32.mrf.mxu1 }
 0x694   : > { %v10336_v54 = vpop.f32.mrf.mxu0  ;;  %7530 = vmatmul.mubr.bf16.gmra.mxu0 %v16420_v13  ;;  %v10235_v37 = vadd.f32 %v10234_v4, %v10233_v43 }
 0x695   : > { %v15562_v36 = vadd.f32 %v10335_v0, %v6980_v28  ;;  %v10236_v47 = vpop.f32.mrf.mxu1  ;;  %10803 = vmatmul.mubr.bf16.gmra.mxu1 %v15252_v3 }
 0x696   : > { %v10337_v61 = vpop.f32.mrf.mxu0  ;;  %10806 = vmatprep.mubr.bf16.mxu1 %v15293_v29  ;;  %v6996_v14 = vadd.f32 %v10235_v37, %v15483_v57 }
 0x697   : > { %v10338_v7 = vadd.f32 %v10337_v61, %v10336_v54  ;;  %v10237_v25 = vpop.f32.mrf.mxu1 }
 0x698   : > { %v10339_v8 = vpop.f32.mrf.mxu0  ;;  %v10238_v9 = vadd.f32 %v10237_v25, %v10236_v47 }
 0x699   : > { %v15567_v19 = vadd.f32 %v10338_v7, %v6985_v49  ;;  %v10239_v1 = vpop.f32.mrf.mxu1 }
 0x69a   : > { %v10340_v35 = vpop.f32.mrf.mxu0  ;;  %v7001_v42 = vadd.f32 %v10238_v9, %v15483_v57 }
 0x69b   : > { %v10341_v52 = vadd.f32 %v10340_v35, %v10339_v8  ;;  %v10240_v55 = vpop.f32.mrf.mxu1 }
 0x69c   : > { %v10342_v32 = vpop.f32.mrf.mxu0  ;;  %v10241_v2 = vadd.f32 %v10240_v55, %v10239_v1 }
 0x69d   : > { %v15570_v3 = vadd.f32 %v10341_v52, %v6988_v34  ;;  %v10242_v44 = vpop.f32.mrf.mxu1  ;;  %10807 = vmatmul.mubr.bf16.gmra.mxu1 %v15328_v62 }
 0x69e   : > { %v10343_v29 = vpop.f32.mrf.mxu0  ;;  %10810 = vmatprep.mubr.bf16.mxu1 %v15352_v27  ;;  %v7004_v49 = vadd.f32 %v10241_v2, %v15483_v57 }
 0x69f   : > { %v10344_v40 = vadd.f32 %v10343_v29, %v10342_v32  ;;  %v10243_v50 = vpop.f32.mrf.mxu1 }
 0x6a0   : > { %v10345_v22 = vpop.f32.mrf.mxu0  ;;  %v10244_v6 = vadd.f32 %v10243_v50, %v10242_v44 }
 0x6a1   : > { %v15575_v56 = vadd.f32 %v10344_v40, %v6993_v59  ;;  %v10245_v10 = vpop.f32.mrf.mxu1 }
 0x6a2   : > { %v10346_v17 = vpop.f32.mrf.mxu0  ;;  %v7009_v9 = vadd.f32 %v10244_v6, %v15483_v57 }
 0x6a3   : > { %v10347_v18 = vadd.f32 %v10346_v17, %v10345_v22  ;;  %v10246_v58 = vpop.f32.mrf.mxu1 }
 0x6a4   : > { %v10348_v43 = vpop.f32.mrf.mxu0  ;;  %v10247_v45 = vadd.f32 %v10246_v58, %v10245_v10 }
 0x6a5   : > { %v15578_v62 = vadd.f32 %v10347_v18, %v6996_v14  ;;  %v10248_v28 = vpop.f32.mrf.mxu1  ;;  %10811 = vmatmul.mubr.bf16.gmra.mxu1 %v15362_v63 }
 0x6a6   : > { %v10349_v27 = vpop.f32.mrf.mxu0  ;;  %10814 = vmatprep.mubr.bf16.mxu1 %v15372_v46  ;;  %v7012_v59 = vadd.f32 %v10247_v45, %v15483_v57 }
 0x6a7   : > { %v10350_v0 = vadd.f32 %v10349_v27, %v10348_v43  ;;  %v10249_v4 = vpop.f32.mrf.mxu1 }
 0x6a8   : > { %v10351_v54 = vpop.f32.mrf.mxu0  ;;  %v10250_v13 = vadd.f32 %v10249_v4, %v10248_v28 }
 0x6a9   : > { %v15583_v47 = vadd.f32 %v10350_v0, %v7001_v42  ;;  %v10251_v37 = vpop.f32.mrf.mxu1 }
 0x6aa   : > { %v10352_v61 = vpop.f32.mrf.mxu0  ;;  %v7017_v6 = vadd.f32 %v10250_v13, %v15483_v57 }
 0x6ab   : > { %v10353_v7 = vadd.f32 %v10352_v61, %v10351_v54  ;;  %v10252_v25 = vpop.f32.mrf.mxu1 }
 0x6ac   : > { %v10354_v8 = vpop.f32.mrf.mxu0  ;;  %v10253_v1 = vadd.f32 %v10252_v25, %v10251_v37 }
 0x6ad   : > { %v15586_v63 = vadd.f32 %v10353_v7, %v7004_v49  ;;  %v10254_v35 = vpop.f32.mrf.mxu1  ;;  %10815 = vmatmul.mubr.bf16.gmra.mxu1 %v15382_v41 }
 0x6ae   : > { %v10355_v46 = vpop.f32.mrf.mxu0  ;;  %10818 = vmatprep.mubr.bf16.mxu1 %v15392_v38  ;;  %v7020_v42 = vadd.f32 %v10253_v1, %v15483_v57 }
 0x6af   : > { %v10356_v34 = vadd.f32 %v10355_v46, %v10354_v8  ;;  %v10255_v52 = vpop.f32.mrf.mxu1 }
 0x6b0   : > { %v10357_v55 = vpop.f32.mrf.mxu0  ;;  %v10256_v32 = vadd.f32 %v10255_v52, %v10254_v35 }
 0x6b1   : > { %v15591_v44 = vadd.f32 %v10356_v34, %v7009_v9  ;;  %v10257_v2 = vpop.f32.mrf.mxu1 }
 0x6b2   : > { %v10358_v29 = vpop.f32.mrf.mxu0  ;;  %v7025_v13 = vadd.f32 %v10256_v32, %v15483_v57 }
 0x6b3   : > { %v10359_v40 = vadd.f32 %v10358_v29, %v10357_v55  ;;  %v10258_v50 = vpop.f32.mrf.mxu1 }
 0x6b4   : > { %v10360_v22 = vpop.f32.mrf.mxu0  ;;  %v10259_v10 = vadd.f32 %v10258_v50, %v10257_v2 }
 0x6b5   : > { %v15594_v41 = vadd.f32 %v10359_v40, %v7012_v59  ;;  %v10260_v17 = vpop.f32.mrf.mxu1  ;;  %10819 = vmatmul.mubr.bf16.gmra.mxu1 %v15402_v51 }
 0x6b6   : > { %v10361_v38 = vpop.f32.mrf.mxu0  ;;  %10822 = vmatprep.mubr.bf16.mxu1 %v15412_v39  ;;  %v7028_v9 = vadd.f32 %v10259_v10, %v15483_v57 }
 0x6b7   : > { %v10362_v14 = vadd.f32 %v10361_v38, %v10360_v22  ;;  %v10261_v18 = vpop.f32.mrf.mxu1 }
 0x6b8   : > { %v10363_v58 = vpop.f32.mrf.mxu0  ;;  %v10262_v43 = vadd.f32 %v10261_v18, %v10260_v17 }
 0x6b9   : > { %v15599_v28 = vadd.f32 %v10362_v14, %v7017_v6  ;;  %v10263_v45 = vpop.f32.mrf.mxu1 }
 0x6ba   : > { %v10364_v27 = vpop.f32.mrf.mxu0  ;;  %v7033_v32 = vadd.f32 %v10262_v43, %v15483_v57 }
 0x6bb   : > { %v10365_v0 = vadd.f32 %v10364_v27, %v10363_v58  ;;  %v10264_v4 = vpop.f32.mrf.mxu1 }
 0x6bc   : > { %v10366_v54 = vpop.f32.mrf.mxu0  ;;  %v10265_v37 = vadd.f32 %v10264_v4, %v10263_v45 }
 0x6bd   : > { %v15602_v51 = vadd.f32 %v10365_v0, %v7020_v42  ;;  %v10266_v61 = vpop.f32.mrf.mxu1  ;;  %10823 = vmatmul.mubr.bf16.gmra.mxu1 %v15428_v24 }
 0x6be   : > { %v10367_v39 = vpop.f32.mrf.mxu0  ;;  %10826 = vmatprep.mubr.bf16.mxu1 %v15534_v60  ;;  %v7036_v6 = vadd.f32 %v10265_v37, %v15483_v57 }
 0x6bf   : > { %v10368_v49 = vadd.f32 %v10367_v39, %v10366_v54  ;;  %v10267_v7 = vpop.f32.mrf.mxu1 }
 0x6c0   : > { %v10369_v25 = vpop.f32.mrf.mxu0  ;;  %v10268_v8 = vadd.f32 %v10267_v7, %v10266_v61 }
 0x6c1   : > { %v15607_v35 = vadd.f32 %v10368_v49, %v7025_v13  ;;  %v10269_v1 = vpop.f32.mrf.mxu1 }
 0x6c2   : > { %v10370_v46 = vpop.f32.mrf.mxu0  ;;  %v7041_v43 = vadd.f32 %v10268_v8, %v15483_v57 }
 0x6c3   : > { %v10371_v34 = vadd.f32 %v10370_v46, %v10369_v25  ;;  %v10270_v52 = vpop.f32.mrf.mxu1 }
 0x6c4   : > { %v10372_v55 = vpop.f32.mrf.mxu0  ;;  %v10271_v2 = vadd.f32 %v10270_v52, %v10269_v1 }
 0x6c5   : > { %v15610_v24 = vadd.f32 %v10371_v34, %v7028_v9  ;;  %v10272_v29 = vpop.f32.mrf.mxu1  ;;  %10827 = vmatmul.mubr.bf16.gmra.mxu1 %v16393_v21 }
 0x6c6   : > { %v10373_v60 = vpop.f32.mrf.mxu0  ;;  %v7044_v7 = vadd.f32 %v10271_v2, %v15483_v57 }
 0x6c7   : > { %v10374_v59 = vadd.f32 %v10373_v60, %v10372_v55  ;;  %v10273_v40 = vpop.f32.mrf.mxu1 }
 0x6c8   : > { %v10375_v50 = vpop.f32.mrf.mxu0  ;;  %v10274_v22 = vadd.f32 %v10273_v40, %v10272_v29 }
 0x6c9   : > { %v15614_v17 = vadd.f32 %v10374_v59, %v7033_v32  ;;  %v10275_v38 = vpop.f32.mrf.mxu1 }
 0x6ca   : > { %v10376_v10 = vpop.f32.mrf.mxu0  ;;  %v7049_v29 = vadd.f32 %v10274_v22, %v15483_v57 }
 0x6cb   : > { %v10377_v14 = vadd.f32 %v10376_v10, %v10375_v50  ;;  %v10276_v18 = vpop.f32.mrf.mxu1 }
 0x6cc   : > { %v10378_v58 = vpop.f32.mrf.mxu0  ;;  %v10277_v45 = vadd.f32 %v10276_v18, %v10275_v38 }
 0x6cd   : > { %v15617_v27 = vadd.f32 %v10377_v14, %v7036_v6  ;;  %v10406_v21 = vpop.f32.mrf.mxu1 }
 0x6ce   : > { %v10379_v42 = vpop.f32.mrf.mxu0  ;;  %v7052_v10 = vadd.f32 %v10277_v45, %v15483_v57 }
 0x6cf   : > { %v10380_v0 = vadd.f32 %v10379_v42, %v10378_v58  ;;  %v10407_v4 = vpop.f32.mrf.mxu1 }
 0x6d0   : > { %v10381_v54 = vpop.f32.mrf.mxu0  ;;  %v10408_v61 = vadd.f32 %v10407_v4, %v10406_v21 }
 0x6d1   : > { %v15620_v39 = vadd.f32 %v10380_v0, %v7041_v43  ;;  %v10409_v13 = vpop.f32.mrf.mxu1 }
 0x6d2   : > { %v10382_v49 = vpop.f32.mrf.mxu0  ;;  %v7251_v37 = vadd.f32 %v10408_v61, %v15488_v26 }
 0x6d3   : > { %v10383_v25 = vadd.f32 %v10382_v49, %v10381_v54  ;;  %v10410_v1 = vpop.f32.mrf.mxu1 }
 0x6d4   : > { %v10384_v46 = vpop.f32.mrf.mxu0  ;;  %v10411_v9 = vadd.f32 %v10410_v1, %v10409_v13 }
 0x6d5   : > { %v15624_v34 = vadd.f32 %v10383_v25, %v7044_v7  ;;  %v10412_v52 = vpop.f32.mrf.mxu1 }
 0x6d6   : > { %v10385_v8 = vpop.f32.mrf.mxu0  ;;  %v7254_v55 = vadd.f32 %v10411_v9, %v15495_v53 }
 0x6d7   : > { %v10386_v60 = vadd.f32 %v10385_v8, %v10384_v46  ;;  %v10413_v32 = vpop.f32.mrf.mxu1 }
 0x6d8   : > { %v10387_v59 = vpop.f32.mrf.mxu0  ;;  %v10414_v40 = vadd.f32 %v10413_v32, %v10412_v52 }
 0x6d9   : > { %v15628_v50 = vadd.f32 %v10386_v60, %v7049_v29  ;;  %v10415_v26 = vpop.f32.mrf.mxu1 }
 0x6da   : > { %v10388_v2 = vpop.f32.mrf.mxu0  ;;  %v15631_v38 = vadd.f32 %v10414_v40, %v15499_v20 }
 0x6db   : > { %16421 = vst [vmem:[#allocation8_spill] sm:$0xff] %v15628_v50  ;;  %v10389_v6 = vadd.f32 %v10388_v2, %v10387_v59  ;;  %v10416_v14 = vpop.f32.mrf.mxu1 }
 0x6dc   : > { %v10518_v18 = vpop.f32.mrf.mxu0  ;;  %v10417_v58 = vadd.f32 %v10416_v14, %v10415_v26 }
 0x6dd   : > { %v15634_v53 = vadd.f32 %v10389_v6, %v7052_v10  ;;  %v10418_v22 = vpop.f32.mrf.mxu1 }
 0x6de   : > { %v10519_v21 = vpop.f32.mrf.mxu0  ;;  %v15637_v42 = vadd.f32 %v10417_v58, %v15505_v31 }
 0x6df   : > { %16422 = vst [vmem:[#allocation7_spill] sm:$0xff] %v15634_v53  ;;  %v10520_v43 = vadd.f32 %v10519_v21, %v10518_v18  ;;  %v10419_v0 = vpop.f32.mrf.mxu1 }
 0x6e0   : > { %v10521_v4 = vpop.f32.mrf.mxu0  ;;  %v10420_v54 = vadd.f32 %v10419_v0, %v10418_v22 }
 0x6e1   : > { %v10421_v61 = vpop.f32.mrf.mxu1  ;;  %v15639_v20 = vadd.f32 %v10520_v43, %v7251_v37 }
 0x6e2   : > { %v10522_v13 = vpop.f32.mrf.mxu0  ;;  %v15642_v57 = vadd.f32 %v10420_v54, %v15512_v11 }
 0x6e3   : > { %v10523_v45 = vadd.f32 %v10522_v13, %v10521_v4  ;;  %v10422_v49 = vpop.f32.mrf.mxu1 }
 0x6e4   : > { %v15644_v7 = vpop.f32.mrf.mxu0  ;;  %v10423_v25 = vadd.f32 %v10422_v49, %v10421_v61 }
 0x6e5   : > { %v10424_v1 = vpop.f32.mrf.mxu1  ;;  %v15646_v46 = vadd.f32 %v10523_v45, %v7254_v55 }
 0x6e6   : > { %v15648_v31 = vpop.f32.mrf.mxu0  ;;  %v15651_v9 = vadd.f32 %v10423_v25, %v15516_v12 }
 0x6e7   : > { %v10425_v52 = vpop.f32.mrf.mxu1 }
 0x6e8   : > { %v15653_v37 = vpop.f32.mrf.mxu0  ;;  %v10426_v8 = vadd.f32 %v10425_v52, %v10424_v1 }
 0x6e9   : > { %v10427_v29 = vpop.f32.mrf.mxu1 }
 0x6ea   : > { %v15655_v11 = vpop.f32.mrf.mxu0  ;;  %v15658_v60 = vadd.f32 %v10426_v8, %v15524_v48 }
 0x6eb   : > { %v10428_v32 = vpop.f32.mrf.mxu1 }
 0x6ec   : > { %v15660_v59 = vpop.f32.mrf.mxu0  ;;  %v10429_v55 = vadd.f32 %v10428_v32, %v10427_v29 }
 0x6ed   : > { %v10430_v40 = vpop.f32.mrf.mxu1 }
 0x6ee   : > { %v15662_v26 = vpop.f32.mrf.mxu0  ;;  %v15665_v12 = vadd.f32 %v10429_v55, %v15528_v15 }
 0x6ef   : > { %v10431_v2 = vpop.f32.mrf.mxu1 }
 0x6f0   : > { %v15667_v10 = vpop.f32.mrf.mxu0  ;;  %v10432_v6 = vadd.f32 %v10431_v2, %v10430_v40 }
 0x6f1   : > { %v10433_v14 = vpop.f32.mrf.mxu1 }
 0x6f2   : > { %v15669_v18 = vpop.f32.mrf.mxu0  ;;  %v15672_v48 = vadd.f32 %v10432_v6, %v15538_v5 }
 0x6f3   : > { %v10434_v58 = vpop.f32.mrf.mxu1 }
 0x6f4   : > { %v15674_v22 = vpop.f32.mrf.mxu0  ;;  %v10435_v21 = vadd.f32 %v10434_v58, %v10433_v14 }
 0x6f5   : > { %v10436_v43 = vpop.f32.mrf.mxu1 }
 0x6f6   : > { %v15676_v0 = vpop.f32.mrf.mxu0  ;;  %v15679_v15 = vadd.f32 %v10435_v21, %v15542_v23 }
 0x6f7   : > { %v10437_v4 = vpop.f32.mrf.mxu1 }
 0x6f8   : > { %v15681_v54 = vpop.f32.mrf.mxu0  ;;  %v10438_v61 = vadd.f32 %v10437_v4, %v10436_v43 }
 0x6f9   : > { %v10439_v13 = vpop.f32.mrf.mxu1 }
 0x6fa   : > { %v15683_v45 = vpop.f32.mrf.mxu0  ;;  %v15686_v5 = vadd.f32 %v10438_v61, %v15548_v30 }
 0x6fb   : > { %v10440_v49 = vpop.f32.mrf.mxu1 }
 0x6fc   : > { %v15688_v25 = vpop.f32.mrf.mxu0  ;;  %v10441_v1 = vadd.f32 %v10440_v49, %v10439_v13 }
 0x6fd   : > { %v10442_v52 = vpop.f32.mrf.mxu1 }
 0x6fe   : > { %v15690_v8 = vpop.f32.mrf.mxu0  ;;  %v15693_v23 = vadd.f32 %v10441_v1, %v15552_v16 }
 0x6ff   : > { %v10443_v29 = vpop.f32.mrf.mxu1 }
 0x700   : > { %v15695_v32 = vpop.f32.mrf.mxu0  ;;  %v10444_v55 = vadd.f32 %v10443_v29, %v10442_v52 }
 0x701   : > { %v10445_v40 = vpop.f32.mrf.mxu1 }
 0x702   : > { %v15697_v2 = vpop.f32.mrf.mxu0  ;;  %v15700_v30 = vadd.f32 %v10444_v55, %v15558_v33 }
 0x703   : > { %v10446_v6 = vpop.f32.mrf.mxu1 }
 0x704   : > { %16423 = vst [vmem:[#allocation20_spill] sm:$0xff] %v15700_v30  ;;  %v15702_v14 = vpop.f32.mrf.mxu0  ;;  %v10447_v58 = vadd.f32 %v10446_v6, %v10445_v40 }
 0x705   : > { %v10448_v21 = vpop.f32.mrf.mxu1 }
 0x706   : > { %v15704_v43 = vpop.f32.mrf.mxu0  ;;  %v15707_v16 = vadd.f32 %v10447_v58, %v15562_v36 }
 0x707   : > { %v10449_v4 = vpop.f32.mrf.mxu1 }
 0x708   : > { %16424 = vst [vmem:[#allocation26_spill] sm:$0xff] %v15707_v16  ;;  %v15709_v61 = vpop.f32.mrf.mxu0  ;;  %v10450_v13 = vadd.f32 %v10449_v4, %v10448_v21 }
 0x709   : > { %v10451_v49 = vpop.f32.mrf.mxu1 }
 0x70a   : > { %v15711_v1 = vpop.f32.mrf.mxu0  ;;  %v15714_v33 = vadd.f32 %v10450_v13, %v15567_v19 }
 0x70b   : > { %v10452_v52 = vpop.f32.mrf.mxu1 }
 0x70c   : > { %16425 = vst [vmem:[#allocation25_spill] sm:$0xff] %v15714_v33  ;;  %v15716_v29 = vpop.f32.mrf.mxu0  ;;  %v10453_v55 = vadd.f32 %v10452_v52, %v10451_v49 }
 0x70d   : > { %v10454_v40 = vpop.f32.mrf.mxu1 }
 0x70e   : > { %v15718_v6 = vpop.f32.mrf.mxu0  ;;  %v15721_v36 = vadd.f32 %v10453_v55, %v15570_v3 }
 0x70f   : > { %v10455_v58 = vpop.f32.mrf.mxu1 }
 0x710   : > { %16426 = vst [vmem:[#allocation24_spill] sm:$0xff] %v15721_v36  ;;  %v15723_v53 = vpop.f32.mrf.mxu0  ;;  %v10456_v21 = vadd.f32 %v10455_v58, %v10454_v40 }
 0x711   : > { %16427 = vst [vmem:[#allocation37_spill] sm:$0xff] %v15723_v53  ;;  %v10457_v4 = vpop.f32.mrf.mxu1 }
 0x712   : > { %v15725_v50 = vpop.f32.mrf.mxu0  ;;  %v15728_v19 = vadd.f32 %v10456_v21, %v15575_v56 }
 0x713   : > { %16428 = vst [vmem:[#allocation29_spill] sm:$0xff] %v15725_v50  ;;  %v10458_v13 = vpop.f32.mrf.mxu1 }
 0x714   : > { %16429 = vst [vmem:[#allocation10_spill] sm:$0xff] %v15728_v19  ;;  %v15730_v16 = vpop.f32.mrf.mxu0  ;;  %v10459_v49 = vadd.f32 %v10458_v13, %v10457_v4 }
 0x715   : > { %v10460_v52 = vpop.f32.mrf.mxu1 }
 0x716   : > { %v15732_v30 = vpop.f32.mrf.mxu0  ;;  %v15735_v3 = vadd.f32 %v10459_v49, %v15578_v62 }
 0x717   : > { %v10461_v55 = vpop.f32.mrf.mxu1 }
 0x718   : > { %16430 = vst [vmem:[#allocation11_spill] sm:$0xff] %v15735_v3  ;;  %v15737_v36 = vpop.f32.mrf.mxu0  ;;  %v10462_v40 = vadd.f32 %v10461_v55, %v10460_v52 }
 0x719   : > { %v10463_v58 = vpop.f32.mrf.mxu1 }
 0x71a   : > { %v15739_v53 = vpop.f32.mrf.mxu0  ;;  %v15742_v56 = vadd.f32 %v10462_v40, %v15583_v47 }
 0x71b   : > { %v10464_v21 = vpop.f32.mrf.mxu1 }
 0x71c   : > { %16431 = vst [vmem:[#allocation13_spill] sm:$0xff] %v15742_v56  ;;  %v15744_v19 = vpop.f32.mrf.mxu0  ;;  %v10465_v4 = vadd.f32 %v10464_v21, %v10463_v58 }
 0x71d   : > { %16432 = vst [vmem:[#allocation32_spill] sm:$0xff] %v15744_v19  ;;  %v10466_v13 = vpop.f32.mrf.mxu1 }
 0x71e   : > { %v15746_v50 = vpop.f32.mrf.mxu0  ;;  %v15749_v62 = vadd.f32 %v10465_v4, %v15586_v63 }
 0x71f   : > { %v10467_v49 = vpop.f32.mrf.mxu1 }
 0x720   : > { %16433 = vst [vmem:[#allocation31_spill] sm:$0xff] %v15749_v62  ;;  %v15751_v3 = vpop.f32.mrf.mxu0  ;;  %v10468_v52 = vadd.f32 %v10467_v49, %v10466_v13 }
 0x721   : > { %16434 = vst [vmem:[#allocation27_spill] sm:$0xff] %v15751_v3  ;;  %v10469_v55 = vpop.f32.mrf.mxu1 }
 0x722   : > { %v15753_v33 = vpop.f32.mrf.mxu0  ;;  %v15756_v47 = vadd.f32 %v10468_v52, %v15591_v44 }
 0x723   : > { %16435 = vst [vmem:[#allocation22_spill] sm:$0xff] %v15753_v33  ;;  %v10470_v40 = vpop.f32.mrf.mxu1 }
 0x724   : > { %16436 = vst [vmem:[#allocation23_spill] sm:$0xff] %v15756_v47  ;;  %v15758_v56 = vpop.f32.mrf.mxu0  ;;  %v10471_v58 = vadd.f32 %v10470_v40, %v10469_v55 }
 0x725   : > { %v10472_v21 = vpop.f32.mrf.mxu1 }
 0x726   : > { %v15760_v19 = vpop.f32.mrf.mxu0  ;;  %v15763_v63 = vadd.f32 %v10471_v58, %v15594_v41 }
 0x727   : > { %v10473_v4 = vpop.f32.mrf.mxu1 }
 0x728   : > { %16437 = vst [vmem:[#allocation28_spill] sm:$0xff] %v15763_v63  ;;  %v15765_v62 = vpop.f32.mrf.mxu0  ;;  %v10474_v13 = vadd.f32 %v10473_v4, %v10472_v21 }
 0x729   : > { %16438 = vst [vmem:[#allocation30_spill] sm:$0xff] %v15765_v62  ;;  %v10475_v49 = vpop.f32.mrf.mxu1 }
 0x72a   : > { %v15767_v3 = vpop.f32.mrf.mxu0  ;;  %v15770_v44 = vadd.f32 %v10474_v13, %v15599_v28 }
 0x72b   : > { %v10476_v52 = vpop.f32.mrf.mxu1 }
 0x72c   : > { %16439 = vst [vmem:[#allocation3_spill] sm:$0xff] %v15770_v44  ;;  %v15772_v47 = vpop.f32.mrf.mxu0  ;;  %v10477_v55 = vadd.f32 %v10476_v52, %v10475_v49 }
 0x72d   : > { %v10478_v40 = vpop.f32.mrf.mxu1 }
 0x72e   : > { %v15774_v33 = vpop.f32.mrf.mxu0  ;;  %v15777_v41 = vadd.f32 %v10477_v55, %v15602_v51 }
 0x72f   : > { %16440 = vst [vmem:[#allocation16_spill] sm:$0xff] %v15774_v33  ;;  %v10479_v58 = vpop.f32.mrf.mxu1 }
 0x730   : > { %16441 = vst [vmem:[#allocation14_spill] sm:$0xff] %v15777_v41  ;;  %v15779_v63 = vpop.f32.mrf.mxu0  ;;  %v10480_v21 = vadd.f32 %v10479_v58, %v10478_v40 }
 0x731   : > { %16442 = vst [vmem:[#allocation6_spill] sm:$0xff] %v15779_v63  ;;  %v10481_v4 = vpop.f32.mrf.mxu1 }
 0x732   : > { %v15781_v62 = vpop.f32.mrf.mxu0  ;;  %v15784_v28 = vadd.f32 %v10480_v21, %v15607_v35 }
 0x733   : > { %16443 = vst [vmem:[#allocation17_spill] sm:$0xff] %v15781_v62  ;;  %v10482_v13 = vpop.f32.mrf.mxu1 }
 0x734   : > { %16444 = vst [vmem:[#allocation15_spill] sm:$0xff] %v15784_v28  ;;  %v15786_v44 = vpop.f32.mrf.mxu0  ;;  %v10483_v49 = vadd.f32 %v10482_v13, %v10481_v4 }
 0x735   : > { %v10484_v52 = vpop.f32.mrf.mxu1 }
 0x736   : > { %v15789_v33 = vadd.f32 %v10483_v49, %v15610_v24  ;;  %v15791_v55 = vpop.f32.mrf.mxu0 }
 0x737   : > { %v10485_v51 = vpop.f32.mrf.mxu1 }
 0x738   : > { %16445 = vst [vmem:[#allocation18_spill] sm:$0xff] %v15789_v33  ;;  %v10486_v41 = vadd.f32 %v10485_v51, %v10484_v52  ;;  %v15796_v62 = vpop.f32.mrf.mxu0 }
 0x739   : > { %v10487_v63 = vpop.f32.mrf.mxu1 }
 0x73a   : > { %v15794_v40 = vadd.f32 %v10486_v41, %v15614_v17  ;;  %v15801_v13 = vpop.f32.mrf.mxu0 }
 0x73b   : > { %v10488_v58 = vpop.f32.mrf.mxu1 }
 0x73c   : > { %v10489_v35 = vadd.f32 %v10488_v58, %v10487_v63  ;;  %v15806_v51 = vpop.f32.mrf.mxu0 }
 0x73d   : > { %v10490_v21 = vpop.f32.mrf.mxu1 }
 0x73e   : > { %v15799_v28 = vadd.f32 %v10489_v35, %v15617_v27  ;;  %v10526_v27 = vadd.f32 %v15648_v31, %v15644_v7  ;;  %v15817_v35 = vpop.f32.mrf.mxu0 }
 0x73f   : > { %v10491_v4 = vpop.f32.mrf.mxu1 }
 0x740   : > { %v10492_v24 = vadd.f32 %v10491_v4, %v10490_v21  ;;  %v10529_v4 = vadd.f32 %v15655_v11, %v15653_v37  ;;  %v10532_v37 = vadd.f32 %v15662_v26, %v15660_v59 }
 0x741   : > { %v10493_v49 = vpop.f32.mrf.mxu1 }
 0x742   : > { %v15804_v33 = vadd.f32 %v10492_v24, %v15620_v39  ;;  %v15825_v24 = vpop.f32.mrf.mxu0 }
 0x743   : > { %v10494_v52 = vpop.f32.mrf.mxu1 }
 0x744   : > { %16446 = vst [vmem:[#allocation4_spill] sm:$0xff] %v15804_v33  ;;  %v10495_v17 = vadd.f32 %v10494_v52, %v10493_v49  ;;  %v7420_v49 = vadd.f32 %v10526_v27, %v15631_v38  ;;  %v15830_v7 = vpop.f32.mrf.mxu0  ;;  %v10541_v27 = vadd.f32 %v15683_v45, %v15681_v54  ;;  %v10550_v45 = vadd.f32 %v15704_v43, %v15702_v14 }
 0x745   : > { %v15808_v41 = vpop.f32.mrf.mxu1 }
 0x746   : > { %v15811_v63 = vadd.f32 %v10495_v17, %v15624_v34  ;;  %v7439_v54 = vadd.f32 %v10541_v27, %v15665_v12  ;;  %v10553_v12 = vadd.f32 %v15711_v1, %v15709_v61  ;;  %v10562_v61 = vadd.f32 %v15732_v30, %v15730_v16 }
 0x747   : > { %v15813_v58 = vpop.f32.mrf.mxu1 }
 0x748   : > { %16447 = vst [vmem:[#allocation34_spill] sm:$0xff] %v15811_v63  ;;  %v10538_v63 = vadd.f32 %v15676_v0, %v15674_v22 }
 0x749   : > { %v15819_v21 = vpop.f32.mrf.mxu1 }
 0x74a   : > { %16448 = vst [vmem:[#allocation36_spill] sm:$0xff] %v15819_v21 }
 0x74b   : > { %v15821_v39 = vpop.f32.mrf.mxu1 }
 0x74c   : > { %16449 = vst [vmem:[#allocation19_spill] sm:$0xff] %v15821_v39  ;;  %v7423_v39 = vadd.f32 %v10529_v4, %v15637_v42  ;;  %v10535_v42 = vadd.f32 %v15669_v18, %v15667_v10  ;;  %v10544_v18 = vadd.f32 %v15690_v8, %v15688_v25 }
 0x74d   : > { %v10800_v34 = vpop.f32.mrf.mxu1 }
 0x74e   : > { %v7581_v52 = vadd.f32 %v10800_v34, %v7420_v49  ;;  %v15838_v34 = vpop.f32.mrf.mxu0  ;;  %v7431_v10 = vadd.f32 %v10535_v42, %v15651_v9  ;;  %v10547_v9 = vadd.f32 %v15697_v2, %v15695_v32  ;;  %v10556_v2 = vadd.f32 %v15718_v6, %v15716_v29 }
 0x74f   : > { %v7572_v17 = vpop.f32.mrf.mxu1 }
 0x750   : > { %v8716_v31 = vmul.f32 -1.442695, %v7581_v52  ;;  %v7573_v33 = vadd.f32 %v7572_v17, %v15639_v20  ;;  %v7436_v20 = vadd.f32 %v10538_v63, %v15658_v60 }
 0x751   : > { %v10801_v21 = vpop.f32.mrf.mxu1 }
 0x752   : > { %11129 = vpow2.f32 %v8716_v31  ;;  %v8714_v11 = vmul.f32 -1.442695, %v7573_v33  ;;  %v7584_v38 = vadd.f32 %v10801_v21, %v7423_v39  ;;  %v7428_v33 = vadd.f32 %v10532_v37, %v15642_v57  ;;  %v15848_v39 = vpop.f32.mrf.mxu0 }
 0x753   : > { %v7575_v49 = vpop.f32.mrf.mxu1  ;;  %v7452_v37 = vadd.f32 %v10550_v45, %v15686_v5 }
 0x754   : > { %11131 = vpow2.f32 %v8714_v11  ;;  %v8717_v22 = vmul.f32 -1.442695, %v7584_v38  ;;  %v7576_v0 = vadd.f32 %v7575_v49, %v15646_v46  ;;  %v15855_v31 = vpop.f32.mrf.mxu0  ;;  %v7444_v38 = vadd.f32 %v10544_v18, %v15672_v48  ;;  %v16453_v18 = vld [vmem:[#allocation20_spill] sm:$0xff] }
 0x755   : > { %v10804_v4 = vpop.f32.mrf.mxu1  ;;  %v7455_v49 = vadd.f32 %v10553_v12, %v15693_v23  ;;  %v7447_v48 = vadd.f32 %v10547_v9, %v15679_v15  ;;  %v10565_v23 = vadd.f32 %v15739_v53, %v15737_v36  ;;  %v16451_v15 = vld [vmem:[#allocation37_spill] sm:$0xff] }
 0x756   : > { %11133 = vpow2.f32 %v8717_v22  ;;  %v8715_v59 = vmul.f32 -1.442695, %v7576_v0  ;;  %v7597_v26 = vadd.f32 %v10804_v4, %v7436_v20  ;;  %v15864_v22 = vpop.f32.mrf.mxu0 }
 0x757   : > { %v7588_v21 = vpop.f32.mrf.mxu1 }
 0x758   : > { %11135 = vpow2.f32 %v8715_v59  ;;  %v8720_v46 = vmul.f32 -1.442695, %v7597_v26  ;;  %v7589_v60 = vadd.f32 %v7588_v21, %v7428_v33  ;;  %v16450_v33 = vld [vmem:[#allocation25_spill] sm:$0xff] }
 0x759   : > { %v10805_v63 = vpop.f32.mrf.mxu1  ;;  %v7468_v21 = vadd.f32 %v10562_v61, %v16450_v33  ;;  %v16460_v33 = vld [vmem:[#allocation22_spill] sm:$0xff] }
 0x75a   : > { %11137 = vpow2.f32 %v8720_v46  ;;  %v8718_v52 = vmul.f32 -1.442695, %v7589_v60  ;;  %v7600_v57 = vadd.f32 %v10805_v63, %v7439_v54  ;;  %v15872_v54 = vpop.f32.mrf.mxu0  ;;  %v16452_v60 = vld [vmem:[#allocation29_spill] sm:$0xff] }
 0x75b   : > { %v7591_v17 = vpop.f32.mrf.mxu1  ;;  %v10559_v63 = vadd.f32 %v16452_v60, %v16451_v15 }
 0x75c   : > { %11139 = vpow2.f32 %v8718_v52  ;;  %v8721_v14 = vmul.f32 -1.442695, %v7600_v57  ;;  %v7592_v43 = vadd.f32 %v7591_v17, %v7431_v10  ;;  %v7460_v52 = vadd.f32 %v10556_v2, %v16453_v18  ;;  %v15880_v9 = vpop.f32.mrf.mxu0 }
 0x75d   : > { %v10808_v11 = vpop.f32.mrf.mxu1  ;;  %v10574_v17 = vadd.f32 %v15760_v19, %v15758_v56 }
 0x75e   : > { %11141 = vpow2.f32 %v8721_v14  ;;  %v8719_v25 = vmul.f32 -1.442695, %v7592_v43  ;;  %v7613_v8 = vadd.f32 %v10808_v11, %v7452_v37  ;;  %v16454_v43 = vld [vmem:[#allocation24_spill] sm:$0xff] }
 0x75f   : > { %v11130_v27 = vpop.eup %11129  ;;  %v7604_v1 = vpop.f32.mrf.mxu1  ;;  %v7471_v37 = vadd.f32 %v10565_v23, %v16454_v43 }
 0x760   : > { %v7797_v0 = vadd.f32 1.0, %v11130_v27  ;;  %11143 = vpow2.f32 %v8719_v25  ;;  %v8724_v5 = vmul.f32 -1.442695, %v7613_v8  ;;  %v7605_v20 = vadd.f32 %v7604_v1, %v7444_v38  ;;  %v16455_v27 = vld [vmem:[#allocation32_spill] sm:$0xff] }
 0x761   : > { %v11132_v32 = vpop.eup %11131  ;;  %v10809_v42 = vpop.f32.mrf.mxu1  ;;  %v10568_v61 = vadd.f32 %v15746_v50, %v16455_v27 }
 0x762   : > { %11145 = vrcp.f32 %v7797_v0  ;;  %v7795_v4 = vadd.f32 1.0, %v11132_v32  ;;  %v8722_v59 = vmul.f32 -1.442695, %v7605_v20  ;;  %v7616_v30 = vadd.f32 %v10809_v42, %v7455_v49  ;;  %v16456_v49 = vld [vmem:[#allocation26_spill] sm:$0xff] }
 0x763   : > { %v11134_v16 = vpop.eup %11133  ;;  %11147 = vpow2.f32 %v8724_v5  ;;  %v7607_v26 = vpop.f32.mrf.mxu1  ;;  %v7463_v0 = vadd.f32 %v10559_v63, %v16456_v49  ;;  %v16457_v32 = vld [vmem:[#allocation30_spill] sm:$0xff] }
 0x764   : > { %11149 = vrcp.f32 %v7795_v4  ;;  %v7798_v45 = vadd.f32 1.0, %v11134_v16  ;;  %v8725_v29 = vmul.f32 -1.442695, %v7616_v30  ;;  %v7608_v6 = vadd.f32 %v7607_v26, %v7447_v48  ;;  %v16458_v48 = vld [vmem:[#allocation13_spill] sm:$0xff]  ;;  %v16459_v26 = vld [vmem:[#allocation27_spill] sm:$0xff] }
 0x765   : > { %v11136_v46 = vpop.eup %11135  ;;  %11151 = vpow2.f32 %v8722_v59  ;;  %v10812_v10 = vpop.f32.mrf.mxu1  ;;  %v10577_v2 = vadd.f32 %v15767_v3, %v16457_v32  ;;  %v7484_v4 = vadd.f32 %v10574_v17, %v16458_v48  ;;  %v10571_v3 = vadd.f32 %v16460_v33, %v16459_v26 }
 0x766   : > { %11153 = vrcp.f32 %v7798_v45  ;;  %v7796_v53 = vadd.f32 1.0, %v11136_v46  ;;  %v8723_v36 = vmul.f32 -1.442695, %v7608_v6  ;;  %v7629_v57 = vadd.f32 %v10812_v10, %v7468_v21  ;;  %v15888_v59 = vpop.f32.mrf.mxu0  ;;  %v16461_v45 = vld [vmem:[#allocation10_spill] sm:$0xff]  ;;  %v16462_v10 = vld [vmem:[#allocation31_spill] sm:$0xff] }
 0x767   : > { %v11138_v12 = vpop.eup %11137  ;;  %11155 = vpow2.f32 %v8725_v29  ;;  %v7620_v14 = vpop.f32.mrf.mxu1  ;;  %v7476_v29 = vadd.f32 %v10568_v61, %v16461_v45  ;;  %v7487_v18 = vadd.f32 %v10577_v2, %v16462_v10  ;;  %v10589_v61 = vadd.f32 %v15801_v13, %v15796_v62  ;;  %v16466_v2 = vld [vmem:[#allocation6_spill] sm:$0xff] }
 0x768   : > { %11157 = vrcp.f32 %v7796_v53  ;;  %v7801_v11 = vadd.f32 1.0, %v11138_v12  ;;  %v8728_v25 = vmul.f32 -1.442695, %v7629_v57  ;;  %v7621_v8 = vadd.f32 %v7620_v14, %v7460_v52 }
 0x769   : > { %v11140_v38 = vpop.eup %11139  ;;  %11159 = vpow2.f32 %v8723_v36  ;;  %v10813_v1 = vpop.f32.mrf.mxu1  ;;  %v10586_v53 = vadd.f32 %v15791_v55, %v15786_v44  ;;  %v10592_v10 = vadd.f32 %v15817_v35, %v15806_v51 }
 0x76a   : > { %11161 = vrcp.f32 %v7801_v11  ;;  %v7799_v19 = vadd.f32 1.0, %v11140_v38  ;;  %v8726_v56 = vmul.f32 -1.442695, %v7621_v8  ;;  %v7632_v5 = vadd.f32 %v10813_v1, %v7471_v37  ;;  %v15903_v36 = vpop.f32.mrf.mxu0  ;;  %v16463_v37 = vld [vmem:[#allocation11_spill] sm:$0xff]  ;;  %v16464_v8 = vld [vmem:[#allocation16_spill] sm:$0xff] }
 0x76b   : > { %v11142_v20 = vpop.eup %11141  ;;  %11163 = vpow2.f32 %v8728_v25  ;;  %v7623_v42 = vpop.f32.mrf.mxu1  ;;  %v7479_v11 = vadd.f32 %v10571_v3, %v16463_v37  ;;  %v10580_v38 = vadd.f32 %v16464_v8, %v15772_v47  ;;  %v16465_v47 = vld [vmem:[#allocation3_spill] sm:$0xff] }
 0x76c   : > { %11165 = vrcp.f32 %v7799_v19  ;;  %v7802_v50 = vadd.f32 1.0, %v11142_v20  ;;  %v8729_v30 = vmul.f32 -1.442695, %v7632_v5  ;;  %v7624_v16 = vadd.f32 %v7623_v42, %v7463_v0  ;;  %v15912_v19 = vpop.f32.mrf.mxu0  ;;  %v16467_v42 = vld [vmem:[#allocation17_spill] sm:$0xff] }
 0x76d   : > { %v11144_v23 = vpop.eup %11143  ;;  %11167 = vpow2.f32 %v8726_v56  ;;  %v10816_v21 = vpop.f32.mrf.mxu1  ;;  %v7500_v20 = vadd.f32 %v10586_v53, %v16465_v47  ;;  %v10583_v48 = vadd.f32 %v16467_v42, %v16466_v2  ;;  %v16470_v53 = vld [vmem:[#allocation28_spill] sm:$0xff] }
 0x76e   : > { %11169 = vrcp.f32 %v7802_v50  ;;  %v7800_v6 = vadd.f32 1.0, %v11144_v23  ;;  %v8727_v46 = vmul.f32 -1.442695, %v7624_v16  ;;  %v7645_v15 = vadd.f32 %v10816_v21, %v7484_v4  ;;  %v16468_v16 = vld [vmem:[#allocation23_spill] sm:$0xff]  ;;  %v16469_v21 = vld [vmem:[#allocation14_spill] sm:$0xff] }
 0x76f   : > { %v11146_v60 = vpop.eup %11145  ;;  %11171 = vpow2.f32 %v8729_v30  ;;  %v7636_v63 = vpop.f32.mrf.mxu1  ;;  %v7492_v23 = vadd.f32 %v10580_v38, %v16468_v16  ;;  %v7503_v45 = vadd.f32 %v10589_v61, %v16469_v21  ;;  %v10498_v38 = vadd.f32 %v15813_v58, %v15808_v41 }
 0x770   : > { %v11148_v52 = vpop.eup %11147  ;;  %7893 = vst [vmem:[%s15895_s29 + $0x10] sm:$0xff] %v11146_v60  ;;  %11173 = vrcp.f32 %v7800_v6  ;;  %v8732_v57 = vmul.f32 -1.442695, %v7645_v15  ;;  %v7637_v12 = vadd.f32 %v7636_v63, %v7476_v29  ;;  %v10598_v6 = vadd.f32 %v15848_v39, %v15838_v34 }
 0x771   : > { %v11150_v17 = vpop.eup %11149  ;;  %v7805_v14 = vadd.f32 1.0, %v11148_v52  ;;  %11175 = vpow2.f32 %v8727_v46  ;;  %v10817_v43 = vpop.f32.mrf.mxu1 }
 0x772   : > { %v11152_v25 = vpop.eup %11151  ;;  %7891 = vst [vmem:[%s15895_s29] sm:$0xff] %v11150_v17  ;;  %11177 = vpow2.f32 %v8732_v57  ;;  %v8730_v44 = vmul.f32 -1.442695, %v7637_v12  ;;  %v7648_v55 = vadd.f32 %v10817_v43, %v7487_v18  ;;  %v10609_v46 = vpop.f32.mrf.mxu0  ;;  %v7495_v57 = vadd.f32 %v10583_v48, %v16470_v53 }
 0x773   : > { %v11154_v27 = vpop.eup %11153  ;;  %11179 = vrcp.f32 %v7805_v14  ;;  %v7803_v1 = vadd.f32 1.0, %v11152_v25  ;;  %v7639_v49 = vpop.f32.mrf.mxu1  ;;  %v10595_v17 = vadd.f32 %v15830_v7, %v15825_v24  ;;  %v10601_v43 = vadd.f32 %v15864_v22, %v15855_v31  ;;  %v16471_v31 = vld [vmem:[#allocation15_spill] sm:$0xff] }
 0x774   : > { %v11156_v0 = vpop.eup %11155  ;;  %7894 = vst [vmem:[%s15895_s29 + $0x18] sm:$0xff] %v11154_v27  ;;  %11181 = vpow2.f32 %v8730_v44  ;;  %v8733_v56 = vmul.f32 -1.442695, %v7648_v55  ;;  %v7640_v5 = vadd.f32 %v7639_v49, %v7479_v11  ;;  %v10611_v11 = vpop.f32.mrf.mxu0  ;;  %v7516_v24 = vadd.f32 %v10598_v6, %v15794_v40  ;;  %v16472_v49 = vld [vmem:[#allocation18_spill] sm:$0xff] }
 0x775   : > { %v11158_v32 = vpop.eup %11157  ;;  %11183 = vrcp.f32 %v7803_v1  ;;  %v7806_v4 = vadd.f32 1.0, %v11156_v0  ;;  %v10820_v62 = vpop.f32.mrf.mxu1  ;;  %v7508_v22 = vadd.f32 %v10592_v10, %v16471_v31  ;;  %v7511_v0 = vadd.f32 %v10595_v17, %v16472_v49 }
 0x776   : > { %v11160_v13 = vpop.eup %11159  ;;  %7892 = vst [vmem:[%s15895_s29 + $0x8] sm:$0xff] %v11158_v32  ;;  %11185 = vpow2.f32 %v8733_v56  ;;  %v8731_v50 = vmul.f32 -1.442695, %v7640_v5  ;;  %v7661_v30 = vadd.f32 %v10820_v62, %v7500_v20  ;;  %v10610_v40 = vadd.f32 %v10609_v46, %v15912_v19  ;;  %v10612_v20 = vpop.f32.mrf.mxu0  ;;  %v16475_v19 = vld [vmem:[#allocation19_spill] sm:$0xff] }
 0x777   : > { %v11162_v26 = vpop.eup %11161  ;;  %11187 = vrcp.f32 %v7806_v4  ;;  %v7804_v33 = vadd.f32 1.0, %v11160_v13  ;;  %v7652_v3 = vpop.f32.mrf.mxu1  ;;  %v7519_v41 = vadd.f32 %v10601_v43, %v15799_v28  ;;  %v16473_v4 = vld [vmem:[#allocation8_spill] sm:$0xff]  ;;  %v10604_v13 = vadd.f32 %v15880_v9, %v15872_v54 }
 0x778   : > { %v11164_v29 = vpop.eup %11163  ;;  %7897 = vst [vmem:[%s15895_s29 + $0x30] sm:$0xff] %v11162_v26  ;;  %11189 = vpow2.f32 %v8731_v50  ;;  %v8736_v15 = vmul.f32 -1.442695, %v7661_v30  ;;  %v7653_v60 = vadd.f32 %v7652_v3, %v7492_v23  ;;  %v7371_v62 = vadd.f32 %v10498_v38, %v16473_v4  ;;  %v16474_v50 = vld [vmem:[#allocation36_spill] sm:$0xff] }
 0x779   : > { %v11166_v63 = vpop.eup %11165  ;;  %11191 = vrcp.f32 %v7804_v33  ;;  %v7809_v18 = vadd.f32 1.0, %v11164_v29  ;;  %v10821_v52 = vpop.f32.mrf.mxu1  ;;  %v10501_v30 = vadd.f32 %v16475_v19, %v16474_v50  ;;  %v10613_v21 = vadd.f32 %v10612_v20, %v10611_v11 }
 0x77a   : > { %v11168_v12 = vpop.eup %11167  ;;  %7895 = vst [vmem:[%s15895_s29 + $0x20] sm:$0xff] %v11166_v63  ;;  %11193 = vpow2.f32 %v8736_v15  ;;  %v8734_v34 = vmul.f32 -1.442695, %v7653_v60  ;;  %v7664_v39 = vadd.f32 %v10821_v52, %v7503_v45  ;;  %v7532_v29 = vadd.f32 %v10610_v40, %v7371_v62  ;;  %v16476_v60 = vld [vmem:[#allocation7_spill] sm:$0xff]  ;;  %v16477_v52 = vld [vmem:[#allocation4_spill] sm:$0xff] }
 0x77b   : > { %v11170_v14 = vpop.eup %11169  ;;  %11195 = vrcp.f32 %v7809_v18  ;;  %v7807_v51 = vadd.f32 1.0, %v11168_v12  ;;  %v7655_v35 = vpop.f32.mrf.mxu1  ;;  %v7374_v63 = vadd.f32 %v10501_v30, %v16476_v60  ;;  %v10607_v10 = vadd.f32 %v15903_v36, %v15888_v59 }
 0x77c   : > { %v11172_v37 = vpop.eup %11171  ;;  %7898 = vst [vmem:[%s15895_s29 + $0x38] sm:$0xff] %v11170_v14  ;;  %11197 = vpow2.f32 %v8734_v34  ;;  %v8737_v25 = vmul.f32 -1.442695, %v7664_v39  ;;  %v7656_v8 = vadd.f32 %v7655_v35, %v7495_v57  ;;  %v7524_v53 = vadd.f32 %v10604_v13, %v16477_v52 }
 0x77d   : > { %v11174_v7 = vpop.eup %11173  ;;  %11199 = vrcp.f32 %v7807_v51  ;;  %v7810_v44 = vadd.f32 1.0, %v11172_v37  ;;  %v10824_v55 = vpop.f32.mrf.mxu1  ;;  %v7535_v43 = vadd.f32 %v10613_v21, %v7374_v63 }
 0x77e   : > { %v11176_v27 = vpop.eup %11175  ;;  %7896 = vst [vmem:[%s15895_s29 + $0x28] sm:$0xff] %v11174_v7  ;;  %11201 = vpow2.f32 %v8737_v25  ;;  %v8735_v61 = vmul.f32 -1.442695, %v7656_v8  ;;  %v7677_v1 = vadd.f32 %v10824_v55, %v7516_v24  ;;  %v16478_v25 = vld [vmem:[#allocation34_spill] sm:$0xff] }
 0x77f   : > { %v11178_v56 = vpop.eup %11177  ;;  %11203 = vrcp.f32 %v7810_v44  ;;  %v7808_v5 = vadd.f32 1.0, %v11176_v27  ;;  %v7668_v47 = vpop.f32.mrf.mxu1  ;;  %v7527_v8 = vadd.f32 %v10607_v10, %v16478_v25 }
 0x780   : > { %v11180_v58 = vpop.eup %11179  ;;  %v7813_v32 = vadd.f32 1.0, %v11178_v56  ;;  %11205 = vpow2.f32 %v8735_v61  ;;  %v8740_v2 = vmul.f32 -1.442695, %v7677_v1  ;;  %v7669_v42 = vadd.f32 %v7668_v47, %v7508_v22 }
 0x781   : > { %v11182_v48 = vpop.eup %11181  ;;  %7901 = vst [vmem:[%s15895_s29 + $0x50] sm:$0xff] %v11180_v58  ;;  %11207 = vrcp.f32 %v7808_v5  ;;  %v10825_v16 = vpop.f32.mrf.mxu1 }
 0x782   : > { %v11184_v28 = vpop.eup %11183  ;;  %11209 = vrcp.f32 %v7813_v32  ;;  %v7811_v23 = vadd.f32 1.0, %v11182_v48  ;;  %v8738_v26 = vmul.f32 -1.442695, %v7669_v42  ;;  %v7680_v33 = vadd.f32 %v10825_v16, %v7519_v41 }
 0x783   : > { %v11186_v3 = vpop.eup %11185  ;;  %7899 = vst [vmem:[%s15895_s29 + $0x40] sm:$0xff] %v11184_v28  ;;  %11211 = vpow2.f32 %v8740_v2  ;;  %v7671_v45 = vpop.f32.mrf.mxu1 }
 0x784   : > { %v11188_v6 = vpop.eup %11187  ;;  %11213 = vrcp.f32 %v7811_v23  ;;  %v7814_v54 = vadd.f32 1.0, %v11186_v3  ;;  %v8741_v9 = vmul.f32 -1.442695, %v7680_v33  ;;  %v7672_v46 = vadd.f32 %v7671_v45, %v7511_v0 }
 0x785   : > { %v11190_v15 = vpop.eup %11189  ;;  %7902 = vst [vmem:[%s15895_s29 + $0x58] sm:$0xff] %v11188_v6  ;;  %11215 = vpow2.f32 %v8738_v26  ;;  %v10828_v18 = vpop.f32.mrf.mxu1 }
 0x786   : > { %v11192_v57 = vpop.eup %11191  ;;  %11217 = vrcp.f32 %v7814_v54  ;;  %v7812_v12 = vadd.f32 1.0, %v11190_v15  ;;  %v8739_v17 = vmul.f32 -1.442695, %v7672_v46  ;;  %v7693_v34 = vadd.f32 %v10828_v18, %v7532_v29 }
 0x787   : > { %v11194_v39 = vpop.eup %11193  ;;  %7900 = vst [vmem:[%s15895_s29 + $0x48] sm:$0xff] %v11192_v57  ;;  %11219 = vpow2.f32 %v8741_v9  ;;  %v7684_v14 = vpop.f32.mrf.mxu1 }
 0x788   : > { %v11196_v51 = vpop.eup %11195  ;;  %11221 = vrcp.f32 %v7812_v12  ;;  %v7817_v59 = vadd.f32 1.0, %v11194_v39  ;;  %v8744_v36 = vmul.f32 -1.442695, %v7693_v34  ;;  %v7685_v35 = vadd.f32 %v7684_v14, %v7524_v53 }
 0x789   : > { %v11198_v37 = vpop.eup %11197  ;;  %7905 = vst [vmem:[%s15895_s29 + $0x70] sm:$0xff] %v11196_v51  ;;  %11223 = vpow2.f32 %v8739_v17  ;;  %v10829_v11 = vpop.f32.mrf.mxu1 }
 0x78a   : > { %v11200_v24 = vpop.eup %11199  ;;  %11225 = vrcp.f32 %v7817_v59  ;;  %v7815_v7 = vadd.f32 1.0, %v11198_v37  ;;  %v8742_v38 = vmul.f32 -1.442695, %v7685_v35  ;;  %v7696_v44 = vadd.f32 %v10829_v11, %v7535_v43 }
 0x78b   : > { %v11202_v55 = vpop.eup %11201  ;;  %7903 = vst [vmem:[%s15895_s29 + $0x60] sm:$0xff] %v11200_v24  ;;  %11227 = vpow2.f32 %v8744_v36  ;;  %v7687_v31 = vpop.f32.mrf.mxu1 }
 0x78c   : > { %v11204_v22 = vpop.eup %11203  ;;  %11229 = vrcp.f32 %v7815_v7  ;;  %v7818_v27 = vadd.f32 1.0, %v11202_v55  ;;  %v8745_v61 = vmul.f32 -1.442695, %v7696_v44  ;;  %v7688_v1 = vadd.f32 %v7687_v31, %v7527_v8 }
 0x78d   : > { %v11206_v49 = vpop.eup %11205  ;;  %7906 = vst [vmem:[%s15895_s29 + $0x78] sm:$0xff] %v11204_v22  ;;  %11231 = vpow2.f32 %v8742_v38 }
 0x78e   : > { %v11208_v0 = vpop.eup %11207  ;;  %11233 = vrcp.f32 %v7818_v27  ;;  %v7816_v56 = vadd.f32 1.0, %v11206_v49  ;;  %v8743_v40 = vmul.f32 -1.442695, %v7688_v1 }
 0x78f   : > { %v11210_v5 = vpop.eup %11209  ;;  %7904 = vst [vmem:[%s15895_s29 + $0x68] sm:$0xff] %v11208_v0  ;;  %11235 = vpow2.f32 %v8745_v61 }
 0x790   : > { %v11212_v47 = vpop.eup %11211  ;;  %7909 = vst [vmem:[%s15895_s29 + $0x90] sm:$0xff] %v11210_v5  ;;  %11237 = vrcp.f32 %v7816_v56 }
 0x791   : > { %v11214_v41 = vpop.eup %11213  ;;  %v7821_v58 = vadd.f32 1.0, %v11212_v47  ;;  %11239 = vpow2.f32 %v8743_v40 }
 0x792   : > { %v11216_v20 = vpop.eup %11215  ;;  %7907 = vst [vmem:[%s15895_s29 + $0x80] sm:$0xff] %v11214_v41 }
 0x793   : > { %v11218_v32 = vpop.eup %11217  ;;  %11241 = vrcp.f32 %v7821_v58  ;;  %v7819_v2 = vadd.f32 1.0, %v11216_v20 }
 0x794   : > { %v11220_v42 = vpop.eup %11219  ;;  %7910 = vst [vmem:[%s15895_s29 + $0x98] sm:$0xff] %v11218_v32 }
 0x795   : > { %v11222_v48 = vpop.eup %11221  ;;  %11243 = vrcp.f32 %v7819_v2  ;;  %v7822_v4 = vadd.f32 1.0, %v11220_v42 }
 0x796   : > { %v11224_v62 = vpop.eup %11223  ;;  %7908 = vst [vmem:[%s15895_s29 + $0x88] sm:$0xff] %v11222_v48 }
 0x797   : > { %v11226_v13 = vpop.eup %11225  ;;  %11245 = vrcp.f32 %v7822_v4  ;;  %v7820_v50 = vadd.f32 1.0, %v11224_v62 }
 0x798   : > { %v11228_v19 = vpop.eup %11227  ;;  %7913 = vst [vmem:[%s15895_s29 + $0xb0] sm:$0xff] %v11226_v13 }
 0x799   : > { %v11230_v30 = vpop.eup %11229  ;;  %11247 = vrcp.f32 %v7820_v50  ;;  %v7825_v16 = vadd.f32 1.0, %v11228_v19 }
 0x79a   : > { %v11232_v28 = vpop.eup %11231  ;;  %7911 = vst [vmem:[%s15895_s29 + $0xa0] sm:$0xff] %v11230_v30 }
 0x79b   : > { %v11234_v23 = vpop.eup %11233  ;;  %11249 = vrcp.f32 %v7825_v16  ;;  %v7823_v26 = vadd.f32 1.0, %v11232_v28 }
 0x79c   : > { %v11236_v33 = vpop.eup %11235  ;;  %7914 = vst [vmem:[%s15895_s29 + $0xb8] sm:$0xff] %v11234_v23 }
 0x79d   : > { %v11238_v3 = vpop.eup %11237  ;;  %11251 = vrcp.f32 %v7823_v26  ;;  %v7826_v21 = vadd.f32 1.0, %v11236_v33 }
 0x79e   : > { %v11240_v45 = vpop.eup %11239  ;;  %7912 = vst [vmem:[%s15895_s29 + $0xa8] sm:$0xff] %v11238_v3 }
 0x79f   : > { %11253 = vrcp.f32 %v7826_v21  ;;  %v7824_v29 = vadd.f32 1.0, %v11240_v45 }
 0x7a0   : > { %v11242_v6 = vpop.eup %11241 }
 0x7a1   : > { %7917 = vst [vmem:[%s15895_s29 + $0xd0] sm:$0xff] %v11242_v6  ;;  %11255 = vrcp.f32 %v7824_v29 }
 0x7a2   : > { %v11244_v54 = vpop.eup %11243 }
 0x7a3   : > { %7915 = vst [vmem:[%s15895_s29 + $0xc0] sm:$0xff] %v11244_v54 }
 0x7a4   : > { %v11246_v9 = vpop.eup %11245 }
 0x7a5   : > { %7918 = vst [vmem:[%s15895_s29 + $0xd8] sm:$0xff] %v11246_v9 }
 0x7a6   : > { %v11248_v46 = vpop.eup %11247 }
 0x7a7   : > { %7916 = vst [vmem:[%s15895_s29 + $0xc8] sm:$0xff] %v11248_v46 }
 0x7a8   : > { %v11250_v15 = vpop.eup %11249 }
 0x7a9   : > { %7921 = vst [vmem:[%s15895_s29 + $0xf0] sm:$0xff] %v11250_v15 }
 0x7aa   : > { %v11252_v60 = vpop.eup %11251 }
 0x7ab   : > { %7919 = vst [vmem:[%s15895_s29 + $0xe0] sm:$0xff] %v11252_v60 }
 0x7ac   : > { %v11254_v63 = vpop.eup %11253 }
 0x7ad   : > { %7922 = vst [vmem:[%s15895_s29 + $0xf8] sm:$0xff] %v11254_v63 }
 0x7ae   : > { %v11256_v10 = vpop.eup %11255 }
 0x7af   : > { %7920 = vst [vmem:[%s15895_s29 + $0xe8] sm:$0xff] %v11256_v10 }
 0x7b0 PF: > { %s13_s12 = sadd.s32 1, %s11263_s12  }
 0x7b1   : > { %p10_p4 = scmp.ge.s32.totalorder %s13_s12, 4  }
 0x7b3   :  { %12 = sbr.rel (!%p10_p4) target bundleno = 1 (0x1), region = 68 }

</bundles_post_ra>
